<compile_context>
chip_gen: v7x
topology: tpu7x:2x2x1
jax: 0.10.0
libtpu: 0.0.40
codegen_flags: <defaults>
</compile_context>

<pallas_src>
import functools

import jax
import jax.numpy as jnp
from jax.experimental import pallas as pl
from jax.experimental.pallas import tpu as pltpu


# ----------------------------------------------------------------------------
# Shared in-kernel helper: 3-tap conv along H + folded BN + ReLU
# ----------------------------------------------------------------------------
def _conv3_bn_relu(x, wtap, scale, bias, sp, sn):
    """x: (NH, cin) f32; wtap(k) -> (cin, cout) bf16 for tap k (h-1, h, h+1).

    sp/sn: (NH, NH) bf16 0/1 shift matrices (sp@x -> x[h-1], sn@x -> x[h+1],
    zero rows at segment boundaries), so the halo shift is an exact K=NH
    matmul on the MXU instead of a misaligned VMEM relayout per tap.
    """
    f32 = jnp.float32
    bf16 = jnp.bfloat16
    xc = x.astype(bf16)
    xm = jnp.dot(sp, xc, preferred_element_type=f32).astype(bf16)   # x[h-1]
    xp = jnp.dot(sn, xc, preferred_element_type=f32).astype(bf16)   # x[h+1]
    acc = jnp.dot(xm, wtap(0), preferred_element_type=f32)
    acc = acc + jnp.dot(xc, wtap(1), preferred_element_type=f32)
    acc = acc + jnp.dot(xp, wtap(2), preferred_element_type=f32)
    return jnp.maximum(acc * scale + bias, 0.0)


# ----------------------------------------------------------------------------
# Kernel 1 (stem): conv1 + conv2 + conv3, all weights resident, unrolled.
# ----------------------------------------------------------------------------
def _stem_kernel(*refs):
    # refs = [x3, shifts, (w, sb) x 7, x_out, l1_out]
    x3_ref, sh_ref = refs[0], refs[1]
    ws = refs[2:16]
    x_out_ref, l1_out_ref = refs[16], refs[17]
    bf16 = jnp.bfloat16
    f32 = jnp.float32

    sp = sh_ref[0].astype(bf16)
    sn = sh_ref[1].astype(bf16)

    def sb_rows(sref):
        v = sref[...]
        return v[0:1, :], v[1:2, :]

    # conv1 layer 0 (1 -> 64): cin == 1, the three H taps were im2col'd into a
    # 3-channel input by the wrapper, so this is one (NH,3)@(3,64) matmul.
    s, b = sb_rows(ws[1])
    a = jnp.dot(x3_ref[...].astype(bf16), ws[0][...], preferred_element_type=f32)
    a = jnp.maximum(a * s + b, 0.0)

    # conv1 layer 1, conv2 layers 0-1 (64 -> 64 -> 128 -> 128) -> x.
    for i in (1, 2, 3):
        wref, sref = ws[2 * i], ws[2 * i + 1]
        s, b = sb_rows(sref)
        a = _conv3_bn_relu(a, lambda k, wref=wref: wref[k], s, b, sp, sn)
    x_out_ref[...] = a

    # conv3 layers 0-2 (128 -> 256 -> 256 -> 256) -> l1.
    for i in (4, 5, 6):
        wref, sref = ws[2 * i], ws[2 * i + 1]
        s, b = sb_rows(sref)
        a = _conv3_bn_relu(a, lambda k, wref=wref: wref[k], s, b, sp, sn)
    l1_out_ref[...] = a


def _full_spec(a):
    nd = a.ndim
    return pl.BlockSpec(a.shape, lambda *args, nd=nd: (0,) * nd)


def stem_call(x3, shifts, pk, N, H):
    NH = N * H
    ins = [x3, shifts]
    for w, sb in zip(pk['stem_w'], pk['stem_sb']):
        ins.extend([w, sb])
    return pl.pallas_call(
        _stem_kernel,
        out_shape=(jax.ShapeDtypeStruct((NH, 128), jnp.float32),
                   jax.ShapeDtypeStruct((NH, 256), jnp.float32)),
        grid=(1,),
        in_specs=[_full_spec(a) for a in ins],
        out_specs=(pl.BlockSpec((NH, 128), lambda i: (0, 0)),
                   pl.BlockSpec((NH, 256), lambda i: (0, 0))),
        compiler_params=pltpu.CompilerParams(
            dimension_semantics=("arbitrary",)),
    )(*ins)


# ----------------------------------------------------------------------------
# Kernel 2 (branches): conv4 / conv5 / conv6 as grid axis 0 ("parallel"),
# layers streamed along grid axis 1 ("arbitrary"); the output block doubles
# as the resident inter-layer activation buffer.
# ----------------------------------------------------------------------------
def _branch_kernel(x_ref, sh_ref, w0_ref, w12_ref, sb_ref, o_ref):
    b = pl.program_id(0)
    l = pl.program_id(1)
    bf16 = jnp.bfloat16

    sp = sh_ref[0].astype(bf16)
    sn = sh_ref[1].astype(bf16)
    sb = sb_ref[...]                       # (1, 1, 2, 512)
    scale = sb[0, 0, 0:1, :]
    bias = sb[0, 0, 1:2, :]

    @pl.when(l == 0)                       # widening layer, true cin = 128
    def _():
        y = _conv3_bn_relu(x_ref[...], lambda k: w0_ref[0, k],
                           scale, bias, sp, sn)
        o_ref[0] = y

    # Branch 2 (conv6) only has two layers; its l == 2 step is a no-op.
    run_rest = jnp.logical_and(l > 0, jnp.logical_or(b != 2, l != 2))

    @pl.when(run_rest)                     # 512 -> 512 layers
    def _():
        y = _conv3_bn_relu(o_ref[0], lambda k: w12_ref[0, 0, k],
                           scale, bias, sp, sn)
        o_ref[0] = y


def _w12_index_map(b, l):
    # Branch 2 has a single 512x512 layer: map its l==2 step back to the
    # already-resident block so no extra weight DMA is issued.
    return (b, jnp.where(b == 2, 0, jnp.maximum(l - 1, 0)), 0, 0, 0)


def branch_call(x128, shifts, pk, N, H):
    NH = N * H
    return pl.pallas_call(
        _branch_kernel,
        out_shape=jax.ShapeDtypeStruct((3, NH, 512), jnp.float32),
        grid=(3, 3),
        in_specs=[
            pl.BlockSpec((NH, 128), lambda b, l: (0, 0)),
            pl.BlockSpec((4, NH, NH), lambda b, l: (0, 0, 0)),
            pl.BlockSpec((1, 3, 128, 512), lambda b, l: (b, 0, 0, 0)),
            pl.BlockSpec((1, 1, 3, 512, 512), _w12_index_map),
            pl.BlockSpec((1, 1, 2, 512), lambda b, l: (b, l, 0, 0)),
        ],
        out_specs=pl.BlockSpec((1, NH, 512), lambda b, l: (b, 0, 0)),
        compiler_params=pltpu.CompilerParams(
            dimension_semantics=("parallel", "arbitrary")),
    )(x128, shifts, pk['bw0'], pk['bw12'], pk['bsb'])


# ----------------------------------------------------------------------------
# Kernel 3 (tail): dense + projector + 3x spatial attention + final conv +
# conv7/8/9 + (max over H -> Linear -> ReLU) head.
# ----------------------------------------------------------------------------
def _tail_kernel(l1_ref, bo_ref, sh_ref, dw_ref, db_ref, pw_ref, wattn_ref,
                 wfin_ref, w789_ref, sb6_ref, wlin_ref, bias2_ref,
                 o_ref, xcat_ref, *, H):
    f32 = jnp.float32
    bf16 = jnp.bfloat16
    NH = l1_ref.shape[0]
    N = NH // H

    l2 = bo_ref[0]                         # conv4 output  (NH, 512)
    l3 = bo_ref[1]                         # conv5 output
    x6 = bo_ref[2]                         # conv6 output

    # dense: 1x1 conv 512 -> 512 with bias (no BN / ReLU).
    g = jnp.dot(x6.astype(bf16), dw_ref[...],
                preferred_element_type=f32) + db_ref[...]
    # projector: 1x1 conv 256 -> 512, no bias.
    l1p = jnp.dot(l1_ref[...].astype(bf16), pw_ref[...],
                  preferred_element_type=f32)

    def attend(lmat, wrow):
        # score on VPU/XLU: per-position dot with the 1x1 attention weight,
        # softmax over H (exact division), reweight l.
        c = jnp.sum((lmat + g) * wrow[None, :], axis=1, keepdims=True)  # (NH,1)
        c3 = c.reshape(N, H, 1)
        m = jnp.max(c3, axis=1, keepdims=True)
        e = jnp.exp(c3 - m)
        a = (e / jnp.sum(e, axis=1, keepdims=True)).reshape(NH, 1)
        return a, a * lmat

    a1, f1 = attend(l1p, wattn_ref[0, :])
    a2, f2 = attend(l2, wattn_ref[1, :])
    a3, f3 = attend(l3, wattn_ref[2, :])

    # final_layer: 3-tap conv over H on concat(f1,f2,f3) (1536 ch) -> 1 ch,
    # computed chunk-wise so the 1536-wide concat is never materialized.
    T = (jnp.dot(f1.astype(bf16), wfin_ref[0], preferred_element_type=f32)
         + jnp.dot(f2.astype(bf16), wfin_ref[1], preferred_element_type=f32)
         + jnp.dot(f3.astype(bf16), wfin_ref[2],
                   preferred_element_type=f32))                          # (NH,3)
    sm1 = sh_ref[0]                        # -> value at h-1
    sp1 = sh_ref[1]                        # -> value at h+1
    t_m1 = jnp.dot(sm1, T, preferred_element_type=f32)
    t_p1 = jnp.dot(sp1, T, preferred_element_type=f32)
    b2 = bias2_ref[...]
    xf = jnp.maximum(t_m1[:, 0:1] + T[:, 1:2] + t_p1[:, 2:3] + b2[1:2, 0:1],
                     0.0)                                                # (NH,1)

    # xcat = [relu(final), a1, a2, a3]   (NH, 4)
    xcat_ref[:, 0:1] = xf
    xcat_ref[:, 1:2] = a1
    xcat_ref[:, 2:3] = a2
    xcat_ref[:, 3:4] = a3
    xcat = xcat_ref[...]

    # conv7 (k=1) / conv8 (k=3) / conv9 (k=5), all 4 -> 2 channels, packed as
    # one (5, 4, 6) weight so the three heads share the shifted operands.
    w789 = w789_ref[...]
    acc = jnp.dot(xcat, w789[2], preferred_element_type=f32)
    acc = acc + jnp.dot(jnp.dot(sm1, xcat, preferred_element_type=f32),
                        w789[1], preferred_element_type=f32)
    acc = acc + jnp.dot(jnp.dot(sp1, xcat, preferred_element_type=f32),
                        w789[3], preferred_element_type=f32)
    acc = acc + jnp.dot(jnp.dot(sh_ref[2], xcat, preferred_element_type=f32),
                        w789[0], preferred_element_type=f32)
    acc = acc + jnp.dot(jnp.dot(sh_ref[3], xcat, preferred_element_type=f32),
                        w789[4], preferred_element_type=f32)
    y6 = jnp.maximum(acc * sb6_ref[0:1, :] + sb6_ref[1:2, :], 0.0)       # (NH,6)

    # max over H, then Linear(6 -> 8) + ReLU.
    m6 = jnp.max(y6.reshape(N, H, 6), axis=1)                            # (N,6)
    out = jnp.dot(m6, wlin_ref[...], preferred_element_type=f32) + b2[0:1, :]
    o_ref[...] = jnp.maximum(out, 0.0)                                   # (N,8)


def tail_call(l1, branch_out, shifts, pk, N, H):
    NH = N * H
    args = (l1, branch_out, shifts, pk['dense_w'], pk['dense_b'], pk['proj_w'],
            pk['wattn'], pk['wfinal'], pk['w789'], pk['sb6'], pk['wlin'],
            pk['bias2'])
    return pl.pallas_call(
        functools.partial(_tail_kernel, H=H),
        out_shape=jax.ShapeDtypeStruct((N, 8), jnp.float32),
        grid=(1,),
        in_specs=[_full_spec(a) for a in args],
        out_specs=pl.BlockSpec((N, 8), lambda i: (0, 0)),
        scratch_shapes=[pltpu.VMEM((NH, 4), jnp.float32)],
        compiler_params=pltpu.CompilerParams(
            dimension_semantics=("arbitrary",)),
    )(*args)


# ----------------------------------------------------------------------------
# Parameters (deterministic, synthetic) + packing into kernel-ready layouts
# ----------------------------------------------------------------------------
def init_params(key):
    ks = iter(jax.random.split(key, 128))

    def nk():
        return next(ks)

    def he_w(cin, cout, ksz):
        std = (2.0 / (ksz * cin)) ** 0.5
        return std * jax.random.normal(nk(), (ksz, cin, cout), jnp.float32)

    def conv_bn(cin, cout, ksz=3):
        # Conv2d(bias=False) followed by eval-mode BatchNorm2d, folded.
        w = he_w(cin, cout, ksz)
        gamma = 1.0 + 0.1 * jax.random.normal(nk(), (cout,), jnp.float32)
        beta = 0.1 * jax.random.normal(nk(), (cout,), jnp.float32)
        rmean = 0.1 * jax.random.normal(nk(), (cout,), jnp.float32)
        rvar = 0.8 + 0.4 * jax.random.uniform(nk(), (cout,), jnp.float32)
        scale = gamma / jnp.sqrt(rvar + 1e-5)
        bias = beta - rmean * scale
        return (w, scale, bias)

    p = {}
    p['conv1'] = [conv_bn(1, 64), conv_bn(64, 64)]
    p['conv2'] = [conv_bn(64, 128), conv_bn(128, 128)]
    p['conv3'] = [conv_bn(128, 256), conv_bn(256, 256), conv_bn(256, 256)]
    p['conv4'] = [conv_bn(128, 512), conv_bn(512, 512), conv_bn(512, 512)]
    p['conv5'] = [conv_bn(128, 512), conv_bn(512, 512), conv_bn(512, 512)]
    p['conv6'] = [conv_bn(128, 512), conv_bn(512, 512)]
    p['dense_w'] = he_w(512, 512, 1)           # Conv2d(512,512,1,bias=True)
    p['dense_b'] = 0.01 * jax.random.normal(nk(), (512,), jnp.float32)
    p['proj_w'] = he_w(256, 512, 1)            # ProjectorBlock (no bias)
    p['attn1_w'] = 0.05 * jax.random.normal(nk(), (512, 1), jnp.float32)
    p['attn2_w'] = 0.05 * jax.random.normal(nk(), (512, 1), jnp.float32)
    p['attn3_w'] = 0.05 * jax.random.normal(nk(), (512, 1), jnp.float32)
    p['final_w'] = he_w(1536, 1, 3)            # Conv2d(1536,1,3,pad=1,bias=True)
    p['final_b'] = 0.01 * jax.random.normal(nk(), (1,), jnp.float32)
    p['conv7'] = conv_bn(4, 2, 1)
    p['conv8'] = conv_bn(4, 2, 3)
    p['conv9'] = conv_bn(4, 2, 5)
    p['lin_w'] = 0.01 * jax.random.normal(nk(), (6, 8), jnp.float32)
    p['lin_b'] = 0.01 * jax.random.normal(nk(), (8,), jnp.float32)
    return p


def prepare_params(p):
    """One-time packing into kernel-ready layouts (true channel widths, bf16)."""
    bf16 = jnp.bfloat16
    pk = {}

    # --- stem: conv1 (2 layers) + conv2 (2) + conv3 (3), no channel padding.
    stem_layers = p['conv1'] + p['conv2'] + p['conv3']
    stem_w, stem_sb = [], []
    for idx, (w, s, b) in enumerate(stem_layers):
        wb = w.astype(bf16)
        if idx == 0:
            wb = wb.reshape(3, 64)             # (3,1,64) -> (3,64): cin==1
        stem_w.append(wb)
        stem_sb.append(jnp.stack([s, b]))      # (2, cout)
    pk['stem_w'] = stem_w
    pk['stem_sb'] = stem_sb

    # --- branches: conv4 / conv5 / conv6.
    c4, c5, c6 = p['conv4'], p['conv5'], p['conv6']
    pk['bw0'] = jnp.stack([c4[0][0], c5[0][0], c6[0][0]]).astype(bf16)  # (3,3,128,512)
    zw = jnp.zeros((3, 512, 512), jnp.float32)
    pk['bw12'] = jnp.stack([
        jnp.stack([c4[1][0], c4[2][0]]),
        jnp.stack([c5[1][0], c5[2][0]]),
        jnp.stack([c6[1][0], zw]),             # conv6 has no third layer
    ]).astype(bf16)                            # (3,2,3,512,512)

    def sb_of(layer):
        _, s, b = layer
        return jnp.stack([s, b])

    zsb = jnp.zeros((2, 512), jnp.float32)
    pk['bsb'] = jnp.stack([
        jnp.stack([sb_of(c4[0]), sb_of(c4[1]), sb_of(c4[2])]),
        jnp.stack([sb_of(c5[0]), sb_of(c5[1]), sb_of(c5[2])]),
        jnp.stack([sb_of(c6[0]), sb_of(c6[1]), zsb]),
    ])                                         # (3,3,2,512)

    # --- tail.
    pk['dense_w'] = p['dense_w'][0].astype(bf16)          # (512,512)
    pk['dense_b'] = p['dense_b'].reshape(1, 512)
    pk['proj_w'] = p['proj_w'][0].astype(bf16)            # (256,512)
    pk['wattn'] = jnp.stack([p['attn1_w'][:, 0],
                             p['attn2_w'][:, 0],
                             p['attn3_w'][:, 0]])         # (3,512)
    wf = jnp.transpose(p['final_w'][:, :, 0], (1, 0))     # (1536,3) [ci, tap]
    pk['wfinal'] = wf.reshape(3, 512, 3).astype(bf16)     # per-512 chunk
    w7, s7, b7 = p['conv7']
    w8, s8, b8 = p['conv8']
    w9, s9, b9 = p['conv9']
    W = jnp.zeros((5, 4, 6), jnp.float32)                 # [shift j (d=j-2), cin, cout6]
    W = W.at[2, :, 0:2].set(w7[0])
    for k in range(3):
        W = W.at[k + 1, :, 2:4].set(w8[k])
    for k in range(5):
        W = W.at[k, :, 4:6].set(w9[k])
    pk['w789'] = W
    pk['sb6'] = jnp.stack([jnp.concatenate([s7, s8, s9]),
                           jnp.concatenate([b7, b8, b9])])  # (2,6)
    pk['wlin'] = p['lin_w']                                # (6,8)
    bias2 = jnp.zeros((2, 8), jnp.float32)
    bias2 = bias2.at[0, :].set(p['lin_b'])
    bias2 = bias2.at[1, 0].set(p['final_b'][0])
    pk['bias2'] = bias2
    return pk


def _shift_matrices(N, H):
    """(4, NH, NH) 0/1 matrices: S_d @ v -> v at h+d (zero outside [0, H))."""
    NH = N * H
    i = jnp.arange(NH)
    h = i % H
    cols = jnp.arange(NH)[None, :]

    def smat(d):
        valid = jnp.logical_and(h + d >= 0, h + d <= H - 1)
        tgt = jnp.clip(i + d, 0, NH - 1)
        return jnp.logical_and(cols == tgt[:, None],
                               valid[:, None]).astype(jnp.float32)

    return jnp.stack([smat(-1), smat(1), smat(-2), smat(2)])


# ----------------------------------------------------------------------------
# Forward pass (3 pallas_calls total)
# ----------------------------------------------------------------------------
def attn_vgg_forward(x_nchw, pk):
    N, C, H, W = x_nchw.shape
    assert C == 1 and W == 1, "AttnVGG head requires a (N, 1, H, 1) input"
    NH = N * H

    # im2col of the 1-channel input for the first 3-tap conv: (NH, 3).
    x = x_nchw.reshape(N, H)
    xpad = jnp.pad(x, ((0, 0), (1, 1)))
    x3 = jnp.stack([xpad[:, 0:H], xpad[:, 1:H + 1], xpad[:, 2:H + 2]],
                   axis=-1).reshape(NH, 3)
    shifts = _shift_matrices(N, H)

    x128, l1 = stem_call(x3, shifts, pk, N, H)        # (NH,128), (NH,256)
    bo = branch_call(x128, shifts, pk, N, H)          # (3, NH, 512): l2,l3,conv6
    return tail_call(l1, bo, shifts, pk, N, H)        # (N, 8)


if __name__ == "__main__":
    key = jax.random.PRNGKey(0)
    pkey, xkey = jax.random.split(key)
    params = init_params(pkey)
    packed = prepare_params(params)

    N, H = 2, 16
    x = jax.random.normal(xkey, (N, 1, H, 1), jnp.float32)   # NCHW, W == 1

    fwd = jax.jit(attn_vgg_forward)
    out = jax.block_until_ready(fwd(x, packed))

    assert out.shape == (N, 8), out.shape
    assert bool(jnp.all(jnp.isfinite(out)))
    print("KERNEL_OK")
</pallas_src>

<mosaic_0001>
module attributes {stable_mosaic.version = 11 : i64} {
  func.func @_branch_kernel(%arg0: i32, %arg1: i32, %arg2: memref<32x128xf32, #tpu.memory_space<vmem>>, %arg3: memref<4x32x32xf32, #tpu.memory_space<vmem>>, %arg4: memref<1x3x128x512xbf16, #tpu.memory_space<vmem>>, %arg5: memref<1x1x3x512x512xbf16, #tpu.memory_space<vmem>>, %arg6: memref<1x1x2x512xf32, #tpu.memory_space<vmem>>, %arg7: memref<1x32x512xf32, #tpu.memory_space<vmem>>) attributes {dimension_semantics = [#tpu.dimension_semantics<parallel>, #tpu.dimension_semantics<arbitrary>], iteration_bounds = array<i64: 3, 3>, scalar_prefetch = 0 : i64, scratch_operands = 0 : i64, tpu.core_type = #tpu.core_type<tc>, window_params = [{pipeline_mode = #tpu.pipeline_mode<synchronous>, transform_indices = @transform_0, window_bounds = array<i64: 32, 128>}, {pipeline_mode = #tpu.pipeline_mode<synchronous>, transform_indices = @transform_1, window_bounds = array<i64: 4, 32, 32>}, {transform_indices = @transform_2, window_bounds = array<i64: 1, 3, 128, 512>}, {transform_indices = @transform_3, window_bounds = array<i64: 1, 1, 3, 512, 512>}, {transform_indices = @transform_4, window_bounds = array<i64: 1, 1, 2, 512>}, {transform_indices = @transform_5, window_bounds = array<i64: 1, 32, 512>}]} {
    %c0 = arith.constant 0 : index
    %c0_0 = arith.constant 0 : index
    %c0_1 = arith.constant 0 : index
    %0 = vector.load %arg3[%c0, %c0_0, %c0_1] : memref<4x32x32xf32, #tpu.memory_space<vmem>>, vector<1x32x32xf32>
    %1 = vector.shape_cast %0 : vector<1x32x32xf32> to vector<32x32xf32>
    %2 = arith.truncf %1 : vector<32x32xf32> to vector<32x32xbf16>
    %c1 = arith.constant 1 : index
    %c0_2 = arith.constant 0 : index
    %c0_3 = arith.constant 0 : index
    %3 = vector.load %arg3[%c1, %c0_2, %c0_3] : memref<4x32x32xf32, #tpu.memory_space<vmem>>, vector<1x32x32xf32>
    %4 = vector.shape_cast %3 : vector<1x32x32xf32> to vector<32x32xf32>
    %5 = arith.truncf %4 : vector<32x32xf32> to vector<32x32xbf16>
    %c0_4 = arith.constant 0 : index
    %c0_5 = arith.constant 0 : index
    %c0_6 = arith.constant 0 : index
    %c0_7 = arith.constant 0 : index
    %6 = vector.load %arg6[%c0_4, %c0_5, %c0_6, %c0_7] : memref<1x1x2x512xf32, #tpu.memory_space<vmem>>, vector<1x1x2x512xf32>
    %7 = vector.extract_strided_slice %6 {offsets = [0, 0, 0, 0], sizes = [1, 1, 1, 512], strides = [1, 1, 1, 1]} : vector<1x1x2x512xf32> to vector<1x1x1x512xf32>
    %8 = vector.shape_cast %7 : vector<1x1x1x512xf32> to vector<1x512xf32>
    %9 = vector.extract_strided_slice %6 {offsets = [0, 0, 1, 0], sizes = [1, 1, 1, 512], strides = [1, 1, 1, 1]} : vector<1x1x2x512xf32> to vector<1x1x1x512xf32>
    %10 = vector.shape_cast %9 : vector<1x1x1x512xf32> to vector<1x512xf32>
    %c0_i32 = arith.constant 0 : i32
    %11 = arith.cmpi eq, %arg1, %c0_i32 : i32
    %12 = arith.extui %11 : i1 to i32
    %c0_i32_8 = arith.constant 0 : i32
    %13 = arith.cmpi ne, %12, %c0_i32_8 : i32
    scf.if %13 {
      %c0_12 = arith.constant 0 : index
      %c0_13 = arith.constant 0 : index
      %21 = vector.load %arg2[%c0_12, %c0_13] : memref<32x128xf32, #tpu.memory_space<vmem>>, vector<32x128xf32>
      %22 = arith.truncf %21 : vector<32x128xf32> to vector<32x128xbf16>
      %cst = arith.constant dense<0.000000e+00> : vector<32x128xf32>
      %23 = tpu.matmul %2, %22, %cst {dimension_numbers = #tpu.dot_dimension_numbers<[1], [0], [0], [1], [0, 0, 1, 1], [], []>} : vector<32x32xbf16>, vector<32x128xbf16>, vector<32x128xf32> -> vector<32x128xf32>
      %24 = arith.truncf %23 : vector<32x128xf32> to vector<32x128xbf16>
      %cst_14 = arith.constant dense<0.000000e+00> : vector<32x128xf32>
      %25 = tpu.matmul %5, %22, %cst_14 {dimension_numbers = #tpu.dot_dimension_numbers<[1], [0], [0], [1], [0, 0, 1, 1], [], []>} : vector<32x32xbf16>, vector<32x128xbf16>, vector<32x128xf32> -> vector<32x128xf32>
      %26 = arith.truncf %25 : vector<32x128xf32> to vector<32x128xbf16>
      %c0_15 = arith.constant 0 : index
      %c0_16 = arith.constant 0 : index
      %c0_17 = arith.constant 0 : index
      %c0_18 = arith.constant 0 : index
      %27 = vector.load %arg4[%c0_15, %c0_16, %c0_17, %c0_18] : memref<1x3x128x512xbf16, #tpu.memory_space<vmem>>, vector<1x1x128x512xbf16>
      %28 = vector.shape_cast %27 : vector<1x1x128x512xbf16> to vector<128x512xbf16>
      %cst_19 = arith.constant dense<0.000000e+00> : vector<32x512xf32>
      %29 = tpu.matmul %24, %28, %cst_19 {dimension_numbers = #tpu.dot_dimension_numbers<[1], [0], [0], [1], [0, 0, 1, 1], [], []>} : vector<32x128xbf16>, vector<128x512xbf16>, vector<32x512xf32> -> vector<32x512xf32>
      %c0_20 = arith.constant 0 : index
      %c1_21 = arith.constant 1 : index
      %c0_22 = arith.constant 0 : index
      %c0_23 = arith.constant 0 : index
      %30 = vector.load %arg4[%c0_20, %c1_21, %c0_22, %c0_23] : memref<1x3x128x512xbf16, #tpu.memory_space<vmem>>, vector<1x1x128x512xbf16>
      %31 = vector.shape_cast %30 : vector<1x1x128x512xbf16> to vector<128x512xbf16>
      %cst_24 = arith.constant dense<0.000000e+00> : vector<32x512xf32>
      %32 = tpu.matmul %22, %31, %cst_24 {dimension_numbers = #tpu.dot_dimension_numbers<[1], [0], [0], [1], [0, 0, 1, 1], [], []>} : vector<32x128xbf16>, vector<128x512xbf16>, vector<32x512xf32> -> vector<32x512xf32>
      %33 = arith.addf %29, %32 : vector<32x512xf32>
      %c0_25 = arith.constant 0 : index
      %c2 = arith.constant 2 : index
      %c0_26 = arith.constant 0 : index
      %c0_27 = arith.constant 0 : index
      %34 = vector.load %arg4[%c0_25, %c2, %c0_26, %c0_27] : memref<1x3x128x512xbf16, #tpu.memory_space<vmem>>, vector<1x1x128x512xbf16>
      %35 = vector.shape_cast %34 : vector<1x1x128x512xbf16> to vector<128x512xbf16>
      %cst_28 = arith.constant dense<0.000000e+00> : vector<32x512xf32>
      %36 = tpu.matmul %26, %35, %cst_28 {dimension_numbers = #tpu.dot_dimension_numbers<[1], [0], [0], [1], [0, 0, 1, 1], [], []>} : vector<32x128xbf16>, vector<128x512xbf16>, vector<32x512xf32> -> vector<32x512xf32>
      %37 = arith.addf %33, %36 : vector<32x512xf32>
      %38 = vector.broadcast %8 : vector<1x512xf32> to vector<32x512xf32>
      %39 = arith.mulf %37, %38 : vector<32x512xf32>
      %40 = vector.broadcast %10 : vector<1x512xf32> to vector<32x512xf32>
      %41 = arith.addf %39, %40 : vector<32x512xf32>
      %cst_29 = arith.constant 0.000000e+00 : f32
      %42 = vector.broadcast %cst_29 : f32 to vector<32x512xf32>
      %43 = arith.maximumf %41, %42 : vector<32x512xf32>
      %c0_30 = arith.constant 0 : index
      %c0_31 = arith.constant 0 : index
      %c0_32 = arith.constant 0 : index
      %44 = vector.load %arg7[%c0_30, %c0_31, %c0_32] : memref<1x32x512xf32, #tpu.memory_space<vmem>>, vector<1x32x512xf32>
      %45 = vector.shape_cast %44 : vector<1x32x512xf32> to vector<32x512xf32>
      %46 = vector.shape_cast %43 : vector<32x512xf32> to vector<1x32x512xf32>
      tpu.vector_store %arg7[%c0_30, %c0_31, %c0_32], %46 {strides = array<i32>} : memref<1x32x512xf32, #tpu.memory_space<vmem>>, vector<1x32x512xf32>,
    } else {
    }
    %c0_i32_9 = arith.constant 0 : i32
    %14 = arith.cmpi sgt, %arg1, %c0_i32_9 : i32
    %c2_i32 = arith.constant 2 : i32
    %15 = arith.cmpi ne, %arg0, %c2_i32 : i32
    %c2_i32_10 = arith.constant 2 : i32
    %16 = arith.cmpi ne, %arg1, %c2_i32_10 : i32
    %17 = arith.ori %15, %16 : i1
    %18 = arith.andi %14, %17 : i1
    %19 = arith.extui %18 : i1 to i32
    %c0_i32_11 = arith.constant 0 : i32
    %20 = arith.cmpi ne, %19, %c0_i32_11 : i32
    scf.if %20 {
      %c0_12 = arith.constant 0 : index
      %c0_13 = arith.constant 0 : index
      %c0_14 = arith.constant 0 : index
      %21 = vector.load %arg7[%c0_12, %c0_13, %c0_14] : memref<1x32x512xf32, #tpu.memory_space<vmem>>, vector<1x32x512xf32>
      %22 = vector.shape_cast %21 : vector<1x32x512xf32> to vector<32x512xf32>
      %23 = arith.truncf %22 : vector<32x512xf32> to vector<32x512xbf16>
      %cst = arith.constant dense<0.000000e+00> : vector<32x512xf32>
      %24 = tpu.matmul %2, %23, %cst {dimension_numbers = #tpu.dot_dimension_numbers<[1], [0], [0], [1], [0, 0, 1, 1], [], []>} : vector<32x32xbf16>, vector<32x512xbf16>, vector<32x512xf32> -> vector<32x512xf32>
      %25 = arith.truncf %24 : vector<32x512xf32> to vector<32x512xbf16>
      %cst_15 = arith.constant dense<0.000000e+00> : vector<32x512xf32>
      %26 = tpu.matmul %5, %23, %cst_15 {dimension_numbers = #tpu.dot_dimension_numbers<[1], [0], [0], [1], [0, 0, 1, 1], [], []>} : vector<32x32xbf16>, vector<32x512xbf16>, vector<32x512xf32> -> vector<32x512xf32>
      %27 = arith.truncf %26 : vector<32x512xf32> to vector<32x512xbf16>
      %c0_16 = arith.constant 0 : index
      %c0_17 = arith.constant 0 : index
      %c0_18 = arith.constant 0 : index
      %c0_19 = arith.constant 0 : index
      %c0_20 = arith.constant 0 : index
      %28 = vector.load %arg5[%c0_16, %c0_17, %c0_18, %c0_19, %c0_20] : memref<1x1x3x512x512xbf16, #tpu.memory_space<vmem>>, vector<1x1x1x512x512xbf16>
      %29 = vector.shape_cast %28 : vector<1x1x1x512x512xbf16> to vector<512x512xbf16>
      %cst_21 = arith.constant dense<0.000000e+00> : vector<32x512xf32>
      %30 = tpu.matmul %25, %29, %cst_21 {dimension_numbers = #tpu.dot_dimension_numbers<[1], [0], [0], [1], [0, 0, 1, 1], [], []>} : vector<32x512xbf16>, vector<512x512xbf16>, vector<32x512xf32> -> vector<32x512xf32>
      %c0_22 = arith.constant 0 : index
      %c0_23 = arith.constant 0 : index
      %c1_24 = arith.constant 1 : index
      %c0_25 = arith.constant 0 : index
      %c0_26 = arith.constant 0 : index
      %31 = vector.load %arg5[%c0_22, %c0_23, %c1_24, %c0_25, %c0_26] : memref<1x1x3x512x512xbf16, #tpu.memory_space<vmem>>, vector<1x1x1x512x512xbf16>
      %32 = vector.shape_cast %31 : vector<1x1x1x512x512xbf16> to vector<512x512xbf16>
      %cst_27 = arith.constant dense<0.000000e+00> : vector<32x512xf32>
      %33 = tpu.matmul %23, %32, %cst_27 {dimension_numbers = #tpu.dot_dimension_numbers<[1], [0], [0], [1], [0, 0, 1, 1], [], []>} : vector<32x512xbf16>, vector<512x512xbf16>, vector<32x512xf32> -> vector<32x512xf32>
      %34 = arith.addf %30, %33 : vector<32x512xf32>
      %c0_28 = arith.constant 0 : index
      %c0_29 = arith.constant 0 : index
      %c2 = arith.constant 2 : index
      %c0_30 = arith.constant 0 : index
      %c0_31 = arith.constant 0 : index
      %35 = vector.load %arg5[%c0_28, %c0_29, %c2, %c0_30, %c0_31] : memref<1x1x3x512x512xbf16, #tpu.memory_space<vmem>>, vector<1x1x1x512x512xbf16>
      %36 = vector.shape_cast %35 : vector<1x1x1x512x512xbf16> to vector<512x512xbf16>
      %cst_32 = arith.constant dense<0.000000e+00> : vector<32x512xf32>
      %37 = tpu.matmul %27, %36, %cst_32 {dimension_numbers = #tpu.dot_dimension_numbers<[1], [0], [0], [1], [0, 0, 1, 1], [], []>} : vector<32x512xbf16>, vector<512x512xbf16>, vector<32x512xf32> -> vector<32x512xf32>
      %38 = arith.addf %34, %37 : vector<32x512xf32>
      %39 = vector.broadcast %8 : vector<1x512xf32> to vector<32x512xf32>
      %40 = arith.mulf %38, %39 : vector<32x512xf32>
      %41 = vector.broadcast %10 : vector<1x512xf32> to vector<32x512xf32>
      %42 = arith.addf %40, %41 : vector<32x512xf32>
      %cst_33 = arith.constant 0.000000e+00 : f32
      %43 = vector.broadcast %cst_33 : f32 to vector<32x512xf32>
      %44 = arith.maximumf %42, %43 : vector<32x512xf32>
      %c0_34 = arith.constant 0 : index
      %c0_35 = arith.constant 0 : index
      %c0_36 = arith.constant 0 : index
      %45 = vector.load %arg7[%c0_34, %c0_35, %c0_36] : memref<1x32x512xf32, #tpu.memory_space<vmem>>, vector<1x32x512xf32>
      %46 = vector.shape_cast %45 : vector<1x32x512xf32> to vector<32x512xf32>
      %47 = vector.shape_cast %44 : vector<32x512xf32> to vector<1x32x512xf32>
      tpu.vector_store %arg7[%c0_34, %c0_35, %c0_36], %47 {strides = array<i32>} : memref<1x32x512xf32, #tpu.memory_space<vmem>>, vector<1x32x512xf32>,
    } else {
    }
    return
  }
  func.func @transform_0(%arg0: i32, %arg1: i32) -> (i32, i32) {
    %c0_i32 = arith.constant 0 : i32
    %c0_i32_0 = arith.constant 0 : i32
    %c0_i32_1 = arith.constant 0 : i32
    return %c0_i32, %c0_i32_0 : i32, i32
  }
  func.func @transform_1(%arg0: i32, %arg1: i32) -> (i32, i32, i32) {
    %c0_i32 = arith.constant 0 : i32
    %c0_i32_0 = arith.constant 0 : i32
    %c0_i32_1 = arith.constant 0 : i32
    %c0_i32_2 = arith.constant 0 : i32
    return %c0_i32, %c0_i32_0, %c0_i32_1 : i32, i32, i32
  }
  func.func @transform_2(%arg0: i32, %arg1: i32) -> (i32, i32, i32, i32) {
    %c0_i32 = arith.constant 0 : i32
    %c0_i32_0 = arith.constant 0 : i32
    %c0_i32_1 = arith.constant 0 : i32
    %c0_i32_2 = arith.constant 0 : i32
    return %arg0, %c0_i32, %c0_i32_0, %c0_i32_1 : i32, i32, i32, i32
  }
  func.func @transform_3(%arg0: i32, %arg1: i32) -> (i32, i32, i32, i32, i32) {
    %c2_i32 = arith.constant 2 : i32
    %0 = arith.cmpi eq, %arg0, %c2_i32 : i32
    %c1_i32 = arith.constant 1 : i32
    %1 = arith.subi %arg1, %c1_i32 : i32
    %c0_i32 = arith.constant 0 : i32
    %2 = arith.maxsi %1, %c0_i32 : i32
    %c0_i32_0 = arith.constant 0 : i32
    %3 = arith.select %0, %c0_i32_0, %2 : i32
    %c0_i32_1 = arith.constant 0 : i32
    %c0_i32_2 = arith.constant 0 : i32
    %c0_i32_3 = arith.constant 0 : i32
    %c0_i32_4 = arith.constant 0 : i32
    return %arg0, %3, %c0_i32_1, %c0_i32_2, %c0_i32_3 : i32, i32, i32, i32, i32
  }
  func.func @transform_4(%arg0: i32, %arg1: i32) -> (i32, i32, i32, i32) {
    %c0_i32 = arith.constant 0 : i32
    %c0_i32_0 = arith.constant 0 : i32
    %c0_i32_1 = arith.constant 0 : i32
    return %arg0, %arg1, %c0_i32, %c0_i32_0 : i32, i32, i32, i32
  }
  func.func @transform_5(%arg0: i32, %arg1: i32) -> (i32, i32, i32) {
    %c0_i32 = arith.constant 0 : i32
    %c0_i32_0 = arith.constant 0 : i32
    %c0_i32_1 = arith.constant 0 : i32
    return %arg0, %c0_i32, %c0_i32_0 : i32, i32, i32
  }
}

module attributes {stable_mosaic.version = 11 : i64} {
  func.func @_stem_kernel(%arg0: i32, %arg1: memref<32x3xf32, #tpu.memory_space<vmem>>, %arg2: memref<4x32x32xf32, #tpu.memory_space<vmem>>, %arg3: memref<3x64xbf16, #tpu.memory_space<vmem>>, %arg4: memref<2x64xf32, #tpu.memory_space<vmem>>, %arg5: memref<3x64x64xbf16, #tpu.memory_space<vmem>>, %arg6: memref<2x64xf32, #tpu.memory_space<vmem>>, %arg7: memref<3x64x128xbf16, #tpu.memory_space<vmem>>, %arg8: memref<2x128xf32, #tpu.memory_space<vmem>>, %arg9: memref<3x128x128xbf16, #tpu.memory_space<vmem>>, %arg10: memref<2x128xf32, #tpu.memory_space<vmem>>, %arg11: memref<3x128x256xbf16, #tpu.memory_space<vmem>>, %arg12: memref<2x256xf32, #tpu.memory_space<vmem>>, %arg13: memref<3x256x256xbf16, #tpu.memory_space<vmem>>, %arg14: memref<2x256xf32, #tpu.memory_space<vmem>>, %arg15: memref<3x256x256xbf16, #tpu.memory_space<vmem>>, %arg16: memref<2x256xf32, #tpu.memory_space<vmem>>, %arg17: memref<32x128xf32, #tpu.memory_space<vmem>>, %arg18: memref<32x256xf32, #tpu.memory_space<vmem>>) attributes {dimension_semantics = [#tpu.dimension_semantics<arbitrary>], iteration_bounds = array<i64: 1>, scalar_prefetch = 0 : i64, scratch_operands = 0 : i64, tpu.core_type = #tpu.core_type<tc>, window_params = [{pipeline_mode = #tpu.pipeline_mode<synchronous>, transform_indices = @transform_0, window_bounds = array<i64: 32, 3>}, {pipeline_mode = #tpu.pipeline_mode<synchronous>, transform_indices = @transform_1, window_bounds = array<i64: 4, 32, 32>}, {pipeline_mode = #tpu.pipeline_mode<synchronous>, transform_indices = @transform_2, window_bounds = array<i64: 3, 64>}, {pipeline_mode = #tpu.pipeline_mode<synchronous>, transform_indices = @transform_3, window_bounds = array<i64: 2, 64>}, {pipeline_mode = #tpu.pipeline_mode<synchronous>, transform_indices = @transform_4, window_bounds = array<i64: 3, 64, 64>}, {pipeline_mode = #tpu.pipeline_mode<synchronous>, transform_indices = @transform_5, window_bounds = array<i64: 2, 64>}, {pipeline_mode = #tpu.pipeline_mode<synchronous>, transform_indices = @transform_6, window_bounds = array<i64: 3, 64, 128>}, {pipeline_mode = #tpu.pipeline_mode<synchronous>, transform_indices = @transform_7, window_bounds = array<i64: 2, 128>}, {pipeline_mode = #tpu.pipeline_mode<synchronous>, transform_indices = @transform_8, window_bounds = array<i64: 3, 128, 128>}, {pipeline_mode = #tpu.pipeline_mode<synchronous>, transform_indices = @transform_9, window_bounds = array<i64: 2, 128>}, {pipeline_mode = #tpu.pipeline_mode<synchronous>, transform_indices = @transform_10, window_bounds = array<i64: 3, 128, 256>}, {pipeline_mode = #tpu.pipeline_mode<synchronous>, transform_indices = @transform_11, window_bounds = array<i64: 2, 256>}, {pipeline_mode = #tpu.pipeline_mode<synchronous>, transform_indices = @transform_12, window_bounds = array<i64: 3, 256, 256>}, {pipeline_mode = #tpu.pipeline_mode<synchronous>, transform_indices = @transform_13, window_bounds = array<i64: 2, 256>}, {pipeline_mode = #tpu.pipeline_mode<synchronous>, transform_indices = @transform_14, window_bounds = array<i64: 3, 256, 256>}, {pipeline_mode = #tpu.pipeline_mode<synchronous>, transform_indices = @transform_15, window_bounds = array<i64: 2, 256>}, {pipeline_mode = #tpu.pipeline_mode<synchronous>, transform_indices = @transform_16, window_bounds = array<i64: 32, 128>}, {pipeline_mode = #tpu.pipeline_mode<synchronous>, transform_indices = @transform_17, window_bounds = array<i64: 32, 256>}]} {
    %c0 = arith.constant 0 : index
    %c0_0 = arith.constant 0 : index
    %c0_1 = arith.constant 0 : index
    %0 = vector.load %arg2[%c0, %c0_0, %c0_1] : memref<4x32x32xf32, #tpu.memory_space<vmem>>, vector<1x32x32xf32>
    %1 = vector.shape_cast %0 : vector<1x32x32xf32> to vector<32x32xf32>
    %2 = arith.truncf %1 : vector<32x32xf32> to vector<32x32xbf16>
    %c1 = arith.constant 1 : index
    %c0_2 = arith.constant 0 : index
    %c0_3 = arith.constant 0 : index
    %3 = vector.load %arg2[%c1, %c0_2, %c0_3] : memref<4x32x32xf32, #tpu.memory_space<vmem>>, vector<1x32x32xf32>
    %4 = vector.shape_cast %3 : vector<1x32x32xf32> to vector<32x32xf32>
    %5 = arith.truncf %4 : vector<32x32xf32> to vector<32x32xbf16>
    %c0_4 = arith.constant 0 : index
    %c0_5 = arith.constant 0 : index
    %6 = vector.load %arg4[%c0_4, %c0_5] : memref<2x64xf32, #tpu.memory_space<vmem>>, vector<2x64xf32>
    %7 = vector.extract_strided_slice %6 {offsets = [0, 0], sizes = [1, 64], strides = [1, 1]} : vector<2x64xf32> to vector<1x64xf32>
    %8 = vector.extract_strided_slice %6 {offsets = [1, 0], sizes = [1, 64], strides = [1, 1]} : vector<2x64xf32> to vector<1x64xf32>
    %c0_6 = arith.constant 0 : index
    %c0_7 = arith.constant 0 : index
    %9 = vector.load %arg1[%c0_6, %c0_7] : memref<32x3xf32, #tpu.memory_space<vmem>>, vector<32x3xf32>
    %10 = arith.truncf %9 : vector<32x3xf32> to vector<32x3xbf16>
    %c0_8 = arith.constant 0 : index
    %c0_9 = arith.constant 0 : index
    %11 = vector.load %arg3[%c0_8, %c0_9] : memref<3x64xbf16, #tpu.memory_space<vmem>>, vector<3x64xbf16>
    %cst = arith.constant dense<0.000000e+00> : vector<32x64xf32>
    %12 = tpu.matmul %10, %11, %cst {dimension_numbers = #tpu.dot_dimension_numbers<[1], [0], [0], [1], [0, 0, 1, 1], [], []>} : vector<32x3xbf16>, vector<3x64xbf16>, vector<32x64xf32> -> vector<32x64xf32>
    %13 = vector.broadcast %7 : vector<1x64xf32> to vector<32x64xf32>
    %14 = arith.mulf %12, %13 : vector<32x64xf32>
    %15 = vector.broadcast %8 : vector<1x64xf32> to vector<32x64xf32>
    %16 = arith.addf %14, %15 : vector<32x64xf32>
    %cst_10 = arith.constant 0.000000e+00 : f32
    %17 = vector.broadcast %cst_10 : f32 to vector<32x64xf32>
    %18 = arith.maximumf %16, %17 : vector<32x64xf32>
    %c0_11 = arith.constant 0 : index
    %c0_12 = arith.constant 0 : index
    %19 = vector.load %arg6[%c0_11, %c0_12] : memref<2x64xf32, #tpu.memory_space<vmem>>, vector<2x64xf32>
    %20 = vector.extract_strided_slice %19 {offsets = [0, 0], sizes = [1, 64], strides = [1, 1]} : vector<2x64xf32> to vector<1x64xf32>
    %21 = vector.extract_strided_slice %19 {offsets = [1, 0], sizes = [1, 64], strides = [1, 1]} : vector<2x64xf32> to vector<1x64xf32>
    %22 = arith.truncf %18 : vector<32x64xf32> to vector<32x64xbf16>
    %cst_13 = arith.constant dense<0.000000e+00> : vector<32x64xf32>
    %23 = tpu.matmul %2, %22, %cst_13 {dimension_numbers = #tpu.dot_dimension_numbers<[1], [0], [0], [1], [0, 0, 1, 1], [], []>} : vector<32x32xbf16>, vector<32x64xbf16>, vector<32x64xf32> -> vector<32x64xf32>
    %24 = arith.truncf %23 : vector<32x64xf32> to vector<32x64xbf16>
    %cst_14 = arith.constant dense<0.000000e+00> : vector<32x64xf32>
    %25 = tpu.matmul %5, %22, %cst_14 {dimension_numbers = #tpu.dot_dimension_numbers<[1], [0], [0], [1], [0, 0, 1, 1], [], []>} : vector<32x32xbf16>, vector<32x64xbf16>, vector<32x64xf32> -> vector<32x64xf32>
    %26 = arith.truncf %25 : vector<32x64xf32> to vector<32x64xbf16>
    %c0_15 = arith.constant 0 : index
    %c0_16 = arith.constant 0 : index
    %c0_17 = arith.constant 0 : index
    %27 = vector.load %arg5[%c0_15, %c0_16, %c0_17] : memref<3x64x64xbf16, #tpu.memory_space<vmem>>, vector<1x64x64xbf16>
    %28 = vector.shape_cast %27 : vector<1x64x64xbf16> to vector<64x64xbf16>
    %cst_18 = arith.constant dense<0.000000e+00> : vector<32x64xf32>
    %29 = tpu.matmul %24, %28, %cst_18 {dimension_numbers = #tpu.dot_dimension_numbers<[1], [0], [0], [1], [0, 0, 1, 1], [], []>} : vector<32x64xbf16>, vector<64x64xbf16>, vector<32x64xf32> -> vector<32x64xf32>
    %c1_19 = arith.constant 1 : index
    %c0_20 = arith.constant 0 : index
    %c0_21 = arith.constant 0 : index
    %30 = vector.load %arg5[%c1_19, %c0_20, %c0_21] : memref<3x64x64xbf16, #tpu.memory_space<vmem>>, vector<1x64x64xbf16>
    %31 = vector.shape_cast %30 : vector<1x64x64xbf16> to vector<64x64xbf16>
    %cst_22 = arith.constant dense<0.000000e+00> : vector<32x64xf32>
    %32 = tpu.matmul %22, %31, %cst_22 {dimension_numbers = #tpu.dot_dimension_numbers<[1], [0], [0], [1], [0, 0, 1, 1], [], []>} : vector<32x64xbf16>, vector<64x64xbf16>, vector<32x64xf32> -> vector<32x64xf32>
    %33 = arith.addf %29, %32 : vector<32x64xf32>
    %c2 = arith.constant 2 : index
    %c0_23 = arith.constant 0 : index
    %c0_24 = arith.constant 0 : index
    %34 = vector.load %arg5[%c2, %c0_23, %c0_24] : memref<3x64x64xbf16, #tpu.memory_space<vmem>>, vector<1x64x64xbf16>
    %35 = vector.shape_cast %34 : vector<1x64x64xbf16> to vector<64x64xbf16>
    %cst_25 = arith.constant dense<0.000000e+00> : vector<32x64xf32>
    %36 = tpu.matmul %26, %35, %cst_25 {dimension_numbers = #tpu.dot_dimension_numbers<[1], [0], [0], [1], [0, 0, 1, 1], [], []>} : vector<32x64xbf16>, vector<64x64xbf16>, vector<32x64xf32> -> vector<32x64xf32>
    %37 = arith.addf %33, %36 : vector<32x64xf32>
    %38 = vector.broadcast %20 : vector<1x64xf32> to vector<32x64xf32>
    %39 = arith.mulf %37, %38 : vector<32x64xf32>
    %40 = vector.broadcast %21 : vector<1x64xf32> to vector<32x64xf32>
    %41 = arith.addf %39, %40 : vector<32x64xf32>
    %cst_26 = arith.constant 0.000000e+00 : f32
    %42 = vector.broadcast %cst_26 : f32 to vector<32x64xf32>
    %43 = arith.maximumf %41, %42 : vector<32x64xf32>
    %c0_27 = arith.constant 0 : index
    %c0_28 = arith.constant 0 : index
    %44 = vector.load %arg8[%c0_27, %c0_28] : memref<2x128xf32, #tpu.memory_space<vmem>>, vector<2x128xf32>
    %45 = vector.extract_strided_slice %44 {offsets = [0, 0], sizes = [1, 128], strides = [1, 1]} : vector<2x128xf32> to vector<1x128xf32>
    %46 = vector.extract_strided_slice %44 {offsets = [1, 0], sizes = [1, 128], strides = [1, 1]} : vector<2x128xf32> to vector<1x128xf32>
    %47 = arith.truncf %43 : vector<32x64xf32> to vector<32x64xbf16>
    %cst_29 = arith.constant dense<0.000000e+00> : vector<32x64xf32>
    %48 = tpu.matmul %2, %47, %cst_29 {dimension_numbers = #tpu.dot_dimension_numbers<[1], [0], [0], [1], [0, 0, 1, 1], [], []>} : vector<32x32xbf16>, vector<32x64xbf16>, vector<32x64xf32> -> vector<32x64xf32>
    %49 = arith.truncf %48 : vector<32x64xf32> to vector<32x64xbf16>
    %cst_30 = arith.constant dense<0.000000e+00> : vector<32x64xf32>
    %50 = tpu.matmul %5, %47, %cst_30 {dimension_numbers = #tpu.dot_dimension_numbers<[1], [0], [0], [1], [0, 0, 1, 1], [], []>} : vector<32x32xbf16>, vector<32x64xbf16>, vector<32x64xf32> -> vector<32x64xf32>
    %51 = arith.truncf %50 : vector<32x64xf32> to vector<32x64xbf16>
    %c0_31 = arith.constant 0 : index
    %c0_32 = arith.constant 0 : index
    %c0_33 = arith.constant 0 : index
    %52 = vector.load %arg7[%c0_31, %c0_32, %c0_33] : memref<3x64x128xbf16, #tpu.memory_space<vmem>>, vector<1x64x128xbf16>
    %53 = vector.shape_cast %52 : vector<1x64x128xbf16> to vector<64x128xbf16>
    %cst_34 = arith.constant dense<0.000000e+00> : vector<32x128xf32>
    %54 = tpu.matmul %49, %53, %cst_34 {dimension_numbers = #tpu.dot_dimension_numbers<[1], [0], [0], [1], [0, 0, 1, 1], [], []>} : vector<32x64xbf16>, vector<64x128xbf16>, vector<32x128xf32> -> vector<32x128xf32>
    %c1_35 = arith.constant 1 : index
    %c0_36 = arith.constant 0 : index
    %c0_37 = arith.constant 0 : index
    %55 = vector.load %arg7[%c1_35, %c0_36, %c0_37] : memref<3x64x128xbf16, #tpu.memory_space<vmem>>, vector<1x64x128xbf16>
    %56 = vector.shape_cast %55 : vector<1x64x128xbf16> to vector<64x128xbf16>
    %cst_38 = arith.constant dense<0.000000e+00> : vector<32x128xf32>
    %57 = tpu.matmul %47, %56, %cst_38 {dimension_numbers = #tpu.dot_dimension_numbers<[1], [0], [0], [1], [0, 0, 1, 1], [], []>} : vector<32x64xbf16>, vector<64x128xbf16>, vector<32x128xf32> -> vector<32x128xf32>
    %58 = arith.addf %54, %57 : vector<32x128xf32>
    %c2_39 = arith.constant 2 : index
    %c0_40 = arith.constant 0 : index
    %c0_41 = arith.constant 0 : index
    %59 = vector.load %arg7[%c2_39, %c0_40, %c0_41] : memref<3x64x128xbf16, #tpu.memory_space<vmem>>, vector<1x64x128xbf16>
    %60 = vector.shape_cast %59 : vector<1x64x128xbf16> to vector<64x128xbf16>
    %cst_42 = arith.constant dense<0.000000e+00> : vector<32x128xf32>
    %61 = tpu.matmul %51, %60, %cst_42 {dimension_numbers = #tpu.dot_dimension_numbers<[1], [0], [0], [1], [0, 0, 1, 1], [], []>} : vector<32x64xbf16>, vector<64x128xbf16>, vector<32x128xf32> -> vector<32x128xf32>
    %62 = arith.addf %58, %61 : vector<32x128xf32>
    %63 = vector.broadcast %45 : vector<1x128xf32> to vector<32x128xf32>
    %64 = arith.mulf %62, %63 : vector<32x128xf32>
    %65 = vector.broadcast %46 : vector<1x128xf32> to vector<32x128xf32>
    %66 = arith.addf %64, %65 : vector<32x128xf32>
    %cst_43 = arith.constant 0.000000e+00 : f32
    %67 = vector.broadcast %cst_43 : f32 to vector<32x128xf32>
    %68 = arith.maximumf %66, %67 : vector<32x128xf32>
    %c0_44 = arith.constant 0 : index
    %c0_45 = arith.constant 0 : index
    %69 = vector.load %arg10[%c0_44, %c0_45] : memref<2x128xf32, #tpu.memory_space<vmem>>, vector<2x128xf32>
    %70 = vector.extract_strided_slice %69 {offsets = [0, 0], sizes = [1, 128], strides = [1, 1]} : vector<2x128xf32> to vector<1x128xf32>
    %71 = vector.extract_strided_slice %69 {offsets = [1, 0], sizes = [1, 128], strides = [1, 1]} : vector<2x128xf32> to vector<1x128xf32>
    %72 = arith.truncf %68 : vector<32x128xf32> to vector<32x128xbf16>
    %cst_46 = arith.constant dense<0.000000e+00> : vector<32x128xf32>
    %73 = tpu.matmul %2, %72, %cst_46 {dimension_numbers = #tpu.dot_dimension_numbers<[1], [0], [0], [1], [0, 0, 1, 1], [], []>} : vector<32x32xbf16>, vector<32x128xbf16>, vector<32x128xf32> -> vector<32x128xf32>
    %74 = arith.truncf %73 : vector<32x128xf32> to vector<32x128xbf16>
    %cst_47 = arith.constant dense<0.000000e+00> : vector<32x128xf32>
    %75 = tpu.matmul %5, %72, %cst_47 {dimension_numbers = #tpu.dot_dimension_numbers<[1], [0], [0], [1], [0, 0, 1, 1], [], []>} : vector<32x32xbf16>, vector<32x128xbf16>, vector<32x128xf32> -> vector<32x128xf32>
    %76 = arith.truncf %75 : vector<32x128xf32> to vector<32x128xbf16>
    %c0_48 = arith.constant 0 : index
    %c0_49 = arith.constant 0 : index
    %c0_50 = arith.constant 0 : index
    %77 = vector.load %arg9[%c0_48, %c0_49, %c0_50] : memref<3x128x128xbf16, #tpu.memory_space<vmem>>, vector<1x128x128xbf16>
    %78 = vector.shape_cast %77 : vector<1x128x128xbf16> to vector<128x128xbf16>
    %cst_51 = arith.constant dense<0.000000e+00> : vector<32x128xf32>
    %79 = tpu.matmul %74, %78, %cst_51 {dimension_numbers = #tpu.dot_dimension_numbers<[1], [0], [0], [1], [0, 0, 1, 1], [], []>} : vector<32x128xbf16>, vector<128x128xbf16>, vector<32x128xf32> -> vector<32x128xf32>
    %c1_52 = arith.constant 1 : index
    %c0_53 = arith.constant 0 : index
    %c0_54 = arith.constant 0 : index
    %80 = vector.load %arg9[%c1_52, %c0_53, %c0_54] : memref<3x128x128xbf16, #tpu.memory_space<vmem>>, vector<1x128x128xbf16>
    %81 = vector.shape_cast %80 : vector<1x128x128xbf16> to vector<128x128xbf16>
    %cst_55 = arith.constant dense<0.000000e+00> : vector<32x128xf32>
    %82 = tpu.matmul %72, %81, %cst_55 {dimension_numbers = #tpu.dot_dimension_numbers<[1], [0], [0], [1], [0, 0, 1, 1], [], []>} : vector<32x128xbf16>, vector<128x128xbf16>, vector<32x128xf32> -> vector<32x128xf32>
    %83 = arith.addf %79, %82 : vector<32x128xf32>
    %c2_56 = arith.constant 2 : index
    %c0_57 = arith.constant 0 : index
    %c0_58 = arith.constant 0 : index
    %84 = vector.load %arg9[%c2_56, %c0_57, %c0_58] : memref<3x128x128xbf16, #tpu.memory_space<vmem>>, vector<1x128x128xbf16>
    %85 = vector.shape_cast %84 : vector<1x128x128xbf16> to vector<128x128xbf16>
    %cst_59 = arith.constant dense<0.000000e+00> : vector<32x128xf32>
    %86 = tpu.matmul %76, %85, %cst_59 {dimension_numbers = #tpu.dot_dimension_numbers<[1], [0], [0], [1], [0, 0, 1, 1], [], []>} : vector<32x128xbf16>, vector<128x128xbf16>, vector<32x128xf32> -> vector<32x128xf32>
    %87 = arith.addf %83, %86 : vector<32x128xf32>
    %88 = vector.broadcast %70 : vector<1x128xf32> to vector<32x128xf32>
    %89 = arith.mulf %87, %88 : vector<32x128xf32>
    %90 = vector.broadcast %71 : vector<1x128xf32> to vector<32x128xf32>
    %91 = arith.addf %89, %90 : vector<32x128xf32>
    %cst_60 = arith.constant 0.000000e+00 : f32
    %92 = vector.broadcast %cst_60 : f32 to vector<32x128xf32>
    %93 = arith.maximumf %91, %92 : vector<32x128xf32>
    %c0_61 = arith.constant 0 : index
    %c0_62 = arith.constant 0 : index
    %94 = vector.load %arg17[%c0_61, %c0_62] : memref<32x128xf32, #tpu.memory_space<vmem>>, vector<32x128xf32>
    tpu.vector_store %arg17[%c0_61, %c0_62], %93 {strides = array<i32>} : memref<32x128xf32, #tpu.memory_space<vmem>>, vector<32x128xf32>,
    %c0_63 = arith.constant 0 : index
    %c0_64 = arith.constant 0 : index
    %95 = vector.load %arg12[%c0_63, %c0_64] : memref<2x256xf32, #tpu.memory_space<vmem>>, vector<2x256xf32>
    %96 = vector.extract_strided_slice %95 {offsets = [0, 0], sizes = [1, 256], strides = [1, 1]} : vector<2x256xf32> to vector<1x256xf32>
    %97 = vector.extract_strided_slice %95 {offsets = [1, 0], sizes = [1, 256], strides = [1, 1]} : vector<2x256xf32> to vector<1x256xf32>
    %98 = arith.truncf %93 : vector<32x128xf32> to vector<32x128xbf16>
    %cst_65 = arith.constant dense<0.000000e+00> : vector<32x128xf32>
    %99 = tpu.matmul %2, %98, %cst_65 {dimension_numbers = #tpu.dot_dimension_numbers<[1], [0], [0], [1], [0, 0, 1, 1], [], []>} : vector<32x32xbf16>, vector<32x128xbf16>, vector<32x128xf32> -> vector<32x128xf32>
    %100 = arith.truncf %99 : vector<32x128xf32> to vector<32x128xbf16>
    %cst_66 = arith.constant dense<0.000000e+00> : vector<32x128xf32>
    %101 = tpu.matmul %5, %98, %cst_66 {dimension_numbers = #tpu.dot_dimension_numbers<[1], [0], [0], [1], [0, 0, 1, 1], [], []>} : vector<32x32xbf16>, vector<32x128xbf16>, vector<32x128xf32> -> vector<32x128xf32>
    %102 = arith.truncf %101 : vector<32x128xf32> to vector<32x128xbf16>
    %c0_67 = arith.constant 0 : index
    %c0_68 = arith.constant 0 : index
    %c0_69 = arith.constant 0 : index
    %103 = vector.load %arg11[%c0_67, %c0_68, %c0_69] : memref<3x128x256xbf16, #tpu.memory_space<vmem>>, vector<1x128x256xbf16>
    %104 = vector.shape_cast %103 : vector<1x128x256xbf16> to vector<128x256xbf16>
    %cst_70 = arith.constant dense<0.000000e+00> : vector<32x256xf32>
    %105 = tpu.matmul %100, %104, %cst_70 {dimension_numbers = #tpu.dot_dimension_numbers<[1], [0], [0], [1], [0, 0, 1, 1], [], []>} : vector<32x128xbf16>, vector<128x256xbf16>, vector<32x256xf32> -> vector<32x256xf32>
    %c1_71 = arith.constant 1 : index
    %c0_72 = arith.constant 0 : index
    %c0_73 = arith.constant 0 : index
    %106 = vector.load %arg11[%c1_71, %c0_72, %c0_73] : memref<3x128x256xbf16, #tpu.memory_space<vmem>>, vector<1x128x256xbf16>
    %107 = vector.shape_cast %106 : vector<1x128x256xbf16> to vector<128x256xbf16>
    %cst_74 = arith.constant dense<0.000000e+00> : vector<32x256xf32>
    %108 = tpu.matmul %98, %107, %cst_74 {dimension_numbers = #tpu.dot_dimension_numbers<[1], [0], [0], [1], [0, 0, 1, 1], [], []>} : vector<32x128xbf16>, vector<128x256xbf16>, vector<32x256xf32> -> vector<32x256xf32>
    %109 = arith.addf %105, %108 : vector<32x256xf32>
    %c2_75 = arith.constant 2 : index
    %c0_76 = arith.constant 0 : index
    %c0_77 = arith.constant 0 : index
    %110 = vector.load %arg11[%c2_75, %c0_76, %c0_77] : memref<3x128x256xbf16, #tpu.memory_space<vmem>>, vector<1x128x256xbf16>
    %111 = vector.shape_cast %110 : vector<1x128x256xbf16> to vector<128x256xbf16>
    %cst_78 = arith.constant dense<0.000000e+00> : vector<32x256xf32>
    %112 = tpu.matmul %102, %111, %cst_78 {dimension_numbers = #tpu.dot_dimension_numbers<[1], [0], [0], [1], [0, 0, 1, 1], [], []>} : vector<32x128xbf16>, vector<128x256xbf16>, vector<32x256xf32> -> vector<32x256xf32>
    %113 = arith.addf %109, %112 : vector<32x256xf32>
    %114 = vector.broadcast %96 : vector<1x256xf32> to vector<32x256xf32>
    %115 = arith.mulf %113, %114 : vector<32x256xf32>
    %116 = vector.broadcast %97 : vector<1x256xf32> to vector<32x256xf32>
    %117 = arith.addf %115, %116 : vector<32x256xf32>
    %cst_79 = arith.constant 0.000000e+00 : f32
    %118 = vector.broadcast %cst_79 : f32 to vector<32x256xf32>
    %119 = arith.maximumf %117, %118 : vector<32x256xf32>
    %c0_80 = arith.constant 0 : index
    %c0_81 = arith.constant 0 : index
    %120 = vector.load %arg14[%c0_80, %c0_81] : memref<2x256xf32, #tpu.memory_space<vmem>>, vector<2x256xf32>
    %121 = vector.extract_strided_slice %120 {offsets = [0, 0], sizes = [1, 256], strides = [1, 1]} : vector<2x256xf32> to vector<1x256xf32>
    %122 = vector.extract_strided_slice %120 {offsets = [1, 0], sizes = [1, 256], strides = [1, 1]} : vector<2x256xf32> to vector<1x256xf32>
    %123 = arith.truncf %119 : vector<32x256xf32> to vector<32x256xbf16>
    %cst_82 = arith.constant dense<0.000000e+00> : vector<32x256xf32>
    %124 = tpu.matmul %2, %123, %cst_82 {dimension_numbers = #tpu.dot_dimension_numbers<[1], [0], [0], [1], [0, 0, 1, 1], [], []>} : vector<32x32xbf16>, vector<32x256xbf16>, vector<32x256xf32> -> vector<32x256xf32>
    %125 = arith.truncf %124 : vector<32x256xf32> to vector<32x256xbf16>
    %cst_83 = arith.constant dense<0.000000e+00> : vector<32x256xf32>
    %126 = tpu.matmul %5, %123, %cst_83 {dimension_numbers = #tpu.dot_dimension_numbers<[1], [0], [0], [1], [0, 0, 1, 1], [], []>} : vector<32x32xbf16>, vector<32x256xbf16>, vector<32x256xf32> -> vector<32x256xf32>
    %127 = arith.truncf %126 : vector<32x256xf32> to vector<32x256xbf16>
    %c0_84 = arith.constant 0 : index
    %c0_85 = arith.constant 0 : index
    %c0_86 = arith.constant 0 : index
    %128 = vector.load %arg13[%c0_84, %c0_85, %c0_86] : memref<3x256x256xbf16, #tpu.memory_space<vmem>>, vector<1x256x256xbf16>
    %129 = vector.shape_cast %128 : vector<1x256x256xbf16> to vector<256x256xbf16>
    %cst_87 = arith.constant dense<0.000000e+00> : vector<32x256xf32>
    %130 = tpu.matmul %125, %129, %cst_87 {dimension_numbers = #tpu.dot_dimension_numbers<[1], [0], [0], [1], [0, 0, 1, 1], [], []>} : vector<32x256xbf16>, vector<256x256xbf16>, vector<32x256xf32> -> vector<32x256xf32>
    %c1_88 = arith.constant 1 : index
    %c0_89 = arith.constant 0 : index
    %c0_90 = arith.constant 0 : index
    %131 = vector.load %arg13[%c1_88, %c0_89, %c0_90] : memref<3x256x256xbf16, #tpu.memory_space<vmem>>, vector<1x256x256xbf16>
    %132 = vector.shape_cast %131 : vector<1x256x256xbf16> to vector<256x256xbf16>
    %cst_91 = arith.constant dense<0.000000e+00> : vector<32x256xf32>
    %133 = tpu.matmul %123, %132, %cst_91 {dimension_numbers = #tpu.dot_dimension_numbers<[1], [0], [0], [1], [0, 0, 1, 1], [], []>} : vector<32x256xbf16>, vector<256x256xbf16>, vector<32x256xf32> -> vector<32x256xf32>
    %134 = arith.addf %130, %133 : vector<32x256xf32>
    %c2_92 = arith.constant 2 : index
    %c0_93 = arith.constant 0 : index
    %c0_94 = arith.constant 0 : index
    %135 = vector.load %arg13[%c2_92, %c0_93, %c0_94] : memref<3x256x256xbf16, #tpu.memory_space<vmem>>, vector<1x256x256xbf16>
    %136 = vector.shape_cast %135 : vector<1x256x256xbf16> to vector<256x256xbf16>
    %cst_95 = arith.constant dense<0.000000e+00> : vector<32x256xf32>
    %137 = tpu.matmul %127, %136, %cst_95 {dimension_numbers = #tpu.dot_dimension_numbers<[1], [0], [0], [1], [0, 0, 1, 1], [], []>} : vector<32x256xbf16>, vector<256x256xbf16>, vector<32x256xf32> -> vector<32x256xf32>
    %138 = arith.addf %134, %137 : vector<32x256xf32>
    %139 = vector.broadcast %121 : vector<1x256xf32> to vector<32x256xf32>
    %140 = arith.mulf %138, %139 : vector<32x256xf32>
    %141 = vector.broadcast %122 : vector<1x256xf32> to vector<32x256xf32>
    %142 = arith.addf %140, %141 : vector<32x256xf32>
    %cst_96 = arith.constant 0.000000e+00 : f32
    %143 = vector.broadcast %cst_96 : f32 to vector<32x256xf32>
    %144 = arith.maximumf %142, %143 : vector<32x256xf32>
    %c0_97 = arith.constant 0 : index
    %c0_98 = arith.constant 0 : index
    %145 = vector.load %arg16[%c0_97, %c0_98] : memref<2x256xf32, #tpu.memory_space<vmem>>, vector<2x256xf32>
    %146 = vector.extract_strided_slice %145 {offsets = [0, 0], sizes = [1, 256], strides = [1, 1]} : vector<2x256xf32> to vector<1x256xf32>
    %147 = vector.extract_strided_slice %145 {offsets = [1, 0], sizes = [1, 256], strides = [1, 1]} : vector<2x256xf32> to vector<1x256xf32>
    %148 = arith.truncf %144 : vector<32x256xf32> to vector<32x256xbf16>
    %cst_99 = arith.constant dense<0.000000e+00> : vector<32x256xf32>
    %149 = tpu.matmul %2, %148, %cst_99 {dimension_numbers = #tpu.dot_dimension_numbers<[1], [0], [0], [1], [0, 0, 1, 1], [], []>} : vector<32x32xbf16>, vector<32x256xbf16>, vector<32x256xf32> -> vector<32x256xf32>
    %150 = arith.truncf %149 : vector<32x256xf32> to vector<32x256xbf16>
    %cst_100 = arith.constant dense<0.000000e+00> : vector<32x256xf32>
    %151 = tpu.matmul %5, %148, %cst_100 {dimension_numbers = #tpu.dot_dimension_numbers<[1], [0], [0], [1], [0, 0, 1, 1], [], []>} : vector<32x32xbf16>, vector<32x256xbf16>, vector<32x256xf32> -> vector<32x256xf32>
    %152 = arith.truncf %151 : vector<32x256xf32> to vector<32x256xbf16>
    %c0_101 = arith.constant 0 : index
    %c0_102 = arith.constant 0 : index
    %c0_103 = arith.constant 0 : index
    %153 = vector.load %arg15[%c0_101, %c0_102, %c0_103] : memref<3x256x256xbf16, #tpu.memory_space<vmem>>, vector<1x256x256xbf16>
    %154 = vector.shape_cast %153 : vector<1x256x256xbf16> to vector<256x256xbf16>
    %cst_104 = arith.constant dense<0.000000e+00> : vector<32x256xf32>
    %155 = tpu.matmul %150, %154, %cst_104 {dimension_numbers = #tpu.dot_dimension_numbers<[1], [0], [0], [1], [0, 0, 1, 1], [], []>} : vector<32x256xbf16>, vector<256x256xbf16>, vector<32x256xf32> -> vector<32x256xf32>
    %c1_105 = arith.constant 1 : index
    %c0_106 = arith.constant 0 : index
    %c0_107 = arith.constant 0 : index
    %156 = vector.load %arg15[%c1_105, %c0_106, %c0_107] : memref<3x256x256xbf16, #tpu.memory_space<vmem>>, vector<1x256x256xbf16>
    %157 = vector.shape_cast %156 : vector<1x256x256xbf16> to vector<256x256xbf16>
    %cst_108 = arith.constant dense<0.000000e+00> : vector<32x256xf32>
    %158 = tpu.matmul %148, %157, %cst_108 {dimension_numbers = #tpu.dot_dimension_numbers<[1], [0], [0], [1], [0, 0, 1, 1], [], []>} : vector<32x256xbf16>, vector<256x256xbf16>, vector<32x256xf32> -> vector<32x256xf32>
    %159 = arith.addf %155, %158 : vector<32x256xf32>
    %c2_109 = arith.constant 2 : index
    %c0_110 = arith.constant 0 : index
    %c0_111 = arith.constant 0 : index
    %160 = vector.load %arg15[%c2_109, %c0_110, %c0_111] : memref<3x256x256xbf16, #tpu.memory_space<vmem>>, vector<1x256x256xbf16>
    %161 = vector.shape_cast %160 : vector<1x256x256xbf16> to vector<256x256xbf16>
    %cst_112 = arith.constant dense<0.000000e+00> : vector<32x256xf32>
    %162 = tpu.matmul %152, %161, %cst_112 {dimension_numbers = #tpu.dot_dimension_numbers<[1], [0], [0], [1], [0, 0, 1, 1], [], []>} : vector<32x256xbf16>, vector<256x256xbf16>, vector<32x256xf32> -> vector<32x256xf32>
    %163 = arith.addf %159, %162 : vector<32x256xf32>
    %164 = vector.broadcast %146 : vector<1x256xf32> to vector<32x256xf32>
    %165 = arith.mulf %163, %164 : vector<32x256xf32>
    %166 = vector.broadcast %147 : vector<1x256xf32> to vector<32x256xf32>
    %167 = arith.addf %165, %166 : vector<32x256xf32>
    %cst_113 = arith.constant 0.000000e+00 : f32
    %168 = vector.broadcast %cst_113 : f32 to vector<32x256xf32>
    %169 = arith.maximumf %167, %168 : vector<32x256xf32>
    %c0_114 = arith.constant 0 : index
    %c0_115 = arith.constant 0 : index
    %170 = vector.load %arg18[%c0_114, %c0_115] : memref<32x256xf32, #tpu.memory_space<vmem>>, vector<32x256xf32>
    tpu.vector_store %arg18[%c0_114, %c0_115], %169 {strides = array<i32>} : memref<32x256xf32, #tpu.memory_space<vmem>>, vector<32x256xf32>,
    return
  }
  func.func @transform_0(%arg0: i32) -> (i32, i32) {
    %c0_i32 = arith.constant 0 : i32
    %c0_i32_0 = arith.constant 0 : i32
    %c0_i32_1 = arith.constant 0 : i32
    return %c0_i32, %c0_i32_0 : i32, i32
  }
  func.func @transform_1(%arg0: i32) -> (i32, i32, i32) {
    %c0_i32 = arith.constant 0 : i32
    %c0_i32_0 = arith.constant 0 : i32
    %c0_i32_1 = arith.constant 0 : i32
    %c0_i32_2 = arith.constant 0 : i32
    return %c0_i32, %c0_i32_0, %c0_i32_1 : i32, i32, i32
  }
  func.func @transform_2(%arg0: i32) -> (i32, i32) {
    %c0_i32 = arith.constant 0 : i32
    %c0_i32_0 = arith.constant 0 : i32
    %c0_i32_1 = arith.constant 0 : i32
    return %c0_i32, %c0_i32_0 : i32, i32
  }
  func.func @transform_3(%arg0: i32) -> (i32, i32) {
    %c0_i32 = arith.constant 0 : i32
    %c0_i32_0 = arith.constant 0 : i32
    %c0_i32_1 = arith.constant 0 : i32
    return %c0_i32, %c0_i32_0 : i32, i32
  }
  func.func @transform_4(%arg0: i32) -> (i32, i32, i32) {
    %c0_i32 = arith.constant 0 : i32
    %c0_i32_0 = arith.constant 0 : i32
    %c0_i32_1 = arith.constant 0 : i32
    %c0_i32_2 = arith.constant 0 : i32
    return %c0_i32, %c0_i32_0, %c0_i32_1 : i32, i32, i32
  }
  func.func @transform_5(%arg0: i32) -> (i32, i32) {
    %c0_i32 = arith.constant 0 : i32
    %c0_i32_0 = arith.constant 0 : i32
    %c0_i32_1 = arith.constant 0 : i32
    return %c0_i32, %c0_i32_0 : i32, i32
  }
  func.func @transform_6(%arg0: i32) -> (i32, i32, i32) {
    %c0_i32 = arith.constant 0 : i32
    %c0_i32_0 = arith.constant 0 : i32
    %c0_i32_1 = arith.constant 0 : i32
    %c0_i32_2 = arith.constant 0 : i32
    return %c0_i32, %c0_i32_0, %c0_i32_1 : i32, i32, i32
  }
  func.func @transform_7(%arg0: i32) -> (i32, i32) {
    %c0_i32 = arith.constant 0 : i32
    %c0_i32_0 = arith.constant 0 : i32
    %c0_i32_1 = arith.constant 0 : i32
    return %c0_i32, %c0_i32_0 : i32, i32
  }
  func.func @transform_8(%arg0: i32) -> (i32, i32, i32) {
    %c0_i32 = arith.constant 0 : i32
    %c0_i32_0 = arith.constant 0 : i32
    %c0_i32_1 = arith.constant 0 : i32
    %c0_i32_2 = arith.constant 0 : i32
    return %c0_i32, %c0_i32_0, %c0_i32_1 : i32, i32, i32
  }
  func.func @transform_9(%arg0: i32) -> (i32, i32) {
    %c0_i32 = arith.constant 0 : i32
    %c0_i32_0 = arith.constant 0 : i32
    %c0_i32_1 = arith.constant 0 : i32
    return %c0_i32, %c0_i32_0 : i32, i32
  }
  func.func @transform_10(%arg0: i32) -> (i32, i32, i32) {
    %c0_i32 = arith.constant 0 : i32
    %c0_i32_0 = arith.constant 0 : i32
    %c0_i32_1 = arith.constant 0 : i32
    %c0_i32_2 = arith.constant 0 : i32
    return %c0_i32, %c0_i32_0, %c0_i32_1 : i32, i32, i32
  }
  func.func @transform_11(%arg0: i32) -> (i32, i32) {
    %c0_i32 = arith.constant 0 : i32
    %c0_i32_0 = arith.constant 0 : i32
    %c0_i32_1 = arith.constant 0 : i32
    return %c0_i32, %c0_i32_0 : i32, i32
  }
  func.func @transform_12(%arg0: i32) -> (i32, i32, i32) {
    %c0_i32 = arith.constant 0 : i32
    %c0_i32_0 = arith.constant 0 : i32
    %c0_i32_1 = arith.constant 0 : i32
    %c0_i32_2 = arith.constant 0 : i32
    return %c0_i32, %c0_i32_0, %c0_i32_1 : i32, i32, i32
  }
  func.func @transform_13(%arg0: i32) -> (i32, i32) {
    %c0_i32 = arith.constant 0 : i32
    %c0_i32_0 = arith.constant 0 : i32
    %c0_i32_1 = arith.constant 0 : i32
    return %c0_i32, %c0_i32_0 : i32, i32
  }
  func.func @transform_14(%arg0: i32) -> (i32, i32, i32) {
    %c0_i32 = arith.constant 0 : i32
    %c0_i32_0 = arith.constant 0 : i32
    %c0_i32_1 = arith.constant 0 : i32
    %c0_i32_2 = arith.constant 0 : i32
    return %c0_i32, %c0_i32_0, %c0_i32_1 : i32, i32, i32
  }
  func.func @transform_15(%arg0: i32) -> (i32, i32) {
    %c0_i32 = arith.constant 0 : i32
    %c0_i32_0 = arith.constant 0 : i32
    %c0_i32_1 = arith.constant 0 : i32
    return %c0_i32, %c0_i32_0 : i32, i32
  }
  func.func @transform_16(%arg0: i32) -> (i32, i32) {
    %c0_i32 = arith.constant 0 : i32
    %c0_i32_0 = arith.constant 0 : i32
    %c0_i32_1 = arith.constant 0 : i32
    return %c0_i32, %c0_i32_0 : i32, i32
  }
  func.func @transform_17(%arg0: i32) -> (i32, i32) {
    %c0_i32 = arith.constant 0 : i32
    %c0_i32_0 = arith.constant 0 : i32
    %c0_i32_1 = arith.constant 0 : i32
    return %c0_i32, %c0_i32_0 : i32, i32
  }
}

module attributes {stable_mosaic.version = 11 : i64} {
  func.func @_tail_kernel(%arg0: i32, %arg1: memref<32x256xf32, #tpu.memory_space<vmem>>, %arg2: memref<3x32x512xf32, #tpu.memory_space<vmem>>, %arg3: memref<4x32x32xf32, #tpu.memory_space<vmem>>, %arg4: memref<512x512xbf16, #tpu.memory_space<vmem>>, %arg5: memref<1x512xf32, #tpu.memory_space<vmem>>, %arg6: memref<256x512xbf16, #tpu.memory_space<vmem>>, %arg7: memref<3x512xf32, #tpu.memory_space<vmem>>, %arg8: memref<3x512x3xbf16, #tpu.memory_space<vmem>>, %arg9: memref<5x4x6xf32, #tpu.memory_space<vmem>>, %arg10: memref<2x6xf32, #tpu.memory_space<vmem>>, %arg11: memref<6x8xf32, #tpu.memory_space<vmem>>, %arg12: memref<2x8xf32, #tpu.memory_space<vmem>>, %arg13: memref<2x8xf32, #tpu.memory_space<vmem>>, %arg14: memref<32x4xf32, #tpu.memory_space<vmem>>) attributes {dimension_semantics = [#tpu.dimension_semantics<arbitrary>], iteration_bounds = array<i64: 1>, scalar_prefetch = 0 : i64, scratch_operands = 1 : i64, tpu.core_type = #tpu.core_type<tc>, window_params = [{pipeline_mode = #tpu.pipeline_mode<synchronous>, transform_indices = @transform_0, window_bounds = array<i64: 32, 256>}, {pipeline_mode = #tpu.pipeline_mode<synchronous>, transform_indices = @transform_1, window_bounds = array<i64: 3, 32, 512>}, {pipeline_mode = #tpu.pipeline_mode<synchronous>, transform_indices = @transform_2, window_bounds = array<i64: 4, 32, 32>}, {pipeline_mode = #tpu.pipeline_mode<synchronous>, transform_indices = @transform_3, window_bounds = array<i64: 512, 512>}, {pipeline_mode = #tpu.pipeline_mode<synchronous>, transform_indices = @transform_4, window_bounds = array<i64: 1, 512>}, {pipeline_mode = #tpu.pipeline_mode<synchronous>, transform_indices = @transform_5, window_bounds = array<i64: 256, 512>}, {pipeline_mode = #tpu.pipeline_mode<synchronous>, transform_indices = @transform_6, window_bounds = array<i64: 3, 512>}, {pipeline_mode = #tpu.pipeline_mode<synchronous>, transform_indices = @transform_7, window_bounds = array<i64: 3, 512, 3>}, {pipeline_mode = #tpu.pipeline_mode<synchronous>, transform_indices = @transform_8, window_bounds = array<i64: 5, 4, 6>}, {pipeline_mode = #tpu.pipeline_mode<synchronous>, transform_indices = @transform_9, window_bounds = array<i64: 2, 6>}, {pipeline_mode = #tpu.pipeline_mode<synchronous>, transform_indices = @transform_10, window_bounds = array<i64: 6, 8>}, {pipeline_mode = #tpu.pipeline_mode<synchronous>, transform_indices = @transform_11, window_bounds = array<i64: 2, 8>}, {pipeline_mode = #tpu.pipeline_mode<synchronous>, transform_indices = @transform_12, window_bounds = array<i64: 2, 8>}]} {
    %c0 = arith.constant 0 : index
    %c0_0 = arith.constant 0 : index
    %c0_1 = arith.constant 0 : index
    %0 = vector.load %arg2[%c0, %c0_0, %c0_1] : memref<3x32x512xf32, #tpu.memory_space<vmem>>, vector<1x32x512xf32>
    %1 = vector.shape_cast %0 : vector<1x32x512xf32> to vector<32x512xf32>
    %c1 = arith.constant 1 : index
    %c0_2 = arith.constant 0 : index
    %c0_3 = arith.constant 0 : index
    %2 = vector.load %arg2[%c1, %c0_2, %c0_3] : memref<3x32x512xf32, #tpu.memory_space<vmem>>, vector<1x32x512xf32>
    %3 = vector.shape_cast %2 : vector<1x32x512xf32> to vector<32x512xf32>
    %c2 = arith.constant 2 : index
    %c0_4 = arith.constant 0 : index
    %c0_5 = arith.constant 0 : index
    %4 = vector.load %arg2[%c2, %c0_4, %c0_5] : memref<3x32x512xf32, #tpu.memory_space<vmem>>, vector<1x32x512xf32>
    %5 = vector.shape_cast %4 : vector<1x32x512xf32> to vector<32x512xf32>
    %6 = arith.truncf %5 : vector<32x512xf32> to vector<32x512xbf16>
    %c0_6 = arith.constant 0 : index
    %c0_7 = arith.constant 0 : index
    %7 = vector.load %arg4[%c0_6, %c0_7] : memref<512x512xbf16, #tpu.memory_space<vmem>>, vector<512x512xbf16>
    %cst = arith.constant dense<0.000000e+00> : vector<32x512xf32>
    %8 = tpu.matmul %6, %7, %cst {dimension_numbers = #tpu.dot_dimension_numbers<[1], [0], [0], [1], [0, 0, 1, 1], [], []>} : vector<32x512xbf16>, vector<512x512xbf16>, vector<32x512xf32> -> vector<32x512xf32>
    %c0_8 = arith.constant 0 : index
    %c0_9 = arith.constant 0 : index
    %9 = vector.load %arg5[%c0_8, %c0_9] : memref<1x512xf32, #tpu.memory_space<vmem>>, vector<1x512xf32>
    %10 = vector.broadcast %9 : vector<1x512xf32> to vector<32x512xf32>
    %11 = arith.addf %8, %10 : vector<32x512xf32>
    %c0_10 = arith.constant 0 : index
    %c0_11 = arith.constant 0 : index
    %12 = vector.load %arg1[%c0_10, %c0_11] : memref<32x256xf32, #tpu.memory_space<vmem>>, vector<32x256xf32>
    %13 = arith.truncf %12 : vector<32x256xf32> to vector<32x256xbf16>
    %c0_12 = arith.constant 0 : index
    %c0_13 = arith.constant 0 : index
    %14 = vector.load %arg6[%c0_12, %c0_13] : memref<256x512xbf16, #tpu.memory_space<vmem>>, vector<256x512xbf16>
    %cst_14 = arith.constant dense<0.000000e+00> : vector<32x512xf32>
    %15 = tpu.matmul %13, %14, %cst_14 {dimension_numbers = #tpu.dot_dimension_numbers<[1], [0], [0], [1], [0, 0, 1, 1], [], []>} : vector<32x256xbf16>, vector<256x512xbf16>, vector<32x512xf32> -> vector<32x512xf32>
    %c0_15 = arith.constant 0 : index
    %c0_16 = arith.constant 0 : index
    %16 = vector.load %arg7[%c0_15, %c0_16] : memref<3x512xf32, #tpu.memory_space<vmem>>, vector<1x512xf32>
    %17 = vector.shape_cast %16 : vector<1x512xf32> to vector<512xf32>
    %18 = arith.addf %15, %11 : vector<32x512xf32>
    %19 = vector.shape_cast %17 : vector<512xf32> to vector<1x512xf32>
    %20 = vector.broadcast %19 : vector<1x512xf32> to vector<32x512xf32>
    %21 = arith.mulf %18, %20 : vector<32x512xf32>
    %cst_17 = arith.constant dense<0.000000e+00> : vector<32xf32>
    %22 = vector.multi_reduction <add>, %21, %cst_17 [1] : vector<32x512xf32> to vector<32xf32>
    %23 = vector.shape_cast %22 : vector<32xf32> to vector<32x1xf32>
    %24 = vector.shape_cast %23 : vector<32x1xf32> to vector<2x16x1xf32>
    %cst_18 = arith.constant dense<0xFF800000> : vector<2x1xf32>
    %25 = vector.multi_reduction <maximumf>, %24, %cst_18 [1] : vector<2x16x1xf32> to vector<2x1xf32>
    %26 = vector.shape_cast %25 : vector<2x1xf32> to vector<2x1x1xf32>
    %27 = vector.broadcast %26 : vector<2x1x1xf32> to vector<2x16x1xf32>
    %28 = arith.subf %24, %27 : vector<2x16x1xf32>
    %29 = math.exp %28 : vector<2x16x1xf32>
    %cst_19 = arith.constant dense<0.000000e+00> : vector<2x1xf32>
    %30 = vector.multi_reduction <add>, %29, %cst_19 [1] : vector<2x16x1xf32> to vector<2x1xf32>
    %31 = vector.shape_cast %30 : vector<2x1xf32> to vector<2x1x1xf32>
    %32 = vector.broadcast %31 : vector<2x1x1xf32> to vector<2x16x1xf32>
    %33 = arith.divf %29, %32 : vector<2x16x1xf32>
    %34 = vector.shape_cast %33 : vector<2x16x1xf32> to vector<32x1xf32>
    %35 = vector.broadcast %34 : vector<32x1xf32> to vector<32x512xf32>
    %36 = arith.mulf %35, %15 : vector<32x512xf32>
    %c1_20 = arith.constant 1 : index
    %c0_21 = arith.constant 0 : index
    %37 = vector.load %arg7[%c1_20, %c0_21] : memref<3x512xf32, #tpu.memory_space<vmem>>, vector<1x512xf32>
    %38 = vector.shape_cast %37 : vector<1x512xf32> to vector<512xf32>
    %39 = arith.addf %1, %11 : vector<32x512xf32>
    %40 = vector.shape_cast %38 : vector<512xf32> to vector<1x512xf32>
    %41 = vector.broadcast %40 : vector<1x512xf32> to vector<32x512xf32>
    %42 = arith.mulf %39, %41 : vector<32x512xf32>
    %cst_22 = arith.constant dense<0.000000e+00> : vector<32xf32>
    %43 = vector.multi_reduction <add>, %42, %cst_22 [1] : vector<32x512xf32> to vector<32xf32>
    %44 = vector.shape_cast %43 : vector<32xf32> to vector<32x1xf32>
    %45 = vector.shape_cast %44 : vector<32x1xf32> to vector<2x16x1xf32>
    %cst_23 = arith.constant dense<0xFF800000> : vector<2x1xf32>
    %46 = vector.multi_reduction <maximumf>, %45, %cst_23 [1] : vector<2x16x1xf32> to vector<2x1xf32>
    %47 = vector.shape_cast %46 : vector<2x1xf32> to vector<2x1x1xf32>
    %48 = vector.broadcast %47 : vector<2x1x1xf32> to vector<2x16x1xf32>
    %49 = arith.subf %45, %48 : vector<2x16x1xf32>
    %50 = math.exp %49 : vector<2x16x1xf32>
    %cst_24 = arith.constant dense<0.000000e+00> : vector<2x1xf32>
    %51 = vector.multi_reduction <add>, %50, %cst_24 [1] : vector<2x16x1xf32> to vector<2x1xf32>
    %52 = vector.shape_cast %51 : vector<2x1xf32> to vector<2x1x1xf32>
    %53 = vector.broadcast %52 : vector<2x1x1xf32> to vector<2x16x1xf32>
    %54 = arith.divf %50, %53 : vector<2x16x1xf32>
    %55 = vector.shape_cast %54 : vector<2x16x1xf32> to vector<32x1xf32>
    %56 = vector.broadcast %55 : vector<32x1xf32> to vector<32x512xf32>
    %57 = arith.mulf %56, %1 : vector<32x512xf32>
    %c2_25 = arith.constant 2 : index
    %c0_26 = arith.constant 0 : index
    %58 = vector.load %arg7[%c2_25, %c0_26] : memref<3x512xf32, #tpu.memory_space<vmem>>, vector<1x512xf32>
    %59 = vector.shape_cast %58 : vector<1x512xf32> to vector<512xf32>
    %60 = arith.addf %3, %11 : vector<32x512xf32>
    %61 = vector.shape_cast %59 : vector<512xf32> to vector<1x512xf32>
    %62 = vector.broadcast %61 : vector<1x512xf32> to vector<32x512xf32>
    %63 = arith.mulf %60, %62 : vector<32x512xf32>
    %cst_27 = arith.constant dense<0.000000e+00> : vector<32xf32>
    %64 = vector.multi_reduction <add>, %63, %cst_27 [1] : vector<32x512xf32> to vector<32xf32>
    %65 = vector.shape_cast %64 : vector<32xf32> to vector<32x1xf32>
    %66 = vector.shape_cast %65 : vector<32x1xf32> to vector<2x16x1xf32>
    %cst_28 = arith.constant dense<0xFF800000> : vector<2x1xf32>
    %67 = vector.multi_reduction <maximumf>, %66, %cst_28 [1] : vector<2x16x1xf32> to vector<2x1xf32>
    %68 = vector.shape_cast %67 : vector<2x1xf32> to vector<2x1x1xf32>
    %69 = vector.broadcast %68 : vector<2x1x1xf32> to vector<2x16x1xf32>
    %70 = arith.subf %66, %69 : vector<2x16x1xf32>
    %71 = math.exp %70 : vector<2x16x1xf32>
    %cst_29 = arith.constant dense<0.000000e+00> : vector<2x1xf32>
    %72 = vector.multi_reduction <add>, %71, %cst_29 [1] : vector<2x16x1xf32> to vector<2x1xf32>
    %73 = vector.shape_cast %72 : vector<2x1xf32> to vector<2x1x1xf32>
    %74 = vector.broadcast %73 : vector<2x1x1xf32> to vector<2x16x1xf32>
    %75 = arith.divf %71, %74 : vector<2x16x1xf32>
    %76 = vector.shape_cast %75 : vector<2x16x1xf32> to vector<32x1xf32>
    %77 = vector.broadcast %76 : vector<32x1xf32> to vector<32x512xf32>
    %78 = arith.mulf %77, %3 : vector<32x512xf32>
    %79 = arith.truncf %36 : vector<32x512xf32> to vector<32x512xbf16>
    %c0_30 = arith.constant 0 : index
    %c0_31 = arith.constant 0 : index
    %c0_32 = arith.constant 0 : index
    %80 = vector.load %arg8[%c0_30, %c0_31, %c0_32] : memref<3x512x3xbf16, #tpu.memory_space<vmem>>, vector<1x512x3xbf16>
    %81 = vector.shape_cast %80 : vector<1x512x3xbf16> to vector<512x3xbf16>
    %cst_33 = arith.constant dense<0.000000e+00> : vector<32x3xf32>
    %82 = tpu.matmul %79, %81, %cst_33 {dimension_numbers = #tpu.dot_dimension_numbers<[1], [0], [0], [1], [0, 0, 1, 1], [], []>} : vector<32x512xbf16>, vector<512x3xbf16>, vector<32x3xf32> -> vector<32x3xf32>
    %83 = arith.truncf %57 : vector<32x512xf32> to vector<32x512xbf16>
    %c1_34 = arith.constant 1 : index
    %c0_35 = arith.constant 0 : index
    %c0_36 = arith.constant 0 : index
    %84 = vector.load %arg8[%c1_34, %c0_35, %c0_36] : memref<3x512x3xbf16, #tpu.memory_space<vmem>>, vector<1x512x3xbf16>
    %85 = vector.shape_cast %84 : vector<1x512x3xbf16> to vector<512x3xbf16>
    %cst_37 = arith.constant dense<0.000000e+00> : vector<32x3xf32>
    %86 = tpu.matmul %83, %85, %cst_37 {dimension_numbers = #tpu.dot_dimension_numbers<[1], [0], [0], [1], [0, 0, 1, 1], [], []>} : vector<32x512xbf16>, vector<512x3xbf16>, vector<32x3xf32> -> vector<32x3xf32>
    %87 = arith.addf %82, %86 : vector<32x3xf32>
    %88 = arith.truncf %78 : vector<32x512xf32> to vector<32x512xbf16>
    %c2_38 = arith.constant 2 : index
    %c0_39 = arith.constant 0 : index
    %c0_40 = arith.constant 0 : index
    %89 = vector.load %arg8[%c2_38, %c0_39, %c0_40] : memref<3x512x3xbf16, #tpu.memory_space<vmem>>, vector<1x512x3xbf16>
    %90 = vector.shape_cast %89 : vector<1x512x3xbf16> to vector<512x3xbf16>
    %cst_41 = arith.constant dense<0.000000e+00> : vector<32x3xf32>
    %91 = tpu.matmul %88, %90, %cst_41 {dimension_numbers = #tpu.dot_dimension_numbers<[1], [0], [0], [1], [0, 0, 1, 1], [], []>} : vector<32x512xbf16>, vector<512x3xbf16>, vector<32x3xf32> -> vector<32x3xf32>
    %92 = arith.addf %87, %91 : vector<32x3xf32>
    %c0_42 = arith.constant 0 : index
    %c0_43 = arith.constant 0 : index
    %c0_44 = arith.constant 0 : index
    %93 = vector.load %arg3[%c0_42, %c0_43, %c0_44] : memref<4x32x32xf32, #tpu.memory_space<vmem>>, vector<1x32x32xf32>
    %94 = vector.shape_cast %93 : vector<1x32x32xf32> to vector<32x32xf32>
    %c1_45 = arith.constant 1 : index
    %c0_46 = arith.constant 0 : index
    %c0_47 = arith.constant 0 : index
    %95 = vector.load %arg3[%c1_45, %c0_46, %c0_47] : memref<4x32x32xf32, #tpu.memory_space<vmem>>, vector<1x32x32xf32>
    %96 = vector.shape_cast %95 : vector<1x32x32xf32> to vector<32x32xf32>
    %cst_48 = arith.constant dense<0.000000e+00> : vector<32x3xf32>
    %97 = tpu.matmul %94, %92, %cst_48 {dimension_numbers = #tpu.dot_dimension_numbers<[1], [0], [0], [1], [0, 0, 1, 1], [], []>} : vector<32x32xf32>, vector<32x3xf32>, vector<32x3xf32> -> vector<32x3xf32>
    %cst_49 = arith.constant dense<0.000000e+00> : vector<32x3xf32>
    %98 = tpu.matmul %96, %92, %cst_49 {dimension_numbers = #tpu.dot_dimension_numbers<[1], [0], [0], [1], [0, 0, 1, 1], [], []>} : vector<32x32xf32>, vector<32x3xf32>, vector<32x3xf32> -> vector<32x3xf32>
    %c0_50 = arith.constant 0 : index
    %c0_51 = arith.constant 0 : index
    %99 = vector.load %arg12[%c0_50, %c0_51] : memref<2x8xf32, #tpu.memory_space<vmem>>, vector<2x8xf32>
    %100 = vector.extract_strided_slice %97 {offsets = [0, 0], sizes = [32, 1], strides = [1, 1]} : vector<32x3xf32> to vector<32x1xf32>
    %101 = vector.extract_strided_slice %92 {offsets = [0, 1], sizes = [32, 1], strides = [1, 1]} : vector<32x3xf32> to vector<32x1xf32>
    %102 = arith.addf %100, %101 : vector<32x1xf32>
    %103 = vector.extract_strided_slice %98 {offsets = [0, 2], sizes = [32, 1], strides = [1, 1]} : vector<32x3xf32> to vector<32x1xf32>
    %104 = arith.addf %102, %103 : vector<32x1xf32>
    %105 = vector.extract_strided_slice %99 {offsets = [1, 0], sizes = [1, 1], strides = [1, 1]} : vector<2x8xf32> to vector<1x1xf32>
    %106 = vector.broadcast %105 : vector<1x1xf32> to vector<32x1xf32>
    %107 = arith.addf %104, %106 : vector<32x1xf32>
    %cst_52 = arith.constant 0.000000e+00 : f32
    %108 = vector.broadcast %cst_52 : f32 to vector<32x1xf32>
    %109 = arith.maximumf %107, %108 : vector<32x1xf32>
    %c0_53 = arith.constant 0 : index
    %c0_54 = arith.constant 0 : index
    %110 = vector.load %arg14[%c0_53, %c0_54] : memref<32x4xf32, #tpu.memory_space<vmem>>, vector<32x1xf32>
    tpu.vector_store %arg14[%c0_53, %c0_54], %109 {strides = array<i32>} : memref<32x4xf32, #tpu.memory_space<vmem>>, vector<32x1xf32>,
    %c0_55 = arith.constant 0 : index
    %c1_56 = arith.constant 1 : index
    %111 = vector.load %arg14[%c0_55, %c1_56] : memref<32x4xf32, #tpu.memory_space<vmem>>, vector<32x1xf32>
    tpu.vector_store %arg14[%c0_55, %c1_56], %34 {strides = array<i32>} : memref<32x4xf32, #tpu.memory_space<vmem>>, vector<32x1xf32>,
    %c0_57 = arith.constant 0 : index
    %c2_58 = arith.constant 2 : index
    %112 = vector.load %arg14[%c0_57, %c2_58] : memref<32x4xf32, #tpu.memory_space<vmem>>, vector<32x1xf32>
    tpu.vector_store %arg14[%c0_57, %c2_58], %55 {strides = array<i32>} : memref<32x4xf32, #tpu.memory_space<vmem>>, vector<32x1xf32>,
    %c0_59 = arith.constant 0 : index
    %c3 = arith.constant 3 : index
    %113 = vector.load %arg14[%c0_59, %c3] : memref<32x4xf32, #tpu.memory_space<vmem>>, vector<32x1xf32>
    tpu.vector_store %arg14[%c0_59, %c3], %76 {strides = array<i32>} : memref<32x4xf32, #tpu.memory_space<vmem>>, vector<32x1xf32>,
    %c0_60 = arith.constant 0 : index
    %c0_61 = arith.constant 0 : index
    %114 = vector.load %arg14[%c0_60, %c0_61] : memref<32x4xf32, #tpu.memory_space<vmem>>, vector<32x4xf32>
    %c0_62 = arith.constant 0 : index
    %c0_63 = arith.constant 0 : index
    %c0_64 = arith.constant 0 : index
    %115 = vector.load %arg9[%c0_62, %c0_63, %c0_64] : memref<5x4x6xf32, #tpu.memory_space<vmem>>, vector<5x4x6xf32>
    %116 = vector.extract_strided_slice %115 {offsets = [2, 0, 0], sizes = [1, 4, 6], strides = [1, 1, 1]} : vector<5x4x6xf32> to vector<1x4x6xf32>
    %117 = vector.shape_cast %116 : vector<1x4x6xf32> to vector<4x6xf32>
    %cst_65 = arith.constant dense<0.000000e+00> : vector<32x6xf32>
    %118 = tpu.matmul %114, %117, %cst_65 {dimension_numbers = #tpu.dot_dimension_numbers<[1], [0], [0], [1], [0, 0, 1, 1], [], []>} : vector<32x4xf32>, vector<4x6xf32>, vector<32x6xf32> -> vector<32x6xf32>
    %cst_66 = arith.constant dense<0.000000e+00> : vector<32x4xf32>
    %119 = tpu.matmul %94, %114, %cst_66 {dimension_numbers = #tpu.dot_dimension_numbers<[1], [0], [0], [1], [0, 0, 1, 1], [], []>} : vector<32x32xf32>, vector<32x4xf32>, vector<32x4xf32> -> vector<32x4xf32>
    %120 = vector.extract_strided_slice %115 {offsets = [1, 0, 0], sizes = [1, 4, 6], strides = [1, 1, 1]} : vector<5x4x6xf32> to vector<1x4x6xf32>
    %121 = vector.shape_cast %120 : vector<1x4x6xf32> to vector<4x6xf32>
    %cst_67 = arith.constant dense<0.000000e+00> : vector<32x6xf32>
    %122 = tpu.matmul %119, %121, %cst_67 {dimension_numbers = #tpu.dot_dimension_numbers<[1], [0], [0], [1], [0, 0, 1, 1], [], []>} : vector<32x4xf32>, vector<4x6xf32>, vector<32x6xf32> -> vector<32x6xf32>
    %123 = arith.addf %118, %122 : vector<32x6xf32>
    %cst_68 = arith.constant dense<0.000000e+00> : vector<32x4xf32>
    %124 = tpu.matmul %96, %114, %cst_68 {dimension_numbers = #tpu.dot_dimension_numbers<[1], [0], [0], [1], [0, 0, 1, 1], [], []>} : vector<32x32xf32>, vector<32x4xf32>, vector<32x4xf32> -> vector<32x4xf32>
    %125 = vector.extract_strided_slice %115 {offsets = [3, 0, 0], sizes = [1, 4, 6], strides = [1, 1, 1]} : vector<5x4x6xf32> to vector<1x4x6xf32>
    %126 = vector.shape_cast %125 : vector<1x4x6xf32> to vector<4x6xf32>
    %cst_69 = arith.constant dense<0.000000e+00> : vector<32x6xf32>
    %127 = tpu.matmul %124, %126, %cst_69 {dimension_numbers = #tpu.dot_dimension_numbers<[1], [0], [0], [1], [0, 0, 1, 1], [], []>} : vector<32x4xf32>, vector<4x6xf32>, vector<32x6xf32> -> vector<32x6xf32>
    %128 = arith.addf %123, %127 : vector<32x6xf32>
    %c2_70 = arith.constant 2 : index
    %c0_71 = arith.constant 0 : index
    %c0_72 = arith.constant 0 : index
    %129 = vector.load %arg3[%c2_70, %c0_71, %c0_72] : memref<4x32x32xf32, #tpu.memory_space<vmem>>, vector<1x32x32xf32>
    %130 = vector.shape_cast %129 : vector<1x32x32xf32> to vector<32x32xf32>
    %cst_73 = arith.constant dense<0.000000e+00> : vector<32x4xf32>
    %131 = tpu.matmul %130, %114, %cst_73 {dimension_numbers = #tpu.dot_dimension_numbers<[1], [0], [0], [1], [0, 0, 1, 1], [], []>} : vector<32x32xf32>, vector<32x4xf32>, vector<32x4xf32> -> vector<32x4xf32>
    %132 = vector.extract_strided_slice %115 {offsets = [0, 0, 0], sizes = [1, 4, 6], strides = [1, 1, 1]} : vector<5x4x6xf32> to vector<1x4x6xf32>
    %133 = vector.shape_cast %132 : vector<1x4x6xf32> to vector<4x6xf32>
    %cst_74 = arith.constant dense<0.000000e+00> : vector<32x6xf32>
    %134 = tpu.matmul %131, %133, %cst_74 {dimension_numbers = #tpu.dot_dimension_numbers<[1], [0], [0], [1], [0, 0, 1, 1], [], []>} : vector<32x4xf32>, vector<4x6xf32>, vector<32x6xf32> -> vector<32x6xf32>
    %135 = arith.addf %128, %134 : vector<32x6xf32>
    %c3_75 = arith.constant 3 : index
    %c0_76 = arith.constant 0 : index
    %c0_77 = arith.constant 0 : index
    %136 = vector.load %arg3[%c3_75, %c0_76, %c0_77] : memref<4x32x32xf32, #tpu.memory_space<vmem>>, vector<1x32x32xf32>
    %137 = vector.shape_cast %136 : vector<1x32x32xf32> to vector<32x32xf32>
    %cst_78 = arith.constant dense<0.000000e+00> : vector<32x4xf32>
    %138 = tpu.matmul %137, %114, %cst_78 {dimension_numbers = #tpu.dot_dimension_numbers<[1], [0], [0], [1], [0, 0, 1, 1], [], []>} : vector<32x32xf32>, vector<32x4xf32>, vector<32x4xf32> -> vector<32x4xf32>
    %139 = vector.extract_strided_slice %115 {offsets = [4, 0, 0], sizes = [1, 4, 6], strides = [1, 1, 1]} : vector<5x4x6xf32> to vector<1x4x6xf32>
    %140 = vector.shape_cast %139 : vector<1x4x6xf32> to vector<4x6xf32>
    %cst_79 = arith.constant dense<0.000000e+00> : vector<32x6xf32>
    %141 = tpu.matmul %138, %140, %cst_79 {dimension_numbers = #tpu.dot_dimension_numbers<[1], [0], [0], [1], [0, 0, 1, 1], [], []>} : vector<32x4xf32>, vector<4x6xf32>, vector<32x6xf32> -> vector<32x6xf32>
    %142 = arith.addf %135, %141 : vector<32x6xf32>
    %c0_80 = arith.constant 0 : index
    %c0_81 = arith.constant 0 : index
    %143 = vector.load %arg10[%c0_80, %c0_81] : memref<2x6xf32, #tpu.memory_space<vmem>>, vector<1x6xf32>
    %144 = vector.broadcast %143 : vector<1x6xf32> to vector<32x6xf32>
    %145 = arith.mulf %142, %144 : vector<32x6xf32>
    %c1_82 = arith.constant 1 : index
    %c0_83 = arith.constant 0 : index
    %146 = vector.load %arg10[%c1_82, %c0_83] : memref<2x6xf32, #tpu.memory_space<vmem>>, vector<1x6xf32>
    %147 = vector.broadcast %146 : vector<1x6xf32> to vector<32x6xf32>
    %148 = arith.addf %145, %147 : vector<32x6xf32>
    %cst_84 = arith.constant 0.000000e+00 : f32
    %149 = vector.broadcast %cst_84 : f32 to vector<32x6xf32>
    %150 = arith.maximumf %148, %149 : vector<32x6xf32>
    %151 = vector.shape_cast %150 : vector<32x6xf32> to vector<2x16x6xf32>
    %cst_85 = arith.constant dense<0xFF800000> : vector<2x6xf32>
    %152 = vector.multi_reduction <maximumf>, %151, %cst_85 [1] : vector<2x16x6xf32> to vector<2x6xf32>
    %c0_86 = arith.constant 0 : index
    %c0_87 = arith.constant 0 : index
    %153 = vector.load %arg11[%c0_86, %c0_87] : memref<6x8xf32, #tpu.memory_space<vmem>>, vector<6x8xf32>
    %cst_88 = arith.constant dense<0.000000e+00> : vector<2x8xf32>
    %154 = tpu.matmul %152, %153, %cst_88 {dimension_numbers = #tpu.dot_dimension_numbers<[1], [0], [0], [1], [0, 0, 1, 1], [], []>} : vector<2x6xf32>, vector<6x8xf32>, vector<2x8xf32> -> vector<2x8xf32>
    %155 = vector.extract_strided_slice %99 {offsets = [0, 0], sizes = [1, 8], strides = [1, 1]} : vector<2x8xf32> to vector<1x8xf32>
    %156 = vector.broadcast %155 : vector<1x8xf32> to vector<2x8xf32>
    %157 = arith.addf %154, %156 : vector<2x8xf32>
    %cst_89 = arith.constant 0.000000e+00 : f32
    %158 = vector.broadcast %cst_89 : f32 to vector<2x8xf32>
    %159 = arith.maximumf %157, %158 : vector<2x8xf32>
    %c0_90 = arith.constant 0 : index
    %c0_91 = arith.constant 0 : index
    %160 = vector.load %arg13[%c0_90, %c0_91] : memref<2x8xf32, #tpu.memory_space<vmem>>, vector<2x8xf32>
    tpu.vector_store %arg13[%c0_90, %c0_91], %159 {strides = array<i32>} : memref<2x8xf32, #tpu.memory_space<vmem>>, vector<2x8xf32>,
    return
  }
  func.func @transform_0(%arg0: i32) -> (i32, i32) {
    %c0_i32 = arith.constant 0 : i32
    %c0_i32_0 = arith.constant 0 : i32
    %c0_i32_1 = arith.constant 0 : i32
    return %c0_i32, %c0_i32_0 : i32, i32
  }
  func.func @transform_1(%arg0: i32) -> (i32, i32, i32) {
    %c0_i32 = arith.constant 0 : i32
    %c0_i32_0 = arith.constant 0 : i32
    %c0_i32_1 = arith.constant 0 : i32
    %c0_i32_2 = arith.constant 0 : i32
    return %c0_i32, %c0_i32_0, %c0_i32_1 : i32, i32, i32
  }
  func.func @transform_2(%arg0: i32) -> (i32, i32, i32) {
    %c0_i32 = arith.constant 0 : i32
    %c0_i32_0 = arith.constant 0 : i32
    %c0_i32_1 = arith.constant 0 : i32
    %c0_i32_2 = arith.constant 0 : i32
    return %c0_i32, %c0_i32_0, %c0_i32_1 : i32, i32, i32
  }
  func.func @transform_3(%arg0: i32) -> (i32, i32) {
    %c0_i32 = arith.constant 0 : i32
    %c0_i32_0 = arith.constant 0 : i32
    %c0_i32_1 = arith.constant 0 : i32
    return %c0_i32, %c0_i32_0 : i32, i32
  }
  func.func @transform_4(%arg0: i32) -> (i32, i32) {
    %c0_i32 = arith.constant 0 : i32
    %c0_i32_0 = arith.constant 0 : i32
    %c0_i32_1 = arith.constant 0 : i32
    return %c0_i32, %c0_i32_0 : i32, i32
  }
  func.func @transform_5(%arg0: i32) -> (i32, i32) {
    %c0_i32 = arith.constant 0 : i32
    %c0_i32_0 = arith.constant 0 : i32
    %c0_i32_1 = arith.constant 0 : i32
    return %c0_i32, %c0_i32_0 : i32, i32
  }
  func.func @transform_6(%arg0: i32) -> (i32, i32) {
    %c0_i32 = arith.constant 0 : i32
    %c0_i32_0 = arith.constant 0 : i32
    %c0_i32_1 = arith.constant 0 : i32
    return %c0_i32, %c0_i32_0 : i32, i32
  }
  func.func @transform_7(%arg0: i32) -> (i32, i32, i32) {
    %c0_i32 = arith.constant 0 : i32
    %c0_i32_0 = arith.constant 0 : i32
    %c0_i32_1 = arith.constant 0 : i32
    %c0_i32_2 = arith.constant 0 : i32
    return %c0_i32, %c0_i32_0, %c0_i32_1 : i32, i32, i32
  }
  func.func @transform_8(%arg0: i32) -> (i32, i32, i32) {
    %c0_i32 = arith.constant 0 : i32
    %c0_i32_0 = arith.constant 0 : i32
    %c0_i32_1 = arith.constant 0 : i32
    %c0_i32_2 = arith.constant 0 : i32
    return %c0_i32, %c0_i32_0, %c0_i32_1 : i32, i32, i32
  }
  func.func @transform_9(%arg0: i32) -> (i32, i32) {
    %c0_i32 = arith.constant 0 : i32
    %c0_i32_0 = arith.constant 0 : i32
    %c0_i32_1 = arith.constant 0 : i32
    return %c0_i32, %c0_i32_0 : i32, i32
  }
  func.func @transform_10(%arg0: i32) -> (i32, i32) {
    %c0_i32 = arith.constant 0 : i32
    %c0_i32_0 = arith.constant 0 : i32
    %c0_i32_1 = arith.constant 0 : i32
    return %c0_i32, %c0_i32_0 : i32, i32
  }
  func.func @transform_11(%arg0: i32) -> (i32, i32) {
    %c0_i32 = arith.constant 0 : i32
    %c0_i32_0 = arith.constant 0 : i32
    %c0_i32_1 = arith.constant 0 : i32
    return %c0_i32, %c0_i32_0 : i32, i32
  }
  func.func @transform_12(%arg0: i32) -> (i32, i32) {
    %c0_i32 = arith.constant 0 : i32
    %c0_i32_0 = arith.constant 0 : i32
    %c0_i32_1 = arith.constant 0 : i32
    return %c0_i32, %c0_i32_0 : i32, i32
  }
}

</mosaic_0001>

<bundles_post_ra>
// kernel: attn_vgg_forward.3
= control target key start
LH: loop header
LB: loop body
LE: loop exit
PB: predicated region body
PF: predicated region fallthrough
CT: control target
= control target key end

     0   :  { %s6091_s0 = inlined_call_operand.vmem [shape: f32[32,3], index: 0, kind: input, shape index: {}]   ;;  %s6092_s1 = inlined_call_operand.vmem [shape: f32[4,32,32], index: 1, kind: input, shape index: {}]   ;;  %s6093_s2 = inlined_call_operand.hbm [shape: bf16[3,64], index: 2, kind: input, shape index: {}]   ;;  %s6094_s3 = inlined_call_operand.hbm [shape: f32[2,64], index: 3, kind: input, shape index: {}]   ;;  %s6095_s4 = inlined_call_operand.hbm [shape: bf16[3,64,64], index: 4, kind: input, shape index: {}]   ;;  %s6096_s5 = inlined_call_operand.hbm [shape: f32[2,64], index: 5, kind: input, shape index: {}]   ;;  %s6097_s6 = inlined_call_operand.hbm [shape: bf16[3,64,128], index: 6, kind: input, shape index: {}]   ;;  %s6098_s7 = inlined_call_operand.hbm [shape: f32[2,128], index: 7, kind: input, shape index: {}]   ;;  %s6099_s8 = inlined_call_operand.hbm [shape: bf16[3,128,128], index: 8, kind: input, shape index: {}]   ;;  %s6100_s9 = inlined_call_operand.hbm [shape: f32[2,128], index: 9, kind: input, shape index: {}]   ;;  %s6101_s10 = inlined_call_operand.hbm [shape: bf16[3,128,256], index: 10, kind: input, shape index: {}]   ;;  %s6102_s11 = inlined_call_operand.hbm [shape: f32[2,256], index: 11, kind: input, shape index: {}]   ;;  %s6103_s12 = inlined_call_operand.hbm [shape: bf16[3,256,256], index: 12, kind: input, shape index: {}]   ;;  %s6104_s13 = inlined_call_operand.hbm [shape: f32[2,256], index: 13, kind: input, shape index: {}]   ;;  %s6105_s14 = inlined_call_operand.hbm [shape: bf16[3,256,256], index: 14, kind: input, shape index: {}]   ;;  %s6106_s15 = inlined_call_operand.hbm [shape: f32[2,256], index: 15, kind: input, shape index: {}]   ;;  %s6107_s16 = inlined_call_operand.vmem [shape: f32[32,128], index: 16, kind: output, shape index: {0}]   ;;  %s6108_s17 = inlined_call_operand.vmem [shape: f32[32,256], index: 17, kind: output, shape index: {1}]  }
   0x1   :  { %6111 = sst [smem:[#allocation32_spill]] %s6091_s0 }
   0x2   :  { %6112 = sst [smem:[#allocation33_spill]] %s6092_s1 }
   0x3   :  { %23 = vsyncpa [#allocation3], 0 }
   0x4   :  { %24 = vsyncpa [#allocation5], 0 }
   0x5   :  { %25 = vsyncpa [#allocation8], 0 }
   0x6   :  { %26 = vsyncpa [#allocation11], 0 }
   0x7   :  { %27 = vsyncpa [#allocation14], 0 }
   0x8   :  { %28 = vsyncpa [#allocation17], 0 }
   0x9   :  { %29 = vsyncpa [#allocation20], 0 }
   0xa   :  { %30 = vsyncpa [#allocation23], 0  ;;  %s5560_s24 = smov [#allocation4]   ;;  %s5561_s26 = smov [#allocation7]  }
   0xb   :  { %s51_s25 = sshll.u32 %s5560_s24, 4  ;;  %s73_s27 = sshll.u32 %s5561_s26, 4  ;;  %s52_s25 = int_to_ptr.vmem [resolvable:$true] %s51_s25  ;;  %s74_s27 = int_to_ptr.vmem [resolvable:$true] %s73_s27 }
   0xc   :  { %s5236_s0 = scalar_lea.hbm %s6094_s3, 32 }
   0xd   :  { %p5237_p0 = scmp.ne.s32.totalorder %s6094_s3, %s5236_s0  ;;  %p5240_p1 = scmp.lt.u32.totalorder %s5236_s0, %s6094_s3 }
   0xf   :  { %p5242_p2 = pnand %p5240_p1, %p5237_p0 }
  0x11   :  { %5245 = shalt.err (!%p5242_p2)
}
  0x12   :  { %s5246_s20 = scalar_lea.vmem %s52_s25, 32  ;;  %p5251_p4 = scmp.lt.s32.totalorder %s52_s25, %s52_s25 }
  0x13   :  { %p5247_p3 = scmp.ne.s32.totalorder %s52_s25, %s5246_s20  ;;  %p5252_p5 = scmp.lt.s32.totalorder %s5246_s20, %s5246_s20 }
  0x15   :  { %p5253_p6 = por %p5252_p5, %p5251_p4 }
  0x17   :  { %p5254_p7 = pnand %p5253_p6, %p5247_p3 }
  0x19   :  { %5257 = shalt.err (!%p5254_p7)
}
  0x1a   :  { %54 = dma.hbm_to_vmem [thread:$0]  %s6094_s3, 32, %s52_s25, [#allocation5]  }
  0x1b   :  { %s5258_s26 = scalar_lea.hbm %s6096_s5, 32 }
  0x1c   :  { %p5259_p8 = scmp.ne.s32.totalorder %s6096_s5, %s5258_s26  ;;  %p5262_p9 = scmp.lt.u32.totalorder %s5258_s26, %s6096_s5 }
  0x1e   :  { %p5264_p10 = pnand %p5262_p9, %p5259_p8 }
  0x20   :  { %5267 = shalt.err (!%p5264_p10)
}
  0x21   :  { %s5268_s18 = scalar_lea.vmem %s74_s27, 32  ;;  %p5273_p12 = scmp.lt.s32.totalorder %s74_s27, %s74_s27 }
  0x22   :  { %p5269_p11 = scmp.ne.s32.totalorder %s74_s27, %s5268_s18  ;;  %p5274_p13 = scmp.lt.s32.totalorder %s5268_s18, %s5268_s18 }
  0x24   :  { %p5275_p0 = por %p5274_p13, %p5273_p12 }
  0x26   :  { %p5276_p1 = pnand %p5275_p0, %p5269_p11 }
  0x28   :  { %5279 = shalt.err (!%p5276_p1)
}
  0x29   :  { %76 = dma.hbm_to_vmem [thread:$0]  %s6096_s5, 32, %s74_s27, [#allocation8]  }
  0x2a   :  { %s5562_s19 = smov [#allocation10]   ;;  %s5563_s20 = smov [#allocation13]  }
  0x2b   :  { %s95_s1 = sshll.u32 %s5562_s19, 4  ;;  %s117_s21 = sshll.u32 %s5563_s20, 4  ;;  %s96_s1 = int_to_ptr.vmem [resolvable:$true] %s95_s1  ;;  %s118_s21 = int_to_ptr.vmem [resolvable:$true] %s117_s21 }
  0x2c   :  { %s5280_s24 = scalar_lea.hbm %s6098_s7, 32 }
  0x2d   :  { %p5281_p2 = scmp.ne.s32.totalorder %s6098_s7, %s5280_s24  ;;  %p5284_p3 = scmp.lt.u32.totalorder %s5280_s24, %s6098_s7 }
  0x2f   :  { %p5286_p4 = pnand %p5284_p3, %p5281_p2 }
  0x31   :  { %5289 = shalt.err (!%p5286_p4)
}
  0x32   :  { %s5290_s5 = scalar_lea.vmem %s96_s1, 32  ;;  %p5295_p6 = scmp.lt.s32.totalorder %s96_s1, %s96_s1 }
  0x33   :  { %p5291_p5 = scmp.ne.s32.totalorder %s96_s1, %s5290_s5  ;;  %p5296_p7 = scmp.lt.s32.totalorder %s5290_s5, %s5290_s5 }
  0x35   :  { %p5297_p8 = por %p5296_p7, %p5295_p6 }
  0x37   :  { %p5298_p9 = pnand %p5297_p8, %p5291_p5 }
  0x39   :  { %5301 = shalt.err (!%p5298_p9)
}
  0x3a   :  { %98 = dma.hbm_to_vmem [thread:$0]  %s6098_s7, 32, %s96_s1, [#allocation11]  }
  0x3b   :  { %s5302_s25 = scalar_lea.hbm %s6100_s9, 32 }
  0x3c   :  { %p5303_p10 = scmp.ne.s32.totalorder %s6100_s9, %s5302_s25  ;;  %p5306_p11 = scmp.lt.u32.totalorder %s5302_s25, %s6100_s9 }
  0x3e   :  { %p5308_p12 = pnand %p5306_p11, %p5303_p10 }
  0x40   :  { %5311 = shalt.err (!%p5308_p12)
}
  0x41   :  { %s5312_s24 = scalar_lea.vmem %s118_s21, 32  ;;  %p5317_p0 = scmp.lt.s32.totalorder %s118_s21, %s118_s21 }
  0x42   :  { %p5313_p13 = scmp.ne.s32.totalorder %s118_s21, %s5312_s24  ;;  %p5318_p1 = scmp.lt.s32.totalorder %s5312_s24, %s5312_s24 }
  0x44   :  { %p5319_p2 = por %p5318_p1, %p5317_p0 }
  0x46   :  { %p5320_p3 = pnand %p5319_p2, %p5313_p13 }
  0x48   :  { %5323 = shalt.err (!%p5320_p3)
}
  0x49   :  { %120 = dma.hbm_to_vmem [thread:$0]  %s6100_s9, 32, %s118_s21, [#allocation14]  }
  0x4a   :  { %s5564_s26 = smov [#allocation16]   ;;  %s5565_s29 = smov [#allocation19]  }
  0x4b   :  { %s139_s28 = sshll.u32 %s5564_s26, 4  ;;  %s161_s0 = sshll.u32 %s5565_s29, 4  ;;  %s140_s28 = int_to_ptr.vmem [resolvable:$true] %s139_s28  ;;  %s162_s0 = int_to_ptr.vmem [resolvable:$true] %s161_s0 }
  0x4c   :  { %s5324_s30 = scalar_lea.hbm %s6102_s11, 64 }
  0x4d   :  { %p5325_p4 = scmp.ne.s32.totalorder %s6102_s11, %s5324_s30  ;;  %p5328_p5 = scmp.lt.u32.totalorder %s5324_s30, %s6102_s11 }
  0x4f   :  { %p5330_p6 = pnand %p5328_p5, %p5325_p4 }
  0x51   :  { %5333 = shalt.err (!%p5330_p6)
}
  0x52   :  { %s5334_s9 = scalar_lea.vmem %s140_s28, 64  ;;  %p5339_p8 = scmp.lt.s32.totalorder %s140_s28, %s140_s28 }
  0x53   :  { %p5335_p7 = scmp.ne.s32.totalorder %s140_s28, %s5334_s9  ;;  %p5340_p9 = scmp.lt.s32.totalorder %s5334_s9, %s5334_s9 }
  0x55   :  { %p5341_p10 = por %p5340_p9, %p5339_p8 }
  0x57   :  { %p5342_p11 = pnand %p5341_p10, %p5335_p7 }
  0x59   :  { %5345 = shalt.err (!%p5342_p11)
}
  0x5a   :  { %142 = dma.hbm_to_vmem [thread:$0]  %s6102_s11, 64, %s140_s28, [#allocation17]  }
  0x5b   :  { %s5346_s24 = scalar_lea.hbm %s6104_s13, 64 }
  0x5c   :  { %p5347_p12 = scmp.ne.s32.totalorder %s6104_s13, %s5346_s24  ;;  %p5350_p13 = scmp.lt.u32.totalorder %s5346_s24, %s6104_s13 }
  0x5e   :  { %p5352_p0 = pnand %p5350_p13, %p5347_p12 }
  0x60   :  { %5355 = shalt.err (!%p5352_p0)
}
  0x61   :  { %s5356_s5 = scalar_lea.vmem %s162_s0, 64  ;;  %p5361_p2 = scmp.lt.s32.totalorder %s162_s0, %s162_s0 }
  0x62   :  { %p5357_p1 = scmp.ne.s32.totalorder %s162_s0, %s5356_s5  ;;  %p5362_p3 = scmp.lt.s32.totalorder %s5356_s5, %s5356_s5 }
  0x64   :  { %p5363_p4 = por %p5362_p3, %p5361_p2 }
  0x66   :  { %p5364_p5 = pnand %p5363_p4, %p5357_p1 }
  0x68   :  { %5367 = shalt.err (!%p5364_p5)
}
  0x69   :  { %164 = dma.hbm_to_vmem [thread:$0]  %s6104_s13, 64, %s162_s0, [#allocation20]  }
  0x6a   :  { %s5566_s27 = smov [#allocation2]   ;;  %s5567_s18 = smov [#allocation6]  }
  0x6b   :  { %s41_s30 = sshll.u32 %s5566_s27, 4  ;;  %s60_s3 = sshll.u32 %s5567_s18, 4  ;;  %s42_s30 = int_to_ptr.vmem [resolvable:$true] %s41_s30  ;;  %s5742_s3 = int_to_ptr.vmem [resolvable:$true] %s60_s3 }
  0x6c   :  { %s5368_s9 = scalar_lea.hbm %s6093_s2, 32 }
  0x6d   :  { %p5369_p6 = scmp.ne.s32.totalorder %s6093_s2, %s5368_s9  ;;  %p5372_p7 = scmp.lt.u32.totalorder %s5368_s9, %s6093_s2 }
  0x6f   :  { %p5374_p8 = pnand %p5372_p7, %p5369_p6 }
  0x71   :  { %5377 = shalt.err (!%p5374_p8)
}
  0x72   :  { %s5378_s13 = scalar_lea.vmem %s42_s30, 32  ;;  %p5383_p10 = scmp.lt.s32.totalorder %s42_s30, %s42_s30 }
  0x73   :  { %p5379_p9 = scmp.ne.s32.totalorder %s42_s30, %s5378_s13  ;;  %p5384_p11 = scmp.lt.s32.totalorder %s5378_s13, %s5378_s13 }
  0x75   :  { %p5385_p12 = por %p5384_p11, %p5383_p10 }
  0x77   :  { %p5386_p13 = pnand %p5385_p12, %p5379_p9 }
  0x79   :  { %5389 = shalt.err (!%p5386_p13)
}
  0x7a   :  { %44 = dma.hbm_to_vmem [thread:$0]  %s6093_s2, 32, %s42_s30, [#allocation3]  }
  0x7b   :  { %s5390_s26 = scalar_lea.hbm %s6095_s4, 1536 }
  0x7c   :  { %p5391_p0 = scmp.ne.s32.totalorder %s6095_s4, %s5390_s26  ;;  %p5394_p1 = scmp.lt.u32.totalorder %s5390_s26, %s6095_s4 }
  0x7e   :  { %p5396_p2 = pnand %p5394_p1, %p5391_p0 }
  0x80   :  { %5399 = shalt.err (!%p5396_p2)
}
  0x81   :  { %s5400_s27 = scalar_lea.vmem %s5742_s3, 1536  ;;  %p5405_p4 = scmp.lt.s32.totalorder %s5742_s3, %s5742_s3 }
  0x82   :  { %p5401_p3 = scmp.ne.s32.totalorder %s5742_s3, %s5400_s27  ;;  %p5406_p5 = scmp.lt.s32.totalorder %s5400_s27, %s5400_s27 }
  0x84   :  { %p5407_p6 = por %p5406_p5, %p5405_p4 }
  0x86   :  { %p5408_p7 = pnand %p5407_p6, %p5401_p3 }
  0x88   :  { %5411 = shalt.err (!%p5408_p7)
}
  0x89   :  { %s5568_s2 = smov 64   ;;  %s5569_s30 = smov 4  }
  0x8a   :  { %66 = dma.hbm_to_vmem [thread:$0]  %s6095_s4, 1536, %s5742_s3, [#allocation5], %s5568_s2, %s5568_s2, %s5569_s30  }
  0x8b   :  { %s5570_s19 = smov [#allocation9]   ;;  %s5571_s21 = smov [#allocation12]  }
  0x8c   :  { %s82_s9 = sshll.u32 %s5570_s19, 4  ;;  %s104_s20 = sshll.u32 %s5571_s21, 4  ;;  %s83_s9 = int_to_ptr.vmem [resolvable:$true] %s82_s9  ;;  %s5776_s20 = int_to_ptr.vmem [resolvable:$true] %s104_s20 }
  0x8d   :  { %s5412_s13 = scalar_lea.hbm %s6097_s6, 1536 }
  0x8e   :  { %p5413_p8 = scmp.ne.s32.totalorder %s6097_s6, %s5412_s13  ;;  %p5416_p9 = scmp.lt.u32.totalorder %s5412_s13, %s6097_s6 }
  0x90   :  { %p5418_p10 = pnand %p5416_p9, %p5413_p8 }
  0x92   :  { %5421 = shalt.err (!%p5418_p10)
}
  0x93   :  { %s5422_s4 = scalar_lea.vmem %s83_s9, 1536  ;;  %p5427_p12 = scmp.lt.s32.totalorder %s83_s9, %s83_s9 }
  0x94   :  { %p5423_p11 = scmp.ne.s32.totalorder %s83_s9, %s5422_s4  ;;  %p5428_p13 = scmp.lt.s32.totalorder %s5422_s4, %s5422_s4 }
  0x96   :  { %p5429_p0 = por %p5428_p13, %p5427_p12 }
  0x98   :  { %p5430_p1 = pnand %p5429_p0, %p5423_p11 }
  0x9a   :  { %5433 = shalt.err (!%p5430_p1)
}
  0x9b   :  { %88 = dma.hbm_to_vmem [thread:$0]  %s6097_s6, 1536, %s83_s9, [#allocation8], %s5568_s2, %s5568_s2, %s5569_s30  }
  0x9c   :  { %s5434_s11 = scalar_lea.hbm %s6099_s8, 3072 }
  0x9d   :  { %p5435_p2 = scmp.ne.s32.totalorder %s6099_s8, %s5434_s11  ;;  %p5438_p3 = scmp.lt.u32.totalorder %s5434_s11, %s6099_s8 }
  0x9f   :  { %p5440_p4 = pnand %p5438_p3, %p5435_p2 }
  0xa1   :  { %5443 = shalt.err (!%p5440_p4)
}
  0xa2   :  { %s5444_s19 = scalar_lea.vmem %s5776_s20, 3072  ;;  %p5449_p6 = scmp.lt.s32.totalorder %s5776_s20, %s5776_s20 }
  0xa3   :  { %p5445_p5 = scmp.ne.s32.totalorder %s5776_s20, %s5444_s19  ;;  %p5450_p7 = scmp.lt.s32.totalorder %s5444_s19, %s5444_s19 }
  0xa5   :  { %p5451_p8 = por %p5450_p7, %p5449_p6 }
  0xa7   :  { %p5452_p9 = pnand %p5451_p8, %p5445_p5 }
  0xa9   :  { %5455 = shalt.err (!%p5452_p9)
}
  0xaa   :  { %110 = dma.hbm_to_vmem [thread:$0]  %s6099_s8, 3072, %s5776_s20, [#allocation11], %s5568_s2, %s5568_s2, %s5569_s30  }
  0xab   :  { %s5572_s21 = smov [#allocation15]   ;;  %s5456_s0 = scalar_lea.hbm %s6101_s10, 6144 }
  0xac   :  { %s126_s22 = sshll.u32 %s5572_s21, 4  ;;  %p5457_p10 = scmp.ne.s32.totalorder %s6101_s10, %s5456_s0  ;;  %s127_s22 = int_to_ptr.vmem [resolvable:$true] %s126_s22 }
  0xad   :  { %p5460_p11 = scmp.lt.u32.totalorder %s5456_s0, %s6101_s10 }
  0xaf   :  { %p5462_p12 = pnand %p5460_p11, %p5457_p10 }
  0xb1   :  { %5465 = shalt.err (!%p5462_p12)
}
  0xb2   :  { %s5466_s3 = scalar_lea.vmem %s127_s22, 6144  ;;  %p5471_p0 = scmp.lt.s32.totalorder %s127_s22, %s127_s22 }
  0xb3   :  { %p5467_p13 = scmp.ne.s32.totalorder %s127_s22, %s5466_s3  ;;  %p5472_p1 = scmp.lt.s32.totalorder %s5466_s3, %s5466_s3 }
  0xb5   :  { %p5473_p2 = por %p5472_p1, %p5471_p0 }
  0xb7   :  { %p5474_p3 = pnand %p5473_p2, %p5467_p13 }
  0xb9   :  { %5477 = shalt.err (!%p5474_p3)
}
  0xba   :  { %s5573_s8 = smov 128   ;;  %s5574_s2 = smov 8  }
  0xbb   :  { %132 = dma.hbm_to_vmem [thread:$0]  %s6101_s10, 6144, %s127_s22, [#allocation14], %s5573_s8, %s5573_s8, %s5574_s2  }
  0xbc   :  { %s5575_s26 = smov [#allocation18]   ;;  %s5576_s5 = smov [#allocation21]  }
  0xbd   :  { %s148_s29 = sshll.u32 %s5575_s26, 4  ;;  %s170_s11 = sshll.u32 %s5576_s5, 4  ;;  %s149_s29 = int_to_ptr.vmem [resolvable:$true] %s148_s29  ;;  %s171_s11 = int_to_ptr.vmem [resolvable:$true] %s170_s11 }
  0xbe   :  { %s5478_s18 = scalar_lea.hbm %s6103_s12, 12288 }
  0xbf   :  { %p5479_p4 = scmp.ne.s32.totalorder %s6103_s12, %s5478_s18  ;;  %p5482_p5 = scmp.lt.u32.totalorder %s5478_s18, %s6103_s12 }
  0xc1   :  { %p5484_p6 = pnand %p5482_p5, %p5479_p4 }
  0xc3   :  { %5487 = shalt.err (!%p5484_p6)
}
  0xc4   :  { %s5488_s10 = scalar_lea.vmem %s149_s29, 12288  ;;  %p5493_p8 = scmp.lt.s32.totalorder %s149_s29, %s149_s29 }
  0xc5   :  { %p5489_p7 = scmp.ne.s32.totalorder %s149_s29, %s5488_s10  ;;  %p5494_p9 = scmp.lt.s32.totalorder %s5488_s10, %s5488_s10 }
  0xc7   :  { %p5495_p10 = por %p5494_p9, %p5493_p8 }
  0xc9   :  { %p5496_p11 = pnand %p5495_p10, %p5489_p7 }
  0xcb   :  { %5499 = shalt.err (!%p5496_p11)
}
  0xcc   :  { %154 = dma.hbm_to_vmem [thread:$0]  %s6103_s12, 12288, %s149_s29, [#allocation17], %s5573_s8, %s5573_s8, %s5574_s2  }
  0xcd   :  { %s5500_s0 = scalar_lea.hbm %s6105_s14, 12288 }
  0xce   :  { %p5501_p12 = scmp.ne.s32.totalorder %s6105_s14, %s5500_s0  ;;  %p5504_p13 = scmp.lt.u32.totalorder %s5500_s0, %s6105_s14 }
  0xd0   :  { %p5506_p0 = pnand %p5504_p13, %p5501_p12 }
  0xd2   :  { %5509 = shalt.err (!%p5506_p0)
}
  0xd3   :  { %s5510_s3 = scalar_lea.vmem %s171_s11, 12288  ;;  %p5515_p2 = scmp.lt.s32.totalorder %s171_s11, %s171_s11 }
  0xd4   :  { %p5511_p1 = scmp.ne.s32.totalorder %s171_s11, %s5510_s3  ;;  %p5516_p3 = scmp.lt.s32.totalorder %s5510_s3, %s5510_s3 }
  0xd6   :  { %p5517_p4 = por %p5516_p3, %p5515_p2 }
  0xd8   :  { %p5518_p5 = pnand %p5517_p4, %p5511_p1 }
  0xda   :  { %5521 = shalt.err (!%p5518_p5)
}
  0xdb   :  { %176 = dma.hbm_to_vmem [thread:$0]  %s6105_s14, 12288, %s171_s11, [#allocation20], %s5573_s8, %s5573_s8, %s5574_s2  }
  0xdc   :  { %s5577_s20 = smov [#allocation22]   ;;  %s5522_s28 = scalar_lea.hbm %s6106_s15, 64 }
  0xdd   :  { %s183_s26 = sshll.u32 %s5577_s20, 4  ;;  %p5523_p6 = scmp.ne.s32.totalorder %s6106_s15, %s5522_s28  ;;  %s184_s26 = int_to_ptr.vmem [resolvable:$true] %s183_s26 }
  0xde   :  { %p5526_p7 = scmp.lt.u32.totalorder %s5522_s28, %s6106_s15 }
  0xe0   :  { %p5528_p8 = pnand %p5526_p7, %p5523_p6 }
  0xe2   :  { %5531 = shalt.err (!%p5528_p8)
}
  0xe3   :  { %s5532_s6 = scalar_lea.vmem %s184_s26, 64  ;;  %p5537_p10 = scmp.lt.s32.totalorder %s184_s26, %s184_s26 }
  0xe4   :  { %p5533_p9 = scmp.ne.s32.totalorder %s184_s26, %s5532_s6  ;;  %p5538_p11 = scmp.lt.s32.totalorder %s5532_s6, %s5532_s6 }
  0xe6   :  { %p5539_p12 = por %p5538_p11, %p5537_p10 }
  0xe8   :  { %p5540_p13 = pnand %p5539_p12, %p5533_p9 }
  0xea   :  { %5543 = shalt.err (!%p5540_p13)
}
  0xeb   :  { %186 = dma.hbm_to_vmem [thread:$0]  %s6106_s15, 64, %s184_s26, [#allocation23]  }
  0xec   :  { %5544 = dma.done.wait [#allocation3], 32  }
  0xed   :  { %5545 = vsyncadd [#allocation3], 4294967264 }
  0xee   :  { %5546 = dma.done.wait [#allocation5], 1568  }
  0xef   :  { %5547 = vsyncadd [#allocation5], 4294965728 }
  0xf0   :  { %5548 = dma.done.wait [#allocation8], 1568  }
  0xf1   :  { %5549 = vsyncadd [#allocation8], 4294965728 }
  0xf2   :  { %5550 = dma.done.wait [#allocation11], 3104  }
  0xf3   :  { %5551 = vsyncadd [#allocation11], 4294964192 }
  0xf4   :  { %5552 = dma.done.wait [#allocation14], 6176  }
  0xf5   :  { %5553 = vsyncadd [#allocation14], 4294961120 }
  0xf6   :  { %5554 = dma.done.wait [#allocation17], 12352  }
  0xf7   :  { %5555 = vsyncadd [#allocation17], 4294954944 }
  0xf8   :  { %5556 = dma.done.wait [#allocation20], 12352  }
  0xf9   :  { %5557 = vsyncadd [#allocation20], 4294954944 }
  0xfa   :  { %5558 = dma.done.wait [#allocation23], 64  }
  0xfb   :  { %5559 = vsyncadd [#allocation23], 4294967232  ;;  %vm258_vm0 = vcmask 1040384   ;;  %vm259_vm1 = vcmask 1041408   ;;  %v5578_v0 = vmov 65535   ;;  %s6113_s11 = sld [smem:[#allocation32_spill]]  ;;  %v314_v17 = vlaneseq }
  0xfc   :  { %v260_v1 = vsel %vm258_vm0, 4294967295, %v5578_v0  ;;  %v250_v3 = vld [vmem:[#allocation2] sm:$0x3]  ;;  %vm251_vm2 = vcmask 23552   ;;  %s6114_s7 = sld [smem:[#allocation33_spill]]  ;;  %vm337_vm3 = vcmask 261120  }
  0xfd   :  { %v261_v2 = vsel %vm259_vm1, %v260_v1, 0  ;;  %v5902_v18 = vshrl.u32 %v314_v17, 7  ;;  %v243_v20 = vld [vmem:[#allocation4] sm:$0x3]  ;;  %v4828_v46 = vld [vmem:[#allocation6 + $0x20] sm:$0xff]   ;;  %vm493_vm4 = vcmask 523264  }
  0xfe   :  { %v263_v6 = vand.u32 %v261_v2, %v250_v3  ;;  %v4832_v47 = vld [vmem:[#allocation6] sm:$0xff]   ;;  %v4829_v50 = vld [vmem:[#allocation6 + $0x28] sm:$0xff]   ;;  %v4830_v52 = vld [vmem:[#allocation6 + $0x30] sm:$0xff]  }
  0xff   :  { %v5905_v19 = vsub.s32 0, %v5902_v18  ;;  %v5908_v21 = vsub.s32 1, %v5902_v18  ;;  %v4833_v51 = vld [vmem:[#allocation6 + $0x8] sm:$0xff]   ;;  %v4834_v53 = vld [vmem:[#allocation6 + $0x10] sm:$0xff]   ;;  %v4831_v54 = vld [vmem:[#allocation6 + $0x38] sm:$0xff]  }
 0x100   :  { %4534 = vmatprep.subr.bf16.mxu0 %v263_v6  ;;  %v4835_v55 = vld [vmem:[#allocation6 + $0x18] sm:$0xff]   ;;  %v4836_v56 = vld [vmem:[#allocation6 + $0x40] sm:$0xff]  }
 0x101   :  { %v244_v4 = vld [vmem:[%s6113_s11] sm:$0xff]  ;;  %v245_v5 = vld [vmem:[%s6113_s11 + $0x8] sm:$0xff]  ;;  %v246_v8 = vld [vmem:[%s6113_s11 + $0x10] sm:$0xff]  ;;  %4535 = vmatpush3.bf16.msra.mxu0 %v263_v6  ;;  %v317_v22 = vrot.slane %v243_v20, %v5905_v19  ;;  %v325_v23 = vrot.slane %v243_v20, %v5908_v21 }
 0x102   :  { %v248_v7 = vpack.c.bf16 %v245_v5, %v244_v4  ;;  %v247_v9 = vld [vmem:[%s6113_s11 + $0x18] sm:$0xff]  ;;  %v230_v11 = vld [vmem:[%s6114_s7] sm:$0xff]  ;;  %v231_v12 = vld [vmem:[%s6114_s7 + $0x8] sm:$0xff] }
 0x103   :  { %v249_v10 = vpack.c.bf16 %v247_v9, %v246_v8  ;;  %v4103_v13 = vld [vmem:[%s6114_s7 + $0x20] sm:$0xff]  ;;  %v5891_v14 = vpack.c.bf16 %v231_v12, %v230_v11  ;;  %v4104_v15 = vld [vmem:[%s6114_s7 + $0x28] sm:$0xff]  ;;  %v232_v42 = vld [vmem:[%s6114_s7 + $0x10] sm:$0xff] }
 0x104   :  { %4536 = vmatprep.mubr.msk.bf16.mxu0 %vm251_vm2, %v248_v7  ;;  %v5896_v16 = vpack.c.bf16 %v4104_v15, %v4103_v13  ;;  %v233_v43 = vld [vmem:[%s6114_s7 + $0x18] sm:$0xff]  ;;  %v4105_v44 = vld [vmem:[%s6114_s7 + $0x30] sm:$0xff]  ;;  %v334_v12 = vld [vmem:[#allocation7] sm:$0x3] }
 0x105   :  { %4537 = vmatmul.mubr.msk.bf16.vlgmr.msra.gmra.mrb[0].mxu0 %vm251_vm2, %v249_v10  ;;  %4544 = vmatprep.mubr.msk.bf16.mxu1 %vm337_vm3, %v5891_v14  ;;  %v4106_v45 = vld [vmem:[%s6114_s7 + $0x38] sm:$0xff]  ;;  %v5924_v48 = vpack.c.bf16 %v233_v43, %v232_v42  ;;  %v4837_v5 = vld [vmem:[#allocation6 + $0x48] sm:$0xff]   ;;  %v723_v13 = vrot.slane %v334_v12, %v5905_v19  ;;  %v731_v20 = vrot.slane %v334_v12, %v5908_v21 }
 0x106   :  { %4552 = vmatprep.mubr.msk.bf16.mxu0 %vm337_vm3, %v5896_v16  ;;  %v5926_v49 = vpack.c.bf16 %v4106_v45, %v4105_v44  ;;  %v4838_v6 = vld [vmem:[#allocation6 + $0x50] sm:$0xff]   ;;  %v4839_v7 = vld [vmem:[#allocation6 + $0x58] sm:$0xff]   ;;  %v4840_v42 = vld [vmem:[#allocation9 + $0x20] sm:$0xff]  }
 0x107   :  { %v4841_v43 = vld [vmem:[#allocation9 + $0x28] sm:$0xff]   ;;  %v4842_v44 = vld [vmem:[#allocation9 + $0x30] sm:$0xff]   ;;  %v4843_v45 = vld [vmem:[#allocation9 + $0x38] sm:$0xff]  }
 0x1d8   :  { %v4538_v24 = vpop.f32.mrb[0].mxu0 }
 0x1d9   :  { %v320_v25 = vmul.f32 %v4538_v24, %v317_v22  ;;  %v299_v26 = vpop.f32.mrb[1].mxu0 }
 0x1da   :  { %v318_v27 = vmul.f32 %v317_v22, %v299_v26  ;;  %v4539_v28 = vpop.f32.mrb[2].mxu0 }
 0x1db   :  { %v328_v29 = vadd.f32 %v325_v23, %v320_v25  ;;  %v321_v30 = vmul.f32 %v4539_v28, %v317_v22  ;;  %v302_v31 = vpop.f32.mrb[3].mxu0 }
 0x1dc   :  { %v326_v32 = vadd.f32 %v325_v23, %v318_v27  ;;  %v319_v33 = vmul.f32 %v317_v22, %v302_v31 }
 0x1dd   :  { %v329_v34 = vadd.f32 %v325_v23, %v321_v30  ;;  %v332_v36 = vmax.f32 %v328_v29, 0.0 }
 0x1de   :  { %v327_v35 = vadd.f32 %v325_v23, %v319_v33  ;;  %v330_v38 = vmax.f32 %v326_v32, 0.0 }
 0x1df   :  { %v333_v37 = vmax.f32 %v329_v34, 0.0 }
 0x1e0   :  { %v331_v39 = vmax.f32 %v327_v35, 0.0 }
 0x1e1   :  { %v336_v40 = vpack.c.bf16 %v333_v37, %v332_v36 }
 0x1e2   :  { %v335_v41 = vpack.c.bf16 %v331_v39, %v330_v38 }
 0x1e4   :  { %4540 = vmatprep.subr.bf16.mxu1 %v335_v41  ;;  %4548 = vmatprep.subr.bf16.mxu0 %v335_v41 }
 0x1e5   :  { %4541 = vmatpush3.bf16.msra.mxu1 %v335_v41  ;;  %4549 = vmatpush3.bf16.msra.mxu0 %v335_v41 }
 0x1e6   :  { %4542 = vmatprep.subr.bf16.mxu1 %v336_v40  ;;  %4550 = vmatprep.subr.bf16.mxu0 %v336_v40 }
 0x1e9   :  { %4543 = vmatpush3.bf16.msra.mxu1 %v336_v40  ;;  %4551 = vmatpush3.bf16.msra.mxu0 %v336_v40 }
 0x1ea   :  { %4556 = vmatprep.subr.bf16.mxu0 %v4828_v46  ;;  %4568 = vmatprep.subr.bf16.mxu1 %v4832_v47 }
 0x1ec   :  { %4545 = vmatmul.mubr.msk.bf16.vlgmr.msra.gmra.mrb[0].mxu1 %vm337_vm3, %v5924_v48  ;;  %4553 = vmatmul.mubr.msk.bf16.vlgmr.msra.gmra.mrb[4].mxu0 %vm337_vm3, %v5926_v49 }
 0x1ed   :  { %4557 = vmatpush3.bf16.msra.mxu0 %v4828_v46  ;;  %4564 = vmatprep.mubr.msk.bf16.mxu0 %vm493_vm4, %v335_v41  ;;  %v4844_v46 = vld [vmem:[#allocation9] sm:$0xff]  }
 0x1ee   :  { %4558 = vmatprep.subr.bf16.mxu0 %v4829_v50  ;;  %4569 = vmatpush3.bf16.msra.mxu1 %v4832_v47  ;;  %v4845_v47 = vld [vmem:[#allocation9 + $0x8] sm:$0xff]  }
 0x1ef   :  { %4570 = vmatprep.subr.bf16.mxu1 %v4833_v51 }
 0x1f1   :  { %4559 = vmatpush3.bf16.msra.mxu0 %v4829_v50  ;;  %v4846_v50 = vld [vmem:[#allocation9 + $0x10] sm:$0xff]  }
 0x1f2   :  { %4560 = vmatprep.subr.bf16.mxu0 %v4830_v52  ;;  %4571 = vmatpush3.bf16.msra.mxu1 %v4833_v51  ;;  %v4847_v51 = vld [vmem:[#allocation9 + $0x18] sm:$0xff]  }
 0x1f3   :  { %4572 = vmatprep.subr.bf16.mxu1 %v4834_v53 }
 0x1f5   :  { %4561 = vmatpush3.bf16.msra.mxu0 %v4830_v52  ;;  %v4848_v52 = vld [vmem:[#allocation9 + $0x40] sm:$0xff]  }
 0x1f6   :  { %4562 = vmatprep.subr.bf16.mxu0 %v4831_v54  ;;  %4573 = vmatpush3.bf16.msra.mxu1 %v4834_v53 }
 0x1f7   :  { %4574 = vmatprep.subr.bf16.mxu1 %v4835_v55 }
 0x1f9   :  { %4563 = vmatpush3.bf16.msra.mxu0 %v4831_v54 }
 0x1fa   :  { %4575 = vmatpush3.bf16.msra.mxu1 %v4835_v55 }
 0x1fb   :  { %4580 = vmatprep.subr.bf16.mxu1 %v4836_v56 }
 0x1fc   :  { %4565 = vmatmul.mubr.msk.bf16.vlgmr.msra.gmra.mrb[8].mxu0 %vm493_vm4, %v336_v40 }
 0x1fd   :  { %4596 = vmatprep.mubr.msk.bf16.mxu0 %vm337_vm3, %v5891_v14 }
 0x2bf   :  { %v4546_v57 = vpop.f32.mrb[0].mxu1  ;;  %v4554_v58 = vpop.f32.mrb[4].mxu0 }
 0x2c0   :  { %v378_v59 = vpop.f32.mrb[1].mxu1  ;;  %v435_v60 = vpop.f32.mrb[5].mxu0 }
 0x2c1   :  { %v4547_v61 = vpop.f32.mrb[2].mxu1  ;;  %v4555_v62 = vpop.f32.mrb[6].mxu0 }
 0x2c2   :  { %v394_v63 = vpack.c.bf16 %v4547_v61, %v4546_v57  ;;  %v381_v0 = vpop.f32.mrb[3].mxu1  ;;  %v451_v1 = vpack.c.bf16 %v4555_v62, %v4554_v58  ;;  %v438_v2 = vpop.f32.mrb[7].mxu0  ;;  %v4850_v62 = vld [vmem:[#allocation9 + $0x50] sm:$0xff]  }
 0x2c3   :  { %v393_v3 = vpack.c.bf16 %v381_v0, %v378_v59  ;;  %v450_v4 = vpack.c.bf16 %v438_v2, %v435_v60  ;;  %v4849_v59 = vld [vmem:[#allocation9 + $0x48] sm:$0xff]  }
 0x2c5   :  { %4576 = vmatprep.mubr.msk.bf16.mxu1 %vm493_vm4, %v393_v3  ;;  %v4851_v3 = vld [vmem:[#allocation9 + $0x58] sm:$0xff]  }
 0x2c6   :  { %4577 = vmatmul.mubr.msk.bf16.vlgmr.msra.gmra.mrb[4].mxu1 %vm493_vm4, %v394_v63 }
 0x2c7   :  { %4581 = vmatpush3.bf16.msra.mxu1 %v4836_v56  ;;  %4588 = vmatprep.mubr.msk.bf16.mxu1 %vm493_vm4, %v450_v4  ;;  %v740_v4 = vld [vmem:[#allocation10] sm:$0x3] }
 0x2c8   :  { %4582 = vmatprep.subr.bf16.mxu1 %v4837_v5 }
 0x2cb   :  { %4583 = vmatpush3.bf16.msra.mxu1 %v4837_v5  ;;  %v1115_v5 = vrot.slane %v740_v4, %v5905_v19 }
 0x2cc   :  { %4584 = vmatprep.subr.bf16.mxu1 %v4838_v6 }
 0x2cf   :  { %4585 = vmatpush3.bf16.msra.mxu1 %v4838_v6  ;;  %v4566_v8 = vpop.f32.mrb[8].mxu0  ;;  %v1123_v6 = vrot.slane %v740_v4, %v5908_v21  ;;  %v5579_v4 = vmov 0  }
 0x2d0   :  { %v534_v9 = vpop.f32.mrb[9].mxu0  ;;  %4586 = vmatprep.subr.bf16.mxu1 %v4839_v7 }
 0x2d1   :  { %v4567_v10 = vpop.f32.mrb[10].mxu0 }
 0x2d2   :  { %v537_v11 = vpop.f32.mrb[11].mxu0 }
 0x2d3   :  { %4587 = vmatpush3.bf16.msra.mxu1 %v4839_v7 }
 0x2d6   :  { %4589 = vmatmul.mubr.msk.bf16.vlgmr.msra.gmra.mrb[4].mxu1 %vm493_vm4, %v451_v1 }
 0x2d7   :  { %4648 = vmatprep.mubr.msk.bf16.mxu1 %vm337_vm3, %v5891_v14 }
 0x3a9   :  { %v4590_v15 = vpop.f32.mrb[4].mxu1 }
 0x3aa   :  { %v4736_v17 = vadd.f32 %v4590_v15, %v4566_v8  ;;  %v701_v22 = vpop.f32.mrb[5].mxu1 }
 0x3ab   :  { %v4737_v23 = vadd.f32 %v701_v22, %v534_v9  ;;  %v4591_v24 = vpop.f32.mrb[6].mxu1 }
 0x3ac   :  { %v726_v25 = vmul.f32 %v4736_v17, %v723_v13  ;;  %v4738_v26 = vadd.f32 %v4591_v24, %v4567_v10  ;;  %v704_v27 = vpop.f32.mrb[7].mxu1 }
 0x3ad   :  { %v724_v28 = vmul.f32 %v4737_v23, %v723_v13  ;;  %v4739_v29 = vadd.f32 %v704_v27, %v537_v11 }
 0x3ae   :  { %v734_v30 = vadd.f32 %v731_v20, %v726_v25  ;;  %v727_v31 = vmul.f32 %v4738_v26, %v723_v13 }
 0x3af   :  { %v732_v32 = vadd.f32 %v731_v20, %v724_v28  ;;  %v725_v33 = vmul.f32 %v4739_v29, %v723_v13 }
 0x3b0   :  { %v735_v34 = vadd.f32 %v731_v20, %v727_v31  ;;  %v738_v36 = vmax.f32 %v734_v30, 0.0  ;;  %v4852_v30 = vld [vmem:[#allocation12 + $0x40] sm:$0xff]   ;;  %v4853_v31 = vld [vmem:[#allocation12 + $0x48] sm:$0xff]  }
 0x3b1   :  { %v733_v35 = vadd.f32 %v731_v20, %v725_v33  ;;  %v736_v38 = vmax.f32 %v732_v32, 0.0  ;;  %v4854_v32 = vld [vmem:[#allocation12 + $0x50] sm:$0xff]   ;;  %v4855_v33 = vld [vmem:[#allocation12 + $0x58] sm:$0xff]  }
 0x3b2   :  { %v739_v37 = vmax.f32 %v735_v34, 0.0  ;;  %v4856_v34 = vld [vmem:[#allocation12 + $0x60] sm:$0xff]  }
 0x3b3   :  { %v737_v39 = vmax.f32 %v733_v35, 0.0  ;;  %v4857_v35 = vld [vmem:[#allocation12 + $0x68] sm:$0xff]  }
 0x3b4   :  { %v742_v40 = vpack.c.bf16 %v739_v37, %v738_v36  ;;  %v4858_v36 = vld [vmem:[#allocation12 + $0x70] sm:$0xff]   ;;  %v4859_v37 = vld [vmem:[#allocation12 + $0x78] sm:$0xff]  }
 0x3b5   :  { %v741_v41 = vpack.c.bf16 %v737_v39, %v736_v38  ;;  %v4860_v38 = vld [vmem:[#allocation12] sm:$0xff]   ;;  %v4861_v39 = vld [vmem:[#allocation12 + $0x8] sm:$0xff]  }
 0x3b7   :  { %4592 = vmatprep.subr.bf16.mxu0 %v741_v41 }
 0x3b8   :  { %4593 = vmatpush3.bf16.msra.mxu0 %v741_v41 }
 0x3b9   :  { %4594 = vmatprep.subr.bf16.mxu0 %v742_v40 }
 0x3bc   :  { %4595 = vmatpush3.bf16.msra.mxu0 %v742_v40 }
 0x3bd   :  { %4600 = vmatprep.subr.bf16.mxu0 %v741_v41 }
 0x3bf   :  { %4597 = vmatmul.mubr.msk.bf16.vlgmr.msra.gmra.mrb[12].mxu0 %vm337_vm3, %v5924_v48 }
 0x3c0   :  { %4601 = vmatpush3.bf16.msra.mxu0 %v741_v41  ;;  %4604 = vmatprep.mubr.msk.bf16.mxu0 %vm337_vm3, %v5896_v16 }
 0x3c1   :  { %4602 = vmatprep.subr.bf16.mxu0 %v742_v40 }
 0x3c4   :  { %4603 = vmatpush3.bf16.msra.mxu0 %v742_v40 }
 0x3c5   :  { %4608 = vmatprep.subr.bf16.mxu0 %v4840_v42 }
 0x3c7   :  { %4605 = vmatmul.mubr.msk.bf16.vlgmr.msra.gmra.mrb[16].mxu0 %vm337_vm3, %v5926_v49 }
 0x3c8   :  { %4609 = vmatpush3.bf16.msra.mxu0 %v4840_v42  ;;  %4616 = vmatprep.mubr.msk.bf16.mxu0 %vm493_vm4, %v741_v41  ;;  %v4863_v41 = vld [vmem:[#allocation12 + $0x18] sm:$0xff]   ;;  %v4864_v42 = vld [vmem:[#allocation12 + $0x20] sm:$0xff]  }
 0x3c9   :  { %4610 = vmatprep.subr.bf16.mxu0 %v4841_v43 }
 0x3cc   :  { %4611 = vmatpush3.bf16.msra.mxu0 %v4841_v43  ;;  %v4865_v43 = vld [vmem:[#allocation12 + $0x28] sm:$0xff]  }
 0x3cd   :  { %4612 = vmatprep.subr.bf16.mxu0 %v4842_v44 }
 0x3d0   :  { %4613 = vmatpush3.bf16.msra.mxu0 %v4842_v44  ;;  %v4866_v44 = vld [vmem:[#allocation12 + $0x30] sm:$0xff]  }
 0x3d1   :  { %4614 = vmatprep.subr.bf16.mxu0 %v4843_v45 }
 0x3d4   :  { %4615 = vmatpush3.bf16.msra.mxu0 %v4843_v45  ;;  %v4867_v45 = vld [vmem:[#allocation12 + $0x38] sm:$0xff]  }
 0x3d5   :  { %4620 = vmatprep.subr.bf16.mxu0 %v4844_v46 }
 0x3d7   :  { %4617 = vmatmul.mubr.msk.bf16.vlgmr.msra.gmra.mrb[20].mxu0 %vm493_vm4, %v742_v40  ;;  %v4862_v40 = vld [vmem:[#allocation12 + $0x10] sm:$0xff]  }
 0x3d8   :  { %4621 = vmatpush3.bf16.msra.mxu0 %v4844_v46  ;;  %v4868_v46 = vld [vmem:[#allocation12 + $0x80] sm:$0xff]  }
 0x3d9   :  { %4622 = vmatprep.subr.bf16.mxu0 %v4845_v47 }
 0x3dc   :  { %4623 = vmatpush3.bf16.msra.mxu0 %v4845_v47 }
 0x3dd   :  { %4624 = vmatprep.subr.bf16.mxu0 %v4846_v50 }
 0x3e0   :  { %4625 = vmatpush3.bf16.msra.mxu0 %v4846_v50 }
 0x3e1   :  { %4626 = vmatprep.subr.bf16.mxu0 %v4847_v51 }
 0x3e4   :  { %4627 = vmatpush3.bf16.msra.mxu0 %v4847_v51 }
 0x3e5   :  { %4632 = vmatprep.subr.bf16.mxu0 %v4848_v52 }
 0x492   :  { %v4598_v53 = vpop.f32.mrb[12].mxu0 }
 0x493   :  { %v777_v54 = vpop.f32.mrb[13].mxu0 }
 0x494   :  { %v4599_v55 = vpop.f32.mrb[14].mxu0 }
 0x495   :  { %v793_v56 = vpack.c.bf16 %v4599_v55, %v4598_v53  ;;  %v780_v57 = vpop.f32.mrb[15].mxu0  ;;  %v4869_v55 = vld [vmem:[#allocation12 + $0x88] sm:$0xff]  }
 0x496   :  { %v792_v58 = vpack.c.bf16 %v780_v57, %v777_v54  ;;  %v4870_v57 = vld [vmem:[#allocation12 + $0x90] sm:$0xff]  }
 0x498   :  { %4628 = vmatprep.mubr.msk.bf16.mxu0 %vm493_vm4, %v792_v58 }
 0x499   :  { %4629 = vmatmul.mubr.msk.bf16.vlgmr.msra.gmra.mrb[20].mxu0 %vm493_vm4, %v793_v56 }
 0x49a   :  { %4633 = vmatpush3.bf16.msra.mxu0 %v4848_v52  ;;  %v4606_v60 = vpop.f32.mrb[16].mxu0 }
 0x49b   :  { %4634 = vmatprep.subr.bf16.mxu0 %v4849_v59  ;;  %v828_v61 = vpop.f32.mrb[17].mxu0 }
 0x49c   :  { %v4607_v63 = vpop.f32.mrb[18].mxu0 }
 0x49d   :  { %v844_v0 = vpack.c.bf16 %v4607_v63, %v4606_v60  ;;  %v831_v1 = vpop.f32.mrb[19].mxu0  ;;  %v4871_v63 = vld [vmem:[#allocation12 + $0x98] sm:$0xff]  }
 0x49e   :  { %4635 = vmatpush3.bf16.msra.mxu0 %v4849_v59  ;;  %v843_v2 = vpack.c.bf16 %v831_v1, %v828_v61  ;;  %v4873_v1 = vld [vmem:[#allocation12 + $0xa8] sm:$0xff]  }
 0x49f   :  { %4636 = vmatprep.subr.bf16.mxu0 %v4850_v62 }
 0x4a0   :  { %4640 = vmatprep.mubr.msk.bf16.mxu0 %vm493_vm4, %v843_v2  ;;  %v4874_v2 = vld [vmem:[#allocation12 + $0xb0] sm:$0xff]  }
 0x4a2   :  { %4637 = vmatpush3.bf16.msra.mxu0 %v4850_v62 }
 0x4a3   :  { %4638 = vmatprep.subr.bf16.mxu0 %v4851_v3 }
 0x4a6   :  { %4639 = vmatpush3.bf16.msra.mxu0 %v4851_v3  ;;  %v4875_v3 = vld [vmem:[#allocation12 + $0xb8] sm:$0xff]  }
 0x4a9   :  { %4641 = vmatmul.mubr.msk.bf16.vlgmr.msra.gmra.mrb[20].mxu0 %vm493_vm4, %v844_v0  ;;  %v4872_v0 = vld [vmem:[#allocation12 + $0xa0] sm:$0xff]  }
 0x4aa   :  { %4724 = vmatprep.mubr.msk.bf16.mxu0 %vm337_vm3, %v5891_v14 }
 0x57c   :  { %v4642_v7 = vpop.f32.mrb[20].mxu0 }
 0x57d   :  { %v1118_v8 = vmul.f32 %v4642_v7, %v1115_v5  ;;  %v1093_v9 = vpop.f32.mrb[21].mxu0 }
 0x57e   :  { %v1116_v10 = vmul.f32 %v1115_v5, %v1093_v9  ;;  %v4643_v11 = vpop.f32.mrb[22].mxu0 }
 0x57f   :  { %v1126_v12 = vadd.f32 %v1123_v6, %v1118_v8  ;;  %v1119_v13 = vmul.f32 %v4643_v11, %v1115_v5  ;;  %v1096_v15 = vpop.f32.mrb[23].mxu0 }
 0x580   :  { %v1124_v17 = vadd.f32 %v1123_v6, %v1116_v10  ;;  %v1117_v20 = vmul.f32 %v1115_v5, %v1096_v15  ;;  %v1132_v5 = vld [vmem:[#allocation13] sm:$0x3] }
 0x581   :  { %v1127_v22 = vadd.f32 %v1123_v6, %v1119_v13  ;;  %v1130_v24 = vmax.f32 %v1126_v12, 0.0  ;;  %v1593_v7 = vrot.slane %v1132_v5, %v5908_v21 }
 0x582   :  { %v1125_v23 = vadd.f32 %v1123_v6, %v1117_v20  ;;  %v1128_v26 = vmax.f32 %v1124_v17, 0.0  ;;  %v1585_v6 = vrot.slane %v1132_v5, %v5905_v19 }
 0x583   :  { %v1131_v25 = vmax.f32 %v1127_v22, 0.0 }
 0x584   :  { %v1129_v27 = vmax.f32 %v1125_v23, 0.0 }
 0x585   :  { %v1134_v28 = vpack.c.bf16 %v1131_v25, %v1130_v24 }
 0x586   :  { %v1133_v29 = vpack.c.bf16 %v1129_v27, %v1128_v26 }
 0x588   :  { %4644 = vmatprep.subr.bf16.mxu1 %v1133_v29 }
 0x589   :  { %4645 = vmatpush3.bf16.msra.mxu1 %v1133_v29 }
 0x58a   :  { %4646 = vmatprep.subr.bf16.mxu1 %v1134_v28 }
 0x58d   :  { %4647 = vmatpush3.bf16.msra.mxu1 %v1134_v28 }
 0x58e   :  { %4652 = vmatprep.subr.bf16.mxu1 %v1133_v29 }
 0x590   :  { %4649 = vmatmul.mubr.msk.bf16.vlgmr.msra.gmra.mrb[8].mxu1 %vm337_vm3, %v5924_v48 }
 0x591   :  { %4653 = vmatpush3.bf16.msra.mxu1 %v1133_v29  ;;  %4656 = vmatprep.mubr.msk.bf16.mxu1 %vm337_vm3, %v5896_v16 }
 0x592   :  { %4654 = vmatprep.subr.bf16.mxu1 %v1134_v28 }
 0x595   :  { %4655 = vmatpush3.bf16.msra.mxu1 %v1134_v28 }
 0x596   :  { %4660 = vmatprep.subr.bf16.mxu1 %v4852_v30 }
 0x598   :  { %4657 = vmatmul.mubr.msk.bf16.vlgmr.msra.gmra.mrb[12].mxu1 %vm337_vm3, %v5926_v49 }
 0x599   :  { %4661 = vmatpush3.bf16.msra.mxu1 %v4852_v30  ;;  %4676 = vmatprep.mubr.bf16.mxu1 %v1133_v29 }
 0x59a   :  { %4662 = vmatprep.subr.bf16.mxu1 %v4853_v31 }
 0x59d   :  { %4663 = vmatpush3.bf16.msra.mxu1 %v4853_v31  ;;  %v4878_v31 = vld [vmem:[#allocation15 + $0x84] ss:$8 sps:$4 sm:$0xff]  }
 0x59e   :  { %4664 = vmatprep.subr.bf16.mxu1 %v4854_v32 }
 0x5a1   :  { %4665 = vmatpush3.bf16.msra.mxu1 %v4854_v32  ;;  %v4876_v32 = vld [vmem:[#allocation15 + $0x80] ss:$8 sps:$4 sm:$0xff]  }
 0x5a2   :  { %4666 = vmatprep.subr.bf16.mxu1 %v4855_v33 }
 0x5a5   :  { %4667 = vmatpush3.bf16.msra.mxu1 %v4855_v33  ;;  %v4881_v33 = vld [vmem:[#allocation15 + $0x94] ss:$8 sps:$4 sm:$0xff]  }
 0x5a6   :  { %4668 = vmatprep.subr.bf16.mxu1 %v4856_v34 }
 0x5a9   :  { %4669 = vmatpush3.bf16.msra.mxu1 %v4856_v34  ;;  %v4879_v34 = vld [vmem:[#allocation15 + $0x90] ss:$8 sps:$4 sm:$0xff]  }
 0x5aa   :  { %4670 = vmatprep.subr.bf16.mxu1 %v4857_v35 }
 0x5ad   :  { %4671 = vmatpush3.bf16.msra.mxu1 %v4857_v35  ;;  %v4884_v35 = vld [vmem:[#allocation15 + $0xa4] ss:$8 sps:$4 sm:$0xff]  }
 0x5ae   :  { %4672 = vmatprep.subr.bf16.mxu1 %v4858_v36 }
 0x5b1   :  { %4673 = vmatpush3.bf16.msra.mxu1 %v4858_v36  ;;  %v4882_v36 = vld [vmem:[#allocation15 + $0xa0] ss:$8 sps:$4 sm:$0xff]  }
 0x5b2   :  { %4674 = vmatprep.subr.bf16.mxu1 %v4859_v37 }
 0x5b5   :  { %4675 = vmatpush3.bf16.msra.mxu1 %v4859_v37  ;;  %v4887_v37 = vld [vmem:[#allocation15 + $0xb4] ss:$8 sps:$4 sm:$0xff]  }
 0x5b6   :  { %4680 = vmatprep.subr.bf16.mxu1 %v4860_v38 }
 0x5b8   :  { %4677 = vmatmul.mubr.bf16.vlgmr.msra.gmra.mrb[16].mxu1 %v1134_v28 }
 0x5b9   :  { %4681 = vmatpush3.bf16.msra.mxu1 %v4860_v38  ;;  %v4885_v38 = vld [vmem:[#allocation15 + $0xb0] ss:$8 sps:$4 sm:$0xff]  }
 0x5ba   :  { %4682 = vmatprep.subr.bf16.mxu1 %v4861_v39 }
 0x5bd   :  { %4683 = vmatpush3.bf16.msra.mxu1 %v4861_v39  ;;  %v4890_v39 = vld [vmem:[#allocation15 + $0xc4] ss:$8 sps:$4 sm:$0xff]  }
 0x5be   :  { %4684 = vmatprep.subr.bf16.mxu1 %v4862_v40 }
 0x5c1   :  { %4685 = vmatpush3.bf16.msra.mxu1 %v4862_v40  ;;  %v4888_v40 = vld [vmem:[#allocation15 + $0xc0] ss:$8 sps:$4 sm:$0xff]  }
 0x5c2   :  { %4686 = vmatprep.subr.bf16.mxu1 %v4863_v41 }
 0x5c5   :  { %4687 = vmatpush3.bf16.msra.mxu1 %v4863_v41  ;;  %v4893_v41 = vld [vmem:[#allocation15 + $0xd4] ss:$8 sps:$4 sm:$0xff]  }
 0x5c6   :  { %4688 = vmatprep.subr.bf16.mxu1 %v4864_v42 }
 0x5c9   :  { %4689 = vmatpush3.bf16.msra.mxu1 %v4864_v42  ;;  %v4891_v42 = vld [vmem:[#allocation15 + $0xd0] ss:$8 sps:$4 sm:$0xff]  }
 0x5ca   :  { %4690 = vmatprep.subr.bf16.mxu1 %v4865_v43 }
 0x5cd   :  { %4691 = vmatpush3.bf16.msra.mxu1 %v4865_v43  ;;  %v4896_v43 = vld [vmem:[#allocation15 + $0xe4] ss:$8 sps:$4 sm:$0xff]  }
 0x5ce   :  { %4692 = vmatprep.subr.bf16.mxu1 %v4866_v44 }
 0x5d1   :  { %4693 = vmatpush3.bf16.msra.mxu1 %v4866_v44  ;;  %v4894_v44 = vld [vmem:[#allocation15 + $0xe0] ss:$8 sps:$4 sm:$0xff]  }
 0x5d2   :  { %4694 = vmatprep.subr.bf16.mxu1 %v4867_v45 }
 0x5d5   :  { %4695 = vmatpush3.bf16.msra.mxu1 %v4867_v45  ;;  %v4899_v45 = vld [vmem:[#allocation15 + $0xf4] ss:$8 sps:$4 sm:$0xff]  }
 0x5d6   :  { %4700 = vmatprep.subr.bf16.mxu1 %v4868_v46 }
 0x663   :  { %v4650_v47 = vpop.f32.mrb[8].mxu1 }
 0x664   :  { %v1169_v50 = vpop.f32.mrb[9].mxu1 }
 0x665   :  { %v4651_v51 = vpop.f32.mrb[10].mxu1 }
 0x666   :  { %v1185_v52 = vpack.c.bf16 %v4651_v51, %v4650_v47  ;;  %v1172_v53 = vpop.f32.mrb[11].mxu1  ;;  %v4902_v47 = vld [vmem:[#allocation15 + $0x4] ss:$8 sps:$4 sm:$0xff]   ;;  %v4905_v51 = vld [vmem:[#allocation15 + $0x14] ss:$8 sps:$4 sm:$0xff]  }
 0x667   :  { %v1184_v54 = vpack.c.bf16 %v1172_v53, %v1169_v50  ;;  %v4900_v50 = vld [vmem:[#allocation15] ss:$8 sps:$4 sm:$0xff]   ;;  %v4908_v53 = vld [vmem:[#allocation15 + $0x24] ss:$8 sps:$4 sm:$0xff]  }
 0x669   :  { %4696 = vmatprep.mubr.bf16.mxu1 %v1184_v54  ;;  %v4906_v54 = vld [vmem:[#allocation15 + $0x20] ss:$8 sps:$4 sm:$0xff]  }
 0x66a   :  { %4697 = vmatmul.mubr.bf16.vlgmr.msra.gmra.mrb[16].mxu1 %v1185_v52  ;;  %v4903_v52 = vld [vmem:[#allocation15 + $0x10] ss:$8 sps:$4 sm:$0xff]  }
 0x66b   :  { %4701 = vmatpush3.bf16.msra.mxu1 %v4868_v46  ;;  %v4658_v56 = vpop.f32.mrb[12].mxu1  ;;  %v4897_v46 = vld [vmem:[#allocation15 + $0xf0] ss:$8 sps:$4 sm:$0xff]  }
 0x66c   :  { %4702 = vmatprep.subr.bf16.mxu1 %v4869_v55  ;;  %v1220_v58 = vpop.f32.mrb[13].mxu1 }
 0x66d   :  { %v4659_v59 = vpop.f32.mrb[14].mxu1 }
 0x66e   :  { %v1236_v60 = vpack.c.bf16 %v4659_v59, %v4658_v56  ;;  %v1223_v61 = vpop.f32.mrb[15].mxu1  ;;  %v4909_v56 = vld [vmem:[#allocation15 + $0x30] ss:$8 sps:$4 sm:$0xff]   ;;  %v4917_v59 = vld [vmem:[#allocation15 + $0x54] ss:$8 sps:$4 sm:$0xff]  }
 0x66f   :  { %4703 = vmatpush3.bf16.msra.mxu1 %v4869_v55  ;;  %v1235_v62 = vpack.c.bf16 %v1223_v61, %v1220_v58  ;;  %v4911_v55 = vld [vmem:[#allocation15 + $0x34] ss:$8 sps:$4 sm:$0xff]   ;;  %v4912_v58 = vld [vmem:[#allocation15 + $0x40] ss:$8 sps:$4 sm:$0xff]   ;;  %v4920_v61 = vld [vmem:[#allocation15 + $0x64] ss:$8 sps:$4 sm:$0xff]  }
 0x670   :  { %4704 = vmatprep.subr.bf16.mxu1 %v4870_v57 }
 0x671   :  { %4716 = vmatprep.mubr.bf16.mxu1 %v1235_v62  ;;  %v4918_v62 = vld [vmem:[#allocation15 + $0x60] ss:$8 sps:$4 sm:$0xff]  }
 0x673   :  { %4705 = vmatpush3.bf16.msra.mxu1 %v4870_v57  ;;  %v4914_v57 = vld [vmem:[#allocation15 + $0x44] ss:$8 sps:$4 sm:$0xff]  }
 0x674   :  { %4706 = vmatprep.subr.bf16.mxu1 %v4871_v63 }
 0x677   :  { %4707 = vmatpush3.bf16.msra.mxu1 %v4871_v63  ;;  %v4923_v63 = vld [vmem:[#allocation15 + $0x74] ss:$8 sps:$4 sm:$0xff]  }
 0x678   :  { %4708 = vmatprep.subr.bf16.mxu1 %v4872_v0 }
 0x67b   :  { %4709 = vmatpush3.bf16.msra.mxu1 %v4872_v0  ;;  %v4921_v0 = vld [vmem:[#allocation15 + $0x70] ss:$8 sps:$4 sm:$0xff]  }
 0x67c   :  { %4710 = vmatprep.subr.bf16.mxu1 %v4873_v1 }
 0x67f   :  { %4711 = vmatpush3.bf16.msra.mxu1 %v4873_v1  ;;  %v4926_v1 = vld [vmem:[#allocation15 + $0x104] ss:$8 sps:$4 sm:$0xff]  }
 0x680   :  { %4712 = vmatprep.subr.bf16.mxu1 %v4874_v2 }
 0x683   :  { %4713 = vmatpush3.bf16.msra.mxu1 %v4874_v2 }
 0x684   :  { %4714 = vmatprep.subr.bf16.mxu1 %v4875_v3 }
 0x687   :  { %4715 = vmatpush3.bf16.msra.mxu1 %v4875_v3 }
 0x68a   :  { %4717 = vmatmul.mubr.bf16.vlgmr.msra.gmra.mrb[16].mxu1 %v1236_v60  ;;  %v4915_v60 = vld [vmem:[#allocation15 + $0x50] ss:$8 sps:$4 sm:$0xff]  }
 0x68b   :  { %2266 = vmatprep.mubr.bf16.mxu1 %v5579_v4 }
 0x75d   :  { %v4718_v8 = vpop.f32.mrb[16].mxu1 }
 0x75e   :  { %v1588_v9 = vmul.f32 %v4718_v8, %v1585_v6  ;;  %v1563_v10 = vpop.f32.mrb[17].mxu1  ;;  %v4924_v8 = vld [vmem:[#allocation15 + $0x100] ss:$8 sps:$4 sm:$0xff]  }
 0x75f   :  { %v1586_v11 = vmul.f32 %v1585_v6, %v1563_v10  ;;  %v4719_v12 = vpop.f32.mrb[18].mxu1  ;;  %v4929_v10 = vld [vmem:[#allocation15 + $0x114] ss:$8 sps:$4 sm:$0xff]  }
 0x760   :  { %v1596_v13 = vadd.f32 %v1593_v7, %v1588_v9  ;;  %v1589_v15 = vmul.f32 %v4719_v12, %v1585_v6  ;;  %v1566_v17 = vpop.f32.mrb[19].mxu1  ;;  %v4932_v12 = vld [vmem:[#allocation15 + $0x124] ss:$8 sps:$4 sm:$0xff]  }
 0x761   :  { %v1594_v20 = vadd.f32 %v1593_v7, %v1586_v11  ;;  %v1587_v22 = vmul.f32 %v1585_v6, %v1566_v17  ;;  %v4927_v11 = vld [vmem:[#allocation15 + $0x110] ss:$8 sps:$4 sm:$0xff]  }
 0x762   :  { %v1600_v23 = vmax.f32 %v1596_v13, 0.0  ;;  %v1597_v24 = vadd.f32 %v1593_v7, %v1589_v15 }
 0x763   :  { %v1598_v25 = vmax.f32 %v1594_v20, 0.0  ;;  %v1595_v26 = vadd.f32 %v1593_v7, %v1587_v22  ;;  %v4930_v20 = vld [vmem:[#allocation15 + $0x120] ss:$8 sps:$4 sm:$0xff]  }
 0x764   :  { %1604 = vst [vmem:[%s6107_s16 + $0x10] sm:$0xff] %v1600_v23  ;;  %v1601_v27 = vmax.f32 %v1597_v24, 0.0  ;;  %v4935_v24 = vld [vmem:[#allocation15 + $0x134] ss:$8 sps:$4 sm:$0xff]  }
 0x765   :  { %1602 = vst [vmem:[%s6107_s16] sm:$0xff] %v1598_v25  ;;  %v1599_v28 = vmax.f32 %v1595_v26, 0.0  ;;  %v4933_v26 = vld [vmem:[#allocation15 + $0x130] ss:$8 sps:$4 sm:$0xff]  }
 0x766   :  { %1605 = vst [vmem:[%s6107_s16 + $0x18] sm:$0xff] %v1601_v27  ;;  %v1608_v29 = vpack.c.bf16 %v1601_v27, %v1600_v23  ;;  %v4938_v27 = vld [vmem:[#allocation15 + $0x144] ss:$8 sps:$4 sm:$0xff]  }
 0x767   :  { %1603 = vst [vmem:[%s6107_s16 + $0x8] sm:$0xff] %v1599_v28  ;;  %v1607_v30 = vpack.c.bf16 %v1599_v28, %v1598_v25  ;;  %v4936_v28 = vld [vmem:[#allocation15 + $0x140] ss:$8 sps:$4 sm:$0xff]  }
 0x769   :  { %4720 = vmatprep.subr.bf16.mxu0 %v1607_v30 }
 0x76a   :  { %4721 = vmatpush3.bf16.msra.mxu0 %v1607_v30 }
 0x76b   :  { %4722 = vmatprep.subr.bf16.mxu0 %v1608_v29 }
 0x76e   :  { %4723 = vmatpush3.bf16.msra.mxu0 %v1608_v29 }
 0x76f   :  { %4728 = vmatprep.subr.bf16.mxu0 %v1607_v30 }
 0x771   :  { %4725 = vmatmul.mubr.msk.bf16.vlgmr.msra.gmra.mrb[24].mxu0 %vm337_vm3, %v5924_v48 }
 0x772   :  { %4729 = vmatpush3.bf16.msra.mxu0 %v1607_v30  ;;  %4732 = vmatprep.mubr.msk.bf16.mxu0 %vm337_vm3, %v5896_v16 }
 0x773   :  { %4730 = vmatprep.subr.bf16.mxu0 %v1608_v29 }
 0x776   :  { %4731 = vmatpush3.bf16.msra.mxu0 %v1608_v29 }
 0x777   :  { %1824 = vmatprep.subr.bf16.mxu0 %v4878_v31  ;;  %v4944_v31 = vld [vmem:[#allocation15 + $0x164] ss:$8 sps:$4 sm:$0xff]  }
 0x779   :  { %4733 = vmatmul.mubr.msk.bf16.vlgmr.msra.gmra.mrb[28].mxu0 %vm337_vm3, %v5926_v49 }
 0x77a   :  { %1825 = vmatpush1.bf16.msra.mxu0 %v4876_v32  ;;  %1856 = vmatprep.mubr.bf16.mxu0 %v5579_v4  ;;  %v4942_v32 = vld [vmem:[#allocation15 + $0x160] ss:$8 sps:$4 sm:$0xff]  }
 0x77b   :  { %1826 = vmatprep.subr.bf16.mxu0 %v4881_v33  ;;  %v4947_v33 = vld [vmem:[#allocation15 + $0x174] ss:$8 sps:$4 sm:$0xff]  }
 0x77e   :  { %1827 = vmatpush1.bf16.msra.mxu0 %v4879_v34  ;;  %v4945_v34 = vld [vmem:[#allocation15 + $0x170] ss:$8 sps:$4 sm:$0xff]  }
 0x77f   :  { %1828 = vmatprep.subr.bf16.mxu0 %v4884_v35  ;;  %v4950_v35 = vld [vmem:[#allocation18 + $0x104] ss:$8 sps:$4 sm:$0xff]  }
 0x782   :  { %1829 = vmatpush1.bf16.msra.mxu0 %v4882_v36  ;;  %v4948_v36 = vld [vmem:[#allocation18 + $0x100] ss:$8 sps:$4 sm:$0xff]  }
 0x783   :  { %1830 = vmatprep.subr.bf16.mxu0 %v4887_v37  ;;  %v4953_v37 = vld [vmem:[#allocation18 + $0x114] ss:$8 sps:$4 sm:$0xff]  }
 0x786   :  { %1831 = vmatpush1.bf16.msra.mxu0 %v4885_v38  ;;  %v4951_v38 = vld [vmem:[#allocation18 + $0x110] ss:$8 sps:$4 sm:$0xff]  }
 0x787   :  { %1832 = vmatprep.subr.bf16.mxu0 %v4890_v39  ;;  %v4956_v39 = vld [vmem:[#allocation18 + $0x124] ss:$8 sps:$4 sm:$0xff]  }
 0x78a   :  { %1833 = vmatpush1.bf16.msra.mxu0 %v4888_v40  ;;  %v4954_v40 = vld [vmem:[#allocation18 + $0x120] ss:$8 sps:$4 sm:$0xff]  }
 0x78b   :  { %1834 = vmatprep.subr.bf16.mxu0 %v4893_v41  ;;  %v4959_v41 = vld [vmem:[#allocation18 + $0x134] ss:$8 sps:$4 sm:$0xff]  }
 0x78e   :  { %1835 = vmatpush1.bf16.msra.mxu0 %v4891_v42  ;;  %v4957_v42 = vld [vmem:[#allocation18 + $0x130] ss:$8 sps:$4 sm:$0xff]  }
 0x78f   :  { %1836 = vmatprep.subr.bf16.mxu0 %v4896_v43  ;;  %v4962_v43 = vld [vmem:[#allocation18 + $0x144] ss:$8 sps:$4 sm:$0xff]  }
 0x792   :  { %1837 = vmatpush1.bf16.msra.mxu0 %v4894_v44  ;;  %v4960_v44 = vld [vmem:[#allocation18 + $0x140] ss:$8 sps:$4 sm:$0xff]  }
 0x793   :  { %1838 = vmatprep.subr.bf16.mxu0 %v4899_v45  ;;  %v4965_v45 = vld [vmem:[#allocation18 + $0x154] ss:$8 sps:$4 sm:$0xff]  }
 0x796   :  { %1839 = vmatpush1.bf16.msra.mxu0 %v4897_v46  ;;  %v4963_v46 = vld [vmem:[#allocation18 + $0x150] ss:$8 sps:$4 sm:$0xff]  }
 0x797   :  { %1957 = vmatprep.subr.bf16.mxu0 %v4902_v47  ;;  %v4968_v47 = vld [vmem:[#allocation18 + $0x164] ss:$8 sps:$4 sm:$0xff]  }
 0x799   :  { %1857 = vmatmul.mubr.bf16.vlgmr.msra.gmra.mrb[32].mxu0 %v1607_v30  ;;  %v4939_v30 = vld [vmem:[#allocation15 + $0x150] ss:$8 sps:$4 sm:$0xff]  }
 0x79a   :  { %1866 = vmatprep.mubr.bf16.mxu0 %v5579_v4  ;;  %1958 = vmatpush1.bf16.msra.mxu0 %v4900_v50  ;;  %v4966_v50 = vld [vmem:[#allocation18 + $0x160] ss:$8 sps:$4 sm:$0xff]  }
 0x79b   :  { %1959 = vmatprep.subr.bf16.mxu0 %v4905_v51  ;;  %v4971_v51 = vld [vmem:[#allocation18 + $0x174] ss:$8 sps:$4 sm:$0xff]  }
 0x79e   :  { %1960 = vmatpush1.bf16.msra.mxu0 %v4903_v52  ;;  %v4969_v52 = vld [vmem:[#allocation18 + $0x170] ss:$8 sps:$4 sm:$0xff]  }
 0x79f   :  { %1961 = vmatprep.subr.bf16.mxu0 %v4908_v53  ;;  %v4974_v53 = vld [vmem:[#allocation18 + $0x184] ss:$8 sps:$4 sm:$0xff]  }
 0x7a1   :  { %1867 = vmatmul.mubr.bf16.gmra.mrb[36].mxu0 %v1608_v29  ;;  %v4941_v29 = vld [vmem:[#allocation15 + $0x154] ss:$8 sps:$4 sm:$0xff]  }
 0x7a2   :  { %1962 = vmatpush1.bf16.msra.mxu0 %v4906_v54  ;;  %1989 = vmatprep.mubr.bf16.mxu0 %v5579_v4  ;;  %v4972_v54 = vld [vmem:[#allocation18 + $0x180] ss:$8 sps:$4 sm:$0xff]  }
 0x7a3   :  { %1963 = vmatprep.subr.bf16.mxu0 %v4911_v55  ;;  %v4977_v55 = vld [vmem:[#allocation18 + $0x194] ss:$8 sps:$4 sm:$0xff]  }
 0x7a6   :  { %1964 = vmatpush1.bf16.msra.mxu0 %v4909_v56  ;;  %v4975_v56 = vld [vmem:[#allocation18 + $0x190] ss:$8 sps:$4 sm:$0xff]  }
 0x7a7   :  { %1965 = vmatprep.subr.bf16.mxu0 %v4914_v57  ;;  %v4980_v57 = vld [vmem:[#allocation18 + $0x1a4] ss:$8 sps:$4 sm:$0xff]  }
 0x7aa   :  { %1966 = vmatpush1.bf16.msra.mxu0 %v4912_v58  ;;  %v4978_v58 = vld [vmem:[#allocation18 + $0x1a0] ss:$8 sps:$4 sm:$0xff]  }
 0x7ab   :  { %1967 = vmatprep.subr.bf16.mxu0 %v4917_v59  ;;  %v4983_v59 = vld [vmem:[#allocation18 + $0x1b4] ss:$8 sps:$4 sm:$0xff]  }
 0x7ae   :  { %1968 = vmatpush1.bf16.msra.mxu0 %v4915_v60  ;;  %v4981_v60 = vld [vmem:[#allocation18 + $0x1b0] ss:$8 sps:$4 sm:$0xff]  }
 0x7af   :  { %1969 = vmatprep.subr.bf16.mxu0 %v4920_v61  ;;  %v4986_v61 = vld [vmem:[#allocation18 + $0x1c4] ss:$8 sps:$4 sm:$0xff]  }
 0x7b2   :  { %1970 = vmatpush1.bf16.msra.mxu0 %v4918_v62  ;;  %v4984_v62 = vld [vmem:[#allocation18 + $0x1c0] ss:$8 sps:$4 sm:$0xff]  }
 0x7b3   :  { %1971 = vmatprep.subr.bf16.mxu0 %v4923_v63  ;;  %v4989_v63 = vld [vmem:[#allocation18 + $0x1d4] ss:$8 sps:$4 sm:$0xff]  }
 0x7b6   :  { %1972 = vmatpush1.bf16.msra.mxu0 %v4921_v0  ;;  %v4987_v0 = vld [vmem:[#allocation18 + $0x1d0] ss:$8 sps:$4 sm:$0xff]  }
 0x7b7   :  { %2107 = vmatprep.subr.bf16.mxu0 %v4926_v1  ;;  %v4992_v1 = vld [vmem:[#allocation18 + $0x1e4] ss:$8 sps:$4 sm:$0xff]  }
 0x844   :  { %v4726_v2 = vpop.f32.mrb[24].mxu0 }
 0x845   :  { %v1643_v3 = vpop.f32.mrb[25].mxu0 }
 0x846   :  { %v4727_v5 = vpop.f32.mrb[26].mxu0 }
 0x847   :  { %v1659_v6 = vpack.c.bf16 %v4727_v5, %v4726_v2  ;;  %v1646_v7 = vpop.f32.mrb[27].mxu0  ;;  %v4990_v2 = vld [vmem:[#allocation18 + $0x1e0] ss:$8 sps:$4 sm:$0xff]   ;;  %v4993_v5 = vld [vmem:[#allocation18 + $0x1f0] ss:$8 sps:$4 sm:$0xff]  }
 0x848   :  { %v1658_v9 = vpack.c.bf16 %v1646_v7, %v1643_v3  ;;  %v4995_v3 = vld [vmem:[#allocation18 + $0x1f4] ss:$8 sps:$4 sm:$0xff]  }
 0x849   :  { %v1606_v7 = vld [vmem:[#allocation16] sm:$0xf] }
 0x84a   :  { %1990 = vmatmul.mubr.bf16.vlgmr.msra.gmra.mrb[32].mxu0 %v1658_v9  ;;  %v5997_v9 = vsub.s32 3, %v5902_v18 }
 0x84b   :  { %2108 = vmatpush1.bf16.msra.mxu0 %v4924_v8  ;;  %1999 = vmatprep.mubr.bf16.mxu0 %v5579_v4  ;;  %v5994_v8 = vsub.s32 2, %v5902_v18 }
 0x84c   :  { %2109 = vmatprep.subr.bf16.mxu0 %v4929_v10  ;;  %v4734_v13 = vpop.f32.mrb[28].mxu0  ;;  %v2172_v10 = vrot.slane %v1606_v7, %v5905_v19 }
 0x84d   :  { %v1694_v15 = vpop.f32.mrb[29].mxu0 }
 0x84e   :  { %v4735_v17 = vpop.f32.mrb[30].mxu0 }
 0x84f   :  { %2110 = vmatpush1.bf16.msra.mxu0 %v4927_v11  ;;  %v1710_v22 = vpack.c.bf16 %v4735_v17, %v4734_v13  ;;  %v1697_v23 = vpop.f32.mrb[31].mxu0  ;;  %v2176_v11 = vrot.slane %v1606_v7, %v5994_v8  ;;  %v2202_v13 = vrot.slane %v1606_v7, %v5997_v9 }
 0x850   :  { %2111 = vmatprep.subr.bf16.mxu0 %v4932_v12  ;;  %v1709_v25 = vpack.c.bf16 %v1697_v23, %v1694_v15  ;;  %v2198_v12 = vrot.slane %v1606_v7, %v5908_v21  ;;  %v2182_v15 = vrot.slane %v2172_v10, %v5905_v19  ;;  %v5011_v7 = vld [vmem:[#allocation18 + $0x50] ss:$8 sps:$4 sm:$0xff]   ;;  %v5016_v10 = vld [vmem:[#allocation18 + $0x64] ss:$8 sps:$4 sm:$0xff]  }
 0x851   :  { %v2186_v17 = vrot.slane %v2176_v11, %v5905_v19  ;;  %v2212_v23 = vrot.slane %v2202_v13, %v5908_v21  ;;  %v5014_v11 = vld [vmem:[#allocation18 + $0x60] ss:$8 sps:$4 sm:$0xff]   ;;  %v5017_v13 = vld [vmem:[#allocation18 + $0x70] ss:$8 sps:$4 sm:$0xff]  }
 0x852   :  { %2000 = vmatmul.mubr.bf16.gmra.mrb[36].mxu0 %v1659_v6  ;;  %v4998_v6 = vld [vmem:[#allocation18 + $0x4] ss:$8 sps:$4 sm:$0xff]  }
 0x853   :  { %2112 = vmatpush1.bf16.msra.mxu0 %v4930_v20  ;;  %2139 = vmatprep.mubr.bf16.mxu0 %v5579_v4  ;;  %v2208_v20 = vrot.slane %v2198_v12, %v5908_v21  ;;  %v5019_v12 = vld [vmem:[#allocation18 + $0x74] ss:$8 sps:$4 sm:$0xff]  }
 0x854   :  { %2113 = vmatprep.subr.bf16.mxu0 %v4935_v24 }
 0x857   :  { %2114 = vmatpush1.bf16.msra.mxu0 %v4933_v26 }
 0x858   :  { %2115 = vmatprep.subr.bf16.mxu0 %v4938_v27 }
 0x85b   :  { %2116 = vmatpush1.bf16.msra.mxu0 %v4936_v28 }
 0x85c   :  { %2117 = vmatprep.subr.bf16.mxu0 %v4941_v29 }
 0x85f   :  { %2118 = vmatpush1.bf16.msra.mxu0 %v4939_v30 }
 0x860   :  { %2119 = vmatprep.subr.bf16.mxu0 %v4944_v31 }
 0x863   :  { %2120 = vmatpush1.bf16.msra.mxu0 %v4942_v32 }
 0x864   :  { %2121 = vmatprep.subr.bf16.mxu0 %v4947_v33 }
 0x867   :  { %2122 = vmatpush1.bf16.msra.mxu0 %v4945_v34 }
 0x868   :  { %2573 = vmatprep.subr.bf16.mxu0 %v4950_v35 }
 0x86a   :  { %2140 = vmatmul.mubr.bf16.vlgmr.msra.gmra.mrb[32].mxu0 %v1709_v25 }
 0x86b   :  { %2149 = vmatprep.mubr.bf16.mxu0 %v5579_v4  ;;  %2574 = vmatpush1.bf16.msra.mxu0 %v4948_v36 }
 0x86c   :  { %2575 = vmatprep.subr.bf16.mxu0 %v4953_v37 }
 0x86f   :  { %2576 = vmatpush1.bf16.msra.mxu0 %v4951_v38 }
 0x870   :  { %2577 = vmatprep.subr.bf16.mxu0 %v4956_v39 }
 0x872   :  { %2150 = vmatmul.mubr.bf16.gmra.mrb[36].mxu0 %v1710_v22 }
 0x873   :  { %2578 = vmatpush1.bf16.msra.mxu0 %v4954_v40 }
 0x874   :  { %2579 = vmatprep.subr.bf16.mxu0 %v4959_v41 }
 0x877   :  { %2580 = vmatpush1.bf16.msra.mxu0 %v4957_v42 }
 0x878   :  { %2581 = vmatprep.subr.bf16.mxu0 %v4962_v43 }
 0x87b   :  { %2582 = vmatpush1.bf16.msra.mxu0 %v4960_v44 }
 0x87c   :  { %2583 = vmatprep.subr.bf16.mxu0 %v4965_v45  ;;  %v4996_v45 = vld [vmem:[#allocation18] ss:$8 sps:$4 sm:$0xff]  }
 0x87f   :  { %2584 = vmatpush1.bf16.msra.mxu0 %v4963_v46 }
 0x880   :  { %2585 = vmatprep.subr.bf16.mxu0 %v4968_v47 }
 0x883   :  { %2586 = vmatpush1.bf16.msra.mxu0 %v4966_v50 }
 0x884   :  { %2587 = vmatprep.subr.bf16.mxu0 %v4971_v51  ;;  %v5001_v51 = vld [vmem:[#allocation18 + $0x14] ss:$8 sps:$4 sm:$0xff]  }
 0x887   :  { %2588 = vmatpush1.bf16.msra.mxu0 %v4969_v52 }
 0x888   :  { %2589 = vmatprep.subr.bf16.mxu0 %v4974_v53 }
 0x88b   :  { %2590 = vmatpush1.bf16.msra.mxu0 %v4972_v54 }
 0x88c   :  { %2591 = vmatprep.subr.bf16.mxu0 %v4977_v55 }
 0x88f   :  { %2592 = vmatpush1.bf16.msra.mxu0 %v4975_v56  ;;  %v4999_v56 = vld [vmem:[#allocation18 + $0x10] ss:$8 sps:$4 sm:$0xff]  }
 0x890   :  { %2593 = vmatprep.subr.bf16.mxu0 %v4980_v57 }
 0x893   :  { %2594 = vmatpush1.bf16.msra.mxu0 %v4978_v58 }
 0x894   :  { %2595 = vmatprep.subr.bf16.mxu0 %v4983_v59  ;;  %v5004_v59 = vld [vmem:[#allocation18 + $0x24] ss:$8 sps:$4 sm:$0xff]  }
 0x897   :  { %2596 = vmatpush1.bf16.msra.mxu0 %v4981_v60 }
 0x898   :  { %2597 = vmatprep.subr.bf16.mxu0 %v4986_v61 }
 0x89b   :  { %2598 = vmatpush1.bf16.msra.mxu0 %v4984_v62 }
 0x89c   :  { %2599 = vmatprep.subr.bf16.mxu0 %v4989_v63 }
 0x89f   :  { %2600 = vmatpush1.bf16.msra.mxu0 %v4987_v0  ;;  %v5002_v0 = vld [vmem:[#allocation18 + $0x20] ss:$8 sps:$4 sm:$0xff]  }
 0x8a0   :  { %2601 = vmatprep.subr.bf16.mxu0 %v4992_v1  ;;  %v5007_v1 = vld [vmem:[#allocation18 + $0x34] ss:$8 sps:$4 sm:$0xff]  }
 0x8a3   :  { %2602 = vmatpush1.bf16.msra.mxu0 %v4990_v2  ;;  %v5005_v2 = vld [vmem:[#allocation18 + $0x30] ss:$8 sps:$4 sm:$0xff]  }
 0x8a4   :  { %2603 = vmatprep.subr.bf16.mxu0 %v4995_v3  ;;  %v5010_v3 = vld [vmem:[#allocation18 + $0x44] ss:$8 sps:$4 sm:$0xff]  }
 0x8a7   :  { %2604 = vmatpush1.bf16.msra.mxu0 %v4993_v5  ;;  %v5008_v5 = vld [vmem:[#allocation18 + $0x40] ss:$8 sps:$4 sm:$0xff]  }
 0x8a8   :  { %2786 = vmatprep.subr.bf16.mxu0 %v4998_v6  ;;  %v5013_v6 = vld [vmem:[#allocation18 + $0x54] ss:$8 sps:$4 sm:$0xff]  }
 0x93d   :  { %v2141_v22 = vpop.f32.mrb[32].mxu0 }
 0x93e   :  { %v2187_v24 = vmul.f32 %v2182_v15, %v2141_v22  ;;  %v2143_v18 = vpop.f32.mrb[33].mxu0  ;;  %v5023_v22 = vld [vmem:[#allocation18 + $0x90] ss:$8 sps:$4 sm:$0xff]  }
 0x93f   :  { %v2188_v25 = vmul.f32 %v2186_v17, %v2143_v18  ;;  %v2145_v26 = vpop.f32.mrb[34].mxu0  ;;  %v5031_v18 = vld [vmem:[#allocation18 + $0xb4] ss:$8 sps:$4 sm:$0xff]  }
 0x940   :  { %v2213_v27 = vadd.f32 %v2208_v20, %v2187_v24  ;;  %v2189_v28 = vmul.f32 %v2182_v15, %v2145_v26  ;;  %v2147_v29 = vpop.f32.mrb[35].mxu0  ;;  %v5026_v24 = vld [vmem:[#allocation18 + $0xa0] ss:$8 sps:$4 sm:$0xff]   ;;  %v5034_v26 = vld [vmem:[#allocation18 + $0xc4] ss:$8 sps:$4 sm:$0xff]  }
 0x941   :  { %v2214_v30 = vadd.f32 %v2212_v23, %v2188_v25  ;;  %v2190_v31 = vmul.f32 %v2186_v17, %v2147_v29  ;;  %v5029_v25 = vld [vmem:[#allocation18 + $0xb0] ss:$8 sps:$4 sm:$0xff]  }
 0x942   :  { %v2215_v32 = vadd.f32 %v2208_v20, %v2189_v28  ;;  %v2221_v34 = vmax.f32 %v2213_v27, 0.0  ;;  %v5032_v27 = vld [vmem:[#allocation18 + $0xc0] ss:$8 sps:$4 sm:$0xff]   ;;  %v5037_v28 = vld [vmem:[#allocation18 + $0xd4] ss:$8 sps:$4 sm:$0xff]  }
 0x943   :  { %v2216_v33 = vadd.f32 %v2212_v23, %v2190_v31  ;;  %v2222_v36 = vmax.f32 %v2214_v30, 0.0  ;;  %v5035_v29 = vld [vmem:[#allocation18 + $0xd0] ss:$8 sps:$4 sm:$0xff]   ;;  %v5040_v30 = vld [vmem:[#allocation18 + $0xe4] ss:$8 sps:$4 sm:$0xff]  }
 0x944   :  { %v2223_v35 = vmax.f32 %v2215_v32, 0.0  ;;  %v5038_v31 = vld [vmem:[#allocation18 + $0xe0] ss:$8 sps:$4 sm:$0xff]   ;;  %v5043_v32 = vld [vmem:[#allocation18 + $0xf4] ss:$8 sps:$4 sm:$0xff]  }
 0x945   :  { %v2224_v37 = vmax.f32 %v2216_v33, 0.0  ;;  %v2151_v38 = vpop.f32.mrb[36].mxu0  ;;  %v5041_v33 = vld [vmem:[#allocation18 + $0xf0] ss:$8 sps:$4 sm:$0xff]  }
 0x946   :  { %v2230_v39 = vpack.c.bf16 %v2223_v35, %v2221_v34  ;;  %v2191_v40 = vmul.f32 %v2182_v15, %v2151_v38  ;;  %v2153_v41 = vpop.f32.mrb[37].mxu0  ;;  %v5046_v34 = vld [vmem:[#allocation18 + $0x204] ss:$8 sps:$4 sm:$0xff]  }
 0x947   :  { %v2192_v42 = vmul.f32 %v2186_v17, %v2153_v41  ;;  %v2155_v43 = vpop.f32.mrb[38].mxu0  ;;  %v2231_v44 = vpack.c.bf16 %v2224_v37, %v2222_v36  ;;  %v5044_v41 = vld [vmem:[#allocation18 + $0x200] ss:$8 sps:$4 sm:$0xff]  }
 0x948   :  { %v2217_v46 = vadd.f32 %v2208_v20, %v2191_v40  ;;  %v2193_v47 = vmul.f32 %v2182_v15, %v2155_v43  ;;  %v2157_v50 = vpop.f32.mrb[39].mxu0  ;;  %v5022_v15 = vld [vmem:[#allocation18 + $0x84] ss:$8 sps:$4 sm:$0xff]   ;;  %v5047_v43 = vld [vmem:[#allocation18 + $0x210] ss:$8 sps:$4 sm:$0xff]  }
 0x949   :  { %v2218_v52 = vadd.f32 %v2212_v23, %v2192_v42  ;;  %v2194_v53 = vmul.f32 %v2186_v17, %v2157_v50  ;;  %2234 = vmatprep.subr.bf16.mxu1 %v2231_v44  ;;  %2605 = vmatprep.mubr.bf16.mxu0 %v2231_v44  ;;  %v5020_v17 = vld [vmem:[#allocation18 + $0x80] ss:$8 sps:$4 sm:$0xff]   ;;  %v5049_v42 = vld [vmem:[#allocation18 + $0x214] ss:$8 sps:$4 sm:$0xff]  }
 0x94a   :  { %v2219_v54 = vadd.f32 %v2208_v20, %v2193_v47  ;;  %2235 = vmatpush1.bf16.msra.mxu1 %v2230_v39  ;;  %2606 = vmatmul.mubr.bf16.vlgmr.msra.gmra.mrb[40].mxu0 %v2230_v39  ;;  %v2225_v57 = vmax.f32 %v2217_v46, 0.0  ;;  %v5025_v20 = vld [vmem:[#allocation18 + $0x94] ss:$8 sps:$4 sm:$0xff]  }
 0x94b   :  { %v2220_v55 = vadd.f32 %v2212_v23, %v2194_v53  ;;  %2787 = vmatpush1.bf16.msra.mxu0 %v4996_v45  ;;  %v2226_v60 = vmax.f32 %v2218_v52, 0.0  ;;  %v5028_v23 = vld [vmem:[#allocation18 + $0xa4] ss:$8 sps:$4 sm:$0xff]   ;;  %v5050_v52 = vld [vmem:[#allocation18 + $0x220] ss:$8 sps:$4 sm:$0xff]  }
 0x94c   :  { %v2227_v58 = vmax.f32 %v2219_v54, 0.0  ;;  %2788 = vmatprep.subr.bf16.mxu0 %v5001_v51  ;;  %v5052_v45 = vld [vmem:[#allocation18 + $0x224] ss:$8 sps:$4 sm:$0xff]   ;;  %v5055_v54 = vld [vmem:[#allocation18 + $0x234] ss:$8 sps:$4 sm:$0xff]  }
 0x94d   :  { %v2228_v61 = vmax.f32 %v2220_v55, 0.0  ;;  %v5053_v55 = vld [vmem:[#allocation18 + $0x230] ss:$8 sps:$4 sm:$0xff]  }
 0x94e   :  { %v2232_v62 = vpack.c.bf16 %v2227_v58, %v2225_v57  ;;  %v5058_v57 = vld [vmem:[#allocation18 + $0x244] ss:$8 sps:$4 sm:$0xff]  }
 0x94f   :  { %v2233_v63 = vpack.c.bf16 %v2228_v61, %v2226_v60  ;;  %2789 = vmatpush1.bf16.msra.mxu0 %v4999_v56 }
 0x950   :  { %2790 = vmatprep.subr.bf16.mxu0 %v5004_v59 }
 0x951   :  { %2236 = vmatprep.subr.bf16.mxu1 %v2233_v63  ;;  %2615 = vmatprep.mubr.bf16.mxu0 %v2233_v63 }
 0x952   :  { %2237 = vmatpush1.bf16.msra.mxu1 %v2232_v62  ;;  %2616 = vmatmul.mubr.bf16.gmra.mrb[44].mxu0 %v2232_v62 }
 0x953   :  { %2291 = vmatprep.subr.bf16.mxu1 %v2231_v44  ;;  %2791 = vmatpush1.bf16.msra.mxu0 %v5002_v0  ;;  %v5061_v0 = vld [vmem:[#allocation18 + $0x254] ss:$8 sps:$4 sm:$0xff]  }
 0x954   :  { %2792 = vmatprep.subr.bf16.mxu0 %v5007_v1  ;;  %v5059_v1 = vld [vmem:[#allocation18 + $0x250] ss:$8 sps:$4 sm:$0xff]  }
 0x955   :  { %4233 = vmatmul.mubr.msk.bf16.vlgmr.msra.gmra.mrb[20].mxu1 %vm337_vm3, %v5891_v14 }
 0x956   :  { %2292 = vmatpush1.bf16.msra.mxu1 %v2230_v39  ;;  %2276 = vmatprep.mubr.bf16.mxu1 %v5579_v4 }
 0x957   :  { %2293 = vmatprep.subr.bf16.mxu1 %v2233_v63  ;;  %2793 = vmatpush1.bf16.msra.mxu0 %v5005_v2 }
 0x958   :  { %2794 = vmatprep.subr.bf16.mxu0 %v5010_v3  ;;  %v5064_v3 = vld [vmem:[#allocation18 + $0x264] ss:$8 sps:$4 sm:$0xff]  }
 0x95a   :  { %2294 = vmatpush1.bf16.msra.mxu1 %v2232_v62  ;;  %v5056_v62 = vld [vmem:[#allocation18 + $0x240] ss:$8 sps:$4 sm:$0xff]  }
 0x95b   :  { %2795 = vmatpush1.bf16.msra.mxu0 %v5008_v5 }
 0x95c   :  { %2796 = vmatprep.subr.bf16.mxu0 %v5013_v6 }
 0x95d   :  { %4234 = vmatmul.mubr.msk.bf16.gmra.mrb[24].mxu1 %vm337_vm3, %v5924_v48 }
 0x95e   :  { %2323 = vmatprep.mubr.bf16.mxu1 %v5579_v4 }
 0x95f   :  { %2797 = vmatpush1.bf16.msra.mxu0 %v5011_v7 }
 0x960   :  { %2798 = vmatprep.subr.bf16.mxu0 %v5016_v10 }
 0x963   :  { %2799 = vmatpush1.bf16.msra.mxu0 %v5014_v11  ;;  %v5062_v11 = vld [vmem:[#allocation18 + $0x260] ss:$8 sps:$4 sm:$0xff]  }
 0x964   :  { %2800 = vmatprep.subr.bf16.mxu0 %v5019_v12 }
 0x965   :  { %4235 = vmatmul.mubr.msk.bf16.vlgmr.msra.gmra.mrb[28].mxu1 %vm337_vm3, %v5896_v16 }
 0x966   :  { %2333 = vmatprep.mubr.bf16.mxu1 %v5579_v4 }
 0x967   :  { %2801 = vmatpush1.bf16.msra.mxu0 %v5017_v13  ;;  %v5067_v13 = vld [vmem:[#allocation18 + $0x274] ss:$8 sps:$4 sm:$0xff]  }
 0x968   :  { %2802 = vmatprep.subr.bf16.mxu0 %v5022_v15  ;;  %v5065_v15 = vld [vmem:[#allocation18 + $0x270] ss:$8 sps:$4 sm:$0xff]  }
 0x96b   :  { %2803 = vmatpush1.bf16.msra.mxu0 %v5020_v17  ;;  %v5070_v17 = vld [vmem:[#allocation18 + $0x284] ss:$8 sps:$4 sm:$0xff]  }
 0x96c   :  { %2804 = vmatprep.subr.bf16.mxu0 %v5025_v20  ;;  %v5068_v20 = vld [vmem:[#allocation18 + $0x280] ss:$8 sps:$4 sm:$0xff]  }
 0x96d   :  { %4236 = vmatmul.mubr.msk.bf16.gmra.mrb[32].mxu1 %vm337_vm3, %v5926_v49 }
 0x96e   :  { %3191 = vmatprep.mubr.bf16.mxu1 %v5579_v4 }
 0x96f   :  { %2805 = vmatpush1.bf16.msra.mxu0 %v5023_v22  ;;  %v5073_v22 = vld [vmem:[#allocation18 + $0x294] ss:$8 sps:$4 sm:$0xff]  }
 0x970   :  { %2806 = vmatprep.subr.bf16.mxu0 %v5028_v23  ;;  %v5071_v23 = vld [vmem:[#allocation18 + $0x290] ss:$8 sps:$4 sm:$0xff]  }
 0x973   :  { %2807 = vmatpush1.bf16.msra.mxu0 %v5026_v24  ;;  %v5076_v24 = vld [vmem:[#allocation18 + $0x2a4] ss:$8 sps:$4 sm:$0xff]  }
 0x974   :  { %2808 = vmatprep.subr.bf16.mxu0 %v5031_v18  ;;  %v5074_v18 = vld [vmem:[#allocation18 + $0x2a0] ss:$8 sps:$4 sm:$0xff]  }
 0x977   :  { %2809 = vmatpush1.bf16.msra.mxu0 %v5029_v25  ;;  %v5079_v25 = vld [vmem:[#allocation18 + $0x2b4] ss:$8 sps:$4 sm:$0xff]  }
 0x978   :  { %2810 = vmatprep.subr.bf16.mxu0 %v5034_v26  ;;  %v5077_v26 = vld [vmem:[#allocation18 + $0x2b0] ss:$8 sps:$4 sm:$0xff]  }
 0x97b   :  { %2811 = vmatpush1.bf16.msra.mxu0 %v5032_v27  ;;  %v5082_v27 = vld [vmem:[#allocation18 + $0x2c4] ss:$8 sps:$4 sm:$0xff]  }
 0x97c   :  { %2812 = vmatprep.subr.bf16.mxu0 %v5037_v28  ;;  %v5080_v28 = vld [vmem:[#allocation18 + $0x2c0] ss:$8 sps:$4 sm:$0xff]  }
 0x97f   :  { %2813 = vmatpush1.bf16.msra.mxu0 %v5035_v29  ;;  %v5085_v29 = vld [vmem:[#allocation18 + $0x2d4] ss:$8 sps:$4 sm:$0xff]  }
 0x980   :  { %2814 = vmatprep.subr.bf16.mxu0 %v5040_v30  ;;  %v5083_v30 = vld [vmem:[#allocation18 + $0x2d0] ss:$8 sps:$4 sm:$0xff]  }
 0x983   :  { %2815 = vmatpush1.bf16.msra.mxu0 %v5038_v31  ;;  %v5088_v31 = vld [vmem:[#allocation18 + $0x2e4] ss:$8 sps:$4 sm:$0xff]  }
 0x984   :  { %2816 = vmatprep.subr.bf16.mxu0 %v5043_v32  ;;  %v5086_v32 = vld [vmem:[#allocation18 + $0x2e0] ss:$8 sps:$4 sm:$0xff]  }
 0x987   :  { %2817 = vmatpush1.bf16.msra.mxu0 %v5041_v33  ;;  %v5091_v33 = vld [vmem:[#allocation18 + $0x2f4] ss:$8 sps:$4 sm:$0xff]  }
 0x988   :  { %3032 = vmatprep.subr.bf16.mxu0 %v5046_v34  ;;  %v5089_v34 = vld [vmem:[#allocation18 + $0x2f0] ss:$8 sps:$4 sm:$0xff]  }
 0xa28   :  { %v2268_v35 = vpop.f32.mrb[20].mxu1 }
 0xa29   :  { %v2270_v36 = vpop.f32.mrb[21].mxu1 }
 0xa2a   :  { %v2272_v37 = vpop.f32.mrb[22].mxu1 }
 0xa2b   :  { %v2287_v38 = vpack.c.bf16 %v2272_v37, %v2268_v35  ;;  %v2274_v39 = vpop.f32.mrb[23].mxu1  ;;  %v2229_v35 = vld [vmem:[#allocation19] sm:$0xf] }
 0xa2c   :  { %v2288_v40 = vpack.c.bf16 %v2274_v39, %v2270_v36  ;;  %v3097_v36 = vrot.slane %v2229_v35, %v5905_v19  ;;  %v3101_v37 = vrot.slane %v2229_v35, %v5994_v8  ;;  %v3127_v39 = vrot.slane %v2229_v35, %v5997_v9 }
 0xa2e   :  { %2818 = vmatprep.mubr.bf16.mxu0 %v2288_v40  ;;  %v3107_v40 = vrot.slane %v3097_v36, %v5905_v19  ;;  %v5113_v36 = vld [vmem:[#allocation21 + $0x170] ss:$8 sps:$4 sm:$0xff]  }
 0xa2f   :  { %2819 = vmatmul.mubr.bf16.vlgmr.msra.gmra.mrb[40].mxu0 %v2287_v38  ;;  %v3123_v38 = vrot.slane %v2229_v35, %v5908_v21  ;;  %v5115_v35 = vld [vmem:[#allocation21 + $0x174] ss:$8 sps:$4 sm:$0xff]  }
 0xa30   :  { %3033 = vmatpush1.bf16.msra.mxu0 %v5044_v41  ;;  %v2278_v44 = vpop.f32.mrb[24].mxu1  ;;  %v3111_v41 = vrot.slane %v3101_v37, %v5905_v19  ;;  %v5116_v37 = vld [vmem:[#allocation21 + $0x180] ss:$8 sps:$4 sm:$0xff]  }
 0xa31   :  { %3034 = vmatprep.subr.bf16.mxu0 %v5049_v42  ;;  %v2280_v46 = vpop.f32.mrb[25].mxu1  ;;  %v3133_v42 = vrot.slane %v3123_v38, %v5908_v21  ;;  %v5121_v38 = vld [vmem:[#allocation21 + $0x194] ss:$8 sps:$4 sm:$0xff]  }
 0xa32   :  { %v2282_v47 = vpop.f32.mrb[26].mxu1 }
 0xa33   :  { %v2289_v50 = vpack.c.bf16 %v2282_v47, %v2278_v44  ;;  %v2284_v51 = vpop.f32.mrb[27].mxu1  ;;  %v3137_v44 = vrot.slane %v3127_v39, %v5908_v21  ;;  %v5119_v39 = vld [vmem:[#allocation21 + $0x190] ss:$8 sps:$4 sm:$0xff]  }
 0xa34   :  { %3035 = vmatpush1.bf16.msra.mxu0 %v5047_v43  ;;  %v2290_v53 = vpack.c.bf16 %v2284_v51, %v2280_v46 }
 0xa35   :  { %3036 = vmatprep.subr.bf16.mxu0 %v5052_v45 }
 0xa36   :  { %2828 = vmatprep.mubr.bf16.mxu0 %v2290_v53 }
 0xa37   :  { %2829 = vmatmul.mubr.bf16.gmra.mrb[44].mxu0 %v2289_v50 }
 0xa38   :  { %3037 = vmatpush1.bf16.msra.mxu0 %v5050_v52  ;;  %v6019_v56 = vpop.f32.mrb[28].mxu1 }
 0xa39   :  { %3038 = vmatprep.subr.bf16.mxu0 %v5055_v54  ;;  %v2327_v58 = vpop.f32.mrb[29].mxu1 }
 0xa3a   :  { %v2329_v59 = vpop.f32.mrb[30].mxu1 }
 0xa3b   :  { %v2344_v60 = vpack.c.bf16 %v2329_v59, %v6019_v56  ;;  %v2331_v61 = vpop.f32.mrb[31].mxu1 }
 0xa3c   :  { %3039 = vmatpush1.bf16.msra.mxu0 %v5053_v55  ;;  %v2345_v63 = vpack.c.bf16 %v2331_v61, %v2327_v58 }
 0xa3d   :  { %3040 = vmatprep.subr.bf16.mxu0 %v5058_v57 }
 0xa3e   :  { %3064 = vmatprep.mubr.bf16.mxu0 %v2345_v63 }
 0xa40   :  { %3041 = vmatpush1.bf16.msra.mxu0 %v5056_v62  ;;  %v2335_v2 = vpop.f32.mrb[32].mxu1 }
 0xa41   :  { %3042 = vmatprep.subr.bf16.mxu0 %v5061_v0  ;;  %v2337_v5 = vpop.f32.mrb[33].mxu1 }
 0xa42   :  { %v2339_v6 = vpop.f32.mrb[34].mxu1 }
 0xa43   :  { %v2346_v7 = vpack.c.bf16 %v2339_v6, %v2335_v2  ;;  %v2341_v10 = vpop.f32.mrb[35].mxu1 }
 0xa44   :  { %3043 = vmatpush1.bf16.msra.mxu0 %v5059_v1  ;;  %v2347_v12 = vpack.c.bf16 %v2341_v10, %v2337_v5 }
 0xa45   :  { %3044 = vmatprep.subr.bf16.mxu0 %v5064_v3 }
 0xa48   :  { %3045 = vmatpush1.bf16.msra.mxu0 %v5062_v11 }
 0xa49   :  { %3046 = vmatprep.subr.bf16.mxu0 %v5067_v13 }
 0xa4c   :  { %3047 = vmatpush1.bf16.msra.mxu0 %v5065_v15 }
 0xa4d   :  { %3048 = vmatprep.subr.bf16.mxu0 %v5070_v17 }
 0xa50   :  { %3049 = vmatpush1.bf16.msra.mxu0 %v5068_v20 }
 0xa51   :  { %3050 = vmatprep.subr.bf16.mxu0 %v5073_v22 }
 0xa54   :  { %3051 = vmatpush1.bf16.msra.mxu0 %v5071_v23 }
 0xa55   :  { %3052 = vmatprep.subr.bf16.mxu0 %v5076_v24 }
 0xa58   :  { %3053 = vmatpush1.bf16.msra.mxu0 %v5074_v18 }
 0xa59   :  { %3054 = vmatprep.subr.bf16.mxu0 %v5079_v25  ;;  %v5094_v25 = vld [vmem:[#allocation21 + $0x104] ss:$8 sps:$4 sm:$0xff]  }
 0xa5c   :  { %3055 = vmatpush1.bf16.msra.mxu0 %v5077_v26  ;;  %v5092_v26 = vld [vmem:[#allocation21 + $0x100] ss:$8 sps:$4 sm:$0xff]  }
 0xa5d   :  { %3056 = vmatprep.subr.bf16.mxu0 %v5082_v27  ;;  %v5097_v27 = vld [vmem:[#allocation21 + $0x114] ss:$8 sps:$4 sm:$0xff]  }
 0xa60   :  { %3057 = vmatpush1.bf16.msra.mxu0 %v5080_v28  ;;  %v5100_v28 = vld [vmem:[#allocation21 + $0x124] ss:$8 sps:$4 sm:$0xff]  }
 0xa61   :  { %3058 = vmatprep.subr.bf16.mxu0 %v5085_v29  ;;  %v5098_v29 = vld [vmem:[#allocation21 + $0x120] ss:$8 sps:$4 sm:$0xff]  }
 0xa64   :  { %3059 = vmatpush1.bf16.msra.mxu0 %v5083_v30  ;;  %v5103_v30 = vld [vmem:[#allocation21 + $0x134] ss:$8 sps:$4 sm:$0xff]  }
 0xa65   :  { %3060 = vmatprep.subr.bf16.mxu0 %v5088_v31  ;;  %v5106_v31 = vld [vmem:[#allocation21 + $0x144] ss:$8 sps:$4 sm:$0xff]  }
 0xa68   :  { %3061 = vmatpush1.bf16.msra.mxu0 %v5086_v32  ;;  %v5109_v32 = vld [vmem:[#allocation21 + $0x154] ss:$8 sps:$4 sm:$0xff]  }
 0xa69   :  { %3062 = vmatprep.subr.bf16.mxu0 %v5091_v33  ;;  %v5112_v33 = vld [vmem:[#allocation21 + $0x164] ss:$8 sps:$4 sm:$0xff]  }
 0xa6c   :  { %3063 = vmatpush1.bf16.msra.mxu0 %v5089_v34  ;;  %v5110_v34 = vld [vmem:[#allocation21 + $0x160] ss:$8 sps:$4 sm:$0xff]  }
 0xa6f   :  { %3065 = vmatmul.mubr.bf16.vlgmr.msra.gmra.mrb[40].mxu0 %v2344_v60 }
 0xa70   :  { %3074 = vmatprep.mubr.bf16.mxu0 %v2347_v12 }
 0xa77   :  { %3075 = vmatmul.mubr.bf16.gmra.mrb[44].mxu0 %v2346_v7 }
 0xb42   :  { %v3066_v43 = vpop.f32.mrb[40].mxu0 }
 0xb43   :  { %v3112_v45 = vmul.f32 %v3107_v40, %v3066_v43  ;;  %v3068_v46 = vpop.f32.mrb[41].mxu0  ;;  %v5125_v43 = vld [vmem:[#allocation21 + $0x1b0] ss:$8 sps:$4 sm:$0xff]  }
 0xb44   :  { %v3113_v47 = vmul.f32 %v3111_v41, %v3068_v46  ;;  %v3070_v50 = vpop.f32.mrb[42].mxu0  ;;  %v5133_v46 = vld [vmem:[#allocation21 + $0x1d4] ss:$8 sps:$4 sm:$0xff]  }
 0xb45   :  { %v3138_v51 = vadd.f32 %v3133_v42, %v3112_v45  ;;  %v3114_v52 = vmul.f32 %v3107_v40, %v3070_v50  ;;  %v3072_v53 = vpop.f32.mrb[43].mxu0  ;;  %v5128_v45 = vld [vmem:[#allocation21 + $0x1c0] ss:$8 sps:$4 sm:$0xff]   ;;  %v5136_v50 = vld [vmem:[#allocation21 + $0x1e4] ss:$8 sps:$4 sm:$0xff]  }
 0xb46   :  { %v3139_v54 = vadd.f32 %v3137_v44, %v3113_v47  ;;  %v3115_v55 = vmul.f32 %v3111_v41, %v3072_v53  ;;  %v5131_v47 = vld [vmem:[#allocation21 + $0x1d0] ss:$8 sps:$4 sm:$0xff]  }
 0xb47   :  { %v3140_v56 = vadd.f32 %v3133_v42, %v3114_v52  ;;  %v3146_v58 = vmax.f32 %v3138_v51, 0.0  ;;  %v5134_v51 = vld [vmem:[#allocation21 + $0x1e0] ss:$8 sps:$4 sm:$0xff]   ;;  %v5139_v52 = vld [vmem:[#allocation21 + $0x1f4] ss:$8 sps:$4 sm:$0xff]  }
 0xb48   :  { %v3141_v57 = vadd.f32 %v3137_v44, %v3115_v55  ;;  %v3147_v60 = vmax.f32 %v3139_v54, 0.0  ;;  %v5137_v53 = vld [vmem:[#allocation21 + $0x1f0] ss:$8 sps:$4 sm:$0xff]   ;;  %v5142_v54 = vld [vmem:[#allocation21 + $0x4] ss:$8 sps:$4 sm:$0xff]  }
 0xb49   :  { %v3148_v59 = vmax.f32 %v3140_v56, 0.0  ;;  %v5140_v55 = vld [vmem:[#allocation21] ss:$8 sps:$4 sm:$0xff]   ;;  %v5145_v56 = vld [vmem:[#allocation21 + $0x14] ss:$8 sps:$4 sm:$0xff]  }
 0xb4a   :  { %v3149_v61 = vmax.f32 %v3141_v57, 0.0  ;;  %v3076_v62 = vpop.f32.mrb[44].mxu0  ;;  %v5143_v57 = vld [vmem:[#allocation21 + $0x10] ss:$8 sps:$4 sm:$0xff]  }
 0xb4b   :  { %v6030_v63 = vpack.c.bf16 %v3148_v59, %v3146_v58  ;;  %v3116_v0 = vmul.f32 %v3107_v40, %v3076_v62  ;;  %v3078_v1 = vpop.f32.mrb[45].mxu0  ;;  %v5148_v58 = vld [vmem:[#allocation21 + $0x24] ss:$8 sps:$4 sm:$0xff]   ;;  %v5146_v59 = vld [vmem:[#allocation21 + $0x20] ss:$8 sps:$4 sm:$0xff]  }
 0xb4c   :  { %v3117_v2 = vmul.f32 %v3111_v41, %v3078_v1  ;;  %v3080_v3 = vpop.f32.mrb[46].mxu0  ;;  %v3156_v5 = vpack.c.bf16 %v3149_v61, %v3147_v60  ;;  %v5151_v60 = vld [vmem:[#allocation21 + $0x34] ss:$8 sps:$4 sm:$0xff]   ;;  %v5149_v61 = vld [vmem:[#allocation21 + $0x30] ss:$8 sps:$4 sm:$0xff]  }
 0xb4d   :  { %v3142_v6 = vadd.f32 %v3133_v42, %v3116_v0  ;;  %v3118_v7 = vmul.f32 %v3107_v40, %v3080_v3  ;;  %v3082_v10 = vpop.f32.mrb[47].mxu0  ;;  %v5124_v40 = vld [vmem:[#allocation21 + $0x1a4] ss:$8 sps:$4 sm:$0xff]   ;;  %v5152_v0 = vld [vmem:[#allocation21 + $0x40] ss:$8 sps:$4 sm:$0xff]  }
 0xb4e   :  { %v3143_v11 = vadd.f32 %v3137_v44, %v3117_v2  ;;  %v3119_v12 = vmul.f32 %v3111_v41, %v3082_v10  ;;  %3159 = vmatprep.subr.bf16.mxu1 %v3156_v5  ;;  %v5122_v41 = vld [vmem:[#allocation21 + $0x1a0] ss:$8 sps:$4 sm:$0xff]   ;;  %v5154_v62 = vld [vmem:[#allocation21 + $0x44] ss:$8 sps:$4 sm:$0xff]   ;;  %v5155_v1 = vld [vmem:[#allocation21 + $0x50] ss:$8 sps:$4 sm:$0xff]  }
 0xb4f   :  { %v3144_v13 = vadd.f32 %v3133_v42, %v3118_v7  ;;  %3160 = vmatpush1.bf16.msra.mxu1 %v6030_v63  ;;  %v3150_v17 = vmax.f32 %v3142_v6, 0.0  ;;  %v5127_v42 = vld [vmem:[#allocation21 + $0x1b4] ss:$8 sps:$4 sm:$0xff]   ;;  %v5160_v2 = vld [vmem:[#allocation21 + $0x64] ss:$8 sps:$4 sm:$0xff]  }
 0xb50   :  { %v3145_v15 = vadd.f32 %v3137_v44, %v3119_v12  ;;  %v3151_v22 = vmax.f32 %v3143_v11, 0.0  ;;  %v5130_v44 = vld [vmem:[#allocation21 + $0x1c4] ss:$8 sps:$4 sm:$0xff]   ;;  %v5158_v3 = vld [vmem:[#allocation21 + $0x60] ss:$8 sps:$4 sm:$0xff]  }
 0xb51   :  { %v3152_v20 = vmax.f32 %v3144_v13, 0.0  ;;  %v5161_v6 = vld [vmem:[#allocation21 + $0x70] ss:$8 sps:$4 sm:$0xff]   ;;  %v5166_v7 = vld [vmem:[#allocation21 + $0x84] ss:$8 sps:$4 sm:$0xff]  }
 0xb52   :  { %v3153_v23 = vmax.f32 %v3145_v15, 0.0  ;;  %v5164_v10 = vld [vmem:[#allocation21 + $0x80] ss:$8 sps:$4 sm:$0xff]   ;;  %v5169_v11 = vld [vmem:[#allocation21 + $0x94] ss:$8 sps:$4 sm:$0xff]  }
 0xb53   :  { %v6033_v24 = vpack.c.bf16 %v3152_v20, %v3150_v17  ;;  %v5167_v12 = vld [vmem:[#allocation21 + $0x90] ss:$8 sps:$4 sm:$0xff]   ;;  %v5172_v13 = vld [vmem:[#allocation21 + $0xa4] ss:$8 sps:$4 sm:$0xff]   ;;  %v5170_v15 = vld [vmem:[#allocation21 + $0xa0] ss:$8 sps:$4 sm:$0xff]  }
 0xb54   :  { %v6035_v18 = vpack.c.bf16 %v3153_v23, %v3151_v22  ;;  %v5175_v17 = vld [vmem:[#allocation21 + $0xb4] ss:$8 sps:$4 sm:$0xff]   ;;  %v5173_v20 = vld [vmem:[#allocation21 + $0xb0] ss:$8 sps:$4 sm:$0xff]   ;;  %v5178_v22 = vld [vmem:[#allocation21 + $0xc4] ss:$8 sps:$4 sm:$0xff]  }
 0xb55   :  { %v5176_v23 = vld [vmem:[#allocation21 + $0xc0] ss:$8 sps:$4 sm:$0xff]  }
 0xb56   :  { %3161 = vmatprep.subr.bf16.mxu1 %v6035_v18 }
 0xb57   :  { %3162 = vmatpush1.bf16.msra.mxu1 %v6033_v24 }
 0xb58   :  { %3216 = vmatprep.subr.bf16.mxu1 %v3156_v5 }
 0xb5a   :  { %4333 = vmatmul.mubr.msk.bf16.vlgmr.msra.gmra.mrb[36].mxu1 %vm337_vm3, %v5891_v14  ;;  %v5095_v14 = vld [vmem:[#allocation21 + $0x110] ss:$8 sps:$4 sm:$0xff]  }
 0xb5b   :  { %3217 = vmatpush1.bf16.msra.mxu1 %v6030_v63  ;;  %3201 = vmatprep.mubr.bf16.mxu1 %v5579_v4 }
 0xb5c   :  { %3218 = vmatprep.subr.bf16.mxu1 %v6035_v18 }
 0xb5f   :  { %3219 = vmatpush1.bf16.msra.mxu1 %v6033_v24 }
 0xb60   :  { %3498 = vmatprep.subr.bf16.mxu1 %v5094_v25  ;;  %v5184_v25 = vld [vmem:[#allocation21 + $0xe4] ss:$8 sps:$4 sm:$0xff]  }
 0xb62   :  { %4334 = vmatmul.mubr.msk.bf16.gmra.mrb[40].mxu1 %vm337_vm3, %v5924_v48  ;;  %v5101_v48 = vld [vmem:[#allocation21 + $0x130] ss:$8 sps:$4 sm:$0xff]  }
 0xb63   :  { %3248 = vmatprep.mubr.bf16.mxu1 %v5579_v4 }
 0xb6a   :  { %4335 = vmatmul.mubr.msk.bf16.vlgmr.msra.gmra.mrb[44].mxu1 %vm337_vm3, %v5896_v16  ;;  %v5104_v16 = vld [vmem:[#allocation21 + $0x140] ss:$8 sps:$4 sm:$0xff]  }
 0xb6b   :  { %3499 = vmatpush1.bf16.msra.mxu1 %v5092_v26  ;;  %3258 = vmatprep.mubr.bf16.mxu1 %v5579_v4  ;;  %v5107_v4 = vld [vmem:[#allocation21 + $0x150] ss:$8 sps:$4 sm:$0xff]   ;;  %v5182_v26 = vld [vmem:[#allocation21 + $0xe0] ss:$8 sps:$4 sm:$0xff]  }
 0xb6c   :  { %3500 = vmatprep.subr.bf16.mxu1 %v5097_v27  ;;  %v5187_v27 = vld [vmem:[#allocation21 + $0xf4] ss:$8 sps:$4 sm:$0xff]  }
 0xb6f   :  { %3501 = vmatpush1.bf16.msra.mxu1 %v5095_v14  ;;  %v5185_v14 = vld [vmem:[#allocation21 + $0xf0] ss:$8 sps:$4 sm:$0xff]  }
 0xb70   :  { %3502 = vmatprep.subr.bf16.mxu1 %v5100_v28  ;;  %v5190_v28 = vld [vmem:[#allocation21 + $0x204] ss:$8 sps:$4 sm:$0xff]  }
 0xb72   :  { %4336 = vmatmul.mubr.msk.bf16.gmra.mrb[48].mxu1 %vm337_vm3, %v5926_v49  ;;  %v5118_v49 = vld [vmem:[#allocation21 + $0x184] ss:$8 sps:$4 sm:$0xff]  }
 0xb73   :  { %3503 = vmatpush1.bf16.msra.mxu1 %v5098_v29  ;;  %3530 = vmatprep.mubr.bf16.mxu1 %v3156_v5  ;;  %v5163_v5 = vld [vmem:[#allocation21 + $0x74] ss:$8 sps:$4 sm:$0xff]  }
 0xb74   :  { %3504 = vmatprep.subr.bf16.mxu1 %v5103_v30 }
 0xb77   :  { %3505 = vmatpush1.bf16.msra.mxu1 %v5101_v48 }
 0xb78   :  { %3506 = vmatprep.subr.bf16.mxu1 %v5106_v31 }
 0xb7b   :  { %3507 = vmatpush1.bf16.msra.mxu1 %v5104_v16 }
 0xb7c   :  { %3508 = vmatprep.subr.bf16.mxu1 %v5109_v32 }
 0xb7f   :  { %3509 = vmatpush1.bf16.msra.mxu1 %v5107_v4  ;;  %v5188_v4 = vld [vmem:[#allocation21 + $0x200] ss:$8 sps:$4 sm:$0xff]  }
 0xb80   :  { %3510 = vmatprep.subr.bf16.mxu1 %v5112_v33  ;;  %v5193_v33 = vld [vmem:[#allocation21 + $0x214] ss:$8 sps:$4 sm:$0xff]  }
 0xb83   :  { %3511 = vmatpush1.bf16.msra.mxu1 %v5110_v34  ;;  %v5191_v34 = vld [vmem:[#allocation21 + $0x210] ss:$8 sps:$4 sm:$0xff]  }
 0xb84   :  { %3512 = vmatprep.subr.bf16.mxu1 %v5115_v35 }
 0xb87   :  { %3513 = vmatpush1.bf16.msra.mxu1 %v5113_v36  ;;  %v5196_v36 = vld [vmem:[#allocation21 + $0x224] ss:$8 sps:$4 sm:$0xff]  }
 0xb88   :  { %3514 = vmatprep.subr.bf16.mxu1 %v5118_v49 }
 0xb8b   :  { %3515 = vmatpush1.bf16.msra.mxu1 %v5116_v37 }
 0xb8c   :  { %3516 = vmatprep.subr.bf16.mxu1 %v5121_v38 }
 0xb8f   :  { %3517 = vmatpush1.bf16.msra.mxu1 %v5119_v39 }
 0xb90   :  { %3518 = vmatprep.subr.bf16.mxu1 %v5124_v40  ;;  %v5194_v40 = vld [vmem:[#allocation21 + $0x220] ss:$8 sps:$4 sm:$0xff]  }
 0xb93   :  { %3519 = vmatpush1.bf16.msra.mxu1 %v5122_v41 }
 0xb94   :  { %3520 = vmatprep.subr.bf16.mxu1 %v5127_v42  ;;  %v5199_v42 = vld [vmem:[#allocation21 + $0x234] ss:$8 sps:$4 sm:$0xff]  }
 0xb97   :  { %3521 = vmatpush1.bf16.msra.mxu1 %v5125_v43  ;;  %v5197_v43 = vld [vmem:[#allocation21 + $0x230] ss:$8 sps:$4 sm:$0xff]  }
 0xb98   :  { %3522 = vmatprep.subr.bf16.mxu1 %v5130_v44 }
 0xb9b   :  { %3523 = vmatpush1.bf16.msra.mxu1 %v5128_v45  ;;  %v5202_v45 = vld [vmem:[#allocation21 + $0x244] ss:$8 sps:$4 sm:$0xff]  }
 0xb9c   :  { %3524 = vmatprep.subr.bf16.mxu1 %v5133_v46 }
 0xb9f   :  { %3525 = vmatpush1.bf16.msra.mxu1 %v5131_v47 }
 0xba0   :  { %3526 = vmatprep.subr.bf16.mxu1 %v5136_v50 }
 0xba3   :  { %3527 = vmatpush1.bf16.msra.mxu1 %v5134_v51 }
 0xba4   :  { %3528 = vmatprep.subr.bf16.mxu1 %v5139_v52  ;;  %v5200_v52 = vld [vmem:[#allocation21 + $0x240] ss:$8 sps:$4 sm:$0xff]  }
 0xba7   :  { %3529 = vmatpush1.bf16.msra.mxu1 %v5137_v53 }
 0xba8   :  { %3711 = vmatprep.subr.bf16.mxu1 %v5142_v54  ;;  %v5205_v54 = vld [vmem:[#allocation21 + $0x254] ss:$8 sps:$4 sm:$0xff]  }
 0xbaa   :  { %3531 = vmatmul.mubr.bf16.vlgmr.msra.gmra.mrb[52].mxu1 %v6030_v63  ;;  %v5157_v63 = vld [vmem:[#allocation21 + $0x54] ss:$8 sps:$4 sm:$0xff]  }
 0xbab   :  { %3540 = vmatprep.mubr.bf16.mxu1 %v6035_v18  ;;  %3712 = vmatpush1.bf16.msra.mxu1 %v5140_v55  ;;  %v5179_v18 = vld [vmem:[#allocation21 + $0xd0] ss:$8 sps:$4 sm:$0xff]  }
 0xbac   :  { %3713 = vmatprep.subr.bf16.mxu1 %v5145_v56  ;;  %v5203_v55 = vld [vmem:[#allocation21 + $0x250] ss:$8 sps:$4 sm:$0xff]  }
 0xbaf   :  { %3714 = vmatpush1.bf16.msra.mxu1 %v5143_v57  ;;  %v5208_v57 = vld [vmem:[#allocation21 + $0x264] ss:$8 sps:$4 sm:$0xff]  }
 0xbb0   :  { %3715 = vmatprep.subr.bf16.mxu1 %v5148_v58 }
 0xbb2   :  { %3541 = vmatmul.mubr.bf16.gmra.mrb[56].mxu1 %v6033_v24  ;;  %v5181_v24 = vld [vmem:[#allocation21 + $0xd4] ss:$8 sps:$4 sm:$0xff]  }
 0xbb3   :  { %3716 = vmatpush1.bf16.msra.mxu1 %v5146_v59 }
 0xbb4   :  { %3717 = vmatprep.subr.bf16.mxu1 %v5151_v60 }
 0xbb7   :  { %3718 = vmatpush1.bf16.msra.mxu1 %v5149_v61 }
 0xbb8   :  { %3719 = vmatprep.subr.bf16.mxu1 %v5154_v62  ;;  %v5206_v62 = vld [vmem:[#allocation21 + $0x260] ss:$8 sps:$4 sm:$0xff]  }
 0xbbb   :  { %3720 = vmatpush1.bf16.msra.mxu1 %v5152_v0 }
 0xbbc   :  { %3721 = vmatprep.subr.bf16.mxu1 %v5157_v63  ;;  %v5211_v63 = vld [vmem:[#allocation21 + $0x274] ss:$8 sps:$4 sm:$0xff]  }
 0xbbf   :  { %3722 = vmatpush1.bf16.msra.mxu1 %v5155_v1  ;;  %v5209_v1 = vld [vmem:[#allocation21 + $0x270] ss:$8 sps:$4 sm:$0xff]  }
 0xbc0   :  { %3723 = vmatprep.subr.bf16.mxu1 %v5160_v2  ;;  %v5214_v2 = vld [vmem:[#allocation21 + $0x284] ss:$8 sps:$4 sm:$0xff]  }
 0xbc3   :  { %3724 = vmatpush1.bf16.msra.mxu1 %v5158_v3  ;;  %v5212_v3 = vld [vmem:[#allocation21 + $0x280] ss:$8 sps:$4 sm:$0xff]  }
 0xbc4   :  { %3725 = vmatprep.subr.bf16.mxu1 %v5163_v5  ;;  %v5217_v5 = vld [vmem:[#allocation21 + $0x294] ss:$8 sps:$4 sm:$0xff]  }
 0xbc7   :  { %3726 = vmatpush1.bf16.msra.mxu1 %v5161_v6  ;;  %v5215_v6 = vld [vmem:[#allocation21 + $0x290] ss:$8 sps:$4 sm:$0xff]  }
 0xbc8   :  { %3727 = vmatprep.subr.bf16.mxu1 %v5166_v7  ;;  %v5220_v7 = vld [vmem:[#allocation21 + $0x2a4] ss:$8 sps:$4 sm:$0xff]  }
 0xbcb   :  { %3728 = vmatpush1.bf16.msra.mxu1 %v5164_v10  ;;  %v5218_v10 = vld [vmem:[#allocation21 + $0x2a0] ss:$8 sps:$4 sm:$0xff]  }
 0xbcc   :  { %3729 = vmatprep.subr.bf16.mxu1 %v5169_v11  ;;  %v5223_v11 = vld [vmem:[#allocation21 + $0x2b4] ss:$8 sps:$4 sm:$0xff]  }
 0xbcf   :  { %3730 = vmatpush1.bf16.msra.mxu1 %v5167_v12  ;;  %v5221_v12 = vld [vmem:[#allocation21 + $0x2b0] ss:$8 sps:$4 sm:$0xff]  }
 0xbd0   :  { %3731 = vmatprep.subr.bf16.mxu1 %v5172_v13  ;;  %v5226_v13 = vld [vmem:[#allocation21 + $0x2c4] ss:$8 sps:$4 sm:$0xff]  }
 0xbd3   :  { %3732 = vmatpush1.bf16.msra.mxu1 %v5170_v15  ;;  %v5224_v15 = vld [vmem:[#allocation21 + $0x2c0] ss:$8 sps:$4 sm:$0xff]  }
 0xbd4   :  { %3733 = vmatprep.subr.bf16.mxu1 %v5175_v17  ;;  %v5229_v17 = vld [vmem:[#allocation21 + $0x2d4] ss:$8 sps:$4 sm:$0xff]  }
 0xbd7   :  { %3734 = vmatpush1.bf16.msra.mxu1 %v5173_v20  ;;  %v5227_v20 = vld [vmem:[#allocation21 + $0x2d0] ss:$8 sps:$4 sm:$0xff]  }
 0xbd8   :  { %3735 = vmatprep.subr.bf16.mxu1 %v5178_v22  ;;  %v5232_v22 = vld [vmem:[#allocation21 + $0x2e4] ss:$8 sps:$4 sm:$0xff]  }
 0xbdb   :  { %3736 = vmatpush1.bf16.msra.mxu1 %v5176_v23  ;;  %v5230_v23 = vld [vmem:[#allocation21 + $0x2e0] ss:$8 sps:$4 sm:$0xff]  }
 0xbdc   :  { %3737 = vmatprep.subr.bf16.mxu1 %v5181_v24  ;;  %v5235_v24 = vld [vmem:[#allocation21 + $0x2f4] ss:$8 sps:$4 sm:$0xff]  }
 0xbdf   :  { %3738 = vmatpush1.bf16.msra.mxu1 %v5179_v18  ;;  %v5233_v18 = vld [vmem:[#allocation21 + $0x2f0] ss:$8 sps:$4 sm:$0xff]  }
 0xbe0   :  { %3739 = vmatprep.subr.bf16.mxu1 %v5184_v25  ;;  %v3154_v25 = vld [vmem:[#allocation22] sm:$0xf] }
 0xbe3   :  { %3740 = vmatpush1.bf16.msra.mxu1 %v5182_v26  ;;  %v4022_v26 = vrot.slane %v3154_v25, %v5905_v19 }
 0xbe4   :  { %3741 = vmatprep.subr.bf16.mxu1 %v5187_v27  ;;  %v4026_v27 = vrot.slane %v3154_v25, %v5994_v8 }
 0xbe7   :  { %3742 = vmatpush1.bf16.msra.mxu1 %v5185_v14  ;;  %v4048_v14 = vrot.slane %v3154_v25, %v5908_v21 }
 0xbe8   :  { %3957 = vmatprep.subr.bf16.mxu1 %v5190_v28  ;;  %v4052_v28 = vrot.slane %v3154_v25, %v5997_v9 }
 0xc2d   :  { %v3193_v29 = vpop.f32.mrb[36].mxu1 }
 0xc2e   :  { %v3195_v30 = vpop.f32.mrb[37].mxu1 }
 0xc2f   :  { %v3197_v48 = vpop.f32.mrb[38].mxu1 }
 0xc30   :  { %v3212_v31 = vpack.c.bf16 %v3197_v48, %v3193_v29  ;;  %v3199_v16 = vpop.f32.mrb[39].mxu1  ;;  %v4032_v29 = vrot.slane %v4022_v26, %v5905_v19  ;;  %v4058_v48 = vrot.slane %v4048_v14, %v5908_v21 }
 0xc31   :  { %v3213_v32 = vpack.c.bf16 %v3199_v16, %v3195_v30  ;;  %v4036_v30 = vrot.slane %v4026_v27, %v5905_v19  ;;  %v4062_v16 = vrot.slane %v4052_v28, %v5908_v21 }
 0xc33   :  { %3743 = vmatprep.mubr.bf16.mxu1 %v3213_v32 }
 0xc34   :  { %3744 = vmatmul.mubr.bf16.vlgmr.msra.gmra.mrb[52].mxu1 %v3212_v31 }
 0xc35   :  { %3958 = vmatpush1.bf16.msra.mxu1 %v5188_v4  ;;  %v3203_v35 = vpop.f32.mrb[40].mxu1 }
 0xc36   :  { %3959 = vmatprep.subr.bf16.mxu1 %v5193_v33  ;;  %v3205_v49 = vpop.f32.mrb[41].mxu1 }
 0xc37   :  { %v3207_v37 = vpop.f32.mrb[42].mxu1 }
 0xc38   :  { %v3214_v38 = vpack.c.bf16 %v3207_v37, %v3203_v35  ;;  %v3209_v39 = vpop.f32.mrb[43].mxu1 }
 0xc39   :  { %3960 = vmatpush1.bf16.msra.mxu1 %v5191_v34  ;;  %v3215_v41 = vpack.c.bf16 %v3209_v39, %v3205_v49 }
 0xc3a   :  { %3961 = vmatprep.subr.bf16.mxu1 %v5196_v36 }
 0xc3b   :  { %3753 = vmatprep.mubr.bf16.mxu1 %v3215_v41 }
 0xc3c   :  { %3754 = vmatmul.mubr.bf16.gmra.mrb[56].mxu1 %v3214_v38 }
 0xc3d   :  { %3962 = vmatpush1.bf16.msra.mxu1 %v5194_v40  ;;  %v6056_v44 = vpop.f32.mrb[44].mxu1 }
 0xc3e   :  { %3963 = vmatprep.subr.bf16.mxu1 %v5199_v42  ;;  %v3252_v46 = vpop.f32.mrb[45].mxu1 }
 0xc3f   :  { %v3254_v47 = vpop.f32.mrb[46].mxu1 }
 0xc40   :  { %v3269_v50 = vpack.c.bf16 %v3254_v47, %v6056_v44  ;;  %v3256_v51 = vpop.f32.mrb[47].mxu1 }
 0xc41   :  { %3964 = vmatpush1.bf16.msra.mxu1 %v5197_v43  ;;  %v3270_v53 = vpack.c.bf16 %v3256_v51, %v3252_v46 }
 0xc42   :  { %3965 = vmatprep.subr.bf16.mxu1 %v5202_v45 }
 0xc43   :  { %3989 = vmatprep.mubr.bf16.mxu1 %v3270_v53 }
 0xc45   :  { %3966 = vmatpush1.bf16.msra.mxu1 %v5200_v52  ;;  %v3260_v56 = vpop.f32.mrb[48].mxu1 }
 0xc46   :  { %3967 = vmatprep.subr.bf16.mxu1 %v5205_v54  ;;  %v3262_v58 = vpop.f32.mrb[49].mxu1 }
 0xc47   :  { %v3264_v59 = vpop.f32.mrb[50].mxu1 }
 0xc48   :  { %v3271_v60 = vpack.c.bf16 %v3264_v59, %v3260_v56  ;;  %v3266_v61 = vpop.f32.mrb[51].mxu1 }
 0xc49   :  { %3968 = vmatpush1.bf16.msra.mxu1 %v5203_v55  ;;  %v3272_v0 = vpack.c.bf16 %v3266_v61, %v3262_v58 }
 0xc4a   :  { %3969 = vmatprep.subr.bf16.mxu1 %v5208_v57 }
 0xc4d   :  { %3970 = vmatpush1.bf16.msra.mxu1 %v5206_v62 }
 0xc4e   :  { %3971 = vmatprep.subr.bf16.mxu1 %v5211_v63 }
 0xc51   :  { %3972 = vmatpush1.bf16.msra.mxu1 %v5209_v1 }
 0xc52   :  { %3973 = vmatprep.subr.bf16.mxu1 %v5214_v2 }
 0xc55   :  { %3974 = vmatpush1.bf16.msra.mxu1 %v5212_v3 }
 0xc56   :  { %3975 = vmatprep.subr.bf16.mxu1 %v5217_v5 }
 0xc59   :  { %3976 = vmatpush1.bf16.msra.mxu1 %v5215_v6 }
 0xc5a   :  { %3977 = vmatprep.subr.bf16.mxu1 %v5220_v7 }
 0xc5d   :  { %3978 = vmatpush1.bf16.msra.mxu1 %v5218_v10 }
 0xc5e   :  { %3979 = vmatprep.subr.bf16.mxu1 %v5223_v11 }
 0xc61   :  { %3980 = vmatpush1.bf16.msra.mxu1 %v5221_v12 }
 0xc62   :  { %3981 = vmatprep.subr.bf16.mxu1 %v5226_v13 }
 0xc65   :  { %3982 = vmatpush1.bf16.msra.mxu1 %v5224_v15 }
 0xc66   :  { %3983 = vmatprep.subr.bf16.mxu1 %v5229_v17 }
 0xc69   :  { %3984 = vmatpush1.bf16.msra.mxu1 %v5227_v20 }
 0xc6a   :  { %3985 = vmatprep.subr.bf16.mxu1 %v5232_v22 }
 0xc6d   :  { %3986 = vmatpush1.bf16.msra.mxu1 %v5230_v23 }
 0xc6e   :  { %3987 = vmatprep.subr.bf16.mxu1 %v5235_v24 }
 0xc71   :  { %3988 = vmatpush1.bf16.msra.mxu1 %v5233_v18 }
 0xc74   :  { %3990 = vmatmul.mubr.bf16.vlgmr.msra.gmra.mrb[52].mxu1 %v3269_v50 }
 0xc75   :  { %3999 = vmatprep.mubr.bf16.mxu1 %v3272_v0 }
 0xc7c   :  { %4000 = vmatmul.mubr.bf16.gmra.mrb[56].mxu1 %v3271_v60 }
 0xd47   :  { %v3991_v31 = vpop.f32.mrb[52].mxu1 }
 0xd48   :  { %v4037_v32 = vmul.f32 %v4032_v29, %v3991_v31  ;;  %v3993_v4 = vpop.f32.mrb[53].mxu1 }
 0xd49   :  { %v4038_v33 = vmul.f32 %v4036_v30, %v3993_v4  ;;  %v3995_v34 = vpop.f32.mrb[54].mxu1 }
 0xd4a   :  { %v4063_v35 = vadd.f32 %v4058_v48, %v4037_v32  ;;  %v4039_v36 = vmul.f32 %v4032_v29, %v3995_v34  ;;  %v3997_v8 = vpop.f32.mrb[55].mxu1 }
 0xd4b   :  { %v4064_v49 = vadd.f32 %v4062_v16, %v4038_v33  ;;  %v4040_v37 = vmul.f32 %v4036_v30, %v3997_v8 }
 0xd4c   :  { %v4071_v38 = vmax.f32 %v4063_v35, 0.0  ;;  %v4065_v9 = vadd.f32 %v4058_v48, %v4039_v36 }
 0xd4d   :  { %v4072_v39 = vmax.f32 %v4064_v49, 0.0  ;;  %v4066_v40 = vadd.f32 %v4062_v16, %v4040_v37 }
 0xd4e   :  { %4079 = vst [vmem:[%s6108_s17] sm:$0xff] %v4071_v38  ;;  %v4073_v19 = vmax.f32 %v4065_v9, 0.0 }
 0xd4f   :  { %4080 = vst [vmem:[%s6108_s17 + $0x8] sm:$0xff] %v4072_v39  ;;  %v4074_v21 = vmax.f32 %v4066_v40, 0.0  ;;  %v4001_v41 = vpop.f32.mrb[56].mxu1 }
 0xd50   :  { %4081 = vst [vmem:[%s6108_s17 + $0x10] sm:$0xff] %v4073_v19  ;;  %v4041_v42 = vmul.f32 %v4032_v29, %v4001_v41  ;;  %v4003_v43 = vpop.f32.mrb[57].mxu1 }
 0xd51   :  { %4082 = vst [vmem:[%s6108_s17 + $0x18] sm:$0xff] %v4074_v21  ;;  %v4042_v44 = vmul.f32 %v4036_v30, %v4003_v43  ;;  %v4005_v45 = vpop.f32.mrb[58].mxu1 }
 0xd52   :  { %v4067_v46 = vadd.f32 %v4058_v48, %v4041_v42  ;;  %v4043_v47 = vmul.f32 %v4032_v29, %v4005_v45  ;;  %v4007_v50 = vpop.f32.mrb[59].mxu1 }
 0xd53   :  { %v4068_v51 = vadd.f32 %v4062_v16, %v4042_v44  ;;  %v4044_v52 = vmul.f32 %v4036_v30, %v4007_v50 }
 0xd54   :  { %v4075_v53 = vmax.f32 %v4067_v46, 0.0  ;;  %v4069_v54 = vadd.f32 %v4058_v48, %v4043_v47 }
 0xd55   :  { %v4076_v55 = vmax.f32 %v4068_v51, 0.0  ;;  %v4070_v56 = vadd.f32 %v4062_v16, %v4044_v52 }
 0xd56   :  { %4083 = vst [vmem:[%s6108_s17 + $0x20] sm:$0xff] %v4075_v53  ;;  %v4077_v57 = vmax.f32 %v4069_v54, 0.0 }
 0xd57   :  { %4084 = vst [vmem:[%s6108_s17 + $0x28] sm:$0xff] %v4076_v55  ;;  %v4078_v58 = vmax.f32 %v4070_v56, 0.0 }
 0xd58   :  { %4085 = vst [vmem:[%s6108_s17 + $0x30] sm:$0xff] %v4077_v57 }
 0xd59   :  { %4086 = vst [vmem:[%s6108_s17 + $0x38] sm:$0xff] %v4078_v58 }
 0xd5a   :  { %4095 = vsyncpa [#allocation3], 1 }
 0xd5b   :  { %4096 = vsyncpa [#allocation5], 1 }
 0xd5c   :  { %4097 = vsyncpa [#allocation8], 1 }
 0xd5d   :  { %4098 = vsyncpa [#allocation11], 1 }
 0xd5e   :  { %4099 = vsyncpa [#allocation14], 1 }
 0xd5f   :  { %4100 = vsyncpa [#allocation17], 1 }
 0xd60   :  { %4101 = vsyncpa [#allocation20], 1 }
 0xd61   :  { %4102 = vsyncpa [#allocation23], 1 }

// kernel: attn_vgg_forward.5
= control target key start
LH: loop header
LB: loop body
LE: loop exit
PB: predicated region body
PF: predicated region fallthrough
CT: control target
= control target key end

     0   :  { %s7741_s0 = inlined_call_operand.vmem [shape: f32[32,256], index: 0, kind: input, shape index: {}]   ;;  %s7742_s1 = inlined_call_operand.vmem [shape: f32[3,32,512], index: 1, kind: input, shape index: {}]   ;;  %s7743_s2 = inlined_call_operand.vmem [shape: f32[4,32,32], index: 2, kind: input, shape index: {}]   ;;  %s7744_s3 = inlined_call_operand.vmem [shape: bf16[512,512], index: 3, kind: input, shape index: {}]   ;;  %s7745_s4 = inlined_call_operand.vmem [shape: f32[1,512], index: 4, kind: input, shape index: {}]   ;;  %s7746_s5 = inlined_call_operand.vmem [shape: bf16[256,512], index: 5, kind: input, shape index: {}]   ;;  %s7747_s6 = inlined_call_operand.vmem [shape: f32[3,512], index: 6, kind: input, shape index: {}]   ;;  %s7748_s7 = inlined_call_operand.vmem [shape: bf16[3,512,3], index: 7, kind: input, shape index: {}]   ;;  %s7749_s8 = inlined_call_operand.vmem [shape: f32[5,4,6], index: 8, kind: input, shape index: {}]   ;;  %s7750_s9 = inlined_call_operand.vmem [shape: f32[2,6], index: 9, kind: input, shape index: {}]   ;;  %s7751_s10 = inlined_call_operand.vmem [shape: f32[6,8], index: 10, kind: input, shape index: {}]   ;;  %s7752_s11 = inlined_call_operand.vmem [shape: f32[2,8], index: 11, kind: input, shape index: {}]   ;;  %s7753_s12 = inlined_call_operand.hbm [shape: f32[2,8], index: 12, kind: output, shape index: {}]  }
   0x1   :  { %v5412_v0 = vld [vmem:[%s7744_s3 + $0x4] ss:$16 sps:$4 sm:$0xff]   ;;  %v5414_v1 = vld [vmem:[%s7744_s3 + $0xc] ss:$16 sps:$4 sm:$0xff]   ;;  %v5416_v2 = vld [vmem:[%s7744_s3] ss:$16 sps:$4 sm:$0xff]  }
   0x2   :  { %891 = vmatprep.subr.bf16.mxu0 %v5412_v0  ;;  %v5417_v3 = vld [vmem:[%s7744_s3 + $0x8] ss:$16 sps:$4 sm:$0xff]   ;;  %997 = vmatprep.subr.bf16.mxu1 %v5414_v1  ;;  %v5418_v4 = vld [vmem:[%s7744_s3 + $0x24] ss:$16 sps:$4 sm:$0xff]   ;;  %v5420_v5 = vld [vmem:[%s7744_s3 + $0x2c] ss:$16 sps:$4 sm:$0xff]  }
   0x3   :  { %892 = vmatpush1.bf16.msra.mxu0 %v5416_v2  ;;  %998 = vmatpush1.bf16.msra.mxu1 %v5417_v3  ;;  %v5422_v6 = vld [vmem:[%s7744_s3 + $0x20] ss:$16 sps:$4 sm:$0xff]   ;;  %v5423_v7 = vld [vmem:[%s7744_s3 + $0x28] ss:$16 sps:$4 sm:$0xff]   ;;  %v5424_v8 = vld [vmem:[%s7744_s3 + $0x44] ss:$16 sps:$4 sm:$0xff]  }
   0x4   :  { %893 = vmatprep.subr.bf16.mxu0 %v5418_v4  ;;  %999 = vmatprep.subr.bf16.mxu1 %v5420_v5  ;;  %v5426_v9 = vld [vmem:[%s7744_s3 + $0x4c] ss:$16 sps:$4 sm:$0xff]   ;;  %v5428_v10 = vld [vmem:[%s7744_s3 + $0x40] ss:$16 sps:$4 sm:$0xff]   ;;  %v5429_v11 = vld [vmem:[%s7744_s3 + $0x48] ss:$16 sps:$4 sm:$0xff]  }
   0x5   :  { %v5430_v12 = vld [vmem:[%s7744_s3 + $0x64] ss:$16 sps:$4 sm:$0xff]   ;;  %v5432_v13 = vld [vmem:[%s7744_s3 + $0x6c] ss:$16 sps:$4 sm:$0xff]   ;;  %v5434_v14 = vld [vmem:[%s7744_s3 + $0x60] ss:$16 sps:$4 sm:$0xff]  }
   0x6   :  { %v5435_v15 = vld [vmem:[%s7744_s3 + $0x68] ss:$16 sps:$4 sm:$0xff]   ;;  %v5436_v16 = vld [vmem:[%s7744_s3 + $0x84] ss:$16 sps:$4 sm:$0xff]   ;;  %v5438_v17 = vld [vmem:[%s7744_s3 + $0x8c] ss:$16 sps:$4 sm:$0xff]  }
   0x7   :  { %894 = vmatpush1.bf16.msra.mxu0 %v5422_v6  ;;  %1000 = vmatpush1.bf16.msra.mxu1 %v5423_v7  ;;  %v5440_v18 = vld [vmem:[%s7744_s3 + $0x80] ss:$16 sps:$4 sm:$0xff]   ;;  %v5441_v19 = vld [vmem:[%s7744_s3 + $0x88] ss:$16 sps:$4 sm:$0xff]   ;;  %v5442_v20 = vld [vmem:[%s7744_s3 + $0xa4] ss:$16 sps:$4 sm:$0xff]  }
   0x8   :  { %895 = vmatprep.subr.bf16.mxu0 %v5424_v8  ;;  %1001 = vmatprep.subr.bf16.mxu1 %v5426_v9  ;;  %v5444_v21 = vld [vmem:[%s7744_s3 + $0xac] ss:$16 sps:$4 sm:$0xff]   ;;  %v5446_v22 = vld [vmem:[%s7744_s3 + $0xa0] ss:$16 sps:$4 sm:$0xff]   ;;  %v5447_v23 = vld [vmem:[%s7744_s3 + $0xa8] ss:$16 sps:$4 sm:$0xff]  }
   0x9   :  { %v5448_v24 = vld [vmem:[%s7744_s3 + $0xc4] ss:$16 sps:$4 sm:$0xff]   ;;  %v5450_v25 = vld [vmem:[%s7744_s3 + $0xcc] ss:$16 sps:$4 sm:$0xff]   ;;  %v5452_v26 = vld [vmem:[%s7744_s3 + $0xc0] ss:$16 sps:$4 sm:$0xff]  }
   0xa   :  { %v5453_v27 = vld [vmem:[%s7744_s3 + $0xc8] ss:$16 sps:$4 sm:$0xff]   ;;  %v5454_v28 = vld [vmem:[%s7744_s3 + $0xe4] ss:$16 sps:$4 sm:$0xff]   ;;  %v5456_v29 = vld [vmem:[%s7744_s3 + $0xec] ss:$16 sps:$4 sm:$0xff]  }
   0xb   :  { %896 = vmatpush1.bf16.msra.mxu0 %v5428_v10  ;;  %1002 = vmatpush1.bf16.msra.mxu1 %v5429_v11  ;;  %v5458_v30 = vld [vmem:[%s7744_s3 + $0xe0] ss:$16 sps:$4 sm:$0xff]   ;;  %v5459_v31 = vld [vmem:[%s7744_s3 + $0xe8] ss:$16 sps:$4 sm:$0xff]   ;;  %v5460_v32 = vld [vmem:[%s7744_s3 + $0x104] ss:$16 sps:$4 sm:$0xff]  }
   0xc   :  { %897 = vmatprep.subr.bf16.mxu0 %v5430_v12  ;;  %1003 = vmatprep.subr.bf16.mxu1 %v5432_v13  ;;  %v5462_v33 = vld [vmem:[%s7744_s3 + $0x10c] ss:$16 sps:$4 sm:$0xff]   ;;  %v5464_v34 = vld [vmem:[%s7744_s3 + $0x100] ss:$16 sps:$4 sm:$0xff]   ;;  %v5465_v35 = vld [vmem:[%s7744_s3 + $0x108] ss:$16 sps:$4 sm:$0xff]  }
   0xd   :  { %v5466_v36 = vld [vmem:[%s7744_s3 + $0x124] ss:$16 sps:$4 sm:$0xff]   ;;  %v5468_v37 = vld [vmem:[%s7744_s3 + $0x12c] ss:$16 sps:$4 sm:$0xff]   ;;  %v5470_v38 = vld [vmem:[%s7744_s3 + $0x120] ss:$16 sps:$4 sm:$0xff]  }
   0xe   :  { %v5471_v39 = vld [vmem:[%s7744_s3 + $0x128] ss:$16 sps:$4 sm:$0xff]   ;;  %v5472_v40 = vld [vmem:[%s7744_s3 + $0x144] ss:$16 sps:$4 sm:$0xff]   ;;  %v5474_v41 = vld [vmem:[%s7744_s3 + $0x14c] ss:$16 sps:$4 sm:$0xff]  }
   0xf   :  { %898 = vmatpush1.bf16.msra.mxu0 %v5434_v14  ;;  %1004 = vmatpush1.bf16.msra.mxu1 %v5435_v15  ;;  %v5476_v42 = vld [vmem:[%s7744_s3 + $0x140] ss:$16 sps:$4 sm:$0xff]   ;;  %v5477_v43 = vld [vmem:[%s7744_s3 + $0x148] ss:$16 sps:$4 sm:$0xff]   ;;  %v5478_v44 = vld [vmem:[%s7744_s3 + $0x164] ss:$16 sps:$4 sm:$0xff]  }
  0x10   :  { %899 = vmatprep.subr.bf16.mxu0 %v5436_v16  ;;  %1005 = vmatprep.subr.bf16.mxu1 %v5438_v17  ;;  %v5480_v45 = vld [vmem:[%s7744_s3 + $0x16c] ss:$16 sps:$4 sm:$0xff]   ;;  %v5482_v48 = vld [vmem:[%s7744_s3 + $0x160] ss:$16 sps:$4 sm:$0xff]   ;;  %v5483_v49 = vld [vmem:[%s7744_s3 + $0x168] ss:$16 sps:$4 sm:$0xff]  }
  0x11   :  { %v4441_v46 = vld [vmem:[%s7742_s1 + $0x108] sm:$0xff]  ;;  %v5484_v51 = vld [vmem:[%s7744_s3 + $0x184] ss:$16 sps:$4 sm:$0xff]   ;;  %v5488_v53 = vld [vmem:[%s7744_s3 + $0x180] ss:$16 sps:$4 sm:$0xff]  }
  0x12   :  { %v4445_v47 = vld [vmem:[%s7742_s1 + $0x128] sm:$0xff]  ;;  %v5490_v55 = vld [vmem:[%s7744_s3 + $0x1a4] ss:$16 sps:$4 sm:$0xff]   ;;  %v5494_v57 = vld [vmem:[%s7744_s3 + $0x1a0] ss:$16 sps:$4 sm:$0xff]  }
  0x13   :  { %900 = vmatpush1.bf16.msra.mxu0 %v5440_v18  ;;  %1006 = vmatpush1.bf16.msra.mxu1 %v5441_v19  ;;  %v94_v50 = vpack.c.bf16 %v4445_v47, %v4441_v46  ;;  %v5486_v52 = vld [vmem:[%s7744_s3 + $0x18c] ss:$16 sps:$4 sm:$0xff]   ;;  %v5489_v54 = vld [vmem:[%s7744_s3 + $0x188] ss:$16 sps:$4 sm:$0xff]   ;;  %v5496_v59 = vld [vmem:[%s7744_s3 + $0x1c4] ss:$16 sps:$4 sm:$0xff]  }
  0x14   :  { %901 = vmatprep.subr.bf16.mxu0 %v5442_v20  ;;  %1007 = vmatprep.subr.bf16.mxu1 %v5444_v21  ;;  %v5492_v56 = vld [vmem:[%s7744_s3 + $0x1ac] ss:$16 sps:$4 sm:$0xff]   ;;  %v5495_v58 = vld [vmem:[%s7744_s3 + $0x1a8] ss:$16 sps:$4 sm:$0xff]   ;;  %v5500_v61 = vld [vmem:[%s7744_s3 + $0x1c0] ss:$16 sps:$4 sm:$0xff]  }
  0x15   :  { %923 = vmatprep.mubr.bf16.mxu0 %v94_v50  ;;  %1029 = vmatprep.mubr.bf16.mxu1 %v94_v50  ;;  %v5498_v60 = vld [vmem:[%s7744_s3 + $0x1cc] ss:$16 sps:$4 sm:$0xff]   ;;  %v5501_v62 = vld [vmem:[%s7744_s3 + $0x1c8] ss:$16 sps:$4 sm:$0xff]   ;;  %v5502_v63 = vld [vmem:[%s7744_s3 + $0x1e4] ss:$16 sps:$4 sm:$0xff]  }
  0x16   :  { %v5504_v0 = vld [vmem:[%s7744_s3 + $0x1ec] ss:$16 sps:$4 sm:$0xff]   ;;  %v5506_v1 = vld [vmem:[%s7744_s3 + $0x1e0] ss:$16 sps:$4 sm:$0xff]   ;;  %v5507_v2 = vld [vmem:[%s7744_s3 + $0x1e8] ss:$16 sps:$4 sm:$0xff]  }
  0x17   :  { %902 = vmatpush1.bf16.msra.mxu0 %v5446_v22  ;;  %1008 = vmatpush1.bf16.msra.mxu1 %v5447_v23  ;;  %v5510_v3 = vld [vmem:[%s7744_s3 + $0x204] ss:$16 sps:$4 sm:$0xff]   ;;  %v5513_v6 = vld [vmem:[%s7744_s3 + $0x20c] ss:$16 sps:$4 sm:$0xff]   ;;  %v5508_v7 = vld [vmem:[%s7744_s3 + $0x200] ss:$16 sps:$4 sm:$0xff]  }
  0x18   :  { %903 = vmatprep.subr.bf16.mxu0 %v5448_v24  ;;  %1009 = vmatprep.subr.bf16.mxu1 %v5450_v25  ;;  %v4440_v4 = vld [vmem:[%s7742_s1 + $0x100] sm:$0xff]  ;;  %v5511_v8 = vld [vmem:[%s7744_s3 + $0x208] ss:$16 sps:$4 sm:$0xff]   ;;  %v5519_v11 = vld [vmem:[%s7744_s3 + $0x22c] ss:$16 sps:$4 sm:$0xff]  }
  0x19   :  { %v4444_v5 = vld [vmem:[%s7742_s1 + $0x120] sm:$0xff]  ;;  %v5517_v13 = vld [vmem:[%s7744_s3 + $0x228] ss:$16 sps:$4 sm:$0xff]   ;;  %v5525_v15 = vld [vmem:[%s7744_s3 + $0x24c] ss:$16 sps:$4 sm:$0xff]  }
  0x1a   :  { %v93_v9 = vpack.c.bf16 %v4444_v5, %v4440_v4  ;;  %v5516_v10 = vld [vmem:[%s7744_s3 + $0x224] ss:$16 sps:$4 sm:$0xff]   ;;  %v5514_v12 = vld [vmem:[%s7744_s3 + $0x220] ss:$16 sps:$4 sm:$0xff]   ;;  %v5523_v17 = vld [vmem:[%s7744_s3 + $0x248] ss:$16 sps:$4 sm:$0xff]  }
  0x1b   :  { %904 = vmatpush1.bf16.msra.mxu0 %v5452_v26  ;;  %1010 = vmatpush1.bf16.msra.mxu1 %v5453_v27  ;;  %v5522_v14 = vld [vmem:[%s7744_s3 + $0x244] ss:$16 sps:$4 sm:$0xff]   ;;  %v5520_v16 = vld [vmem:[%s7744_s3 + $0x240] ss:$16 sps:$4 sm:$0xff]   ;;  %v5531_v19 = vld [vmem:[%s7744_s3 + $0x26c] ss:$16 sps:$4 sm:$0xff]  }
  0x1c   :  { %905 = vmatprep.subr.bf16.mxu0 %v5454_v28  ;;  %1011 = vmatprep.subr.bf16.mxu1 %v5456_v29  ;;  %v5528_v18 = vld [vmem:[%s7744_s3 + $0x264] ss:$16 sps:$4 sm:$0xff]   ;;  %v5526_v20 = vld [vmem:[%s7744_s3 + $0x260] ss:$16 sps:$4 sm:$0xff]   ;;  %v5529_v21 = vld [vmem:[%s7744_s3 + $0x268] ss:$16 sps:$4 sm:$0xff]  }
  0x1d   :  { %v5534_v22 = vld [vmem:[%s7744_s3 + $0x284] ss:$16 sps:$4 sm:$0xff]   ;;  %v5537_v23 = vld [vmem:[%s7744_s3 + $0x28c] ss:$16 sps:$4 sm:$0xff]   ;;  %v5532_v24 = vld [vmem:[%s7744_s3 + $0x280] ss:$16 sps:$4 sm:$0xff]  }
  0x1e   :  { %v5535_v25 = vld [vmem:[%s7744_s3 + $0x288] ss:$16 sps:$4 sm:$0xff]   ;;  %v5540_v26 = vld [vmem:[%s7744_s3 + $0x2a4] ss:$16 sps:$4 sm:$0xff]   ;;  %v5543_v27 = vld [vmem:[%s7744_s3 + $0x2ac] ss:$16 sps:$4 sm:$0xff]  }
  0x1f   :  { %906 = vmatpush1.bf16.msra.mxu0 %v5458_v30  ;;  %1012 = vmatpush1.bf16.msra.mxu1 %v5459_v31  ;;  %v4449_v28 = vld [vmem:[%s7742_s1 + $0x148] sm:$0xff]  ;;  %v4448_v31 = vld [vmem:[%s7742_s1 + $0x140] sm:$0xff] }
  0x20   :  { %907 = vmatprep.subr.bf16.mxu0 %v5460_v32  ;;  %1013 = vmatprep.subr.bf16.mxu1 %v5462_v33  ;;  %v4453_v29 = vld [vmem:[%s7742_s1 + $0x168] sm:$0xff]  ;;  %v4452_v32 = vld [vmem:[%s7742_s1 + $0x160] sm:$0xff] }
  0x21   :  { %v98_v30 = vpack.c.bf16 %v4453_v29, %v4449_v28  ;;  %v5538_v33 = vld [vmem:[%s7744_s3 + $0x2a0] ss:$16 sps:$4 sm:$0xff]   ;;  %v5553_v46 = vld [vmem:[%s7744_s3 + $0x2e8] ss:$16 sps:$4 sm:$0xff]   ;;  %v5558_v47 = vld [vmem:[%s7744_s3 + $0x304] ss:$16 sps:$4 sm:$0xff]  }
  0x22   :  { %v5559_v50 = vld [vmem:[%s7744_s3 + $0x308] ss:$16 sps:$4 sm:$0xff]   ;;  %v5591_v4 = vld [vmem:[%s7744_s3 + $0x3ac] ss:$16 sps:$4 sm:$0xff]   ;;  %v5586_v5 = vld [vmem:[%s7744_s3 + $0x3a0] ss:$16 sps:$4 sm:$0xff]  }
  0x23   :  { %908 = vmatpush1.bf16.msra.mxu0 %v5464_v34  ;;  %1014 = vmatpush1.bf16.msra.mxu1 %v5465_v35  ;;  %v5541_v34 = vld [vmem:[%s7744_s3 + $0x2a8] ss:$16 sps:$4 sm:$0xff]   ;;  %v97_v35 = vpack.c.bf16 %v4452_v32, %v4448_v31  ;;  %v4450_v29 = vld [vmem:[%s7742_s1 + $0x150] sm:$0xff]  ;;  %v5621_v32 = vld [vmem:[%s7746_s5 + $0x4c] ss:$16 sps:$4 sm:$0xff]  }
  0x24   :  { %909 = vmatprep.subr.bf16.mxu0 %v5466_v36  ;;  %1015 = vmatprep.subr.bf16.mxu1 %v5468_v37  ;;  %v5546_v36 = vld [vmem:[%s7744_s3 + $0x2c4] ss:$16 sps:$4 sm:$0xff]   ;;  %v5549_v37 = vld [vmem:[%s7744_s3 + $0x2cc] ss:$16 sps:$4 sm:$0xff]   ;;  %v5613_v28 = vld [vmem:[%s7746_s5 + $0x28] ss:$16 sps:$4 sm:$0xff]  }
  0x25   :  { %v5618_v31 = vld [vmem:[%s7746_s5 + $0x44] ss:$16 sps:$4 sm:$0xff]  }
  0x27   :  { %910 = vmatpush1.bf16.msra.mxu0 %v5470_v38  ;;  %1016 = vmatpush1.bf16.msra.mxu1 %v5471_v39  ;;  %v5544_v38 = vld [vmem:[%s7744_s3 + $0x2c0] ss:$16 sps:$4 sm:$0xff]   ;;  %v5547_v39 = vld [vmem:[%s7744_s3 + $0x2c8] ss:$16 sps:$4 sm:$0xff]  }
  0x28   :  { %911 = vmatprep.subr.bf16.mxu0 %v5472_v40  ;;  %1017 = vmatprep.subr.bf16.mxu1 %v5474_v41  ;;  %v5552_v40 = vld [vmem:[%s7744_s3 + $0x2e4] ss:$16 sps:$4 sm:$0xff]   ;;  %v4443_v41 = vld [vmem:[%s7742_s1 + $0x118] sm:$0xff] }
  0x2b   :  { %912 = vmatpush1.bf16.msra.mxu0 %v5476_v42  ;;  %1018 = vmatpush1.bf16.msra.mxu1 %v5477_v43  ;;  %v4447_v42 = vld [vmem:[%s7742_s1 + $0x138] sm:$0xff] }
  0x2c   :  { %913 = vmatprep.subr.bf16.mxu0 %v5478_v44  ;;  %1019 = vmatprep.subr.bf16.mxu1 %v5480_v45  ;;  %v5555_v43 = vld [vmem:[%s7744_s3 + $0x2ec] ss:$16 sps:$4 sm:$0xff]   ;;  %v96_v44 = vpack.c.bf16 %v4447_v42, %v4443_v41  ;;  %v5550_v45 = vld [vmem:[%s7744_s3 + $0x2e0] ss:$16 sps:$4 sm:$0xff]   ;;  %v5625_v41 = vld [vmem:[%s7746_s5 + $0x68] ss:$16 sps:$4 sm:$0xff]  }
  0x2f   :  { %914 = vmatpush1.bf16.msra.mxu0 %v5482_v48  ;;  %1020 = vmatpush1.bf16.msra.mxu1 %v5483_v49  ;;  %v5561_v48 = vld [vmem:[%s7744_s3 + $0x30c] ss:$16 sps:$4 sm:$0xff]   ;;  %v5556_v49 = vld [vmem:[%s7744_s3 + $0x300] ss:$16 sps:$4 sm:$0xff]  }
  0x30   :  { %915 = vmatprep.subr.bf16.mxu0 %v5484_v51  ;;  %1021 = vmatprep.subr.bf16.mxu1 %v5486_v52  ;;  %v5564_v51 = vld [vmem:[%s7744_s3 + $0x324] ss:$16 sps:$4 sm:$0xff]   ;;  %v5567_v52 = vld [vmem:[%s7744_s3 + $0x32c] ss:$16 sps:$4 sm:$0xff]  }
  0x33   :  { %916 = vmatpush1.bf16.msra.mxu0 %v5488_v53  ;;  %1022 = vmatpush1.bf16.msra.mxu1 %v5489_v54  ;;  %v5562_v53 = vld [vmem:[%s7744_s3 + $0x320] ss:$16 sps:$4 sm:$0xff]   ;;  %v5565_v54 = vld [vmem:[%s7744_s3 + $0x328] ss:$16 sps:$4 sm:$0xff]  }
  0x34   :  { %917 = vmatprep.subr.bf16.mxu0 %v5490_v55  ;;  %1023 = vmatprep.subr.bf16.mxu1 %v5492_v56  ;;  %v5570_v55 = vld [vmem:[%s7744_s3 + $0x344] ss:$16 sps:$4 sm:$0xff]   ;;  %v5573_v56 = vld [vmem:[%s7744_s3 + $0x34c] ss:$16 sps:$4 sm:$0xff]  }
  0x37   :  { %918 = vmatpush1.bf16.msra.mxu0 %v5494_v57  ;;  %1024 = vmatpush1.bf16.msra.mxu1 %v5495_v58  ;;  %v5568_v57 = vld [vmem:[%s7744_s3 + $0x340] ss:$16 sps:$4 sm:$0xff]   ;;  %v5571_v58 = vld [vmem:[%s7744_s3 + $0x348] ss:$16 sps:$4 sm:$0xff]  }
  0x38   :  { %919 = vmatprep.subr.bf16.mxu0 %v5496_v59  ;;  %1025 = vmatprep.subr.bf16.mxu1 %v5498_v60  ;;  %v5576_v59 = vld [vmem:[%s7744_s3 + $0x364] ss:$16 sps:$4 sm:$0xff]   ;;  %v5579_v60 = vld [vmem:[%s7744_s3 + $0x36c] ss:$16 sps:$4 sm:$0xff]  }
  0x3b   :  { %920 = vmatpush1.bf16.msra.mxu0 %v5500_v61  ;;  %1026 = vmatpush1.bf16.msra.mxu1 %v5501_v62  ;;  %v5574_v61 = vld [vmem:[%s7744_s3 + $0x360] ss:$16 sps:$4 sm:$0xff]   ;;  %v5577_v62 = vld [vmem:[%s7744_s3 + $0x368] ss:$16 sps:$4 sm:$0xff]  }
  0x3c   :  { %921 = vmatprep.subr.bf16.mxu0 %v5502_v63  ;;  %1027 = vmatprep.subr.bf16.mxu1 %v5504_v0  ;;  %v5582_v63 = vld [vmem:[%s7744_s3 + $0x384] ss:$16 sps:$4 sm:$0xff]   ;;  %v5585_v0 = vld [vmem:[%s7744_s3 + $0x38c] ss:$16 sps:$4 sm:$0xff]  }
  0x3f   :  { %922 = vmatpush1.bf16.msra.mxu0 %v5506_v1  ;;  %1028 = vmatpush1.bf16.msra.mxu1 %v5507_v2  ;;  %v5580_v1 = vld [vmem:[%s7744_s3 + $0x380] ss:$16 sps:$4 sm:$0xff]   ;;  %v5583_v2 = vld [vmem:[%s7744_s3 + $0x388] ss:$16 sps:$4 sm:$0xff]  }
  0x40   :  { %944 = vmatprep.subr.bf16.mxu0 %v5510_v3  ;;  %1050 = vmatprep.subr.bf16.mxu1 %v5513_v6  ;;  %v5588_v3 = vld [vmem:[%s7744_s3 + $0x3a4] ss:$16 sps:$4 sm:$0xff]   ;;  %v5589_v6 = vld [vmem:[%s7744_s3 + $0x3a8] ss:$16 sps:$4 sm:$0xff]  }
  0x42   :  { %924 = vmatmul.mubr.bf16.vlgmr.msra.gmra.mrb[0].mxu0 %v93_v9  ;;  %1030 = vmatmul.mubr.bf16.vlgmr.msra.gmra.mrb[0].mxu1 %v93_v9  ;;  %v5592_v9 = vld [vmem:[%s7744_s3 + $0x3c0] ss:$16 sps:$4 sm:$0xff]  }
  0x43   :  { %945 = vmatpush1.bf16.msra.mxu0 %v5508_v7  ;;  %1051 = vmatpush1.bf16.msra.mxu1 %v5511_v8  ;;  %v5594_v7 = vld [vmem:[%s7744_s3 + $0x3c4] ss:$16 sps:$4 sm:$0xff]   ;;  %v5597_v8 = vld [vmem:[%s7744_s3 + $0x3cc] ss:$16 sps:$4 sm:$0xff]  }
  0x44   :  { %946 = vmatprep.subr.bf16.mxu0 %v5516_v10  ;;  %1052 = vmatprep.subr.bf16.mxu1 %v5519_v11  ;;  %v5595_v10 = vld [vmem:[%s7744_s3 + $0x3c8] ss:$16 sps:$4 sm:$0xff]   ;;  %v5600_v11 = vld [vmem:[%s7744_s3 + $0x3e4] ss:$16 sps:$4 sm:$0xff]  }
  0x45   :  { %933 = vmatprep.mubr.bf16.mxu0 %v98_v30  ;;  %1039 = vmatprep.mubr.bf16.mxu1 %v98_v30  ;;  %v4454_v30 = vld [vmem:[%s7742_s1 + $0x170] sm:$0xff] }
  0x47   :  { %947 = vmatpush1.bf16.msra.mxu0 %v5514_v12  ;;  %1053 = vmatpush1.bf16.msra.mxu1 %v5517_v13  ;;  %v5603_v12 = vld [vmem:[%s7744_s3 + $0x3ec] ss:$16 sps:$4 sm:$0xff]   ;;  %v5598_v13 = vld [vmem:[%s7744_s3 + $0x3e0] ss:$16 sps:$4 sm:$0xff]  }
  0x48   :  { %948 = vmatprep.subr.bf16.mxu0 %v5522_v14  ;;  %1054 = vmatprep.subr.bf16.mxu1 %v5525_v15  ;;  %v5601_v14 = vld [vmem:[%s7744_s3 + $0x3e8] ss:$16 sps:$4 sm:$0xff]   ;;  %v4442_v15 = vld [vmem:[%s7742_s1 + $0x110] sm:$0xff] }
  0x4a   :  { %934 = vmatmul.mubr.bf16.gmra.mrb[4].mxu0 %v97_v35  ;;  %1040 = vmatmul.mubr.bf16.gmra.mrb[4].mxu1 %v97_v35  ;;  %v1104_v35 = vld [vmem:[%s7741_s0 + $0x8] sm:$0xff] }
  0x4b   :  { %949 = vmatpush1.bf16.msra.mxu0 %v5520_v16  ;;  %1055 = vmatpush1.bf16.msra.mxu1 %v5523_v17  ;;  %v4446_v16 = vld [vmem:[%s7742_s1 + $0x130] sm:$0xff] }
  0x4c   :  { %950 = vmatprep.subr.bf16.mxu0 %v5528_v18  ;;  %1056 = vmatprep.subr.bf16.mxu1 %v5531_v19  ;;  %v5606_v17 = vld [vmem:[%s7746_s5 + $0x4] ss:$16 sps:$4 sm:$0xff]   ;;  %v5609_v18 = vld [vmem:[%s7746_s5 + $0xc] ss:$16 sps:$4 sm:$0xff]   ;;  %v5604_v19 = vld [vmem:[%s7746_s5] ss:$16 sps:$4 sm:$0xff]  }
  0x4d   :  { %976 = vmatprep.mubr.bf16.mxu0 %v96_v44  ;;  %1082 = vmatprep.mubr.bf16.mxu1 %v96_v44  ;;  %v5633_v44 = vld [vmem:[%s7746_s5 + $0x8c] ss:$16 sps:$4 sm:$0xff]  }
  0x4f   :  { %951 = vmatpush1.bf16.msra.mxu0 %v5526_v20  ;;  %1057 = vmatpush1.bf16.msra.mxu1 %v5529_v21  ;;  %v5607_v20 = vld [vmem:[%s7746_s5 + $0x8] ss:$16 sps:$4 sm:$0xff]   ;;  %v95_v21 = vpack.c.bf16 %v4446_v16, %v4442_v15  ;;  %v5684_v15 = vld [vmem:[%s7746_s5 + $0x1a4] ss:$16 sps:$4 sm:$0xff]   ;;  %v5687_v16 = vld [vmem:[%s7746_s5 + $0x1ac] ss:$16 sps:$4 sm:$0xff]  }
  0x50   :  { %952 = vmatprep.subr.bf16.mxu0 %v5534_v22  ;;  %1058 = vmatprep.subr.bf16.mxu1 %v5537_v23  ;;  %v4451_v22 = vld [vmem:[%s7742_s1 + $0x158] sm:$0xff] }
  0x51   :  { %v4455_v23 = vld [vmem:[%s7742_s1 + $0x178] sm:$0xff] }
  0x53   :  { %953 = vmatpush1.bf16.msra.mxu0 %v5532_v24  ;;  %1059 = vmatpush1.bf16.msra.mxu1 %v5535_v25  ;;  %v5612_v24 = vld [vmem:[%s7746_s5 + $0x24] ss:$16 sps:$4 sm:$0xff]   ;;  %v5615_v25 = vld [vmem:[%s7746_s5 + $0x2c] ss:$16 sps:$4 sm:$0xff]  }
  0x54   :  { %954 = vmatprep.subr.bf16.mxu0 %v5540_v26  ;;  %1060 = vmatprep.subr.bf16.mxu1 %v5543_v27  ;;  %v5610_v26 = vld [vmem:[%s7746_s5 + $0x20] ss:$16 sps:$4 sm:$0xff]   ;;  %v100_v27 = vpack.c.bf16 %v4455_v23, %v4451_v22  ;;  %v5691_v22 = vld [vmem:[%s7746_s5 + $0x1c8] ss:$16 sps:$4 sm:$0xff]   ;;  %v5696_v23 = vld [vmem:[%s7746_s5 + $0x1e4] ss:$16 sps:$4 sm:$0xff]  }
  0x57   :  { %955 = vmatpush1.bf16.msra.mxu0 %v5538_v33  ;;  %1061 = vmatpush1.bf16.msra.mxu1 %v5541_v34  ;;  %v99_v33 = vpack.c.bf16 %v4454_v30, %v4450_v29  ;;  %v5616_v34 = vld [vmem:[%s7746_s5 + $0x40] ss:$16 sps:$4 sm:$0xff]   ;;  %v1108_v29 = vld [vmem:[%s7741_s0 + $0x28] sm:$0xff]  ;;  %v1110_v30 = vld [vmem:[%s7741_s0 + $0x38] sm:$0xff] }
  0x58   :  { %956 = vmatprep.subr.bf16.mxu0 %v5546_v36  ;;  %1062 = vmatprep.subr.bf16.mxu1 %v5549_v37  ;;  %v1106_v36 = vld [vmem:[%s7741_s0 + $0x18] sm:$0xff] }
  0x59   :  { %v5619_v37 = vld [vmem:[%s7746_s5 + $0x48] ss:$16 sps:$4 sm:$0xff]   ;;  %v1112_v42 = vpack.c.bf16 %v1106_v36, %v1104_v35 }
  0x5b   :  { %957 = vmatpush1.bf16.msra.mxu0 %v5544_v38  ;;  %1063 = vmatpush1.bf16.msra.mxu1 %v5547_v39  ;;  %v5624_v38 = vld [vmem:[%s7746_s5 + $0x64] ss:$16 sps:$4 sm:$0xff]   ;;  %v5627_v39 = vld [vmem:[%s7746_s5 + $0x6c] ss:$16 sps:$4 sm:$0xff]  }
  0x5c   :  { %958 = vmatprep.subr.bf16.mxu0 %v5552_v40  ;;  %1064 = vmatprep.subr.bf16.mxu1 %v5555_v43  ;;  %v5622_v40 = vld [vmem:[%s7746_s5 + $0x60] ss:$16 sps:$4 sm:$0xff]   ;;  %v5630_v43 = vld [vmem:[%s7746_s5 + $0x84] ss:$16 sps:$4 sm:$0xff]  }
  0x5f   :  { %959 = vmatpush1.bf16.msra.mxu0 %v5550_v45  ;;  %1065 = vmatpush1.bf16.msra.mxu1 %v5553_v46  ;;  %v5628_v45 = vld [vmem:[%s7746_s5 + $0x80] ss:$16 sps:$4 sm:$0xff]   ;;  %v5631_v46 = vld [vmem:[%s7746_s5 + $0x88] ss:$16 sps:$4 sm:$0xff]  }
  0x60   :  { %960 = vmatprep.subr.bf16.mxu0 %v5558_v47  ;;  %1066 = vmatprep.subr.bf16.mxu1 %v5561_v48  ;;  %v5636_v47 = vld [vmem:[%s7746_s5 + $0xa4] ss:$16 sps:$4 sm:$0xff]   ;;  %v5639_v48 = vld [vmem:[%s7746_s5 + $0xac] ss:$16 sps:$4 sm:$0xff]  }
  0x63   :  { %961 = vmatpush1.bf16.msra.mxu0 %v5556_v49  ;;  %1067 = vmatpush1.bf16.msra.mxu1 %v5559_v50  ;;  %v5634_v49 = vld [vmem:[%s7746_s5 + $0xa0] ss:$16 sps:$4 sm:$0xff]   ;;  %v5637_v50 = vld [vmem:[%s7746_s5 + $0xa8] ss:$16 sps:$4 sm:$0xff]  }
  0x64   :  { %962 = vmatprep.subr.bf16.mxu0 %v5564_v51  ;;  %1068 = vmatprep.subr.bf16.mxu1 %v5567_v52  ;;  %v5642_v51 = vld [vmem:[%s7746_s5 + $0xc4] ss:$16 sps:$4 sm:$0xff]   ;;  %v5645_v52 = vld [vmem:[%s7746_s5 + $0xcc] ss:$16 sps:$4 sm:$0xff]  }
  0x67   :  { %963 = vmatpush1.bf16.msra.mxu0 %v5562_v53  ;;  %1069 = vmatpush1.bf16.msra.mxu1 %v5565_v54  ;;  %v5640_v53 = vld [vmem:[%s7746_s5 + $0xc0] ss:$16 sps:$4 sm:$0xff]   ;;  %v5643_v54 = vld [vmem:[%s7746_s5 + $0xc8] ss:$16 sps:$4 sm:$0xff]  }
  0x68   :  { %964 = vmatprep.subr.bf16.mxu0 %v5570_v55  ;;  %1070 = vmatprep.subr.bf16.mxu1 %v5573_v56  ;;  %v5648_v55 = vld [vmem:[%s7746_s5 + $0xe4] ss:$16 sps:$4 sm:$0xff]   ;;  %v5651_v56 = vld [vmem:[%s7746_s5 + $0xec] ss:$16 sps:$4 sm:$0xff]  }
  0x6b   :  { %965 = vmatpush1.bf16.msra.mxu0 %v5568_v57  ;;  %1071 = vmatpush1.bf16.msra.mxu1 %v5571_v58  ;;  %v5646_v57 = vld [vmem:[%s7746_s5 + $0xe0] ss:$16 sps:$4 sm:$0xff]   ;;  %v5649_v58 = vld [vmem:[%s7746_s5 + $0xe8] ss:$16 sps:$4 sm:$0xff]  }
  0x6c   :  { %966 = vmatprep.subr.bf16.mxu0 %v5576_v59  ;;  %1072 = vmatprep.subr.bf16.mxu1 %v5579_v60  ;;  %v5654_v59 = vld [vmem:[%s7746_s5 + $0x104] ss:$16 sps:$4 sm:$0xff]   ;;  %v5657_v60 = vld [vmem:[%s7746_s5 + $0x10c] ss:$16 sps:$4 sm:$0xff]  }
  0x6f   :  { %967 = vmatpush1.bf16.msra.mxu0 %v5574_v61  ;;  %1073 = vmatpush1.bf16.msra.mxu1 %v5577_v62  ;;  %v5652_v61 = vld [vmem:[%s7746_s5 + $0x100] ss:$16 sps:$4 sm:$0xff]   ;;  %v5655_v62 = vld [vmem:[%s7746_s5 + $0x108] ss:$16 sps:$4 sm:$0xff]  }
  0x70   :  { %968 = vmatprep.subr.bf16.mxu0 %v5582_v63  ;;  %1074 = vmatprep.subr.bf16.mxu1 %v5585_v0  ;;  %v5660_v63 = vld [vmem:[%s7746_s5 + $0x124] ss:$16 sps:$4 sm:$0xff]   ;;  %v5663_v0 = vld [vmem:[%s7746_s5 + $0x12c] ss:$16 sps:$4 sm:$0xff]  }
  0x73   :  { %969 = vmatpush1.bf16.msra.mxu0 %v5580_v1  ;;  %1075 = vmatpush1.bf16.msra.mxu1 %v5583_v2  ;;  %v5658_v1 = vld [vmem:[%s7746_s5 + $0x120] ss:$16 sps:$4 sm:$0xff]   ;;  %v5661_v2 = vld [vmem:[%s7746_s5 + $0x128] ss:$16 sps:$4 sm:$0xff]  }
  0x74   :  { %970 = vmatprep.subr.bf16.mxu0 %v5588_v3  ;;  %1076 = vmatprep.subr.bf16.mxu1 %v5591_v4  ;;  %v5666_v3 = vld [vmem:[%s7746_s5 + $0x144] ss:$16 sps:$4 sm:$0xff]   ;;  %v5669_v4 = vld [vmem:[%s7746_s5 + $0x14c] ss:$16 sps:$4 sm:$0xff]  }
  0x77   :  { %971 = vmatpush1.bf16.msra.mxu0 %v5586_v5  ;;  %1077 = vmatpush1.bf16.msra.mxu1 %v5589_v6  ;;  %v5664_v5 = vld [vmem:[%s7746_s5 + $0x140] ss:$16 sps:$4 sm:$0xff]   ;;  %v5667_v6 = vld [vmem:[%s7746_s5 + $0x148] ss:$16 sps:$4 sm:$0xff]  }
  0x78   :  { %972 = vmatprep.subr.bf16.mxu0 %v5594_v7  ;;  %1078 = vmatprep.subr.bf16.mxu1 %v5597_v8  ;;  %v5672_v7 = vld [vmem:[%s7746_s5 + $0x164] ss:$16 sps:$4 sm:$0xff]   ;;  %v5675_v8 = vld [vmem:[%s7746_s5 + $0x16c] ss:$16 sps:$4 sm:$0xff]  }
  0x7b   :  { %973 = vmatpush1.bf16.msra.mxu0 %v5592_v9  ;;  %1079 = vmatpush1.bf16.msra.mxu1 %v5595_v10  ;;  %v5670_v9 = vld [vmem:[%s7746_s5 + $0x160] ss:$16 sps:$4 sm:$0xff]   ;;  %v5673_v10 = vld [vmem:[%s7746_s5 + $0x168] ss:$16 sps:$4 sm:$0xff]  }
  0x7c   :  { %974 = vmatprep.subr.bf16.mxu0 %v5600_v11  ;;  %1080 = vmatprep.subr.bf16.mxu1 %v5603_v12  ;;  %v5678_v11 = vld [vmem:[%s7746_s5 + $0x184] ss:$16 sps:$4 sm:$0xff]   ;;  %v5681_v12 = vld [vmem:[%s7746_s5 + $0x18c] ss:$16 sps:$4 sm:$0xff]  }
  0x7f   :  { %975 = vmatpush1.bf16.msra.mxu0 %v5598_v13  ;;  %1081 = vmatpush1.bf16.msra.mxu1 %v5601_v14  ;;  %v5676_v13 = vld [vmem:[%s7746_s5 + $0x180] ss:$16 sps:$4 sm:$0xff]   ;;  %v5679_v14 = vld [vmem:[%s7746_s5 + $0x188] ss:$16 sps:$4 sm:$0xff]  }
  0x80   :  { %1499 = vmatprep.subr.bf16.mxu0 %v5606_v17  ;;  %1552 = vmatprep.subr.bf16.mxu1 %v5609_v18  ;;  %v5682_v17 = vld [vmem:[%s7746_s5 + $0x1a0] ss:$16 sps:$4 sm:$0xff]   ;;  %v5685_v18 = vld [vmem:[%s7746_s5 + $0x1a8] ss:$16 sps:$4 sm:$0xff]  }
  0x82   :  { %977 = vmatmul.mubr.bf16.vlgmr.msra.gmra.mrb[0].mxu0 %v95_v21  ;;  %1083 = vmatmul.mubr.bf16.vlgmr.msra.gmra.mrb[0].mxu1 %v95_v21  ;;  %v5688_v21 = vld [vmem:[%s7746_s5 + $0x1c0] ss:$16 sps:$4 sm:$0xff]  }
  0x83   :  { %1500 = vmatpush1.bf16.msra.mxu0 %v5604_v19  ;;  %1553 = vmatpush1.bf16.msra.mxu1 %v5607_v20  ;;  %v5690_v19 = vld [vmem:[%s7746_s5 + $0x1c4] ss:$16 sps:$4 sm:$0xff]   ;;  %v5693_v20 = vld [vmem:[%s7746_s5 + $0x1cc] ss:$16 sps:$4 sm:$0xff]  }
  0x84   :  { %1501 = vmatprep.subr.bf16.mxu0 %v5612_v24  ;;  %1554 = vmatprep.subr.bf16.mxu1 %v5615_v25  ;;  %v5699_v24 = vld [vmem:[%s7746_s5 + $0x1ec] ss:$16 sps:$4 sm:$0xff]   ;;  %v5694_v25 = vld [vmem:[%s7746_s5 + $0x1e0] ss:$16 sps:$4 sm:$0xff]  }
  0x85   :  { %986 = vmatprep.mubr.bf16.mxu0 %v100_v27  ;;  %1092 = vmatprep.mubr.bf16.mxu1 %v100_v27  ;;  %v1103_v27 = vld [vmem:[%s7741_s0] sm:$0xff] }
  0x87   :  { %1502 = vmatpush1.bf16.msra.mxu0 %v5610_v26  ;;  %1555 = vmatpush1.bf16.msra.mxu1 %v5613_v28  ;;  %v5697_v26 = vld [vmem:[%s7746_s5 + $0x1e8] ss:$16 sps:$4 sm:$0xff]   ;;  %v1105_v28 = vld [vmem:[%s7741_s0 + $0x10] sm:$0xff] }
  0x88   :  { %1503 = vmatprep.subr.bf16.mxu0 %v5618_v31  ;;  %1556 = vmatprep.subr.bf16.mxu1 %v5621_v32  ;;  %v1111_v31 = vpack.c.bf16 %v1105_v28, %v1103_v27  ;;  %v1114_v32 = vpack.c.bf16 %v1110_v30, %v1108_v29 }
  0x8a   :  { %987 = vmatmul.mubr.bf16.gmra.mrb[4].mxu0 %v99_v33  ;;  %1093 = vmatmul.mubr.bf16.gmra.mrb[4].mxu1 %v99_v33  ;;  %v1107_v33 = vld [vmem:[%s7741_s0 + $0x20] sm:$0xff] }
  0x8b   :  { %1504 = vmatpush1.bf16.msra.mxu0 %v5616_v34  ;;  %1557 = vmatpush1.bf16.msra.mxu1 %v5619_v37  ;;  %v1109_v34 = vld [vmem:[%s7741_s0 + $0x30] sm:$0xff] }
  0x8c   :  { %1505 = vmatprep.subr.bf16.mxu0 %v5624_v38  ;;  %1558 = vmatprep.subr.bf16.mxu1 %v5627_v39  ;;  %v1113_v35 = vpack.c.bf16 %v1109_v34, %v1107_v33 }
  0x8d   :  { %1531 = vmatprep.mubr.bf16.mxu0 %v1112_v42  ;;  %1584 = vmatprep.mubr.bf16.mxu1 %v1112_v42 }
  0x8f   :  { %1506 = vmatpush1.bf16.msra.mxu0 %v5622_v40  ;;  %1559 = vmatpush1.bf16.msra.mxu1 %v5625_v41 }
  0x90   :  { %1507 = vmatprep.subr.bf16.mxu0 %v5630_v43  ;;  %1560 = vmatprep.subr.bf16.mxu1 %v5633_v44 }
  0x93   :  { %1508 = vmatpush1.bf16.msra.mxu0 %v5628_v45  ;;  %1561 = vmatpush1.bf16.msra.mxu1 %v5631_v46 }
  0x94   :  { %1509 = vmatprep.subr.bf16.mxu0 %v5636_v47  ;;  %1562 = vmatprep.subr.bf16.mxu1 %v5639_v48 }
  0x97   :  { %1510 = vmatpush1.bf16.msra.mxu0 %v5634_v49  ;;  %1563 = vmatpush1.bf16.msra.mxu1 %v5637_v50 }
  0x98   :  { %1511 = vmatprep.subr.bf16.mxu0 %v5642_v51  ;;  %1564 = vmatprep.subr.bf16.mxu1 %v5645_v52 }
  0x9b   :  { %1512 = vmatpush1.bf16.msra.mxu0 %v5640_v53  ;;  %1565 = vmatpush1.bf16.msra.mxu1 %v5643_v54 }
  0x9c   :  { %1513 = vmatprep.subr.bf16.mxu0 %v5648_v55  ;;  %1566 = vmatprep.subr.bf16.mxu1 %v5651_v56 }
  0x9f   :  { %1514 = vmatpush1.bf16.msra.mxu0 %v5646_v57  ;;  %1567 = vmatpush1.bf16.msra.mxu1 %v5649_v58 }
  0xa0   :  { %1515 = vmatprep.subr.bf16.mxu0 %v5654_v59  ;;  %1568 = vmatprep.subr.bf16.mxu1 %v5657_v60 }
  0xa3   :  { %1516 = vmatpush1.bf16.msra.mxu0 %v5652_v61  ;;  %1569 = vmatpush1.bf16.msra.mxu1 %v5655_v62 }
  0xa4   :  { %1517 = vmatprep.subr.bf16.mxu0 %v5660_v63  ;;  %1570 = vmatprep.subr.bf16.mxu1 %v5663_v0 }
  0xa7   :  { %1518 = vmatpush1.bf16.msra.mxu0 %v5658_v1  ;;  %1571 = vmatpush1.bf16.msra.mxu1 %v5661_v2 }
  0xa8   :  { %1519 = vmatprep.subr.bf16.mxu0 %v5666_v3  ;;  %1572 = vmatprep.subr.bf16.mxu1 %v5669_v4 }
  0xab   :  { %1520 = vmatpush1.bf16.msra.mxu0 %v5664_v5  ;;  %1573 = vmatpush1.bf16.msra.mxu1 %v5667_v6 }
  0xac   :  { %1521 = vmatprep.subr.bf16.mxu0 %v5672_v7  ;;  %1574 = vmatprep.subr.bf16.mxu1 %v5675_v8 }
  0xaf   :  { %1522 = vmatpush1.bf16.msra.mxu0 %v5670_v9  ;;  %1575 = vmatpush1.bf16.msra.mxu1 %v5673_v10 }
  0xb0   :  { %1523 = vmatprep.subr.bf16.mxu0 %v5678_v11  ;;  %1576 = vmatprep.subr.bf16.mxu1 %v5681_v12 }
  0xb3   :  { %1524 = vmatpush1.bf16.msra.mxu0 %v5676_v13  ;;  %1577 = vmatpush1.bf16.msra.mxu1 %v5679_v14 }
  0xb4   :  { %1525 = vmatprep.subr.bf16.mxu0 %v5684_v15  ;;  %1578 = vmatprep.subr.bf16.mxu1 %v5687_v16 }
  0xb7   :  { %1526 = vmatpush1.bf16.msra.mxu0 %v5682_v17  ;;  %1579 = vmatpush1.bf16.msra.mxu1 %v5685_v18 }
  0xb8   :  { %1527 = vmatprep.subr.bf16.mxu0 %v5690_v19  ;;  %1580 = vmatprep.subr.bf16.mxu1 %v5693_v20 }
  0xbb   :  { %1528 = vmatpush1.bf16.msra.mxu0 %v5688_v21  ;;  %1581 = vmatpush1.bf16.msra.mxu1 %v5691_v22 }
  0xbc   :  { %1529 = vmatprep.subr.bf16.mxu0 %v5696_v23  ;;  %1582 = vmatprep.subr.bf16.mxu1 %v5699_v24 }
  0xbf   :  { %1530 = vmatpush1.bf16.msra.mxu0 %v5694_v25  ;;  %1583 = vmatpush1.bf16.msra.mxu1 %v5697_v26 }
  0xc2   :  { %1532 = vmatmul.mubr.bf16.vlgmr.msra.gmra.mrb[8].mxu0 %v1111_v31  ;;  %1585 = vmatmul.mubr.bf16.vlgmr.msra.gmra.mrb[8].mxu1 %v1111_v31 }
  0xc3   :  { %1541 = vmatprep.mubr.bf16.mxu0 %v1114_v32  ;;  %1594 = vmatprep.mubr.bf16.mxu1 %v1114_v32 }
  0xc4   :  { %17 = vsyncpa [#allocation4], 0  ;;  %v231_v36 = vlaneseq  ;;  %v229_v40 = vld [vmem:[%s7745_s4] sm:$0xf]  ;;  %v6633_v53 = vld [vmem:[%s7742_s1 + $0x10] sm:$0xff]  ;;  %vm3116_vm0 = vcmask 261120  }
  0xc5   :  { %v4649_v44 = vld [vmem:[%s7747_s6 + $0x2] ss:$4 sm:$0xf]  ;;  %v4648_v46 = vld [vmem:[%s7747_s6 + $0x1] ss:$4 sm:$0xf] }
  0xc6   :  { %v232_v37 = vshrl.u32 %v231_v36, 7  ;;  %v6622_v49 = vld [vmem:[%s7742_s1] sm:$0xff]  ;;  %7775 = vst [vmem:[#allocation7_spill] sm:$0xff] %v6633_v53  ;;  %v4426_v58 = vld [vmem:[%s7742_s1 + $0x90] sm:$0xff]  ;;  %v6653_v60 = vld [vmem:[%s7742_s1 + $0x8] sm:$0xff]  ;;  %s5873_s22 = smov 126  }
  0xc7   :  { %7774 = vst [vmem:[#allocation6_spill] sm:$0xff] %v6622_v49  ;;  %v4424_v50 = vld [vmem:[%s7742_s1 + $0x80] sm:$0xff]  ;;  %7776 = vst [vmem:[#allocation8_spill] sm:$0xff] %v6653_v60  ;;  %v4425_v61 = vld [vmem:[%s7742_s1 + $0x88] sm:$0xff]  ;;  %vm3491_vm1 = vcmask 1043456   ;;  %vm3364_vm2 = vcmask 7168  }
  0xc8   :  { %v6590_v38 = vsub.s32 0, %v232_v37  ;;  %v6592_v39 = vsub.s32 2, %v232_v37  ;;  %v6597_v41 = vsub.s32 1, %v232_v37  ;;  %v6599_v42 = vsub.s32 3, %v232_v37  ;;  %v4427_v3 = vld [vmem:[%s7742_s1 + $0x98] sm:$0xff]  ;;  %v6689_v12 = vld [vmem:[%s7742_s1 + $0x20] sm:$0xff] }
  0xc9   :  { %7777 = vst [vmem:[#allocation9_spill] sm:$0xff] %v6689_v12  ;;  %v4428_v13 = vld [vmem:[%s7742_s1 + $0xa0] sm:$0xff]  ;;  %v6697_v14 = vld [vmem:[%s7742_s1 + $0x30] sm:$0xff]  ;;  %v6714_v22 = vld [vmem:[%s7742_s1 + $0x28] sm:$0xff]  ;;  %vm3369_vm3 = vcmask 15368   ;;  %vm3374_vm4 = vcmask 23568  }
  0xca   :  { %1542 = vmatmul.mubr.bf16.gmra.mrb[12].mxu0 %v1113_v35  ;;  %1595 = vmatmul.mubr.bf16.gmra.mrb[12].mxu1 %v1113_v35  ;;  %v6602_v43 = vrot.slane %v229_v40, %v6590_v38  ;;  %v6608_v45 = vrot.slane %v229_v40, %v6592_v39  ;;  %v6614_v47 = vrot.slane %v229_v40, %v6597_v41  ;;  %v4429_v23 = vld [vmem:[%s7742_s1 + $0xa8] sm:$0xff]  ;;  %v6722_v24 = vld [vmem:[%s7742_s1 + $0x18] sm:$0xff]  ;;  %v4430_v26 = vld [vmem:[%s7742_s1 + $0xb0] sm:$0xff]  ;;  %vm3379_vm5 = vcmask 31768  }
  0xcb   :  { %v6617_v48 = vrot.slane %v229_v40, %v6599_v42  ;;  %v6628_v52 = vrot.slane %v4649_v44, %v6590_v38  ;;  %v6636_v55 = vrot.slane %v4649_v44, %v6597_v41  ;;  %v6639_v56 = vrot.slane %v4648_v46, %v6590_v38  ;;  %7778 = vst [vmem:[#allocation10_spill] sm:$0xff] %v6697_v14  ;;  %v6739_v29 = vld [vmem:[%s7742_s1 + $0x38] sm:$0xff] }
  0xcc   :  { %v6659_v0 = vrot.slane %v4648_v46, %v6597_v41  ;;  %v6662_v1 = vrot.slane %v4648_v46, %v6592_v39  ;;  %v6674_v7 = vrot.slane %v4648_v46, %v6599_v42  ;;  %v6677_v8 = vrot.slane %v4649_v44, %v6592_v39  ;;  %7779 = vst [vmem:[#allocation11_spill] sm:$0xff] %v6714_v22  ;;  %v4431_v35 = vld [vmem:[%s7742_s1 + $0xb8] sm:$0xff] }
  0xcd   :  { %v6700_v17 = vrot.slane %v4649_v44, %v6599_v42  ;;  %7780 = vst [vmem:[#allocation12_spill] sm:$0xff] %v6722_v24  ;;  %7781 = vst [vmem:[#allocation13_spill] sm:$0xff] %v6739_v29  ;;  %vm3478_vm6 = vcmask 31744   ;;  %vm4333_vm7 = vcmask 1045504   ;;  %vm5875_vm8 = vmmov 0  }
  0xce   :  { %vm4303_vm9 = vcmask 48128   ;;  %vm4329_vm10 = vcmask 1041409   ;;  %vm4408_vm11 = vcmask 58368  }
 0x155   :  { %v978_v51 = vpop.f32.mrb[0].mxu0  ;;  %v1084_v54 = vpop.f32.mrb[0].mxu1 }
 0x156   :  { %v6642_v57 = vadd.f32 %v978_v51, %v6602_v43  ;;  %v6648_v59 = vadd.f32 %v1084_v54, %v6608_v45  ;;  %v980_v62 = vpop.f32.mrb[1].mxu0  ;;  %v1086_v63 = vpop.f32.mrb[1].mxu1 }
 0x157   :  { %v6665_v2 = vadd.f32 %v980_v62, %v6614_v47  ;;  %v6671_v4 = vadd.f32 %v1086_v63, %v6617_v48  ;;  %v982_v5 = vpop.f32.mrb[2].mxu0  ;;  %v1088_v6 = vpop.f32.mrb[2].mxu1  ;;  %v6791_v63 = vld [vmem:[%s7742_s1 + $0x50] sm:$0xff] }
 0x158   :  { %v1743_v9 = vadd.f32 %v6642_v57, %v6622_v49  ;;  %v1880_v10 = vadd.f32 %v6642_v57, %v4424_v50  ;;  %v6684_v11 = vadd.f32 %v6648_v59, %v6633_v53  ;;  %v984_v15 = vpop.f32.mrb[3].mxu0  ;;  %v1090_v16 = vpop.f32.mrb[3].mxu1  ;;  %v6703_v18 = vadd.f32 %v6648_v59, %v4426_v58  ;;  %v6783_v58 = vld [vmem:[%s7742_s1 + $0x40] sm:$0xff]  ;;  %7783 = vst [vmem:[#allocation15_spill] sm:$0xff] %v6791_v63 }
 0x159   :  { %v1744_v19 = vadd.f32 %v6665_v2, %v6653_v60  ;;  %v1881_v20 = vadd.f32 %v6665_v2, %v4425_v61  ;;  %v6709_v21 = vadd.f32 %v982_v5, %v6602_v43  ;;  %v6725_v25 = vadd.f32 %v6671_v4, %v4427_v3  ;;  %7782 = vst [vmem:[#allocation14_spill] sm:$0xff] %v6783_v58  ;;  %v4432_v61 = vld [vmem:[%s7742_s1 + $0xc0] sm:$0xff]  ;;  %v6856_v60 = vld [vmem:[%s7742_s1 + $0x68] sm:$0xff] }
 0x15a   :  { %v6731_v27 = vadd.f32 %v1088_v6, %v6608_v45  ;;  %v6734_v28 = vadd.f32 %v984_v15, %v6614_v47  ;;  %v6742_v30 = vadd.f32 %v1090_v16, %v6617_v48  ;;  %v6745_v31 = vmul.f32 %v6628_v52, %v1880_v10  ;;  %v6809_v16 = vld [vmem:[%s7742_s1 + $0x48] sm:$0xff]  ;;  %7791 = vst [vmem:[#allocation23_spill] sm:$0xff] %v6856_v60 }
 0x15b   :  { %v6748_v32 = vmul.f32 %v6636_v55, %v1881_v20  ;;  %v1747_v33 = vadd.f32 %v6709_v21, %v6689_v12  ;;  %v1884_v34 = vadd.f32 %v6709_v21, %v4428_v13  ;;  %v6765_v44 = vadd.f32 %v6671_v4, %v6722_v24  ;;  %v4434_v13 = vld [vmem:[%s7742_s1 + $0xd0] sm:$0xff]  ;;  %7786 = vst [vmem:[#allocation18_spill] sm:$0xff] %v6809_v16  ;;  %v4433_v20 = vld [vmem:[%s7742_s1 + $0xc8] sm:$0xff]  ;;  %v6835_v12 = vld [vmem:[%s7742_s1 + $0x60] sm:$0xff] }
 0x15c   :  { %v6758_v36 = vadd.f32 %v6731_v27, %v6697_v14  ;;  %v1748_v37 = vadd.f32 %v6734_v28, %v6714_v22  ;;  %v1885_v40 = vadd.f32 %v6734_v28, %v4429_v23  ;;  %v6774_v51 = vadd.f32 %v6731_v27, %v4430_v26  ;;  %7788 = vst [vmem:[#allocation20_spill] sm:$0xff] %v6835_v12  ;;  %v6851_v22 = vld [vmem:[%s7742_s1 + $0x70] sm:$0xff] }
 0x15d   :  { %v6768_v46 = vmul.f32 %v6639_v56, %v1747_v33  ;;  %v6771_v50 = vmul.f32 %v6628_v52, %v1884_v34  ;;  %v6778_v54 = vadd.f32 %v6742_v30, %v6739_v29  ;;  %v988_v62 = vpop.f32.mrb[4].mxu0  ;;  %v1094_v3 = vpop.f32.mrb[4].mxu1  ;;  %v6795_v6 = vadd.f32 %v6742_v30, %v4431_v35  ;;  %v4435_v35 = vld [vmem:[%s7742_s1 + $0xd8] sm:$0xff]  ;;  %7790 = vst [vmem:[#allocation22_spill] sm:$0xff] %v6851_v22 }
 0x15e   :  { %v1785_v5 = vmul.f32 %v6659_v0, %v1748_v37  ;;  %v6798_v10 = vadd.f32 %v988_v62, %v6602_v43  ;;  %v6804_v15 = vadd.f32 %v1094_v3, %v6608_v45  ;;  %v990_v23 = vpop.f32.mrb[5].mxu0  ;;  %v1096_v26 = vpop.f32.mrb[5].mxu1  ;;  %v6815_v33 = vmul.f32 %v6636_v55, %v1885_v40 }
 0x15f   :  { %v6818_v34 = vadd.f32 %v990_v23, %v6614_v47  ;;  %v6824_v37 = vadd.f32 %v1096_v26, %v6617_v48  ;;  %v992_v62 = vpop.f32.mrb[6].mxu0  ;;  %v1098_v3 = vpop.f32.mrb[6].mxu1  ;;  %v1780_v14 = vmul.f32 %v6639_v56, %v1743_v9  ;;  %v4436_v26 = vld [vmem:[%s7742_s1 + $0xe0] sm:$0xff]  ;;  %v1781_v9 = vmul.f32 %v6659_v0, %v1744_v19  ;;  %v4437_v19 = vld [vmem:[%s7742_s1 + $0xe8] sm:$0xff] }
 0x160   :  { %7784 = vst [vmem:[#allocation16_spill] sm:$0xff] %v6798_v10  ;;  %7785 = vst [vmem:[#allocation17_spill] sm:$0xff] %v6804_v15  ;;  %v1751_v53 = vadd.f32 %v6798_v10, %v6783_v58  ;;  %v1888_v40 = vadd.f32 %v6798_v10, %v4432_v61  ;;  %v1753_v23 = vadd.f32 %v6804_v15, %v6791_v63  ;;  %v994_v49 = vpop.f32.mrb[7].mxu0  ;;  %v1100_v29 = vpop.f32.mrb[7].mxu1 }
 0x161   :  { %7787 = vst [vmem:[#allocation19_spill] sm:$0xff] %v6818_v34  ;;  %v1890_v58 = vadd.f32 %v6804_v15, %v4434_v13  ;;  %v1752_v61 = vadd.f32 %v6818_v34, %v6809_v16  ;;  %v1889_v63 = vadd.f32 %v6818_v34, %v4433_v20  ;;  %v6846_v24 = vadd.f32 %v992_v62, %v6602_v43  ;;  %v4438_v43 = vld [vmem:[%s7742_s1 + $0xf0] sm:$0xff]  ;;  %v6874_v16 = vld [vmem:[%s7742_s1 + $0x78] sm:$0xff] }
 0x162   :  { %v1891_v13 = vadd.f32 %v6824_v37, %v4435_v35  ;;  %v6866_v20 = vadd.f32 %v1098_v3, %v6608_v45  ;;  %v6869_v62 = vadd.f32 %v994_v49, %v6614_v47  ;;  %7793 = vst [vmem:[#allocation25_spill] sm:$0xff] %v6874_v16  ;;  %v6877_v34 = vadd.f32 %v1100_v29, %v6617_v48  ;;  %v4439_v47 = vld [vmem:[%s7742_s1 + $0xf8] sm:$0xff] }
 0x163   :  { %7789 = vst [vmem:[#allocation21_spill] sm:$0xff] %v6846_v24  ;;  %v1925_v35 = vmul.f32 %v6628_v52, %v1888_v40  ;;  %v1926_v15 = vmul.f32 %v6636_v55, %v1889_v63  ;;  %v1755_v10 = vadd.f32 %v6846_v24, %v6835_v12  ;;  %v1892_v45 = vadd.f32 %v6846_v24, %v4436_v26  ;;  %v6897_v3 = vld [vmem:[%s7742_s1 + $0x58] sm:$0xff] }
 0x164   :  { %7792 = vst [vmem:[#allocation24_spill] sm:$0xff] %v6869_v62  ;;  %v1757_v49 = vadd.f32 %v6866_v20, %v6851_v22  ;;  %v1756_v48 = vadd.f32 %v6869_v62, %v6856_v60  ;;  %v1893_v29 = vadd.f32 %v6869_v62, %v4437_v19  ;;  %v1782_v63 = vmul.f32 %v6662_v1, %v6684_v11 }
 0x165   :  { %v1792_v40 = vmul.f32 %v6639_v56, %v1755_v10  ;;  %v1929_v26 = vmul.f32 %v6628_v52, %v1892_v45  ;;  %v1894_v12 = vadd.f32 %v6866_v20, %v4438_v43  ;;  %v1758_v22 = vadd.f32 %v6877_v34, %v6874_v16 }
 0x166   :  { %v1793_v60 = vmul.f32 %v6659_v0, %v1756_v48  ;;  %v1930_v19 = vmul.f32 %v6636_v55, %v1893_v29  ;;  %v1895_v11 = vadd.f32 %v6877_v34, %v4439_v47  ;;  %v1796_v62 = vadd.f32 %v1781_v9, %v1780_v14 }
 0x167   :  { %v1783_v24 = vmul.f32 %v6674_v7, %v6765_v44  ;;  %v1786_v10 = vmul.f32 %v6662_v1, %v6758_v36  ;;  %v1801_v52 = vadd.f32 %v1785_v5, %v6768_v46  ;;  %v1754_v43 = vadd.f32 %v6824_v37, %v6897_v3 }
 0x168   :  { %v1797_v45 = vadd.f32 %v1796_v62, %v1782_v63  ;;  %v1787_v48 = vmul.f32 %v6674_v7, %v6778_v54  ;;  %v1788_v55 = vmul.f32 %v6639_v56, %v1751_v53  ;;  %v1789_v47 = vmul.f32 %v6659_v0, %v1752_v61 }
 0x169   :  { %v1802_v14 = vadd.f32 %v1801_v52, %v1786_v10  ;;  %v1790_v9 = vmul.f32 %v6662_v1, %v1753_v23  ;;  %v1791_v44 = vmul.f32 %v6674_v7, %v1754_v43  ;;  %v1794_v36 = vmul.f32 %v6662_v1, %v1757_v49 }
 0x16a   :  { %v1798_v29 = vadd.f32 %v1797_v45, %v1783_v24  ;;  %v1806_v46 = vadd.f32 %v1789_v47, %v1788_v55  ;;  %v1795_v5 = vmul.f32 %v6674_v7, %v1758_v22  ;;  %v1811_v16 = vadd.f32 %v1793_v60, %v1792_v40 }
 0x16b   :  { %v1803_v62 = vadd.f32 %v1802_v14, %v1787_v48  ;;  %v1919_v54 = vmul.f32 %v6677_v8, %v6703_v18  ;;  %v1920_v53 = vmul.f32 %v6700_v17, %v6725_v25  ;;  %v1933_v56 = vadd.f32 %v6748_v32, %v6745_v31 }
 0x16c   :  { %1799 = vadd.xlane.f32.xlu0 %v1798_v29  ;;  %v1807_v0 = vadd.f32 %v1806_v46, %v1790_v9  ;;  %v1812_v23 = vadd.f32 %v1811_v16, %v1794_v36  ;;  %v1923_v1 = vmul.f32 %v6677_v8, %v6774_v51  ;;  %v1938_v7 = vadd.f32 %v6815_v33, %v6771_v50 }
 0x16d   :  { %v1934_v60 = vadd.f32 %v1933_v56, %v1919_v54  ;;  %v1924_v22 = vmul.f32 %v6700_v17, %v6795_v6  ;;  %v1927_v18 = vmul.f32 %v6677_v8, %v1890_v58  ;;  %v1943_v24 = vadd.f32 %v1926_v15, %v1925_v35  ;;  %v7794_v56 = vld [vmem:[#allocation16_spill] sm:$0xff] }
 0x16e   :  { %v1808_v25 = vadd.f32 %v1807_v0, %v1791_v44  ;;  %v1813_v61 = vadd.f32 %v1812_v23, %v1795_v5  ;;  %v1939_v49 = vadd.f32 %v1938_v7, %v1923_v1  ;;  %v1928_v31 = vmul.f32 %v6700_v17, %v1891_v13  ;;  %v1605_v13 = vld [vmem:[%s7747_s6] ss:$4 sm:$0xf] }
 0x16f   :  { %v6936_v32 = vadd.f32 %v1934_v60, %v1920_v53  ;;  %v1944_v16 = vadd.f32 %v1943_v24, %v1927_v18  ;;  %v1931_v51 = vmul.f32 %v6677_v8, %v1894_v12  ;;  %v1948_v63 = vadd.f32 %v1930_v19, %v1929_v26  ;;  %v7795_v0 = vld [vmem:[#allocation17_spill] sm:$0xff]  ;;  %v7796_v7 = vld [vmem:[#allocation19_spill] sm:$0xff] }
 0x170   :  { %1804 = vadd.xlane.f32.xlu0 %v1803_v62  ;;  %1809 = vadd.xlane.f32.xlu1 %v1808_v25  ;;  %v6939_v50 = vadd.f32 %v1939_v49, %v1924_v22  ;;  %v1932_v58 = vmul.f32 %v6700_v17, %v1895_v11  ;;  %v1626_v35 = vrot.slane %v1605_v13, %v6590_v38 }
 0x171   :  { %v6941_v33 = vadd.f32 %v1944_v16, %v1928_v31  ;;  %v1949_v6 = vadd.f32 %v1948_v63, %v1931_v51  ;;  %v1630_v40 = vrot.slane %v1605_v13, %v6597_v41  ;;  %v1634_v10 = vrot.slane %v1605_v13, %v6592_v39  ;;  %v7797_v31 = vld [vmem:[#allocation21_spill] sm:$0xff] }
 0x172   :  { %v1638_v9 = vrot.slane %v1605_v13, %v6599_v42 }
 0x173   :  { %v6944_v15 = vadd.f32 %v1949_v6, %v1932_v58  ;;  %v5701_v6 = vld [vmem:[%s7748_s7 + $0x1c0] sm:$0xff]  }
 0x174   :  { %1814 = vadd.xlane.f32.xlu1 %v1813_v61  ;;  %4967 = vmatprep.subr.bf16.mxu1 %v5701_v6  ;;  %v5729_v6 = vld [vmem:[%s7748_s7 + $0x1f8] sm:$0xff]  }
 0x195   :  { %v6950_v8 = vpop.f32.mrb[8].mxu0  ;;  %v6952_v12 = vpop.f32.mrb[8].mxu1 }
 0x196   :  { %v1606_v26 = vadd.f32 %v6642_v57, %v6950_v8  ;;  %v1608_v17 = vadd.f32 %v6648_v59, %v6952_v12  ;;  %v6959_v19 = vpop.f32.mrb[9].mxu0  ;;  %v6961_v11 = vpop.f32.mrb[9].mxu1 }
 0x197   :  { %v1607_v52 = vadd.f32 %v6665_v2, %v6959_v19  ;;  %v1609_v43 = vadd.f32 %v6671_v4, %v6961_v11  ;;  %v6968_v45 = vpop.f32.mrb[10].mxu0  ;;  %v6970_v48 = vpop.f32.mrb[10].mxu1 }
 0x198   :  { %v1643_v57 = vmul.f32 %v1626_v35, %v1606_v26  ;;  %v1610_v59 = vadd.f32 %v6709_v21, %v6968_v45  ;;  %v1612_v55 = vadd.f32 %v6731_v27, %v6970_v48  ;;  %v6976_v47 = vpop.f32.mrb[11].mxu0  ;;  %v6978_v39 = vpop.f32.mrb[11].mxu1  ;;  %v1645_v36 = vmul.f32 %v1634_v10, %v1608_v17  ;;  %v7798_v26 = vld [vmem:[#allocation24_spill] sm:$0xff] }
 0x199   :  { %v1644_v14 = vmul.f32 %v1630_v40, %v1607_v52  ;;  %v1611_v2 = vadd.f32 %v6734_v28, %v6976_v47  ;;  %v1613_v4 = vadd.f32 %v6742_v30, %v6978_v39  ;;  %v1646_v62 = vmul.f32 %v1638_v9, %v1609_v43  ;;  %v5702_v43 = vld [vmem:[%s7748_s7 + $0x100] sm:$0xff]  }
 0x19a   :  { %v1647_v44 = vmul.f32 %v1626_v35, %v1610_v59  ;;  %v1649_v46 = vmul.f32 %v1634_v10, %v1612_v55 }
 0x19b   :  { %v1648_v29 = vmul.f32 %v1630_v40, %v1611_v2  ;;  %v1659_v21 = vadd.f32 %v1644_v14, %v1643_v57  ;;  %v1650_v1 = vmul.f32 %v1638_v9, %v1613_v4  ;;  %v5703_v57 = vld [vmem:[%s7748_s7 + $0x180] sm:$0xff]   ;;  %v5705_v4 = vld [vmem:[%s7748_s7 + $0x1c8] sm:$0xff]  }
 0x19c   :  { %4968 = vmatpush3.bf16.msra.mxu1 %v5703_v57 }
 0x19d   :  { %v6985_v5 = vpop.f32.mrb[12].mxu0  ;;  %v6987_v27 = vpop.f32.mrb[12].mxu1  ;;  %v1660_v54 = vadd.f32 %v1659_v21, %v1645_v36  ;;  %v1664_v53 = vadd.f32 %v1648_v29, %v1647_v44  ;;  %v5707_v21 = vld [vmem:[%s7748_s7 + $0x188] sm:$0xff]   ;;  %4969 = vmatprep.subr.bf16.mxu1 %v5705_v4 }
 0x19e   :  { %v1614_v28 = vadd.f32 %v7794_v56, %v6985_v5  ;;  %v1616_v30 = vadd.f32 %v7795_v0, %v6987_v27  ;;  %v6993_v23 = vpop.f32.mrb[13].mxu0  ;;  %v6995_v42 = vpop.f32.mrb[13].mxu1  ;;  %v5712_v0 = vld [vmem:[%s7748_s7 + $0x158] sm:$0xff]  }
 0x19f   :  { %v1615_v60 = vadd.f32 %v7796_v7, %v6993_v23  ;;  %v1617_v22 = vadd.f32 %v6824_v37, %v6995_v42  ;;  %v7001_v18 = vpop.f32.mrb[14].mxu0  ;;  %v7003_v24 = vpop.f32.mrb[14].mxu1  ;;  %v1661_v25 = vadd.f32 %v1660_v54, %v1646_v62  ;;  %v1665_v61 = vadd.f32 %v1664_v53, %v1649_v46  ;;  %v5700_v37 = vld [vmem:[%s7748_s7 + $0x140] sm:$0xff]   ;;  %v5709_v53 = vld [vmem:[%s7748_s7 + $0x1d0] sm:$0xff]   ;;  %v5715_v7 = vld [vmem:[%s7748_s7 + $0x198] sm:$0xff]  }
 0x1a0   :  { %v1651_v49 = vmul.f32 %v1626_v35, %v1614_v28  ;;  %v1618_v16 = vadd.f32 %v7797_v31, %v7001_v18  ;;  %v1620_v51 = vadd.f32 %v6866_v20, %v7003_v24  ;;  %v7009_v63 = vpop.f32.mrb[15].mxu0  ;;  %v7011_v58 = vpop.f32.mrb[15].mxu1  ;;  %4939 = vmatprep.subr.bf16.mxu0 %v5700_v37  ;;  %v1653_v55 = vmul.f32 %v1634_v10, %v1616_v30  ;;  %v5710_v28 = vld [vmem:[%s7748_s7 + $0x110] sm:$0xff]   ;;  %v5713_v30 = vld [vmem:[%s7748_s7 + $0x1d8] sm:$0xff]  }
 0x1a1   :  { %v1652_v13 = vmul.f32 %v1630_v40, %v1615_v60  ;;  %v1619_v17 = vadd.f32 %v7798_v26, %v7009_v63  ;;  %v1621_v52 = vadd.f32 %v6877_v34, %v7011_v58  ;;  %1662 = vadd.xlane.f32.xlu0 %v1661_v25  ;;  %v1666_v20 = vadd.f32 %v1665_v61, %v1650_v1  ;;  %v5704_v34 = vld [vmem:[%s7748_s7 + $0x148] sm:$0xff]   ;;  %v5714_v1 = vld [vmem:[%s7748_s7 + $0x118] sm:$0xff]   ;;  %v5716_v60 = vld [vmem:[%s7748_s7 + $0x160] sm:$0xff]  }
 0x1a2   :  { %v1655_v59 = vmul.f32 %v1626_v35, %v1618_v16  ;;  %4940 = vmatpush3.bf16.msra.mxu0 %v5702_v43  ;;  %v1657_v44 = vmul.f32 %v1634_v10, %v1620_v51  ;;  %v1654_v36 = vmul.f32 %v1638_v9, %v1617_v22  ;;  %4970 = vmatpush3.bf16.msra.mxu1 %v5707_v21  ;;  %v5708_v10 = vld [vmem:[%s7748_s7 + $0x150] sm:$0xff]   ;;  %v5718_v22 = vld [vmem:[%s7748_s7 + $0x120] sm:$0xff]   ;;  %v5720_v25 = vld [vmem:[%s7748_s7 + $0x168] sm:$0xff]  }
 0x1a3   :  { %v1656_v14 = vmul.f32 %v1630_v40, %v1619_v17  ;;  %1667 = vadd.xlane.f32.xlu1 %v1666_v20  ;;  %v1669_v2 = vadd.f32 %v1652_v13, %v1651_v49  ;;  %v5706_v40 = vld [vmem:[%s7748_s7 + $0x108] sm:$0xff]   ;;  %4941 = vmatprep.subr.bf16.mxu0 %v5704_v34  ;;  %v1658_v62 = vmul.f32 %v1638_v9, %v1621_v52  ;;  %v5711_v9 = vld [vmem:[%s7748_s7 + $0x190] sm:$0xff]   ;;  %v5728_v37 = vld [vmem:[%s7748_s7 + $0x178] sm:$0xff]  }
 0x1a4   :  { %4971 = vmatprep.subr.bf16.mxu1 %v5709_v53  ;;  %v5722_v61 = vld [vmem:[%s7748_s7 + $0x128] sm:$0xff]   ;;  %v5725_v31 = vld [vmem:[%s7748_s7 + $0x1f0] sm:$0xff]   ;;  %v5730_v13 = vld [vmem:[%s7748_s7 + $0x138] sm:$0xff]  }
 0x1a5   :  { %v1670_v29 = vadd.f32 %v1669_v2, %v1653_v55  ;;  %v1674_v35 = vadd.f32 %v1656_v14, %v1655_v59  ;;  %v5723_v49 = vld [vmem:[%s7748_s7 + $0x1a8] sm:$0xff]   ;;  %v5726_v16 = vld [vmem:[%s7748_s7 + $0x130] sm:$0xff]   ;;  %v5731_v26 = vld [vmem:[%s7748_s7 + $0x1b8] sm:$0xff]  }
 0x1a6   :  { %4942 = vmatpush3.bf16.msra.mxu0 %v5706_v40  ;;  %4972 = vmatpush3.bf16.msra.mxu1 %v5711_v9  ;;  %v5727_v51 = vld [vmem:[%s7748_s7 + $0x1b0] sm:$0xff]   ;;  %v5732_v17 = vld [vmem:[%s7748_s7 + $0x40] sm:$0xff]  }
 0x1a7   :  { %v1671_v46 = vadd.f32 %v1670_v29, %v1654_v36  ;;  %v1675_v54 = vadd.f32 %v1674_v35, %v1657_v44  ;;  %4943 = vmatprep.subr.bf16.mxu0 %v5708_v10  ;;  %4973 = vmatprep.subr.bf16.mxu1 %v5713_v30  ;;  %v5733_v52 = vld [vmem:[%s7748_s7 + $0xc0] sm:$0xff]  }
 0x1a9   :  { %1672 = vadd.xlane.f32.xlu0 %v1671_v46  ;;  %v1676_v56 = vadd.f32 %v1675_v54, %v1658_v62 }
 0x1aa   :  { %4944 = vmatpush3.bf16.msra.mxu0 %v5710_v28  ;;  %4974 = vmatpush3.bf16.msra.mxu1 %v5715_v7 }
 0x1ab   :  { %1677 = vadd.xlane.f32.xlu1 %v1676_v56  ;;  %4945 = vmatprep.subr.bf16.mxu0 %v5712_v0 }
 0x1ad   :  { %1936 = vadd.xlane.f32.xlu0 %v6936_v32  ;;  %v5717_v32 = vld [vmem:[%s7748_s7 + $0x1e0] sm:$0xff]  }
 0x1ae   :  { %4946 = vmatpush3.bf16.msra.mxu0 %v5714_v1  ;;  %4975 = vmatprep.subr.bf16.mxu1 %v5717_v32 }
 0x1af   :  { %1941 = vadd.xlane.f32.xlu1 %v6939_v50  ;;  %v5719_v50 = vld [vmem:[%s7748_s7 + $0x1a0] sm:$0xff]   ;;  %4947 = vmatprep.subr.bf16.mxu0 %v5716_v60 }
 0x1b0   :  { %4976 = vmatpush3.bf16.msra.mxu1 %v5719_v50 }
 0x1b1   :  { %1946 = vadd.xlane.f32.xlu0 %v6941_v33  ;;  %v5721_v33 = vld [vmem:[%s7748_s7 + $0x1e8] sm:$0xff]  }
 0x1b2   :  { %4948 = vmatpush3.bf16.msra.mxu0 %v5718_v22  ;;  %4977 = vmatprep.subr.bf16.mxu1 %v5721_v33 }
 0x1b3   :  { %1951 = vadd.xlane.f32.xlu1 %v6944_v15  ;;  %4949 = vmatprep.subr.bf16.mxu0 %v5720_v25  ;;  %v5724_v15 = vld [vmem:[%s7748_s7 + $0x170] sm:$0xff]  }
 0x1b4   :  { %4978 = vmatpush3.bf16.msra.mxu1 %v5723_v49 }
 0x1b5   :  { %4979 = vmatprep.subr.bf16.mxu1 %v5725_v31 }
 0x1b6   :  { %4950 = vmatpush3.bf16.msra.mxu0 %v5722_v61 }
 0x1b7   :  { %4951 = vmatprep.subr.bf16.mxu0 %v5724_v15 }
 0x1b8   :  { %4980 = vmatpush3.bf16.msra.mxu1 %v5727_v51 }
 0x1b9   :  { %4981 = vmatprep.subr.bf16.mxu1 %v5729_v6 }
 0x1ba   :  { %4952 = vmatpush3.bf16.msra.mxu0 %v5726_v16 }
 0x1bb   :  { %4953 = vmatprep.subr.bf16.mxu0 %v5728_v37 }
 0x1bc   :  { %4982 = vmatpush3.bf16.msra.mxu1 %v5731_v26 }
 0x1bd   :  { %5023 = vmatprep.subr.bf16.mxu1 %v5733_v52 }
 0x1be   :  { %4954 = vmatpush3.bf16.msra.mxu0 %v5730_v13 }
 0x1bf   :  { %4995 = vmatprep.subr.bf16.mxu0 %v5732_v17 }
 0x1f9   :  { %v1800_v20 = vpop.xlane.xlu0 %1799 }
 0x1fd   :  { %v1805_v43 = vpop.xlane.xlu0 %1804  ;;  %v1810_v57 = vpop.xlane.xlu1 %1809 }
 0x1fe   :  { %v1816_v59 = vmax.f32 %v1800_v20, %v1805_v43 }
 0x200   :  { %v1817_v55 = vrot.slane %v1816_v59, 4 }
 0x201   :  { %v1815_v14 = vpop.xlane.xlu1 %1814 }
 0x202   :  { %v1818_v2 = vmax.f32 %v1816_v59, %v1817_v55  ;;  %v1823_v34 = vmax.f32 %v1810_v57, %v1815_v14 }
 0x204   :  { %v1819_v4 = vrot.slane %v1818_v2, 2  ;;  %v1824_v44 = vrot.slane %v1823_v34, 4 }
 0x206   :  { %v1820_v36 = vmax.f32 %v1818_v2, %v1819_v4  ;;  %v1825_v29 = vmax.f32 %v1823_v34, %v1824_v44  ;;  %v7799_v44 = vld [vmem:[#allocation8_spill] sm:$0xff] }
 0x208   :  { %v1821_v35 = vrot.slane %v1820_v36, 1  ;;  %v1826_v40 = vrot.slane %v1825_v29, 2 }
 0x20a   :  { %v1822_v21 = vmax.f32 %v1820_v36, %v1821_v35  ;;  %v1827_v46 = vmax.f32 %v1825_v29, %v1826_v40  ;;  %v7800_v29 = vld [vmem:[#allocation11_spill] sm:$0xff]  ;;  %v7801_v40 = vld [vmem:[#allocation12_spill] sm:$0xff] }
 0x20c   :  { %v1830_v62 = vsub.f32 %v1800_v20, %v1822_v21  ;;  %v1831_v54 = vsub.f32 %v1805_v43, %v1822_v21  ;;  %v1828_v10 = vrot.slane %v1827_v46, 1 }
 0x20e   :  { %v1834_v53 = vmul.f32 1.442695, %v1830_v62  ;;  %v1836_v56 = vmul.f32 1.442695, %v1831_v54  ;;  %v1829_v28 = vmax.f32 %v1827_v46, %v1828_v10  ;;  %v7802_v62 = vld [vmem:[#allocation13_spill] sm:$0xff]  ;;  %v7803_v10 = vld [vmem:[#allocation6_spill] sm:$0xff] }
 0x210   :  { %5796 = vpow2.f32 %v1834_v53  ;;  %v1832_v9 = vsub.f32 %v1810_v57, %v1829_v28  ;;  %v1833_v0 = vsub.f32 %v1815_v14, %v1829_v28 }
 0x211   :  { %5798 = vpow2.f32 %v1836_v56  ;;  %v7804_v56 = vld [vmem:[#allocation9_spill] sm:$0xff] }
 0x212   :  { %v1838_v30 = vmul.f32 1.442695, %v1832_v9  ;;  %v1840_v1 = vmul.f32 1.442695, %v1833_v0  ;;  %v7805_v9 = vld [vmem:[#allocation7_spill] sm:$0xff] }
 0x214   :  { %5800 = vpow2.f32 %v1838_v30 }
 0x215   :  { %5802 = vpow2.f32 %v1840_v1 }
 0x21a   :  { %v5797_v7 = vpop.eup %5796 }
 0x21b   :  { %v5799_v60 = vpop.eup %5798 }
 0x21c   :  { %v1842_v32 = vadd.f32 %v5799_v60, %v5797_v7 }
 0x21e   :  { %v5801_v22 = vpop.eup %5800  ;;  %v1843_v50 = vrot.slane %v1842_v32, 4 }
 0x21f   :  { %v5803_v25 = vpop.eup %5802 }
 0x220   :  { %v1844_v33 = vadd.f32 %v1843_v50, %v1842_v32  ;;  %v1849_v61 = vadd.f32 %v5803_v25, %v5801_v22  ;;  %v5734_v50 = vld [vmem:[%s7748_s7] sm:$0xff]  }
 0x222   :  { %v1845_v49 = vrot.slane %v1844_v33, 2  ;;  %v1850_v15 = vrot.slane %v1849_v61, 4 }
 0x224   :  { %v1846_v31 = vadd.f32 %v1845_v49, %v1844_v33  ;;  %v1851_v16 = vadd.f32 %v1850_v15, %v1849_v61  ;;  %v7806_v49 = vld [vmem:[#allocation10_spill] sm:$0xff] }
 0x226   :  { %v1847_v51 = vrot.slane %v1846_v31, 1  ;;  %v1852_v37 = vrot.slane %v1851_v16, 2 }
 0x228   :  { %v1848_v6 = vadd.f32 %v1847_v51, %v1846_v31  ;;  %v1853_v13 = vadd.f32 %v1852_v37, %v1851_v16  ;;  %v7808_v37 = vld [vmem:[#allocation23_spill] sm:$0xff] }
 0x22a   :  { %5804 = vrcp.f32 %v1848_v6  ;;  %v1854_v26 = vrot.slane %v1853_v13, 1 }
 0x22c   :  { %v1855_v17 = vadd.f32 %v1854_v26, %v1853_v13  ;;  %v5735_v26 = vld [vmem:[%s7748_s7 + $0x80] sm:$0xff]  }
 0x22e   :  { %5806 = vrcp.f32 %v1855_v17  ;;  %v7123_v52 = vpop.xlane.xlu0 %1662 }
 0x230   :  { %v7125_v20 = vpop.xlane.xlu1 %1667 }
 0x231   :  { %v1679_v43 = vmax.f32 %v7123_v52, %v7125_v20 }
 0x233   :  { %v1680_v57 = vrot.slane %v1679_v43, 4 }
 0x234   :  { %v5805_v59 = vpop.eup %5804 }
 0x235   :  { %v7129_v55 = vmul.f32 %v5805_v59, %v5797_v7  ;;  %v7131_v14 = vmul.f32 %v5805_v59, %v5799_v60  ;;  %v1681_v2 = vmax.f32 %v1679_v43, %v1680_v57  ;;  %v7809_v57 = vld [vmem:[#allocation25_spill] sm:$0xff] }
 0x236   :  { %v7133_v34 = vpop.xlane.xlu0 %1672 }
 0x237   :  { %v1682_v4 = vrot.slane %v1681_v2, 2  ;;  %v1863_v36 = vmul.f32 %v7129_v55, %v7799_v44  ;;  %v1867_v35 = vmul.f32 %v7131_v14, %v7800_v29  ;;  %v1865_v21 = vmul.f32 %v7129_v55, %v7801_v40 }
 0x238   :  { %v5807_v46 = vpop.eup %5806  ;;  %v1869_v54 = vmul.f32 %v7131_v14, %v7802_v62  ;;  %v1862_v53 = vmul.f32 %v7129_v55, %v7803_v10  ;;  %v1866_v28 = vmul.f32 %v7131_v14, %v7804_v56  ;;  %v1864_v0 = vmul.f32 %v7129_v55, %v7805_v9  ;;  %v7149_v30 = vpop.xlane.xlu1 %1677  ;;  %v5737_v62 = vld [vmem:[%s7748_s7 + $0xc8] sm:$0xff]  }
 0x239   :  { %v7151_v1 = vmul.f32 %v5807_v46, %v5801_v22  ;;  %v7153_v7 = vmul.f32 %v5807_v46, %v5803_v25  ;;  %v1683_v60 = vmax.f32 %v1681_v2, %v1682_v4  ;;  %v2088_v32 = vpack.c.bf16 %v1867_v35, %v1863_v36  ;;  %v7807_v25 = vld [vmem:[#allocation18_spill] sm:$0xff]  ;;  %v7811_v35 = vld [vmem:[#allocation20_spill] sm:$0xff] }
 0x23a   :  { %v2090_v33 = vpack.c.bf16 %v1869_v54, %v1865_v21  ;;  %v2087_v61 = vpack.c.bf16 %v1866_v28, %v1862_v53  ;;  %v1868_v15 = vmul.f32 %v7131_v14, %v7806_v49  ;;  %v1686_v31 = vmax.f32 %v7133_v34, %v7149_v30  ;;  %v7162_v16 = vpop.xlane.xlu0 %1936  ;;  %v7810_v2 = vld [vmem:[#allocation14_spill] sm:$0xff]  ;;  %v7812_v21 = vld [vmem:[#allocation15_spill] sm:$0xff] }
 0x23b   :  { %v1684_v22 = vrot.slane %v1683_v60, 1  ;;  %2384 = vmatprep.mubr.bf16.mxu0 %v2088_v32  ;;  %v1871_v51 = vmul.f32 %v7151_v1, %v7807_v25  ;;  %v1875_v6 = vmul.f32 %v7153_v7, %v7808_v37  ;;  %v1873_v13 = vmul.f32 %v7151_v1, %v6897_v3  ;;  %v5736_v3 = vld [vmem:[%s7748_s7 + $0x48] sm:$0xff]  }
 0x23c   :  { %2433 = vmatprep.mubr.bf16.mxu1 %v2090_v33  ;;  %2385 = vmatmul.mubr.bf16.vlgmr.msra.gmra.mrb[16].mxu0 %v2087_v61  ;;  %v2089_v17 = vpack.c.bf16 %v1868_v15, %v1864_v0  ;;  %v1687_v43 = vrot.slane %v1686_v31, 4  ;;  %v1877_v59 = vmul.f32 %v7153_v7, %v7809_v57  ;;  %v1870_v4 = vmul.f32 %v7151_v1, %v7810_v2  ;;  %v7177_v44 = vpop.xlane.xlu1 %1941  ;;  %v5738_v54 = vld [vmem:[%s7748_s7 + $0x8] sm:$0xff]   ;;  %v5740_v0 = vld [vmem:[%s7748_s7 + $0x50] sm:$0xff]   ;;  %v5745_v2 = vld [vmem:[%s7748_s7 + $0xd8] sm:$0xff]  }
 0x23d   :  { %v1685_v36 = vmax.f32 %v1683_v60, %v1684_v22  ;;  %v2092_v29 = vpack.c.bf16 %v1875_v6, %v1871_v51  ;;  %v1874_v40 = vmul.f32 %v7153_v7, %v7811_v35  ;;  %v1872_v46 = vmul.f32 %v7151_v1, %v7812_v21  ;;  %4996 = vmatpush3.bf16.msra.mxu0 %v5734_v50  ;;  %v7813_v56 = vld [vmem:[#allocation22_spill] sm:$0xff]  ;;  %v5742_v51 = vld [vmem:[%s7748_s7 + $0x10] sm:$0xff]   ;;  %v5747_v21 = vld [vmem:[%s7748_s7 + $0x98] sm:$0xff]  }
 0x23e   :  { %2434 = vmatmul.mubr.bf16.vlgmr.msra.gmra.mrb[16].mxu1 %v2089_v17  ;;  %v1688_v10 = vmax.f32 %v1686_v31, %v1687_v43  ;;  %v2094_v53 = vpack.c.bf16 %v1877_v59, %v1873_v13  ;;  %v1876_v28 = vmul.f32 %v7153_v7, %v7813_v56  ;;  %v1953_v9 = vmax.f32 %v7162_v16, %v7177_v44  ;;  %v5739_v50 = vld [vmem:[%s7748_s7 + $0x88] sm:$0xff]   ;;  %v7204_v15 = vpop.xlane.xlu0 %1946  ;;  %v5743_v43 = vld [vmem:[%s7748_s7 + $0x90] sm:$0xff]   ;;  %v5748_v35 = vld [vmem:[%s7748_s7 + $0x60] sm:$0xff]  }
 0x23f   :  { %v1693_v60 = vsub.f32 %v7123_v52, %v1685_v36  ;;  %v1694_v32 = vsub.f32 %v7125_v20, %v1685_v36  ;;  %2392 = vmatprep.mubr.bf16.mxu0 %v2092_v29  ;;  %5024 = vmatpush3.bf16.msra.mxu1 %v5735_v26  ;;  %v2091_v61 = vpack.c.bf16 %v1874_v40, %v1870_v4  ;;  %v5741_v52 = vld [vmem:[%s7748_s7 + $0xd0] sm:$0xff]   ;;  %v5744_v26 = vld [vmem:[%s7748_s7 + $0x58] sm:$0xff]   ;;  %v5750_v56 = vld [vmem:[%s7748_s7 + $0x20] sm:$0xff]  }
 0x240   :  { %v1689_v33 = vrot.slane %v1688_v10, 2  ;;  %2441 = vmatprep.mubr.bf16.mxu1 %v2094_v53  ;;  %v1954_v49 = vrot.slane %v1953_v9, 4  ;;  %v7206_v31 = vpop.xlane.xlu1 %1951  ;;  %4997 = vmatprep.subr.bf16.mxu0 %v5736_v3  ;;  %v2093_v6 = vpack.c.bf16 %v1876_v28, %v1872_v46  ;;  %v5746_v3 = vld [vmem:[%s7748_s7 + $0x18] sm:$0xff]  }
 0x241   :  { %v1697_v20 = vmul.f32 1.442695, %v1693_v60  ;;  %v1699_v22 = vmul.f32 1.442695, %v1694_v32  ;;  %v1960_v25 = vmax.f32 %v7204_v15, %v7206_v31  ;;  %5025 = vmatprep.subr.bf16.mxu1 %v5737_v62  ;;  %4998 = vmatpush3.bf16.msra.mxu0 %v5738_v54  ;;  %v5751_v60 = vld [vmem:[%s7748_s7 + $0xa0] sm:$0xff]  }
 0x242   :  { %v1690_v37 = vmax.f32 %v1688_v10, %v1689_v33  ;;  %v1955_v13 = vmax.f32 %v1953_v9, %v1954_v49  ;;  %4999 = vmatprep.subr.bf16.mxu0 %v5740_v0  ;;  %v5749_v10 = vld [vmem:[%s7748_s7 + $0xe0] sm:$0xff]   ;;  %v5753_v33 = vld [vmem:[%s7748_s7 + $0xe8] sm:$0xff]  }
 0x243   :  { %5808 = vpow2.f32 %v1697_v20  ;;  %v1961_v17 = vrot.slane %v1960_v25, 4  ;;  %5026 = vmatpush3.bf16.msra.mxu1 %v5739_v50 }
 0x244   :  { %5810 = vpow2.f32 %v1699_v22  ;;  %v1691_v57 = vrot.slane %v1690_v37, 1  ;;  %2393 = vmatmul.mubr.bf16.gmra.mrb[20].mxu0 %v2091_v61  ;;  %v1956_v59 = vrot.slane %v1955_v13, 2  ;;  %5027 = vmatprep.subr.bf16.mxu1 %v5741_v52  ;;  %v5754_v52 = vld [vmem:[%s7748_s7 + $0x28] sm:$0xff]  }
 0x245   :  { %v1962_v4 = vmax.f32 %v1960_v25, %v1961_v17  ;;  %5000 = vmatpush3.bf16.msra.mxu0 %v5742_v51 }
 0x246   :  { %v1692_v36 = vmax.f32 %v1690_v37, %v1691_v57  ;;  %2442 = vmatmul.mubr.bf16.gmra.mrb[20].mxu1 %v2093_v6  ;;  %v1957_v29 = vmax.f32 %v1955_v13, %v1956_v59  ;;  %5001 = vmatprep.subr.bf16.mxu0 %v5744_v26  ;;  %v5755_v6 = vld [vmem:[%s7748_s7 + $0xa8] sm:$0xff]   ;;  %v5757_v13 = vld [vmem:[%s7748_s7 + $0xf0] sm:$0xff]  }
 0x247   :  { %v1963_v40 = vrot.slane %v1962_v4, 2  ;;  %5028 = vmatpush3.bf16.msra.mxu1 %v5743_v43  ;;  %v5759_v59 = vld [vmem:[%s7748_s7 + $0xb0] sm:$0xff]  }
 0x248   :  { %v1695_v46 = vsub.f32 %v7133_v34, %v1692_v36  ;;  %v1696_v62 = vsub.f32 %v7149_v30, %v1692_v36  ;;  %v1958_v54 = vrot.slane %v1957_v29, 1  ;;  %5029 = vmatprep.subr.bf16.mxu1 %v5745_v2  ;;  %v5752_v34 = vld [vmem:[%s7748_s7 + $0x68] sm:$0xff]   ;;  %v5761_v2 = vld [vmem:[%s7748_s7 + $0xf8] sm:$0xff]  }
 0x249   :  { %v1964_v53 = vmax.f32 %v1962_v4, %v1963_v40  ;;  %5002 = vmatpush3.bf16.msra.mxu0 %v5746_v3  ;;  %v5762_v3 = vld [vmem:[%s7748_s7 + $0x38] sm:$0xff]  }
 0x24a   :  { %v1701_v28 = vmul.f32 1.442695, %v1695_v46  ;;  %v1703_v9 = vmul.f32 1.442695, %v1696_v62  ;;  %v1959_v0 = vmax.f32 %v1957_v29, %v1958_v54  ;;  %5003 = vmatprep.subr.bf16.mxu0 %v5748_v35  ;;  %v5764_v29 = vld [vmem:[%s7748_s7 + $0x240] sm:$0xff]  }
 0x24b   :  { %v1965_v30 = vrot.slane %v1964_v53, 1  ;;  %5030 = vmatpush3.bf16.msra.mxu1 %v5747_v21  ;;  %v5763_v21 = vld [vmem:[%s7748_s7 + $0xb8] sm:$0xff]   ;;  %v5765_v62 = vld [vmem:[%s7748_s7 + $0x2c0] sm:$0xff]  }
 0x24c   :  { %5812 = vpow2.f32 %v1701_v28  ;;  %v1967_v32 = vsub.f32 %v7162_v16, %v1959_v0  ;;  %v1968_v50 = vsub.f32 %v7177_v44, %v1959_v0  ;;  %5031 = vmatprep.subr.bf16.mxu1 %v5749_v10  ;;  %v5756_v44 = vld [vmem:[%s7748_s7 + $0x70] sm:$0xff]  }
 0x24d   :  { %v7253_v61 = vpop.eup %5808  ;;  %5814 = vpow2.f32 %v1703_v9  ;;  %v1966_v49 = vmax.f32 %v1964_v53, %v1965_v30  ;;  %5004 = vmatpush3.bf16.msra.mxu0 %v5750_v56 }
 0x24e   :  { %v7258_v20 = vpop.eup %5810  ;;  %v1971_v22 = vmul.f32 1.442695, %v1967_v32  ;;  %v1973_v16 = vmul.f32 1.442695, %v1968_v50  ;;  %5005 = vmatprep.subr.bf16.mxu0 %v5752_v34 }
 0x24f   :  { %v1705_v25 = vadd.f32 %v7258_v20, %v7253_v61  ;;  %v1969_v51 = vsub.f32 %v7204_v15, %v1966_v49  ;;  %v1970_v37 = vsub.f32 %v7206_v31, %v1966_v49  ;;  %5032 = vmatpush3.bf16.msra.mxu1 %v5751_v60  ;;  %v5758_v15 = vld [vmem:[%s7748_s7 + $0x30] sm:$0xff]   ;;  %v5760_v31 = vld [vmem:[%s7748_s7 + $0x78] sm:$0xff]  }
 0x250   :  { %5816 = vpow2.f32 %v1971_v22  ;;  %5033 = vmatprep.subr.bf16.mxu1 %v5753_v33 }
 0x251   :  { %v1706_v26 = vrot.slane %v1705_v25, 4  ;;  %5818 = vpow2.f32 %v1973_v16  ;;  %v1975_v17 = vmul.f32 1.442695, %v1969_v51  ;;  %v1977_v43 = vmul.f32 1.442695, %v1970_v37  ;;  %5006 = vmatpush3.bf16.msra.mxu0 %v5754_v52 }
 0x252   :  { %5007 = vmatprep.subr.bf16.mxu0 %v5756_v44 }
 0x253   :  { %v1707_v57 = vadd.f32 %v1706_v26, %v1705_v25  ;;  %5820 = vpow2.f32 %v1975_v17  ;;  %5034 = vmatpush3.bf16.msra.mxu1 %v5755_v6 }
 0x254   :  { %5822 = vpow2.f32 %v1977_v43  ;;  %5035 = vmatprep.subr.bf16.mxu1 %v5757_v13 }
 0x255   :  { %v1708_v4 = vrot.slane %v1707_v57, 2  ;;  %5008 = vmatpush3.bf16.msra.mxu0 %v5758_v15 }
 0x256   :  { %v7288_v36 = vpop.eup %5812  ;;  %5009 = vmatprep.subr.bf16.mxu0 %v5760_v31 }
 0x257   :  { %v7293_v35 = vpop.eup %5814  ;;  %v1709_v40 = vadd.f32 %v1708_v4, %v1707_v57  ;;  %5036 = vmatpush3.bf16.msra.mxu1 %v5759_v59 }
 0x258   :  { %v1712_v46 = vadd.f32 %v7293_v35, %v7288_v36  ;;  %5037 = vmatprep.subr.bf16.mxu1 %v5761_v2 }
 0x259   :  { %v1710_v54 = vrot.slane %v1709_v40, 1  ;;  %5010 = vmatpush3.bf16.msra.mxu0 %v5762_v3 }
 0x25a   :  { %v7303_v10 = vpop.eup %5816  ;;  %v1713_v53 = vrot.slane %v1712_v46, 4  ;;  %5051 = vmatprep.subr.bf16.mxu0 %v5764_v29 }
 0x25b   :  { %v7305_v56 = vpop.eup %5818  ;;  %v1711_v28 = vadd.f32 %v1710_v54, %v1709_v40  ;;  %5038 = vmatpush3.bf16.msra.mxu1 %v5763_v21  ;;  %v5770_v40 = vld [vmem:[%s7748_s7 + $0x208] sm:$0xff]  }
 0x25c   :  { %v1714_v9 = vadd.f32 %v1713_v53, %v1712_v46  ;;  %v1979_v0 = vadd.f32 %v7305_v56, %v7303_v10  ;;  %5079 = vmatprep.subr.bf16.mxu1 %v5765_v62  ;;  %v5771_v62 = vld [vmem:[%s7748_s7 + $0x288] sm:$0xff]   ;;  %v5772_v53 = vld [vmem:[%s7748_s7 + $0x250] sm:$0xff]  }
 0x25d   :  { %v7309_v34 = vpop.eup %5820  ;;  %5824 = vrcp.f32 %v1711_v28 }
 0x25e   :  { %v7311_v30 = vpop.eup %5822  ;;  %v1715_v60 = vrot.slane %v1714_v9, 2  ;;  %v1980_v32 = vrot.slane %v1979_v0, 4 }
 0x25f   :  { %v1986_v50 = vadd.f32 %v7311_v30, %v7309_v34 }
 0x260   :  { %v1716_v33 = vadd.f32 %v1715_v60, %v1714_v9  ;;  %v1981_v49 = vadd.f32 %v1980_v32, %v1979_v0 }
 0x261   :  { %v1987_v52 = vrot.slane %v1986_v50, 4 }
 0x262   :  { %v1717_v22 = vrot.slane %v1716_v33, 1  ;;  %v1982_v16 = vrot.slane %v1981_v49, 2 }
 0x263   :  { %v1988_v51 = vadd.f32 %v1987_v52, %v1986_v50  ;;  %v5777_v52 = vld [vmem:[%s7748_s7 + $0x2d8] sm:$0xff]  }
 0x264   :  { %v1718_v44 = vadd.f32 %v1717_v22, %v1716_v33  ;;  %v1983_v25 = vadd.f32 %v1982_v16, %v1981_v49  ;;  %v5832_v22 = vld [vmem:[%s7742_s1 + $0x88] sm:$0xff] }
 0x265   :  { %v1989_v43 = vrot.slane %v1988_v51, 2 }
 0x266   :  { %5826 = vrcp.f32 %v1718_v44  ;;  %v1984_v37 = vrot.slane %v1983_v25, 1  ;;  %v5833_v44 = vld [vmem:[%s7742_s1 + $0xa8] sm:$0xff] }
 0x267   :  { %v5825_v6 = vpop.eup %5824 }
 0x268   :  { %v7316_v13 = vmul.f32 %v5825_v6, %v7253_v61  ;;  %v7319_v26 = vmul.f32 %v5825_v6, %v7258_v20  ;;  %v1985_v17 = vadd.f32 %v1984_v37, %v1983_v25  ;;  %v5835_v6 = vld [vmem:[%s7742_s1 + $0xb8] sm:$0xff] }
 0x26a   :  { %5828 = vrcp.f32 %v1985_v17  ;;  %v1726_v15 = vmul.f32 %v7316_v13, %v6959_v19  ;;  %v1730_v31 = vmul.f32 %v7319_v26, %v6976_v47  ;;  %v1728_v57 = vmul.f32 %v7316_v13, %v6961_v11  ;;  %v5766_v11 = vld [vmem:[%s7748_s7 + $0x200] sm:$0xff]  }
 0x26b   :  { %v1732_v59 = vmul.f32 %v7319_v26, %v6978_v39  ;;  %v1725_v61 = vmul.f32 %v7316_v13, %v6950_v8  ;;  %v1729_v20 = vmul.f32 %v7319_v26, %v6968_v45  ;;  %v1727_v4 = vmul.f32 %v7316_v13, %v6952_v12  ;;  %v5767_v8 = vld [vmem:[%s7748_s7 + $0x280] sm:$0xff]   ;;  %v5768_v45 = vld [vmem:[%s7748_s7 + $0x248] sm:$0xff]  }
 0x26c   :  { %v2016_v2 = vpack.c.bf16 %v1730_v31, %v1726_v15  ;;  %v1731_v19 = vmul.f32 %v7319_v26, %v6970_v48  ;;  %v1990_v39 = vadd.f32 %v1989_v43, %v1988_v51  ;;  %v5769_v48 = vld [vmem:[%s7748_s7 + $0x2c8] sm:$0xff]   ;;  %v5834_v51 = vld [vmem:[%s7742_s1 + $0x98] sm:$0xff] }
 0x26d   :  { %v2018_v47 = vpack.c.bf16 %v1732_v59, %v1728_v57  ;;  %v2015_v3 = vpack.c.bf16 %v1729_v20, %v1725_v61  ;;  %v5778_v15 = vld [vmem:[%s7748_s7 + $0x218] sm:$0xff]   ;;  %v5780_v59 = vld [vmem:[%s7748_s7 + $0x260] sm:$0xff]  }
 0x26e   :  { %2674 = vmatprep.mubr.bf16.mxu0 %v2016_v2  ;;  %v2017_v12 = vpack.c.bf16 %v1731_v19, %v1727_v4  ;;  %v1991_v54 = vrot.slane %v1990_v39, 1  ;;  %v5779_v31 = vld [vmem:[%s7748_s7 + $0x298] sm:$0xff]   ;;  %v5781_v61 = vld [vmem:[%s7748_s7 + $0x2e0] sm:$0xff]   ;;  %v5784_v4 = vld [vmem:[%s7748_s7 + $0x268] sm:$0xff]  }
 0x26f   :  { %2723 = vmatprep.mubr.bf16.mxu1 %v2018_v47  ;;  %2675 = vmatmul.mubr.bf16.vlgmr.msra.gmra.mrb[24].mxu0 %v2015_v3  ;;  %v5782_v20 = vld [vmem:[%s7748_s7 + $0x220] sm:$0xff]   ;;  %v5785_v19 = vld [vmem:[%s7748_s7 + $0x2e8] sm:$0xff]   ;;  %v5788_v3 = vld [vmem:[%s7748_s7 + $0x270] sm:$0xff]  }
 0x270   :  { %v5827_v29 = vpop.eup %5826  ;;  %2724 = vmatmul.mubr.bf16.vlgmr.msra.gmra.mrb[24].mxu1 %v2017_v12  ;;  %5052 = vmatpush3.bf16.msra.mxu0 %v5766_v11  ;;  %v5783_v2 = vld [vmem:[%s7748_s7 + $0x2a0] sm:$0xff]   ;;  %v5786_v11 = vld [vmem:[%s7748_s7 + $0x228] sm:$0xff]   ;;  %v5791_v12 = vld [vmem:[%s7748_s7 + $0x2b0] sm:$0xff]  }
 0x271   :  { %v7353_v21 = vmul.f32 %v5827_v29, %v7288_v36  ;;  %v7356_v46 = vmul.f32 %v5827_v29, %v7293_v35  ;;  %5080 = vmatpush3.bf16.msra.mxu1 %v5767_v8  ;;  %5053 = vmatprep.subr.bf16.mxu0 %v5768_v45  ;;  %v5773_v36 = vld [vmem:[%s7748_s7 + $0x2d0] sm:$0xff]   ;;  %v5787_v47 = vld [vmem:[%s7748_s7 + $0x2a8] sm:$0xff]   ;;  %v5793_v29 = vld [vmem:[%s7748_s7 + $0x2f8] sm:$0xff]  }
 0x272   :  { %5081 = vmatprep.subr.bf16.mxu1 %v5769_v48  ;;  %v5789_v8 = vld [vmem:[%s7748_s7 + $0x2f0] sm:$0xff]   ;;  %v5792_v48 = vld [vmem:[%s7748_s7 + $0x278] sm:$0xff]  }
 0x273   :  { %v1734_v35 = vmul.f32 %v7353_v21, %v6993_v23  ;;  %v1738_v28 = vmul.f32 %v7356_v46, %v7009_v63  ;;  %v1736_v9 = vmul.f32 %v7353_v21, %v6995_v42  ;;  %v1740_v0 = vmul.f32 %v7356_v46, %v7011_v58 }
 0x274   :  { %v5829_v60 = vpop.eup %5828  ;;  %5054 = vmatpush3.bf16.msra.mxu0 %v5770_v40  ;;  %v1733_v32 = vmul.f32 %v7353_v21, %v6985_v5  ;;  %v1737_v50 = vmul.f32 %v7356_v46, %v7001_v18  ;;  %v1735_v23 = vmul.f32 %v7353_v21, %v6987_v27  ;;  %v1739_v63 = vmul.f32 %v7356_v46, %v7003_v24  ;;  %v5774_v5 = vld [vmem:[%s7748_s7 + $0x210] sm:$0xff]  }
 0x275   :  { %v7384_v33 = vmul.f32 %v5829_v60, %v7303_v10  ;;  %v7387_v42 = vmul.f32 %v5829_v60, %v7305_v56  ;;  %5082 = vmatpush3.bf16.msra.mxu1 %v5771_v62  ;;  %v2020_v58 = vpack.c.bf16 %v1738_v28, %v1734_v35  ;;  %v2022_v49 = vpack.c.bf16 %v1740_v0, %v1736_v9  ;;  %v5775_v27 = vld [vmem:[%s7748_s7 + $0x290] sm:$0xff]   ;;  %v5776_v56 = vld [vmem:[%s7748_s7 + $0x258] sm:$0xff]  }
 0x276   :  { %v1992_v18 = vadd.f32 %v1991_v54, %v1990_v39  ;;  %5055 = vmatprep.subr.bf16.mxu0 %v5772_v53  ;;  %5083 = vmatprep.subr.bf16.mxu1 %v5773_v36  ;;  %v2019_v24 = vpack.c.bf16 %v1737_v50, %v1733_v32  ;;  %v2021_v10 = vpack.c.bf16 %v1739_v63, %v1735_v23  ;;  %v5790_v39 = vld [vmem:[%s7748_s7 + $0x230] sm:$0xff]   ;;  %v5794_v54 = vld [vmem:[%s7748_s7 + $0x238] sm:$0xff]   ;;  %v5836_v36 = vld [vmem:[%s7742_s1 + $0x80] sm:$0xff] }
 0x277   :  { %2682 = vmatprep.mubr.bf16.mxu0 %v2020_v58  ;;  %2731 = vmatprep.mubr.bf16.mxu1 %v2022_v49  ;;  %v2000_v16 = vmul.f32 %v5832_v22, %v7384_v33  ;;  %v2004_v25 = vmul.f32 %v5833_v44, %v7387_v42  ;;  %v2002_v37 = vmul.f32 %v5834_v51, %v7384_v33  ;;  %v5795_v53 = vld [vmem:[%s7748_s7 + $0x2b8] sm:$0xff]   ;;  %v5838_v28 = vld [vmem:[%s7742_s1 + $0x90] sm:$0xff]  ;;  %v5840_v32 = vld [vmem:[%s7742_s1 + $0xc8] sm:$0xff] }
 0x278   :  { %2683 = vmatmul.mubr.bf16.gmra.mrb[28].mxu0 %v2019_v24  ;;  %2732 = vmatmul.mubr.bf16.gmra.mrb[28].mxu1 %v2021_v10  ;;  %v2006_v17 = vmul.f32 %v5835_v6, %v7387_v42  ;;  %5830 = vrcp.f32 %v1992_v18  ;;  %v2001_v9 = vmul.f32 %v5838_v28, %v7384_v33  ;;  %v5839_v0 = vld [vmem:[%s7742_s1 + $0xb0] sm:$0xff]  ;;  %v5841_v23 = vld [vmem:[%s7742_s1 + $0xe8] sm:$0xff]  ;;  %v5842_v58 = vld [vmem:[%s7742_s1 + $0xd8] sm:$0xff] }
 0x279   :  { %5056 = vmatpush3.bf16.msra.mxu0 %v5774_v5  ;;  %5084 = vmatpush3.bf16.msra.mxu1 %v5775_v27  ;;  %v2741_v43 = vpack.c.bf16 %v2004_v25, %v2000_v16  ;;  %v2005_v60 = vmul.f32 %v5839_v0, %v7387_v42  ;;  %v5843_v5 = vld [vmem:[%s7742_s1 + $0xf8] sm:$0xff]  ;;  %v5845_v16 = vld [vmem:[%s7742_s1 + $0xe0] sm:$0xff]  ;;  %v5846_v25 = vld [vmem:[%s7742_s1 + $0xd0] sm:$0xff] }
 0x27a   :  { %5057 = vmatprep.subr.bf16.mxu0 %v5776_v56  ;;  %5085 = vmatprep.subr.bf16.mxu1 %v5777_v52  ;;  %v2743_v57 = vpack.c.bf16 %v2006_v17, %v2002_v37  ;;  %v5844_v52 = vld [vmem:[%s7742_s1 + $0xc0] sm:$0xff]  ;;  %v5847_v37 = vld [vmem:[%s7742_s1 + $0xf0] sm:$0xff] }
 0x27b   :  { %3037 = vmatprep.mubr.bf16.mxu0 %v2741_v43  ;;  %v2742_v24 = vpack.c.bf16 %v2005_v60, %v2001_v9 }
 0x27c   :  { %3086 = vmatprep.mubr.bf16.mxu1 %v2743_v57 }
 0x27d   :  { %5058 = vmatpush3.bf16.msra.mxu0 %v5778_v15  ;;  %5086 = vmatpush3.bf16.msra.mxu1 %v5779_v31  ;;  %v7528_v15 = vld [vmem:[%s7743_s2] sm:$0xff] }
 0x27e   :  { %5059 = vmatprep.subr.bf16.mxu0 %v5780_v59  ;;  %5087 = vmatprep.subr.bf16.mxu1 %v5781_v61  ;;  %v7533_v31 = vld [vmem:[%s7743_s2 + $0x20] sm:$0xff] }
 0x281   :  { %5060 = vmatpush3.bf16.msra.mxu0 %v5782_v20  ;;  %5088 = vmatpush3.bf16.msra.mxu1 %v5783_v2 }
 0x282   :  { %5061 = vmatprep.subr.bf16.mxu0 %v5784_v4  ;;  %5089 = vmatprep.subr.bf16.mxu1 %v5785_v19  ;;  %v5831_v45 = vpop.eup %5830 }
 0x283   :  { %v7466_v40 = vmul.f32 %v5831_v45, %v7309_v34  ;;  %v7469_v62 = vmul.f32 %v5831_v45, %v7311_v30  ;;  %v1999_v34 = vmul.f32 %v5836_v36, %v7384_v33  ;;  %v5837_v30 = vld [vmem:[%s7742_s1 + $0xa0] sm:$0xff]  ;;  %s5872_s1 = smov 127  }
 0x284   :  { %v2003_v35 = vmul.f32 %v5837_v30, %v7387_v42 }
 0x285   :  { %5062 = vmatpush3.bf16.msra.mxu0 %v5786_v11  ;;  %5090 = vmatpush3.bf16.msra.mxu1 %v5787_v47  ;;  %v2008_v50 = vmul.f32 %v5840_v32, %v7466_v40  ;;  %v2012_v63 = vmul.f32 %v5841_v23, %v7469_v62  ;;  %v2010_v49 = vmul.f32 %v5842_v58, %v7466_v40 }
 0x286   :  { %5063 = vmatprep.subr.bf16.mxu0 %v5788_v3  ;;  %5091 = vmatprep.subr.bf16.mxu1 %v5789_v8  ;;  %v2014_v27 = vmul.f32 %v5843_v5, %v7469_v62  ;;  %v2740_v18 = vpack.c.bf16 %v2003_v35, %v1999_v34  ;;  %v2007_v22 = vmul.f32 %v5844_v52, %v7466_v40 }
 0x287   :  { %v2745_v10 = vpack.c.bf16 %v2012_v63, %v2008_v50  ;;  %v2011_v44 = vmul.f32 %v5845_v16, %v7469_v62  ;;  %v2009_v51 = vmul.f32 %v5846_v25, %v7466_v40  ;;  %v2013_v6 = vmul.f32 %v5847_v37, %v7469_v62 }
 0x288   :  { %v2747_v56 = vpack.c.bf16 %v2014_v27, %v2010_v49 }
 0x289   :  { %5064 = vmatpush3.bf16.msra.mxu0 %v5790_v39  ;;  %5092 = vmatpush3.bf16.msra.mxu1 %v5791_v12  ;;  %v2744_v17 = vpack.c.bf16 %v2011_v44, %v2007_v22  ;;  %v2746_v43 = vpack.c.bf16 %v2013_v6, %v2009_v51 }
 0x28a   :  { %5065 = vmatprep.subr.bf16.mxu0 %v5792_v48  ;;  %5093 = vmatprep.subr.bf16.mxu1 %v5793_v29 }
 0x28d   :  { %5066 = vmatpush3.bf16.msra.mxu0 %v5794_v54  ;;  %5094 = vmatpush3.bf16.msra.mxu1 %v5795_v53 }
 0x290   :  { %3038 = vmatmul.mubr.bf16.vlgmr.msra.gmra.mrb[32].mxu0 %v2740_v18  ;;  %3087 = vmatmul.mubr.bf16.vlgmr.msra.gmra.mrb[32].mxu1 %v2742_v24 }
 0x291   :  { %3045 = vmatprep.mubr.bf16.mxu0 %v2745_v10  ;;  %3094 = vmatprep.mubr.bf16.mxu1 %v2747_v56 }
 0x298   :  { %3046 = vmatmul.mubr.bf16.gmra.mrb[36].mxu0 %v2744_v17  ;;  %3095 = vmatmul.mubr.bf16.gmra.mrb[36].mxu1 %v2746_v43 }
 0x299   :  { %5190 = vmatprep.mubr.msk.f32.mxu0 %vm3116_vm0, %v7528_v15  ;;  %5204 = vmatprep.mubr.msk.f32.mxu1 %vm3116_vm0, %v7533_v31 }
 0x30f   :  { %v4955_v57 = vpop.f32.mrb[16].mxu0 }
 0x310   :  { %v4956_v59 = vpop.f32.mrb[17].mxu0 }
 0x311   :  { %v4983_v61 = vpop.f32.mrb[16].mxu1  ;;  %v4957_v20 = vadd.f32 %v4956_v59, %v4955_v57  ;;  %v4958_v2 = vpop.f32.mrb[18].mxu0 }
 0x312   :  { %v4984_v4 = vpop.f32.mrb[17].mxu1  ;;  %v4959_v19 = vpop.f32.mrb[19].mxu0 }
 0x313   :  { %v4985_v11 = vadd.f32 %v4984_v4, %v4983_v61  ;;  %v4986_v47 = vpop.f32.mrb[18].mxu1  ;;  %v4960_v3 = vadd.f32 %v4959_v19, %v4958_v2 }
 0x314   :  { %v4987_v8 = vpop.f32.mrb[19].mxu1 }
 0x315   :  { %v2436_v45 = vadd.f32 %v4985_v11, %v4957_v20  ;;  %v4988_v39 = vadd.f32 %v4987_v8, %v4986_v47 }
 0x317   :  { %v2439_v12 = vadd.f32 %v4988_v39, %v4960_v3  ;;  %v4961_v48 = vpop.f32.mrb[20].mxu0 }
 0x318   :  { %v4962_v29 = vpop.f32.mrb[21].mxu0 }
 0x319   :  { %v4989_v54 = vpop.f32.mrb[20].mxu1  ;;  %v4963_v53 = vadd.f32 %v4962_v29, %v4961_v48  ;;  %v4964_v36 = vpop.f32.mrb[22].mxu0 }
 0x31a   :  { %v4990_v34 = vpop.f32.mrb[21].mxu1  ;;  %v4965_v30 = vpop.f32.mrb[23].mxu0 }
 0x31b   :  { %v4991_v35 = vadd.f32 %v4990_v34, %v4989_v54  ;;  %v4992_v28 = vpop.f32.mrb[22].mxu1  ;;  %v4966_v9 = vadd.f32 %v4965_v30, %v4964_v36 }
 0x31c   :  { %v4993_v0 = vpop.f32.mrb[23].mxu1 }
 0x31d   :  { %v2444_v60 = vadd.f32 %v4991_v35, %v4963_v53  ;;  %v4994_v32 = vadd.f32 %v4993_v0, %v4992_v28 }
 0x31f   :  { %v2447_v50 = vadd.f32 %v4994_v32, %v4966_v9 }
 0x342   :  { %v5011_v23 = vpop.f32.mrb[24].mxu0 }
 0x343   :  { %v5039_v63 = vpop.f32.mrb[24].mxu1  ;;  %v5012_v58 = vpop.f32.mrb[25].mxu0 }
 0x344   :  { %v5013_v49 = vadd.f32 %v5012_v58, %v5011_v23  ;;  %v5040_v5 = vpop.f32.mrb[25].mxu1  ;;  %v5014_v27 = vpop.f32.mrb[26].mxu0 }
 0x345   :  { %v5041_v18 = vadd.f32 %v5040_v5, %v5039_v63  ;;  %v5042_v24 = vpop.f32.mrb[26].mxu1  ;;  %v5015_v10 = vpop.f32.mrb[27].mxu0 }
 0x346   :  { %v2677_v56 = vadd.f32 %v5013_v49, %v2436_v45  ;;  %v5016_v52 = vadd.f32 %v5015_v10, %v5014_v27  ;;  %v5043_v22 = vpop.f32.mrb[27].mxu1 }
 0x347   :  { %v5044_v16 = vadd.f32 %v5043_v22, %v5042_v24 }
 0x348   :  { %v2726_v44 = vadd.f32 %v5041_v18, %v2677_v56  ;;  %v2680_v25 = vadd.f32 %v5016_v52, %v2439_v12 }
 0x34a   :  { %v2729_v51 = vadd.f32 %v5044_v16, %v2680_v25 }
 0x34b   :  { %v5017_v37 = vpop.f32.mrb[28].mxu0  ;;  %v5045_v6 = vpop.f32.mrb[28].mxu1 }
 0x34c   :  { %v5018_v17 = vpop.f32.mrb[29].mxu0  ;;  %v5046_v43 = vpop.f32.mrb[29].mxu1 }
 0x34d   :  { %v5019_v57 = vadd.f32 %v5018_v17, %v5017_v37  ;;  %v5047_v59 = vadd.f32 %v5046_v43, %v5045_v6  ;;  %v5020_v61 = vpop.f32.mrb[30].mxu0  ;;  %v5048_v20 = vpop.f32.mrb[30].mxu1  ;;  %v7542_v17 = vld [vmem:[%s7743_s2 + $0x8] sm:$0xff] }
 0x34e   :  { %v5021_v2 = vpop.f32.mrb[31].mxu0  ;;  %v5049_v4 = vpop.f32.mrb[31].mxu1  ;;  %v7547_v43 = vld [vmem:[%s7743_s2 + $0x28] sm:$0xff] }
 0x34f   :  { %v2685_v19 = vadd.f32 %v5019_v57, %v2444_v60  ;;  %v5022_v11 = vadd.f32 %v5021_v2, %v5020_v61  ;;  %v5050_v47 = vadd.f32 %v5049_v4, %v5048_v20  ;;  %v7552_v57 = vld [vmem:[%s7743_s2 + $0x10] sm:$0xff]  ;;  %v7570_v61 = vld [vmem:[%s7743_s2 + $0x18] sm:$0xff] }
 0x350   :  { %v7575_v20 = vld [vmem:[%s7743_s2 + $0x38] sm:$0xff] }
 0x351   :  { %v2734_v3 = vadd.f32 %v5047_v59, %v2685_v19  ;;  %v2688_v8 = vadd.f32 %v5022_v11, %v2447_v50  ;;  %v7557_v59 = vld [vmem:[%s7743_s2 + $0x30] sm:$0xff] }
 0x353   :  { %v2737_v45 = vadd.f32 %v5050_v47, %v2688_v8 }
 0x363   :  { %v5067_v39 = vpop.f32.mrb[32].mxu0  ;;  %v5095_v48 = vpop.f32.mrb[32].mxu1 }
 0x364   :  { %v5068_v12 = vpop.f32.mrb[33].mxu0  ;;  %v5096_v29 = vpop.f32.mrb[33].mxu1 }
 0x365   :  { %v5069_v54 = vadd.f32 %v5068_v12, %v5067_v39  ;;  %v5097_v53 = vadd.f32 %v5096_v29, %v5095_v48  ;;  %v5070_v36 = vpop.f32.mrb[34].mxu0  ;;  %v5098_v34 = vpop.f32.mrb[34].mxu1  ;;  %v3389_v39 = vld [vmem:[%s7749_s8 + $0x4] sm:$0xf]  ;;  %v7591_v12 = vld [vmem:[%s7752_s11] sm:$0x3] }
 0x366   :  { %v5071_v30 = vpop.f32.mrb[35].mxu0  ;;  %v5099_v35 = vpop.f32.mrb[35].mxu1 }
 0x367   :  { %v3089_v28 = vadd.f32 %v5097_v53, %v5069_v54  ;;  %v5072_v9 = vadd.f32 %v5071_v30, %v5070_v36  ;;  %v5100_v0 = vadd.f32 %v5099_v35, %v5098_v34  ;;  %v3355_v53 = vrot.slane %v7591_v12, %v6597_v41 }
 0x369   :  { %v3092_v32 = vadd.f32 %v5100_v0, %v5072_v9  ;;  %v3103_v60 = vadd.f32 %v3089_v28, %v2726_v44 }
 0x36b   :  { %3316 = vrot.lane.b32.xlu0 %v3103_v60, %s5872_s1  ;;  %v5073_v23 = vpop.f32.mrb[36].mxu0  ;;  %v5101_v50 = vpop.f32.mrb[36].mxu1  ;;  %v3104_v63 = vadd.f32 %v3092_v32, %v2729_v51 }
 0x36c   :  { %v5074_v58 = vpop.f32.mrb[37].mxu0  ;;  %v5102_v49 = vpop.f32.mrb[37].mxu1 }
 0x36d   :  { %v5075_v5 = vadd.f32 %v5074_v58, %v5073_v23  ;;  %v5103_v27 = vadd.f32 %v5102_v49, %v5101_v50  ;;  %3318 = vrot.lane.b32.xlu1 %v3104_v63, %s5872_s1  ;;  %v5311_v18 = vpack.c.bf16 %v3104_v63, %v3103_v60  ;;  %v5076_v24 = vpop.f32.mrb[38].mxu0  ;;  %v5104_v10 = vpop.f32.mrb[38].mxu1 }
 0x36e   :  { %v5077_v56 = vpop.f32.mrb[39].mxu0  ;;  %v5105_v52 = vpop.f32.mrb[39].mxu1 }
 0x36f   :  { %v3097_v22 = vadd.f32 %v5103_v27, %v5075_v5  ;;  %v5078_v16 = vadd.f32 %v5077_v56, %v5076_v24  ;;  %v5106_v25 = vadd.f32 %v5105_v52, %v5104_v10  ;;  %5312 = vmatprep.subr.bf16.mxu0 %v5311_v18  ;;  %5320 = vmatprep.subr.bf16.mxu1 %v5311_v18  ;;  %v4924_v10 = vld [vmem:[%s7743_s2 + $0x70] sm:$0xff]  ;;  %v4925_v56 = vld [vmem:[%s7743_s2 + $0x78] sm:$0xff]  ;;  %v3390_v52 = vld [vmem:[%s7749_s8 + $0x8] sm:$0xf] }
 0x370   :  { %5314 = vmatpush3.bf16.msra.mxu0 %v5311_v18  ;;  %5322 = vmatpush3.bf16.msra.mxu1 %v5311_v18 }
 0x371   :  { %v3100_v44 = vadd.f32 %v5106_v25, %v5078_v16  ;;  %v3105_v37 = vadd.f32 %v3097_v22, %v2734_v3  ;;  %v3391_v25 = vld [vmem:[%s7749_s8 + $0xc] sm:$0xf] }
 0x373   :  { %3320 = vrot.lane.b32.xlu0 %v3105_v37, %s5872_s1  ;;  %v3106_v51 = vadd.f32 %v3100_v44, %v2737_v45 }
 0x375   :  { %3322 = vrot.lane.b32.xlu1 %v3106_v51, %s5872_s1  ;;  %v5315_v6 = vpack.c.bf16 %v3106_v51, %v3105_v37 }
 0x377   :  { %5316 = vmatprep.subr.bf16.mxu0 %v5315_v6  ;;  %5324 = vmatprep.subr.bf16.mxu1 %v5315_v6 }
 0x378   :  { %5318 = vmatpush3.bf16.msra.mxu0 %v5315_v6  ;;  %5326 = vmatpush3.bf16.msra.mxu1 %v5315_v6 }
 0x379   :  { %5224 = vmatprep.subr.msk.mxu1 %vm3491_vm1, %v3389_v39 }
 0x37b   :  { %5191 = vmatmul.mubr.msk.f32.vlgmr.msra.gmra.mrb[40].mxu0 %vm3116_vm0, %v7542_v17  ;;  %5205 = vmatmul.mubr.msk.f32.vlgmr.msra.gmra.mrb[40].mxu1 %vm3116_vm0, %v7547_v43 }
 0x37c   :  { %5193 = vmatprep.mubr.msk.f32.mxu0 %vm3116_vm0, %v7552_v57  ;;  %5207 = vmatprep.mubr.msk.f32.mxu1 %vm3116_vm0, %v7557_v59 }
 0x37d   :  { %5225 = vmatpush3.msk.msra.mxu1 %vm3491_vm1, %v3389_v39  ;;  %v4935_v39 = vld [vmem:[%s7750_s9] ss:$0 sm:$0xff] }
 0x37e   :  { %5232 = vmatprep.subr.msk.mxu1 %vm3491_vm1, %v3390_v52 }
 0x37f   :  { %5194 = vmatmul.mubr.msk.f32.gmra.mrb[42].mxu0 %vm3116_vm0, %v7570_v61  ;;  %5208 = vmatmul.mubr.msk.f32.gmra.mrb[42].mxu1 %vm3116_vm0, %v7575_v20 }
 0x380   :  { %5218 = vmatprep.mubr.msk.f32.mxu0 %vm3116_vm0, %v7528_v15 }
 0x3dd   :  { %v3317_v29 = vpop.permute.xlu0 %3316 }
 0x3df   :  { %v3319_v15 = vpop.permute.xlu1 %3318 }
 0x3e5   :  { %v3321_v34 = vpop.permute.xlu0 %3320 }
 0x3e7   :  { %v3323_v48 = vpop.permute.xlu1 %3322 }
 0x44e   :  { %v5192_v2 = vpop.f32.mrb[40].mxu0  ;;  %v5206_v4 = vpop.f32.mrb[40].mxu1 }
 0x44f   :  { %3338 = vrot.lane.b32.xlu1 %v5206_v4, %s5873_s22  ;;  %v3195_v19 = vpop.f32.mrb[41].mxu0  ;;  %v3292_v11 = vpop.f32.mrb[41].mxu1  ;;  %v3329_v54 = vadd.f32 %v5192_v2, %v3319_v15 }
 0x450   :  { %v3328_v35 = vadd.f32 %v3317_v29, %v3195_v19 }
 0x452   :  { %v5195_v47 = vpop.f32.mrb[42].mxu0  ;;  %v5209_v3 = vpop.f32.mrb[42].mxu1 }
 0x453   :  { %3336 = vrot.lane.b32.xlu1 %v3292_v11, %s5873_s22  ;;  %v3205_v8 = vpop.f32.mrb[43].mxu0  ;;  %v3302_v45 = vpop.f32.mrb[43].mxu1  ;;  %v3331_v63 = vadd.f32 %v5195_v47, %v3323_v48  ;;  %v4936_v48 = vld [vmem:[%s7750_s9 + $0x1] ss:$0 sm:$0xff]  ;;  %s5876_s9 = smov [#allocation3]  }
 0x454   :  { %3340 = vrot.lane.b32.xlu0 %v3302_v45, %s5873_s22  ;;  %v3330_v9 = vadd.f32 %v3321_v34, %v3205_v8  ;;  %v4322_v8 = vld [vmem:[%s7751_s10] sm:$0x3f]  ;;  %v5874_v45 = vmov 0.0   ;;  %s4416_s10 = sshll.u32 %s5876_s9, 4  ;;  %s4417_s10 = int_to_ptr.vmem [resolvable:$true] %s4416_s10 }
 0x455   :  { %s5848_s27 = scalar_lea.vmem %s4417_s10, 32  ;;  %p5853_p1 = scmp.lt.s32.totalorder %s4417_s10, %s4417_s10 }
 0x456   :  { %p5849_p0 = scmp.ne.s32.totalorder %s4417_s10, %s5848_s27  ;;  %p5854_p2 = scmp.lt.s32.totalorder %s5848_s27, %s5848_s27 }
 0x457   :  { %3342 = vrot.lane.b32.xlu1 %v5209_v3, %s5873_s22 }
 0x458   :  { %p5855_p3 = por %p5854_p2, %p5853_p1 }
 0x45a   :  { %p5856_p4 = pnand %p5855_p3, %p5849_p0 }
 0x4c1   :  { %v3339_v36 = vpop.permute.xlu1 %3338 }
 0x4c2   :  { %v3349_v30 = vadd.f32 %v3339_v36, %v3329_v54 }
 0x4c4   :  { %v3357_v28 = vadd.f32 %v3355_v53, %v3349_v30 }
 0x4c5   :  { %v3337_v0 = vpop.permute.xlu1 %3336 }
 0x4c6   :  { %v3361_v32 = vmax.f32 %v3357_v28, 0.0  ;;  %v3348_v60 = vadd.f32 %v3337_v0, %v3328_v35  ;;  %v3341_v23 = vpop.permute.xlu0 %3340 }
 0x4c7   :  { %v3350_v50 = vadd.f32 %v3341_v23, %v3330_v9 }
 0x4c8   :  { %3366 = vst.msk [vmem:[#allocation2 + $0x8] sm:$0xff] %vm3364_vm2, %v3361_v32  ;;  %v3356_v58 = vadd.f32 %v3355_v53, %v3348_v60 }
 0x4c9   :  { %3371 = vst.msk [vmem:[#allocation2 + $0x8] sm:$0xff] %vm3369_vm3, %v7319_v26  ;;  %v3358_v41 = vadd.f32 %v3355_v53, %v3350_v50  ;;  %v3343_v49 = vpop.permute.xlu1 %3342 }
 0x4ca   :  { %3376 = vst.msk [vmem:[#allocation2 + $0x8] sm:$0xff] %vm3374_vm4, %v7131_v14  ;;  %v3360_v5 = vmax.f32 %v3356_v58, 0.0  ;;  %v3351_v27 = vadd.f32 %v3343_v49, %v3331_v63 }
 0x4cb   :  { %3381 = vst.msk [vmem:[#allocation2 + $0x8] sm:$0xff] %vm3379_vm5, %v7387_v42  ;;  %v3362_v18 = vmax.f32 %v3358_v41, 0.0  ;;  %v4911_v42 = vld [vmem:[%s7743_s2 + $0x50] sm:$0xff] }
 0x4cc   :  { %3365 = vst.msk [vmem:[#allocation2] sm:$0xff] %vm3364_vm2, %v3360_v5  ;;  %v3359_v24 = vadd.f32 %v3355_v53, %v3351_v27 }
 0x4cd   :  { %3370 = vst.msk [vmem:[#allocation2] sm:$0xff] %vm3369_vm3, %v7316_v13 }
 0x4ce   :  { %3367 = vst.msk [vmem:[#allocation2 + $0x10] sm:$0xff] %vm3364_vm2, %v3362_v18  ;;  %v3363_v14 = vmax.f32 %v3359_v24, 0.0 }
 0x4cf   :  { %3375 = vst.msk [vmem:[#allocation2] sm:$0xff] %vm3374_vm4, %v7129_v55 }
 0x4d0   :  { %3372 = vst.msk [vmem:[#allocation2 + $0x10] sm:$0xff] %vm3369_vm3, %v7353_v21 }
 0x4d1   :  { %3380 = vst.msk [vmem:[#allocation2] sm:$0xff] %vm3379_vm5, %v7384_v33 }
 0x4d2   :  { %3377 = vst.msk [vmem:[#allocation2 + $0x10] sm:$0xff] %vm3374_vm4, %v7151_v1  ;;  %v3385_v13 = vld [vmem:[#allocation2 + $0x8] sm:$0xff] }
 0x4d3   :  { %3382 = vst.msk [vmem:[#allocation2 + $0x10] sm:$0xff] %vm3379_vm5, %v7466_v40  ;;  %v4912_v40 = vld [vmem:[%s7743_s2 + $0x58] sm:$0xff] }
 0x4d4   :  { %3368 = vst.msk [vmem:[#allocation2 + $0x18] sm:$0xff] %vm3364_vm2, %v3363_v14 }
 0x4d5   :  { %3373 = vst.msk [vmem:[#allocation2 + $0x18] sm:$0xff] %vm3369_vm3, %v7356_v46  ;;  %v4910_v46 = vld [vmem:[%s7743_s2 + $0x48] sm:$0xff] }
 0x4d6   :  { %3378 = vst.msk [vmem:[#allocation2 + $0x18] sm:$0xff] %vm3374_vm4, %v7153_v7  ;;  %v4909_v7 = vld [vmem:[%s7743_s2 + $0x40] sm:$0xff] }
 0x4d7   :  { %3383 = vst.msk [vmem:[#allocation2 + $0x18] sm:$0xff] %vm3379_vm5, %v7469_v62  ;;  %v4922_v62 = vld [vmem:[%s7743_s2 + $0x60] sm:$0xff] }
 0x4d8   :  { %v3384_v55 = vld [vmem:[#allocation2] sm:$0xff] }
 0x4d9   :  { %v5327_v26 = vpack.c.bf16 %v3385_v13, %v3384_v55 }
 0x4da   :  { %v3386_v1 = vld [vmem:[#allocation2 + $0x10] sm:$0xff] }
 0x4db   :  { %5328 = vmatprep.subr.bf16.mxu0 %v5327_v26 }
 0x4dc   :  { %5330 = vmatpush3.bf16.msra.mxu0 %v5327_v26 }
 0x4de   :  { %v7623_v21 = vld [vmem:[#allocation2 + $0x18] sm:$0xff] }
 0x4df   :  { %v5331_v33 = vpack.c.bf16 %v7623_v21, %v3386_v1 }
 0x4e1   :  { %5332 = vmatprep.subr.bf16.mxu0 %v5331_v33 }
 0x4e2   :  { %5334 = vmatpush3.bf16.msra.mxu0 %v5331_v33 }
 0x4e3   :  { %5336 = vmatprep.subr.bf16.mxu0 %v5327_v26 }
 0x4e5   :  { %5219 = vmatmul.mubr.msk.f32.vlgmr.msra.gmra.mrb[44].mxu0 %vm3116_vm0, %v7542_v17  ;;  %v3388_v17 = vld [vmem:[%s7749_s8] sm:$0xf] }
 0x4e6   :  { %5338 = vmatpush3.bf16.msra.mxu0 %v5327_v26  ;;  %5221 = vmatprep.mubr.msk.f32.mxu0 %vm3116_vm0, %v7552_v57 }
 0x4e7   :  { %5340 = vmatprep.subr.bf16.mxu0 %v5331_v33 }
 0x4e9   :  { %5222 = vmatmul.mubr.msk.f32.gmra.mrb[46].mxu0 %vm3116_vm0, %v7570_v61 }
 0x4ea   :  { %5342 = vmatpush3.bf16.msra.mxu0 %v5331_v33  ;;  %5248 = vmatprep.mubr.msk.f32.mxu0 %vm3116_vm0, %v7533_v31  ;;  %v4923_v31 = vld [vmem:[%s7743_s2 + $0x68] sm:$0xff] }
 0x4eb   :  { %5344 = vmatprep.subr.bf16.mxu0 %v5327_v26 }
 0x4ed   :  { %5249 = vmatmul.mubr.msk.f32.vlgmr.msra.gmra.mrb[48].mxu0 %vm3116_vm0, %v7547_v43 }
 0x4ee   :  { %5346 = vmatpush3.bf16.msra.mxu0 %v5327_v26  ;;  %5251 = vmatprep.mubr.msk.f32.mxu0 %vm3116_vm0, %v7557_v59 }
 0x4ef   :  { %5348 = vmatprep.subr.bf16.mxu0 %v5331_v33 }
 0x4f1   :  { %5252 = vmatmul.mubr.msk.f32.gmra.mrb[50].mxu0 %vm3116_vm0, %v7575_v20  ;;  %v3392_v20 = vld [vmem:[%s7749_s8 + $0x10] sm:$0xf] }
 0x4f2   :  { %5350 = vmatpush3.bf16.msra.mxu0 %v5331_v33  ;;  %5270 = vmatprep.mubr.msk.f32.mxu0 %vm3116_vm0, %v4909_v7 }
 0x4f3   :  { %5352 = vmatprep.subr.bf16.mxu0 %v5327_v26 }
 0x4f5   :  { %5271 = vmatmul.mubr.msk.f32.vlgmr.msra.gmra.mrb[52].mxu0 %vm3116_vm0, %v4910_v46 }
 0x4f6   :  { %5354 = vmatpush3.bf16.msra.mxu0 %v5327_v26  ;;  %5273 = vmatprep.mubr.msk.f32.mxu0 %vm3116_vm0, %v4911_v42 }
 0x4f7   :  { %5356 = vmatprep.subr.bf16.mxu0 %v5331_v33 }
 0x4f9   :  { %5274 = vmatmul.mubr.msk.f32.gmra.mrb[54].mxu0 %vm3116_vm0, %v4912_v40 }
 0x4fa   :  { %5358 = vmatpush3.bf16.msra.mxu0 %v5331_v33  ;;  %5292 = vmatprep.mubr.msk.f32.mxu0 %vm3116_vm0, %v4922_v62 }
 0x4fb   :  { %5306 = vmatprep.subr.mxu0 %v5874_v45 }
 0x4fd   :  { %5293 = vmatmul.mubr.msk.f32.vlgmr.msra.gmra.mrb[56].mxu0 %vm3116_vm0, %v4923_v31  ;;  %v4326_v31 = vrot.slane %v7591_v12, %v6590_v38 }
 0x4fe   :  { %5295 = vmatprep.mubr.msk.f32.mxu0 %vm3116_vm0, %v4924_v10  ;;  %5307 = vmatpush3.msk.msra.mxu0 %vm4333_vm7, %v4322_v8 }
 0x501   :  { %5296 = vmatmul.mubr.msk.f32.gmra.mrb[58].mxu0 %vm3116_vm0, %v4925_v56 }
 0x502   :  { %5308 = vmatprep.mubr.msk.f32.mxu0 %vm5875_vm8, %v5874_v45 }
 0x5b8   :  { %v5220_v22 = vpop.f32.mrb[44].mxu0 }
 0x5b9   :  { %v3459_v16 = vpop.f32.mrb[45].mxu0 }
 0x5ba   :  { %5226 = vmatprep.mubr.msk.f32.mxu1 %vm3478_vm6, %v3459_v16 }
 0x5bb   :  { %5227 = vmatmul.mubr.msk.f32.vlgmr.msra.gmra.mrb[44].mxu1 %vm3478_vm6, %v5220_v22 }
 0x5bc   :  { %v5223_v44 = vpop.f32.mrb[46].mxu0  ;;  %5233 = vmatpush3.msk.msra.mxu1 %vm3491_vm1, %v3390_v52 }
 0x5bd   :  { %v3469_v37 = vpop.f32.mrb[47].mxu0  ;;  %5254 = vmatprep.subr.msk.mxu1 %vm3491_vm1, %v3391_v25 }
 0x5be   :  { %5229 = vmatprep.mubr.msk.f32.mxu1 %vm3478_vm6, %v3469_v37 }
 0x5bf   :  { %5230 = vmatmul.mubr.msk.f32.gmra.mrb[46].mxu1 %vm3478_vm6, %v5223_v44 }
 0x5c0   :  { %5234 = vmatprep.mubr.msk.f32.mxu1 %vm3478_vm6, %v3384_v55  ;;  %v5250_v51 = vpop.f32.mrb[48].mxu0 }
 0x5c1   :  { %v3746_v6 = vpop.f32.mrb[49].mxu0 }
 0x5c3   :  { %5235 = vmatmul.mubr.msk.f32.vlgmr.msra.gmra.mrb[44].mxu1 %vm3478_vm6, %v3385_v13 }
 0x5c4   :  { %5237 = vmatprep.mubr.msk.f32.mxu1 %vm3478_vm6, %v3386_v1  ;;  %5255 = vmatpush3.msk.msra.mxu1 %vm3491_vm1, %v3391_v25  ;;  %v5253_v43 = vpop.f32.mrb[50].mxu0 }
 0x5c5   :  { %v3756_v57 = vpop.f32.mrb[51].mxu0  ;;  %5276 = vmatprep.subr.msk.mxu1 %vm3491_vm1, %v3388_v17 }
 0x5c7   :  { %5238 = vmatmul.mubr.msk.f32.gmra.mrb[46].mxu1 %vm3478_vm6, %v7623_v21 }
 0x5c8   :  { %5256 = vmatprep.mubr.msk.f32.mxu1 %vm3478_vm6, %v3746_v6  ;;  %v5272_v59 = vpop.f32.mrb[52].mxu0 }
 0x5c9   :  { %v3952_v61 = vpop.f32.mrb[53].mxu0 }
 0x5cb   :  { %5257 = vmatmul.mubr.msk.f32.vlgmr.msra.gmra.mrb[44].mxu1 %vm3478_vm6, %v5250_v51 }
 0x5cc   :  { %5259 = vmatprep.mubr.msk.f32.mxu1 %vm3478_vm6, %v3756_v57  ;;  %5277 = vmatpush3.msk.msra.mxu1 %vm3491_vm1, %v3388_v17  ;;  %v5275_v2 = vpop.f32.mrb[54].mxu0 }
 0x5cd   :  { %v3962_v4 = vpop.f32.mrb[55].mxu0  ;;  %5298 = vmatprep.subr.msk.mxu1 %vm3491_vm1, %v3392_v20 }
 0x5cf   :  { %5260 = vmatmul.mubr.msk.f32.gmra.mrb[46].mxu1 %vm3478_vm6, %v5253_v43 }
 0x5d0   :  { %5278 = vmatprep.mubr.msk.f32.mxu1 %vm3478_vm6, %v3952_v61  ;;  %v5294_v19 = vpop.f32.mrb[56].mxu0 }
 0x5d1   :  { %v4158_v11 = vpop.f32.mrb[57].mxu0 }
 0x5d3   :  { %5279 = vmatmul.mubr.msk.f32.vlgmr.msra.gmra.mrb[44].mxu1 %vm3478_vm6, %v5272_v59 }
 0x5d4   :  { %5281 = vmatprep.mubr.msk.f32.mxu1 %vm3478_vm6, %v3962_v4  ;;  %5299 = vmatpush3.msk.msra.mxu1 %vm3491_vm1, %v3392_v20  ;;  %v5297_v47 = vpop.f32.mrb[58].mxu0 }
 0x5d5   :  { %v4168_v3 = vpop.f32.mrb[59].mxu0 }
 0x5d7   :  { %5282 = vmatmul.mubr.msk.f32.gmra.mrb[46].mxu1 %vm3478_vm6, %v5275_v2 }
 0x5d8   :  { %5300 = vmatprep.mubr.msk.f32.mxu1 %vm3478_vm6, %v4158_v11 }
 0x5db   :  { %5301 = vmatmul.mubr.msk.f32.vlgmr.msra.gmra.mrb[44].mxu1 %vm3478_vm6, %v5294_v19 }
 0x5dc   :  { %5303 = vmatprep.mubr.msk.f32.mxu1 %vm3478_vm6, %v4168_v3 }
 0x5df   :  { %5304 = vmatmul.mubr.msk.f32.gmra.mrb[46].mxu1 %vm3478_vm6, %v5297_v47 }
 0x6ae   :  { %v5302_v15 = vpop.f32.mrb[44].mxu1 }
 0x6af   :  { %v4287_v29 = vmul.f32 %v5302_v15, %v4935_v39  ;;  %v4258_v54 = vpop.f32.mrb[45].mxu1 }
 0x6b0   :  { %v4286_v53 = vmul.f32 %v4935_v39, %v4258_v54 }
 0x6b1   :  { %v4296_v36 = vadd.f32 %v4936_v48, %v4287_v29 }
 0x6b2   :  { %v4295_v34 = vadd.f32 %v4936_v48, %v4286_v53  ;;  %v5305_v30 = vpop.f32.mrb[46].mxu1 }
 0x6b3   :  { %v4300_v35 = vmax.f32 %v4296_v36, 0.0  ;;  %v4289_v28 = vmul.f32 %v5305_v30, %v4935_v39  ;;  %v4268_v9 = vpop.f32.mrb[47].mxu1 }
 0x6b4   :  { %v4299_v0 = vmax.f32 %v4295_v34, 0.0  ;;  %v4288_v32 = vmul.f32 %v4935_v39, %v4268_v9 }
 0x6b5   :  { %v4305_v60 = vsel %vm4303_vm9, %v4300_v35, -inf  ;;  %v4298_v23 = vadd.f32 %v4936_v48, %v4289_v28 }
 0x6b6   :  { %v4304_v50 = vsel %vm4303_vm9, %v4299_v0, -inf  ;;  %v4297_v63 = vadd.f32 %v4936_v48, %v4288_v32 }
 0x6b7   :  { %v4306_v58 = vmax.f32 %v4304_v50, %v4305_v60  ;;  %v4302_v41 = vmax.f32 %v4298_v23, 0.0 }
 0x6b8   :  { %v4301_v49 = vmax.f32 %v4297_v63, 0.0 }
 0x6b9   :  { %v4307_v5 = vrot.slane %v4306_v58, 4  ;;  %v4314_v27 = vsel %vm4303_vm9, %v4302_v41, -inf }
 0x6ba   :  { %v4313_v18 = vsel %vm4303_vm9, %v4301_v49, -inf }
 0x6bb   :  { %v4308_v24 = vmax.f32 %v4306_v58, %v4307_v5  ;;  %v4315_v14 = vmax.f32 %v4313_v18, %v4314_v27 }
 0x6bd   :  { %v4309_v55 = vrot.slane %v4308_v24, 2  ;;  %v4316_v13 = vrot.slane %v4315_v14, 4 }
 0x6bf   :  { %v4310_v26 = vmax.f32 %v4308_v24, %v4309_v55  ;;  %v4317_v1 = vmax.f32 %v4315_v14, %v4316_v13 }
 0x6c1   :  { %v4318_v21 = vrot.slane %v4317_v1, 2  ;;  %v4311_v33 = vrot.slane %v4310_v26, 1 }
 0x6c3   :  { %v4319_v7 = vmax.f32 %v4317_v1, %v4318_v21  ;;  %v4312_v42 = vmax.f32 %v4310_v26, %v4311_v33 }
 0x6c5   :  { %v4320_v46 = vrot.slane %v4319_v7, 1 }
 0x6c7   :  { %v4321_v40 = vmax.f32 %v4319_v7, %v4320_v46 }
 0x6c9   :  { %v4330_v62 = vsel %vm4329_vm10, %v4321_v40, %v4312_v42 }
 0x6ca   :  { %5309 = vmatmul.mubr.msk.f32.vlgmr.msra.gmra.mrb[60].mxu0 %vm4303_vm9, %v4330_v62 }
 0x79d   :  { %v4403_v10 = vpop.f32.mrb[60].mxu0 }
 0x79e   :  { %v4404_v56 = vadd.f32 %v4403_v10, %v4326_v31  ;;  %v5310_v52 = vpop.f32.mrb[61].mxu0 }
 0x7a0   :  { %v4407_v22 = vmax.f32 %v4404_v56, 0.0 }
 0x7a2   :  { %4409 = vst.msk [vmem:[#allocation3] sm:$0x3] %vm4408_vm11, %v4407_v22 }
 0x7a3   :  { %5859 = shalt.err (!%p5856_p4)
}
 0x7a4   :  { %s5860_s30 = scalar_lea.hbm %s7753_s12, 32 }
 0x7a5   :  { %p5861_p5 = scmp.ne.s32.totalorder %s7753_s12, %s5860_s30  ;;  %p5864_p6 = scmp.lt.u32.totalorder %s5860_s30, %s7753_s12 }
 0x7a7   :  { %p5866_p7 = pnand %p5864_p6, %p5861_p5 }
 0x7a9   :  { %5869 = shalt.err (!%p5866_p7)
}
 0x7aa   :  { %4419 = dma.vmem_to_hbm [thread:$0]  %s4417_s10, 32, %s7753_s12, [#allocation4]  }
 0x7ab   :  { %5870 = dma.done.wait [#allocation4], 32  }
 0x7ac   :  { %5871 = vsyncadd [#allocation4], 4294967264 }
 0x7ad   :  { %4423 = vsyncpa [#allocation4], 1 }

// kernel: attn_vgg_forward.4
= control target key start
LH: loop header
LB: loop body
LE: loop exit
PB: predicated region body
PF: predicated region fallthrough
CT: control target
= control target key end

     0   :  { %s8305_s0 = inlined_call_operand.vmem [shape: f32[32,128], index: 0, kind: input, shape index: {}]   ;;  %s8306_s1 = inlined_call_operand.vmem [shape: f32[4,32,32], index: 1, kind: input, shape index: {}]   ;;  %s8307_s2 = inlined_call_operand.hbm [shape: bf16[3,3,128,512], index: 2, kind: input, shape index: {}]   ;;  %s8308_s3 = inlined_call_operand.hbm [shape: bf16[3,2,3,512,512], index: 3, kind: input, shape index: {}]   ;;  %s8309_s4 = inlined_call_operand.hbm [shape: f32[3,3,2,512], index: 4, kind: input, shape index: {}]   ;;  %s8310_s5 = inlined_call_operand.vmem [shape: f32[3,32,512], index: 5, kind: output, shape index: {}]  }
   0x1   :  { %8324 = sst [smem:[#allocation16_spill]] %s8305_s0 }
   0x2   :  { %8325 = sst [smem:[#allocation17_spill]] %s8306_s1 }
   0x3   :  { %8326 = sst [smem:[#allocation18_spill]] %s8308_s3 }
   0x4   :  { %8327 = sst [smem:[#allocation19_spill]] %s8310_s5 }
   0x5   :  { %10 = vsyncpa [#allocation3], 0 }
   0x6   :  { %12 = vsyncpa [#allocation3 + $0x1], 0 }
   0x7   :  { %13 = vsyncpa [#allocation5], 0 }
   0x8   :  { %15 = vsyncpa [#allocation5 + $0x1], 0  ;;  %s7128_s18 = smov 0   ;;  %s7130_s19 = smov 0  }
   0x9   :  { %s7132_s20 = smov 0   ;;  %s7134_s21 = smov 0  }
   0xa   :  { %s7136_s22 = smov 0   ;;  %s7138_s23 = smov 0  }
   0xb   :  { %s7140_s24 = smov 0   ;;  %s7142_s25 = smov 0  }
   0xc   :  { %s7144_s26 = smov 0   ;;  %s7146_s27 = smov 0  }
   0xd   :  { %s7148_s28 = smov 0   ;;  %s7150_s29 = smov 0  }
   0xe   :  { %s7152_s30 = smov 0   ;;  %s7154_s6 = smov 0  }
   0xf LB: > { %8328 = sst [smem:[#allocation10_spill]] %s7057_s23  ;;  %s8311_s7 = sadd.s32 4294967295, %s7089_s6   ;;  %s7089_s6 = sphi %s7154_s6, %s21_s6   ;;  %s7085_s30 = sphi %s7152_s30, %s8379_s30   ;;  %s7081_s29 = sphi %s7150_s29, %s8378_s29   ;;  %s7077_s28 = sphi %s7148_s28, %s8377_s28   ;;  %s7073_s27 = sphi %s7146_s27, %s8376_s27   ;;  %s7069_s26 = sphi %s7144_s26, %s8375_s26   ;;  %s7065_s25 = sphi %s7142_s25, %s8374_s25   ;;  %s7061_s24 = sphi %s7140_s24, %s8373_s24   ;;  %s7057_s23 = sphi %s7138_s23, %s8365_s23   ;;  %s7053_s22 = sphi %s7136_s22, %s8372_s22   ;;  %s7049_s21 = sphi %s7134_s21, %s8371_s21   ;;  %s7045_s20 = sphi %s7132_s20, %s8370_s20   ;;  %s7041_s19 = sphi %s7130_s19, %s8369_s19   ;;  %s7037_s18 = sphi %s7128_s18, %s8368_s18  }
  0x10   : > { %8329 = sst [smem:[#allocation11_spill]] %s7073_s27  ;;  %s30_s8 = sadd.s32 1, %s7081_s29 }
  0x11   : > { %8330 = sst [smem:[#allocation12_spill]] %s7077_s28  ;;  %p31_p0 = scmp.ge.s32.totalorder %s30_s8, 3 }
  0x12   : > { %s33_s9 = sadd.s32 1, %s7085_s30  ;;  %p8319_p1 = scmp.eq.s32.totalorder %s7089_s6, 0 }
  0x13   : > { %p7204_p2 = scmp.eq.s32.totalorder %s8311_s7, 0  ;;  %s8381_s8 = smov (%p31_p0, %s30_s8), 0 }
  0x14   : > { %s8383_s9 = smov (!%p31_p0, %s33_s9), %s7085_s30  ;;  %p105_p3 = scmp.eq.s32.totalorder %s7085_s30, 2 }
  0x15   : > { %s5046_s11 = sadd.s32 4294967295, %s7081_s29  ;;  %p35_p4 = scmp.ge.s32.totalorder %s8383_s9, 3 }
  0x16   : > { %p107_p5 = scmp.gt.s32.totalorder %s5046_s11, 0  ;;  %s5047_s12 = sadd.s32 4294967295, %s8381_s8 }
  0x17   : > { %s120_s13 = sadd.s32 1, %s7057_s23  ;;  %s8385_s9 = smov (%p35_p4, %s8383_s9), 0 }
  0x18   : > { %8332 = sst [smem:[#allocation13_spill]] %s8385_s9  ;;  %s8387_s11 = smov (!%p107_p5, %s5046_s11), 0 }
  0x19   : > { %s7219_s14 = ssub.s32 %s7085_s30, %s8385_s9  ;;  %p110_p6 = scmp.eq.s32.totalorder %s8385_s9, 2 }
  0x1a   : > { %p112_p8 = scmp.gt.s32.totalorder %s5047_s12, 0  ;;  %s8389_s11 = smov (%p105_p3, %s8387_s11), 0 }
  0x1b   : > { %p127_p9 = scmp.ne.s32.totalorder %s7057_s23, %s7053_s22  ;;  %p133_p10 = scmp.ne.s32.totalorder %s7053_s22, %s7049_s21 }
  0x1c   : > { %s8391_s12 = smov (!%p112_p8, %s5047_s12), 0  ;;  %p8318_p13 = scmp.lt.s32.totalorder %s7089_s6, 9 }
  0x1d   : > { %s8393_s12 = smov (%p110_p6, %s8391_s12), 0  ;;  %p129_p11 = por %p127_p9, %p8319_p1 }
  0x1e   : > { %p7231_p12 = por %p133_p10, %p7204_p2  ;;  %s116_s16 = ssub.s32 %s8389_s11, %s8393_s12 }
  0x1f   : > { %s117_s17 = sor.u32 %s116_s16, %s7219_s14  ;;  %s238_s7 = sand.u32 1, %s7089_s6  }
  0x20   : > { %s8333_s15 = scalar_select %p7231_p12, 1, 0 }
  0x21   : > { %p118_p0 = scmp.eq.s32.totalorder %s117_s17, 0  ;;  %s240_s0 = sand.u32 1, %s7057_s23  }
  0x22   : > { %s6018_s27 = smul.u32 3072, %s240_s0  ;;  %p7244_p3 = pnand %p8318_p13, %p129_p11 }
  0x23   : > { %s7239_s9 = scalar_select %p118_p0, %s7057_s23, %s120_s13  }
  0x24   : > { %s6019_s1 = smul.u32 768, %s8389_s11  ;;  %s242_s12 = scalar_lea.vmem [#allocation4], %s6018_s27 }
  0x25   : > { %8334 = sst [smem:[#allocation14_spill]] %s7239_s9  ;;  %s6020_s5 = smul.u32 1536, %s7085_s30 }
  0x26   : > { %s256_s16 = sshll.u32 %s242_s12, 4  ;;  %s8336_s3 = sld [smem:[#allocation18_spill]]  ;;  %s7250_s16 = int_to_ptr.vmem [resolvable:$true] %s256_s16 }
  0x27   : > { %s253_s28 = sadd.s32 %s6020_s5, %s6019_s1  ;;  %s7258_s23 = scalar_lea.sflag [#allocation5], %s238_s7 }
  0x28   : > { %s5052_s17 = sshll.u32 %s253_s28, 6  ;;  %p6879_p8 = pneg %p7244_p3 }
  0x2c   : > { %s7256_s0 = scalar_lea.hbm %s8336_s3, %s5052_s17  ;;  %s6882_s27 = scalar_lea.hbm %s8336_s3, 294912 }
  0x2d   : > { %s6877_s11 = scalar_lea.hbm %s7256_s0, 49152  ;;  %p6883_p11 = scmp.lt.u32.totalorder %s7256_s0, %s8336_s3 }
  0x2e   : > { %p6878_p6 = scmp.ne.s32.totalorder %s7256_s0, %s6877_s11  ;;  %p6884_p0 = scmp.lt.u32.totalorder %s6882_s27, %s6877_s11 }
  0x2f   : > { %p6886_p1 = scmp.lt.u32.totalorder %s6877_s11, %s7256_s0 }
  0x30   : > { %p6880_p9 = pnand %p6879_p8, %p6878_p6  ;;  %p6885_p13 = por %p6884_p0, %p6883_p11 }
  0x32   : > { %p6881_p10 = pneg %p6880_p9  ;;  %p6887_p7 = por %p6886_p1, %p6885_p13 }
  0x34   : > { %p6888_p4 = pnand %p6887_p7, %p6881_p10 }
  0x36   : > { %6891 = shalt.err (!%p6888_p4)
}
  0x37   : > { %s6892_s7 = scalar_lea.vmem %s7250_s16, 49152  ;;  %s7091_s12 = smov [#allocation4]  }
  0x38   : > { %p6893_p6 = scmp.ne.s32.totalorder %s7250_s16, %s6892_s7  ;;  %s6897_s17 = sshll.u32 %s7091_s12, 4  ;;  %s6898_s17 = int_to_ptr.vmem [resolvable:$false] %s6897_s17 }
  0x39   : > { %s6899_s13 = scalar_lea.vmem %s6898_s17, 98304  ;;  %p6900_p12 = scmp.lt.s32.totalorder %s7250_s16, %s6898_s17 }
  0x3a   : > { %p6895_p9 = pnand %p6893_p6, %p6879_p8  ;;  %p6901_p11 = scmp.lt.s32.totalorder %s6899_s13, %s6892_s7 }
  0x3c   : > { %p6896_p5 = pneg %p6895_p9  ;;  %p6902_p0 = por %p6901_p11, %p6900_p12 }
  0x3e   : > { %p6903_p1 = pnand %p6902_p0, %p6896_p5 }
  0x40   : > { %6906 = shalt.err (!%p6903_p1)
}
  0x41   : > { %s8321_s11 = smov 256   ;;  %s8322_s1 = smov 16  }
  0x42   : > { %6036 = dma.hbm_to_vmem [thread:$0]  (!%p7244_p3), %s7256_s0, 49152, %s7250_s16, %s7258_s23, %s8321_s11, %s8321_s11, %s8322_s1  }
  0x43   : > { %p8337_p7 = scmp.lt.s32.totalorder %s7089_s6, 10  ;;  %p8338_p12 = scmp.ge.s32.totalorder %s7089_s6, 1 }
  0x44   : > { %s82_s27 = sadd.s32 1, %s7069_s26  ;;  %p89_p4 = scmp.ne.s32.totalorder %s7069_s26, %s7065_s25 }
  0x45   : > { %p7293_p13 = pnand %p8338_p12, %p8337_p7  ;;  %p8340_p5 = scmp.eq.s32.totalorder %s7219_s14, 0 }
  0x46   : > { %p8342_p8 = scmp.eq.s32.totalorder %s7089_s6, 0  ;;  %p95_p6 = scmp.ne.s32.totalorder %s7065_s25, %s7061_s24 }
  0x47   : > { %s8339_s5 = scalar_select %p7293_p13, 1, 0 }
  0x48   : > { %s7303_s28 = scalar_select %p8340_p5, %s7069_s26, %s82_s27  }
  0x49   : > { %p91_p10 = por %p8342_p8, %p89_p4  ;;  %s217_s9 = sand.u32 1, %s7069_s26  }
  0x4a   : > { %8341 = sst [smem:[#allocation15_spill]] %s7303_s28  ;;  %s6017_s21 = smul.u32 12288, %s7085_s30 }
  0x4b   : > { %p7313_p9 = por %p7204_p2, %p95_p6  ;;  %s6016_s16 = smul.u32 768, %s217_s9 }
  0x4c   : > { %s7320_s17 = scalar_lea.hbm %s8307_s2, %s6017_s21  ;;  %p8344_p3 = scmp.lt.s32.totalorder %s7089_s6, 9 }
  0x4d   : > { %s8343_s7 = scalar_select %p7313_p9, 1, 0 }
  0x4e   : > { %p7324_p11 = pnand %p8344_p3, %p91_p10  ;;  %s221_s13 = scalar_lea.vmem [#allocation2], %s6016_s16 }
  0x4f   : > { %s228_s27 = sshll.u32 %s221_s13, 4  ;;  %s7330_s11 = scalar_lea.sflag [#allocation3], %s217_s9  ;;  %s7328_s27 = int_to_ptr.vmem [resolvable:$true] %s228_s27 }
  0x50   : > { %s6907_s0 = scalar_lea.hbm %s7320_s17, 12288  ;;  %p6909_p1 = pneg %p7324_p11 }
  0x51   : > { %p6908_p0 = scmp.ne.s32.totalorder %s7320_s17, %s6907_s0  ;;  %s6912_s1 = scalar_lea.hbm %s8307_s2, 36864 }
  0x52   : > { %p6913_p4 = scmp.lt.u32.totalorder %s7320_s17, %s8307_s2  ;;  %p6914_p5 = scmp.lt.u32.totalorder %s6912_s1, %s6907_s0 }
  0x53   : > { %p6910_p7 = pnand %p6909_p1, %p6908_p0  ;;  %p6916_p10 = scmp.lt.u32.totalorder %s6907_s0, %s7320_s17 }
  0x54   : > { %p6915_p8 = por %p6914_p5, %p6913_p4 }
  0x55   : > { %p6911_p12 = pneg %p6910_p7 }
  0x56   : > { %p6917_p6 = por %p6916_p10, %p6915_p8 }
  0x58   : > { %p6918_p3 = pnand %p6917_p6, %p6911_p12 }
  0x5a   : > { %6921 = shalt.err (!%p6918_p3)
}
  0x5b   : > { %s6922_s9 = scalar_lea.vmem %s7328_s27, 12288  ;;  %s7094_s16 = smov [#allocation2]  }
  0x5c   : > { %p6923_p0 = scmp.ne.s32.totalorder %s7328_s27, %s6922_s9  ;;  %s6927_s13 = sshll.u32 %s7094_s16, 4  ;;  %s6928_s13 = int_to_ptr.vmem [resolvable:$false] %s6927_s13 }
  0x5d   : > { %s6929_s3 = scalar_lea.vmem %s6928_s13, 24576  ;;  %p6930_p13 = scmp.lt.s32.totalorder %s7328_s27, %s6928_s13 }
  0x5e   : > { %p6925_p7 = pnand %p6923_p0, %p6909_p1  ;;  %p6931_p4 = scmp.lt.s32.totalorder %s6929_s3, %s6922_s9 }
  0x60   : > { %p6926_p9 = pneg %p6925_p7  ;;  %p6932_p5 = por %p6931_p4, %p6930_p13 }
  0x62   : > { %p6933_p8 = pnand %p6932_p5, %p6926_p9 }
  0x64   : > { %6936 = shalt.err (!%p6933_p8)
}
  0x65   : > { %s8346_s1 = smov 16   ;;  %s8347_s28 = smov 256  }
  0x66   : > { %6033 = dma.hbm_to_vmem [thread:$0]  (!%p7324_p11), %s7320_s17, 12288, %s7328_s27, %s7330_s11, %s8347_s28, %s8347_s28, %s8346_s1  }
  0x67   : > { %s144_s24 = ssub.s32 %s7081_s29, %s8381_s8  ;;  %s148_s21 = sadd.s32 1, %s7045_s20 }
  0x68   : > { %s145_s0 = sor.u32 %s144_s24, %s7219_s14  ;;  %p155_p9 = scmp.ne.s32.totalorder %s7045_s20, %s7041_s19 }
  0x69   : > { %p146_p13 = scmp.eq.s32.totalorder %s145_s0, 0  ;;  %p161_p1 = scmp.ne.s32.totalorder %s7041_s19, %s7037_s18 }
  0x6a   : > { %s268_s12 = sand.u32 1, %s7045_s20   ;;  %p8348_p12 = scmp.eq.s32.totalorder %s7089_s6, 0 }
  0x6b   : > { %s7371_s9 = scalar_select %p146_p13, %s7045_s20, %s148_s21  }
  0x6c   : > { %p157_p10 = por %p155_p9, %p8348_p12  ;;  %p7377_p6 = por %p161_p1, %p7204_p2 }
  0x6d   : > { %s5053_s13 = sshll.u32 %s268_s12, 3  ;;  %s5054_s3 = sshll.u32 %s7081_s29, 2 }
  0x6e   : > { %s6021_s11 = smul.u32 12, %s7085_s30  ;;  %s270_s17 = scalar_lea.vmem [#allocation6], %s5053_s13 }
  0x6f   : > { %s280_s27 = sshll.u32 %s270_s17, 4  ;;  %p8350_p11 = scmp.lt.s32.totalorder %s7089_s6, 9  ;;  %s7389_s27 = int_to_ptr.vmem [resolvable:$true] %s280_s27 }
  0x70   : > { %s276_s18 = sadd.s32 %s6021_s11, %s5054_s3  ;;  %s6942_s13 = scalar_lea.hbm %s8309_s4, 1152 }
  0x71   : > { %p7385_p3 = pnand %p8350_p11, %p157_p10  ;;  %s5055_s10 = sshll.u32 %s276_s18, 5 }
  0x72   : > { %s278_s24 = scalar_lea.hbm %s8309_s4, %s5055_s10 }
  0x73   : > { %s6937_s0 = scalar_lea.hbm %s278_s24, 128  ;;  %p6939_p0 = pneg %p7385_p3 }
  0x74   : > { %p6938_p2 = scmp.ne.s32.totalorder %s278_s24, %s6937_s0  ;;  %p6943_p5 = scmp.lt.u32.totalorder %s278_s24, %s8309_s4 }
  0x75   : > { %p6944_p8 = scmp.lt.u32.totalorder %s6942_s13, %s6937_s0  ;;  %p6946_p9 = scmp.lt.u32.totalorder %s6937_s0, %s278_s24 }
  0x76   : > { %p6940_p7 = pnand %p6939_p0, %p6938_p2 }
  0x77   : > { %p6945_p13 = por %p6944_p8, %p6943_p5 }
  0x78   : > { %p6941_p4 = pneg %p6940_p7 }
  0x79   : > { %p6947_p1 = por %p6946_p9, %p6945_p13 }
  0x7b   : > { %p6948_p12 = pnand %p6947_p1, %p6941_p4 }
  0x7d   : > { %6951 = shalt.err (!%p6948_p12)
}
  0x7e   : > { %s6952_s17 = scalar_lea.vmem %s7389_s27, 128  ;;  %s7095_s18 = smov [#allocation6]  }
  0x7f   : > { %p6953_p10 = scmp.ne.s32.totalorder %s7389_s27, %s6952_s17  ;;  %s6957_s10 = sshll.u32 %s7095_s18, 4  ;;  %s6958_s10 = int_to_ptr.vmem [resolvable:$false] %s6957_s10 }
  0x80   : > { %s6959_s1 = scalar_lea.vmem %s6958_s10, 256  ;;  %p6960_p7 = scmp.lt.s32.totalorder %s7389_s27, %s6958_s10 }
  0x81   : > { %p6955_p11 = pnand %p6953_p10, %p6939_p0  ;;  %p6961_p5 = scmp.lt.s32.totalorder %s6959_s1, %s6952_s17 }
  0x83   : > { %p6956_p2 = pneg %p6955_p11  ;;  %p6962_p8 = por %p6961_p5, %p6960_p7 }
  0x85   : > { %p6963_p13 = pnand %p6962_p8, %p6956_p2 }
  0x87   : > { %6966 = shalt.err (!%p6963_p13)
}
  0x88   : > { %6039 = dma.hbm_to_vmem [thread:$0]  (!%p7385_p3), %s278_s24, 128, %s7389_s27, %s7258_s23  }
  0x89   : > { %p8352_p4 = scmp.ne.s32.totalorder %s8339_s5, 0 }
  0x8a   : > { %s291_s28 = sand.u32 (!%p8352_p4), 1, %s7065_s25   ;;  %p8353_p0 = scmp.ne.s32.totalorder (!%p8352_p4), %s8343_s7, 0 }
  0x8b   : > { %289 = sbr.rel (%p8352_p4) target bundleno = 1326 (0x52e), region = 40  ;;  %s292_s21 = scalar_lea.sflag (!%p8352_p4), [#allocation3], %s291_s28 }
  0x8c   : > { %s6022_s0 = smul.u32 (!%p8352_p4), 768, %s291_s28 }
  0x8e   : > { %s7418_s12 = scalar_lea.vmem (!%p8352_p4), [#allocation2], %s6022_s0 }
  0x92   : > { %7024 = dma.done.wait (%p8353_p0), %s292_s21, 12288  }
  0x93   : > { %7026 = vsyncadd (%p8353_p0), %s292_s21, 4294955008  ;;  %s8354_s14 = sadd.s32 4294967295, %s7089_s6   ;;  %s302_s27 = sand.u32 1, %s7053_s22  }
  0x94   : > { %s300_s23 = sand.u32 1, %s8354_s14   ;;  %s6023_s5 = smul.u32 3072, %s302_s27 }
  0x95   : > { %s301_s24 = scalar_lea.sflag [#allocation5], %s300_s23  ;;  %p8355_p3 = scmp.ne.s32.totalorder %s8333_s15, 0 }
  0x96   : > { %s7427_s13 = scalar_lea.vmem [#allocation4], %s6023_s5 }
  0x97   : > { %7028 = dma.done.wait (%p8355_p3), %s301_s24, 49152  }
  0x98   : > { %7030 = vsyncadd (%p8355_p3), %s301_s24, 4294918144  ;;  %s311_s3 = sand.u32 1, %s7041_s19  }
  0x99   : > { %s5057_s7 = sshll.u32 %s311_s3, 3 }
  0x9a   : > { %s313_s11 = scalar_lea.vmem [#allocation6], %s5057_s7 }
  0x9b   : > { %7032 = dma.done.wait (%p7377_p6), %s301_s24, 128  }
  0x9c   : > { %7034 = vsyncadd (%p7377_p6), %s301_s24, 4294967168  ;;  %s8356_s17 = sld [smem:[#allocation12_spill]]  ;;  %s8357_s28 = sld [smem:[#allocation19_spill]]  ;;  %v7475_v11 = vld [vmem:[%s313_s11] sm:$0xff] }
  0x9d   : > { %s8358_s14 = sld [smem:[#allocation17_spill]]  ;;  %s8359_s23 = sld [smem:[#allocation11_spill]] }
  0xa2   : > { %p355_p9 = scmp.lt.s32.totalorder %s8356_s17, 2 }
  0xa3   : > { %v361_v0 = vld [vmem:[%s8358_s14] sm:$0xff]  ;;  %v362_v1 = vld [vmem:[%s8358_s14 + $0x8] sm:$0xff]  ;;  %v363_v2 = vld [vmem:[%s8358_s14 + $0x10] sm:$0xff]  ;;  %p5064_p6 = scmp.ne.s32.totalorder %s8359_s23, 0 }
  0xa4   : > { %s8395_s17 = smov (!%p355_p9, %s8356_s17), 2  ;;  %v364_v3 = vld [vmem:[%s8358_s14 + $0x18] sm:$0xff]  ;;  %v7457_v4 = vpack.c.bf16 %v362_v1, %v361_v0  ;;  %v5060_v5 = vld [vmem:[%s8358_s14 + $0x20] sm:$0xff]  ;;  %v5061_v6 = vld [vmem:[%s8358_s14 + $0x28] sm:$0xff]  ;;  %s8360_s5 = sld [smem:[#allocation16_spill]] (!%p5064_p6)  ;;  %vm385_vm0 = vcmask (!%p5064_p6), 261120  }
  0xa5   : > { %s5879_s18 = sshll.u32 %s8395_s17, 7  ;;  %v7465_v7 = vpack.c.bf16 %v364_v3, %v363_v2  ;;  %v5062_v8 = vld [vmem:[%s8358_s14 + $0x30] sm:$0xff]  ;;  %v5063_v9 = vld [vmem:[%s8358_s14 + $0x38] sm:$0xff]  ;;  %v7473_v10 = vpack.c.bf16 %v5061_v6, %v5060_v5  ;;  %378 = sbr.rel (%p5064_p6) target bundleno = 660 (0x294), region = 56  ;;  %v7096_v29 = vmov (!%p5064_p6), 0  }
  0xa6   : > { %s7443_s15 = scalar_lea.vmem %s8357_s28, %s5879_s18  ;;  %v7477_v12 = vpack.c.bf16 %v5063_v9, %v5062_v8  ;;  %5892 = vmatprep.mubr.msk.bf16.mxu0 (!%p5064_p6), %vm385_vm0, %v7457_v4  ;;  %v6159_v19 = vld [vmem:[%s7418_s12 + $0x104] ss:$16 sps:$4 sm:$0xff] (!%p5064_p6)   ;;  %v6162_v20 = vld [vmem:[%s7418_s12 + $0x10c] ss:$16 sps:$4 sm:$0xff] (!%p5064_p6)   ;;  %v6157_v21 = vld [vmem:[%s7418_s12 + $0x100] ss:$16 sps:$4 sm:$0xff] (!%p5064_p6)  }
  0xa7   : > { %5900 = vmatprep.mubr.msk.bf16.mxu1 (!%p5064_p6), %vm385_vm0, %v7473_v10  ;;  %v6160_v22 = vld [vmem:[%s7418_s12 + $0x108] ss:$16 sps:$4 sm:$0xff] (!%p5064_p6)   ;;  %v6165_v23 = vld [vmem:[%s7418_s12 + $0x124] ss:$16 sps:$4 sm:$0xff] (!%p5064_p6)   ;;  %v6168_v24 = vld [vmem:[%s7418_s12 + $0x12c] ss:$16 sps:$4 sm:$0xff] (!%p5064_p6)  }
  0xa8   : > { %v6163_v25 = vld [vmem:[%s7418_s12 + $0x120] ss:$16 sps:$4 sm:$0xff] (!%p5064_p6)   ;;  %v6166_v26 = vld [vmem:[%s7418_s12 + $0x128] ss:$16 sps:$4 sm:$0xff] (!%p5064_p6)   ;;  %v6171_v27 = vld [vmem:[%s7418_s12 + $0x144] ss:$16 sps:$4 sm:$0xff] (!%p5064_p6)  }
  0xa9   : > { %v6174_v28 = vld [vmem:[%s7418_s12 + $0x14c] ss:$16 sps:$4 sm:$0xff] (!%p5064_p6)   ;;  %v6169_v30 = vld [vmem:[%s7418_s12 + $0x140] ss:$16 sps:$4 sm:$0xff] (!%p5064_p6)   ;;  %v6172_v31 = vld [vmem:[%s7418_s12 + $0x148] ss:$16 sps:$4 sm:$0xff] (!%p5064_p6)  }
  0xaa   : > { %v379_v13 = vld [vmem:[%s8360_s5] sm:$0xff] (!%p5064_p6)  ;;  %v380_v14 = vld [vmem:[%s8360_s5 + $0x8] sm:$0xff] (!%p5064_p6)  ;;  %v381_v15 = vld [vmem:[%s8360_s5 + $0x10] sm:$0xff] (!%p5064_p6) }
  0xab   : > { %v7489_v16 = vpack.c.bf16 (!%p5064_p6), %v380_v14, %v379_v13  ;;  %v382_v17 = vld [vmem:[%s8360_s5 + $0x18] sm:$0xff] (!%p5064_p6)  ;;  %v6177_v32 = vld [vmem:[%s7418_s12 + $0x164] ss:$16 sps:$4 sm:$0xff] (!%p5064_p6)   ;;  %v6175_v34 = vld [vmem:[%s7418_s12 + $0x160] ss:$16 sps:$4 sm:$0xff] (!%p5064_p6)  }
  0xac   : > { %v7498_v18 = vpack.c.bf16 %v382_v17, %v381_v15  ;;  %v6180_v33 = vld [vmem:[%s7418_s12 + $0x16c] ss:$16 sps:$4 sm:$0xff]   ;;  %v6178_v35 = vld [vmem:[%s7418_s12 + $0x168] ss:$16 sps:$4 sm:$0xff]   ;;  %v6183_v36 = vld [vmem:[%s7418_s12 + $0x184] ss:$16 sps:$4 sm:$0xff]  }
  0xad   : > { %5888 = vmatprep.subr.bf16.mxu0 %v7489_v16  ;;  %5896 = vmatprep.subr.bf16.mxu1 %v7489_v16  ;;  %v6186_v37 = vld [vmem:[%s7418_s12 + $0x18c] ss:$16 sps:$4 sm:$0xff]   ;;  %v6181_v38 = vld [vmem:[%s7418_s12 + $0x180] ss:$16 sps:$4 sm:$0xff]   ;;  %v6184_v39 = vld [vmem:[%s7418_s12 + $0x188] ss:$16 sps:$4 sm:$0xff]  }
  0xae   : > { %5889 = vmatpush3.bf16.msra.mxu0 %v7489_v16  ;;  %5897 = vmatpush3.bf16.msra.mxu1 %v7489_v16  ;;  %v6189_v40 = vld [vmem:[%s7418_s12 + $0x1a4] ss:$16 sps:$4 sm:$0xff]   ;;  %v6192_v41 = vld [vmem:[%s7418_s12 + $0x1ac] ss:$16 sps:$4 sm:$0xff]   ;;  %v6187_v42 = vld [vmem:[%s7418_s12 + $0x1a0] ss:$16 sps:$4 sm:$0xff]  }
  0xaf   : > { %5890 = vmatprep.subr.bf16.mxu0 %v7498_v18  ;;  %5898 = vmatprep.subr.bf16.mxu1 %v7498_v18  ;;  %v6190_v43 = vld [vmem:[%s7418_s12 + $0x1a8] ss:$16 sps:$4 sm:$0xff]   ;;  %v6195_v44 = vld [vmem:[%s7418_s12 + $0x1c4] ss:$16 sps:$4 sm:$0xff]   ;;  %v6198_v45 = vld [vmem:[%s7418_s12 + $0x1cc] ss:$16 sps:$4 sm:$0xff]  }
  0xb0   : > { %v6193_v46 = vld [vmem:[%s7418_s12 + $0x1c0] ss:$16 sps:$4 sm:$0xff]   ;;  %v6196_v47 = vld [vmem:[%s7418_s12 + $0x1c8] ss:$16 sps:$4 sm:$0xff]   ;;  %v6201_v48 = vld [vmem:[%s7418_s12 + $0x1e4] ss:$16 sps:$4 sm:$0xff]  }
  0xb1   : > { %v6204_v49 = vld [vmem:[%s7418_s12 + $0x1ec] ss:$16 sps:$4 sm:$0xff]   ;;  %v6199_v50 = vld [vmem:[%s7418_s12 + $0x1e0] ss:$16 sps:$4 sm:$0xff]   ;;  %v6202_v51 = vld [vmem:[%s7418_s12 + $0x1e8] ss:$16 sps:$4 sm:$0xff]  }
  0xb2   : > { %5891 = vmatpush3.bf16.msra.mxu0 %v7498_v18  ;;  %5899 = vmatpush3.bf16.msra.mxu1 %v7498_v18  ;;  %v6207_v52 = vld [vmem:[%s7418_s12 + $0x4] ss:$16 sps:$4 sm:$0xff]   ;;  %v6210_v53 = vld [vmem:[%s7418_s12 + $0xc] ss:$16 sps:$4 sm:$0xff]   ;;  %v6205_v54 = vld [vmem:[%s7418_s12] ss:$16 sps:$4 sm:$0xff]  }
  0xb3   : > { %725 = vmatprep.subr.bf16.mxu0 %v6159_v19  ;;  %778 = vmatprep.subr.bf16.mxu1 %v6162_v20  ;;  %v6208_v55 = vld [vmem:[%s7418_s12 + $0x8] ss:$16 sps:$4 sm:$0xff]   ;;  %v6213_v56 = vld [vmem:[%s7418_s12 + $0x24] ss:$16 sps:$4 sm:$0xff]   ;;  %v6216_v57 = vld [vmem:[%s7418_s12 + $0x2c] ss:$16 sps:$4 sm:$0xff]  }
  0xb4   : > { %v6211_v58 = vld [vmem:[%s7418_s12 + $0x20] ss:$16 sps:$4 sm:$0xff]   ;;  %v6214_v59 = vld [vmem:[%s7418_s12 + $0x28] ss:$16 sps:$4 sm:$0xff]   ;;  %v6219_v60 = vld [vmem:[%s7418_s12 + $0x44] ss:$16 sps:$4 sm:$0xff]  }
  0xb5   : > { %5893 = vmatmul.mubr.msk.bf16.vlgmr.msra.gmra.mrb[0].mxu0 %vm385_vm0, %v7465_v7  ;;  %5901 = vmatmul.mubr.msk.bf16.vlgmr.msra.gmra.mrb[0].mxu1 %vm385_vm0, %v7477_v12  ;;  %v6222_v61 = vld [vmem:[%s7418_s12 + $0x4c] ss:$16 sps:$4 sm:$0xff]   ;;  %v6217_v62 = vld [vmem:[%s7418_s12 + $0x40] ss:$16 sps:$4 sm:$0xff]   ;;  %v6220_v63 = vld [vmem:[%s7418_s12 + $0x48] ss:$16 sps:$4 sm:$0xff]  }
  0xb6   : > { %726 = vmatpush1.bf16.msra.mxu0 %v6157_v21  ;;  %779 = vmatpush1.bf16.msra.mxu1 %v6160_v22  ;;  %v6225_v0 = vld [vmem:[%s7418_s12 + $0x64] ss:$16 sps:$4 sm:$0xff]   ;;  %v6228_v1 = vld [vmem:[%s7418_s12 + $0x6c] ss:$16 sps:$4 sm:$0xff]   ;;  %v6223_v2 = vld [vmem:[%s7418_s12 + $0x60] ss:$16 sps:$4 sm:$0xff]  }
  0xb7   : > { %727 = vmatprep.subr.bf16.mxu0 %v6165_v23  ;;  %780 = vmatprep.subr.bf16.mxu1 %v6168_v24  ;;  %v6226_v3 = vld [vmem:[%s7418_s12 + $0x68] ss:$16 sps:$4 sm:$0xff]   ;;  %v6231_v5 = vld [vmem:[%s7418_s12 + $0x84] ss:$16 sps:$4 sm:$0xff]   ;;  %v6234_v6 = vld [vmem:[%s7418_s12 + $0x8c] ss:$16 sps:$4 sm:$0xff]  }
  0xb8   : > { %757 = vmatprep.mubr.bf16.mxu0 %v7096_v29  ;;  %810 = vmatprep.mubr.bf16.mxu1 %v7096_v29  ;;  %v6229_v8 = vld [vmem:[%s7418_s12 + $0x80] ss:$16 sps:$4 sm:$0xff]   ;;  %v6232_v9 = vld [vmem:[%s7418_s12 + $0x88] ss:$16 sps:$4 sm:$0xff]   ;;  %v6237_v13 = vld [vmem:[%s7418_s12 + $0xa4] ss:$16 sps:$4 sm:$0xff]  }
  0xb9   : > { %v6240_v14 = vld [vmem:[%s7418_s12 + $0xac] ss:$16 sps:$4 sm:$0xff]   ;;  %v6235_v15 = vld [vmem:[%s7418_s12 + $0xa0] ss:$16 sps:$4 sm:$0xff]   ;;  %v6243_v17 = vld [vmem:[%s7418_s12 + $0xc4] ss:$16 sps:$4 sm:$0xff]  }
  0xba   : > { %728 = vmatpush1.bf16.msra.mxu0 %v6163_v25  ;;  %781 = vmatpush1.bf16.msra.mxu1 %v6166_v26  ;;  %v6241_v19 = vld [vmem:[%s7418_s12 + $0xc0] ss:$16 sps:$4 sm:$0xff]   ;;  %v6244_v20 = vld [vmem:[%s7418_s12 + $0xc8] ss:$16 sps:$4 sm:$0xff]   ;;  %v6249_v21 = vld [vmem:[%s7418_s12 + $0xe4] ss:$16 sps:$4 sm:$0xff]  }
  0xbb   : > { %729 = vmatprep.subr.bf16.mxu0 %v6171_v27  ;;  %782 = vmatprep.subr.bf16.mxu1 %v6174_v28  ;;  %v6252_v22 = vld [vmem:[%s7418_s12 + $0xec] ss:$16 sps:$4 sm:$0xff]   ;;  %v6247_v23 = vld [vmem:[%s7418_s12 + $0xe0] ss:$16 sps:$4 sm:$0xff]   ;;  %v6250_v24 = vld [vmem:[%s7418_s12 + $0xe8] ss:$16 sps:$4 sm:$0xff]  }
  0xbc   : > { %v6255_v25 = vld [vmem:[%s7418_s12 + $0x204] ss:$16 sps:$4 sm:$0xff]   ;;  %v6258_v26 = vld [vmem:[%s7418_s12 + $0x20c] ss:$16 sps:$4 sm:$0xff]  }
  0xbe   : > { %730 = vmatpush1.bf16.msra.mxu0 %v6169_v30  ;;  %783 = vmatpush1.bf16.msra.mxu1 %v6172_v31 }
  0xbf   : > { %731 = vmatprep.subr.bf16.mxu0 %v6177_v32  ;;  %784 = vmatprep.subr.bf16.mxu1 %v6180_v33 }
  0xc2   : > { %732 = vmatpush1.bf16.msra.mxu0 %v6175_v34  ;;  %785 = vmatpush1.bf16.msra.mxu1 %v6178_v35 }
  0xc3   : > { %733 = vmatprep.subr.bf16.mxu0 %v6183_v36  ;;  %786 = vmatprep.subr.bf16.mxu1 %v6186_v37  ;;  %v6253_v36 = vld [vmem:[%s7418_s12 + $0x200] ss:$16 sps:$4 sm:$0xff]   ;;  %v6256_v37 = vld [vmem:[%s7418_s12 + $0x208] ss:$16 sps:$4 sm:$0xff]  }
  0xc6   : > { %734 = vmatpush1.bf16.msra.mxu0 %v6181_v38  ;;  %787 = vmatpush1.bf16.msra.mxu1 %v6184_v39 }
  0xc7   : > { %735 = vmatprep.subr.bf16.mxu0 %v6189_v40  ;;  %788 = vmatprep.subr.bf16.mxu1 %v6192_v41  ;;  %v6261_v41 = vld [vmem:[%s7418_s12 + $0x224] ss:$16 sps:$4 sm:$0xff]  }
  0xca   : > { %736 = vmatpush1.bf16.msra.mxu0 %v6187_v42  ;;  %789 = vmatpush1.bf16.msra.mxu1 %v6190_v43  ;;  %v6264_v42 = vld [vmem:[%s7418_s12 + $0x22c] ss:$16 sps:$4 sm:$0xff]  }
  0xcb   : > { %737 = vmatprep.subr.bf16.mxu0 %v6195_v44  ;;  %790 = vmatprep.subr.bf16.mxu1 %v6198_v45  ;;  %v6259_v44 = vld [vmem:[%s7418_s12 + $0x220] ss:$16 sps:$4 sm:$0xff]   ;;  %v6262_v45 = vld [vmem:[%s7418_s12 + $0x228] ss:$16 sps:$4 sm:$0xff]  }
  0xce   : > { %738 = vmatpush1.bf16.msra.mxu0 %v6193_v46  ;;  %791 = vmatpush1.bf16.msra.mxu1 %v6196_v47  ;;  %v6267_v46 = vld [vmem:[%s7418_s12 + $0x244] ss:$16 sps:$4 sm:$0xff]   ;;  %v6270_v47 = vld [vmem:[%s7418_s12 + $0x24c] ss:$16 sps:$4 sm:$0xff]  }
  0xcf   : > { %739 = vmatprep.subr.bf16.mxu0 %v6201_v48  ;;  %792 = vmatprep.subr.bf16.mxu1 %v6204_v49  ;;  %v6265_v48 = vld [vmem:[%s7418_s12 + $0x240] ss:$16 sps:$4 sm:$0xff]   ;;  %v6268_v49 = vld [vmem:[%s7418_s12 + $0x248] ss:$16 sps:$4 sm:$0xff]  }
  0xd2   : > { %740 = vmatpush1.bf16.msra.mxu0 %v6199_v50  ;;  %793 = vmatpush1.bf16.msra.mxu1 %v6202_v51  ;;  %v6273_v50 = vld [vmem:[%s7418_s12 + $0x264] ss:$16 sps:$4 sm:$0xff]   ;;  %v6276_v51 = vld [vmem:[%s7418_s12 + $0x26c] ss:$16 sps:$4 sm:$0xff]  }
  0xd3   : > { %991 = vmatprep.subr.bf16.mxu0 %v6207_v52  ;;  %1044 = vmatprep.subr.bf16.mxu1 %v6210_v53  ;;  %v6271_v52 = vld [vmem:[%s7418_s12 + $0x260] ss:$16 sps:$4 sm:$0xff]   ;;  %v6274_v53 = vld [vmem:[%s7418_s12 + $0x268] ss:$16 sps:$4 sm:$0xff]  }
  0xd5   : > { %758 = vmatmul.mubr.bf16.vlgmr.msra.gmra.mrb[4].mxu0 %v7489_v16  ;;  %811 = vmatmul.mubr.bf16.vlgmr.msra.gmra.mrb[4].mxu1 %v7489_v16  ;;  %v6238_v16 = vld [vmem:[%s7418_s12 + $0xa8] ss:$16 sps:$4 sm:$0xff]  }
  0xd6   : > { %992 = vmatpush1.bf16.msra.mxu0 %v6205_v54  ;;  %1045 = vmatpush1.bf16.msra.mxu1 %v6208_v55  ;;  %v6279_v54 = vld [vmem:[%s7418_s12 + $0x284] ss:$16 sps:$4 sm:$0xff]   ;;  %v6282_v55 = vld [vmem:[%s7418_s12 + $0x28c] ss:$16 sps:$4 sm:$0xff]  }
  0xd7   : > { %993 = vmatprep.subr.bf16.mxu0 %v6213_v56  ;;  %1046 = vmatprep.subr.bf16.mxu1 %v6216_v57  ;;  %v6277_v56 = vld [vmem:[%s7418_s12 + $0x280] ss:$16 sps:$4 sm:$0xff]   ;;  %v6280_v57 = vld [vmem:[%s7418_s12 + $0x288] ss:$16 sps:$4 sm:$0xff]  }
  0xd8   : > { %767 = vmatprep.mubr.bf16.mxu0 %v7096_v29  ;;  %820 = vmatprep.mubr.bf16.mxu1 %v7096_v29 }
  0xda   : > { %994 = vmatpush1.bf16.msra.mxu0 %v6211_v58  ;;  %1047 = vmatpush1.bf16.msra.mxu1 %v6214_v59  ;;  %v6285_v58 = vld [vmem:[%s7418_s12 + $0x2a4] ss:$16 sps:$4 sm:$0xff]   ;;  %v6288_v59 = vld [vmem:[%s7418_s12 + $0x2ac] ss:$16 sps:$4 sm:$0xff]  }
  0xdb   : > { %995 = vmatprep.subr.bf16.mxu0 %v6219_v60  ;;  %1048 = vmatprep.subr.bf16.mxu1 %v6222_v61  ;;  %v6283_v60 = vld [vmem:[%s7418_s12 + $0x2a0] ss:$16 sps:$4 sm:$0xff]   ;;  %v6286_v61 = vld [vmem:[%s7418_s12 + $0x2a8] ss:$16 sps:$4 sm:$0xff]  }
  0xdd   : > { %768 = vmatmul.mubr.bf16.gmra.mrb[8].mxu0 %v7498_v18  ;;  %821 = vmatmul.mubr.bf16.gmra.mrb[8].mxu1 %v7498_v18  ;;  %v6246_v18 = vld [vmem:[%s7418_s12 + $0xcc] ss:$16 sps:$4 sm:$0xff]  }
  0xde   : > { %996 = vmatpush1.bf16.msra.mxu0 %v6217_v62  ;;  %1049 = vmatpush1.bf16.msra.mxu1 %v6220_v63  ;;  %v6291_v62 = vld [vmem:[%s7418_s12 + $0x2c4] ss:$16 sps:$4 sm:$0xff]   ;;  %v6294_v63 = vld [vmem:[%s7418_s12 + $0x2cc] ss:$16 sps:$4 sm:$0xff]  }
  0xdf   : > { %997 = vmatprep.subr.bf16.mxu0 %v6225_v0  ;;  %1050 = vmatprep.subr.bf16.mxu1 %v6228_v1  ;;  %v6289_v0 = vld [vmem:[%s7418_s12 + $0x2c0] ss:$16 sps:$4 sm:$0xff]   ;;  %v6292_v1 = vld [vmem:[%s7418_s12 + $0x2c8] ss:$16 sps:$4 sm:$0xff]  }
  0xe0   : > { %1023 = vmatprep.mubr.bf16.mxu0 %v7096_v29  ;;  %1076 = vmatprep.mubr.bf16.mxu1 %v7096_v29 }
  0xe2   : > { %998 = vmatpush1.bf16.msra.mxu0 %v6223_v2  ;;  %1051 = vmatpush1.bf16.msra.mxu1 %v6226_v3  ;;  %v6297_v2 = vld [vmem:[%s7418_s12 + $0x2e4] ss:$16 sps:$4 sm:$0xff]   ;;  %v6300_v3 = vld [vmem:[%s7418_s12 + $0x2ec] ss:$16 sps:$4 sm:$0xff]  }
  0xe3   : > { %999 = vmatprep.subr.bf16.mxu0 %v6231_v5  ;;  %1052 = vmatprep.subr.bf16.mxu1 %v6234_v6  ;;  %v6295_v5 = vld [vmem:[%s7418_s12 + $0x2e0] ss:$16 sps:$4 sm:$0xff]   ;;  %v6298_v6 = vld [vmem:[%s7418_s12 + $0x2e8] ss:$16 sps:$4 sm:$0xff]  }
  0xe6   : > { %1000 = vmatpush1.bf16.msra.mxu0 %v6229_v8  ;;  %1053 = vmatpush1.bf16.msra.mxu1 %v6232_v9  ;;  %v1413_v8 = vlaneseq }
  0xe7   : > { %1001 = vmatprep.subr.bf16.mxu0 %v6237_v13  ;;  %1054 = vmatprep.subr.bf16.mxu1 %v6240_v14 }
  0xe8   : > { %v1414_v9 = vshrl.u32 %v1413_v8, 7 }
  0xea   : > { %1002 = vmatpush1.bf16.msra.mxu0 %v6235_v15  ;;  %1055 = vmatpush1.bf16.msra.mxu1 %v6238_v16  ;;  %v1415_v13 = vsub.s32 0, %v1414_v9  ;;  %v1423_v14 = vsub.s32 4, %v1414_v9  ;;  %v1419_v15 = vsub.s32 2, %v1414_v9  ;;  %v1427_v16 = vsub.s32 6, %v1414_v9 }
  0xeb   : > { %1003 = vmatprep.subr.bf16.mxu0 %v6243_v17  ;;  %1056 = vmatprep.subr.bf16.mxu1 %v6246_v18  ;;  %v1467_v17 = vsub.s32 1, %v1414_v9  ;;  %v1475_v18 = vsub.s32 5, %v1414_v9 }
  0xee   : > { %1004 = vmatpush1.bf16.msra.mxu0 %v6241_v19  ;;  %1057 = vmatpush1.bf16.msra.mxu1 %v6244_v20  ;;  %v1471_v19 = vsub.s32 3, %v1414_v9  ;;  %v1479_v20 = vsub.s32 7, %v1414_v9 }
  0xef   : > { %1005 = vmatprep.subr.bf16.mxu0 %v6249_v21  ;;  %1058 = vmatprep.subr.bf16.mxu1 %v6252_v22  ;;  %v1416_v21 = vrot.slane %v7475_v11, %v1415_v13  ;;  %v1424_v22 = vrot.slane %v7475_v11, %v1423_v14 }
  0xf2   : > { %1006 = vmatpush1.bf16.msra.mxu0 %v6247_v23  ;;  %1059 = vmatpush1.bf16.msra.mxu1 %v6250_v24  ;;  %v1428_v23 = vrot.slane %v7475_v11, %v1427_v16  ;;  %v1468_v24 = vrot.slane %v7475_v11, %v1467_v17 }
  0xf3   : > { %1290 = vmatprep.subr.bf16.mxu0 %v6255_v25  ;;  %1343 = vmatprep.subr.bf16.mxu1 %v6258_v26  ;;  %v1476_v25 = vrot.slane %v7475_v11, %v1475_v18  ;;  %v1472_v26 = vrot.slane %v7475_v11, %v1471_v19 }
 0x188   : > { %v5894_v27 = vpop.f32.mrb[0].mxu0  ;;  %v5902_v28 = vpop.f32.mrb[0].mxu1 }
 0x189   : > { %v426_v30 = vpop.f32.mrb[1].mxu0  ;;  %v483_v31 = vpop.f32.mrb[1].mxu1 }
 0x18a   : > { %v5895_v32 = vpop.f32.mrb[2].mxu0  ;;  %v5903_v33 = vpop.f32.mrb[2].mxu1 }
 0x18b   : > { %v442_v34 = vpack.c.bf16 %v5895_v32, %v5894_v27  ;;  %v429_v35 = vpop.f32.mrb[3].mxu0  ;;  %v7590_v38 = vpack.c.bf16 %v5903_v33, %v5902_v28  ;;  %v486_v39 = vpop.f32.mrb[3].mxu1  ;;  %v1480_v27 = vrot.slane %v7475_v11, %v1479_v20  ;;  %v1436_v28 = vrot.slane %v1416_v21, %v1415_v13 }
 0x18c   : > { %v441_v40 = vpack.c.bf16 %v429_v35, %v426_v30  ;;  %v7594_v43 = vpack.c.bf16 %v486_v39, %v483_v31  ;;  %v1444_v30 = vrot.slane %v1424_v22, %v1415_v13  ;;  %v7642_v32 = vrot.slane %v1428_v23, %v1415_v13 }
 0x18d   : > { %v7644_v33 = vrot.slane %v1468_v24, %v1467_v17 }
 0x18e   : > { %1024 = vmatmul.mubr.bf16.vlgmr.msra.gmra.mrb[4].mxu0 %v441_v40  ;;  %1077 = vmatmul.mubr.bf16.vlgmr.msra.gmra.mrb[4].mxu1 %v441_v40 }
 0x18f   : > { %1291 = vmatpush1.bf16.msra.mxu0 %v6253_v36  ;;  %1344 = vmatpush1.bf16.msra.mxu1 %v6256_v37  ;;  %v7648_v37 = vrot.slane %v1472_v26, %v1467_v17 }
 0x190   : > { %1292 = vmatprep.subr.bf16.mxu0 %v6261_v41  ;;  %1345 = vmatprep.subr.bf16.mxu1 %v6264_v42 }
 0x191   : > { %1033 = vmatprep.mubr.bf16.mxu0 %v7096_v29  ;;  %1086 = vmatprep.mubr.bf16.mxu1 %v7096_v29 }
 0x193   : > { %1293 = vmatpush1.bf16.msra.mxu0 %v6259_v44  ;;  %1346 = vmatpush1.bf16.msra.mxu1 %v6262_v45 }
 0x194   : > { %1294 = vmatprep.subr.bf16.mxu0 %v6267_v46  ;;  %1347 = vmatprep.subr.bf16.mxu1 %v6270_v47 }
 0x196   : > { %1034 = vmatmul.mubr.bf16.gmra.mrb[8].mxu0 %v442_v34  ;;  %1087 = vmatmul.mubr.bf16.gmra.mrb[8].mxu1 %v442_v34  ;;  %v7646_v34 = vrot.slane %v1476_v25, %v1467_v17 }
 0x197   : > { %1295 = vmatpush1.bf16.msra.mxu0 %v6265_v48  ;;  %1348 = vmatpush1.bf16.msra.mxu1 %v6268_v49 }
 0x198   : > { %1296 = vmatprep.subr.bf16.mxu0 %v6273_v50  ;;  %1349 = vmatprep.subr.bf16.mxu1 %v6276_v51 }
 0x199   : > { %1322 = vmatprep.mubr.bf16.mxu0 %v7096_v29  ;;  %1375 = vmatprep.mubr.bf16.mxu1 %v7096_v29 }
 0x19b   : > { %1297 = vmatpush1.bf16.msra.mxu0 %v6271_v52  ;;  %1350 = vmatpush1.bf16.msra.mxu1 %v6274_v53 }
 0x19c   : > { %1298 = vmatprep.subr.bf16.mxu0 %v6279_v54  ;;  %1351 = vmatprep.subr.bf16.mxu1 %v6282_v55 }
 0x19f   : > { %1299 = vmatpush1.bf16.msra.mxu0 %v6277_v56  ;;  %1352 = vmatpush1.bf16.msra.mxu1 %v6280_v57 }
 0x1a0   : > { %1300 = vmatprep.subr.bf16.mxu0 %v6285_v58  ;;  %1353 = vmatprep.subr.bf16.mxu1 %v6288_v59 }
 0x1a3   : > { %1301 = vmatpush1.bf16.msra.mxu0 %v6283_v60  ;;  %1354 = vmatpush1.bf16.msra.mxu1 %v6286_v61 }
 0x1a4   : > { %1302 = vmatprep.subr.bf16.mxu0 %v6291_v62  ;;  %1355 = vmatprep.subr.bf16.mxu1 %v6294_v63 }
 0x1a7   : > { %1303 = vmatpush1.bf16.msra.mxu0 %v6289_v0  ;;  %1356 = vmatpush1.bf16.msra.mxu1 %v6292_v1 }
 0x1a8   : > { %1304 = vmatprep.subr.bf16.mxu0 %v6297_v2  ;;  %1357 = vmatprep.subr.bf16.mxu1 %v6300_v3 }
 0x1ab   : > { %1305 = vmatpush1.bf16.msra.mxu0 %v6295_v5  ;;  %1358 = vmatpush1.bf16.msra.mxu1 %v6298_v6 }
 0x1ae   : > { %1323 = vmatmul.mubr.bf16.vlgmr.msra.gmra.mrb[4].mxu0 %v7594_v43  ;;  %1376 = vmatmul.mubr.bf16.vlgmr.msra.gmra.mrb[4].mxu1 %v7594_v43 }
 0x1af   : > { %1332 = vmatprep.mubr.bf16.mxu0 %v7096_v29  ;;  %1385 = vmatprep.mubr.bf16.mxu1 %v7096_v29  ;;  %v1420_v29 = vrot.slane %v7475_v11, %v1419_v15 }
 0x1b1   : > { %v7640_v31 = vrot.slane %v1420_v29, %v1415_v13 }
 0x1b6   : > { %1333 = vmatmul.mubr.bf16.gmra.mrb[8].mxu0 %v7590_v38  ;;  %1386 = vmatmul.mubr.bf16.gmra.mrb[8].mxu1 %v7590_v38  ;;  %v7650_v38 = vrot.slane %v1480_v27, %v1467_v17 }
 0x281   : > { %v1324_v35 = vpop.f32.mrb[4].mxu0  ;;  %v1377_v36 = vpop.f32.mrb[4].mxu1 }
 0x282   : > { %v1449_v39 = vmul.f32 %v1436_v28, %v1324_v35  ;;  %v1451_v40 = vmul.f32 %v1444_v30, %v1377_v36  ;;  %v1326_v41 = vpop.f32.mrb[5].mxu0  ;;  %v1379_v42 = vpop.f32.mrb[5].mxu1 }
 0x283   : > { %v1450_v43 = vmul.f32 %v7640_v31, %v1326_v41  ;;  %v1452_v44 = vmul.f32 %v7642_v32, %v1379_v42  ;;  %v1328_v45 = vpop.f32.mrb[6].mxu0  ;;  %v1381_v46 = vpop.f32.mrb[6].mxu1 }
 0x284   : > { %v1501_v47 = vadd.f32 %v7644_v33, %v1449_v39  ;;  %v1503_v48 = vadd.f32 %v7646_v34, %v1451_v40  ;;  %v1453_v49 = vmul.f32 %v1436_v28, %v1328_v45  ;;  %v1455_v50 = vmul.f32 %v1444_v30, %v1381_v46  ;;  %v1330_v51 = vpop.f32.mrb[7].mxu0  ;;  %v1383_v52 = vpop.f32.mrb[7].mxu1 }
 0x285   : > { %v1502_v53 = vadd.f32 %v7648_v37, %v1450_v43  ;;  %v1504_v54 = vadd.f32 %v7650_v38, %v1452_v44  ;;  %v1454_v55 = vmul.f32 %v7640_v31, %v1330_v51  ;;  %v1456_v56 = vmul.f32 %v7642_v32, %v1383_v52 }
 0x286   : > { %v1517_v57 = vmax.f32 %v1501_v47, 0.0  ;;  %v1519_v58 = vmax.f32 %v1503_v48, 0.0  ;;  %v1505_v59 = vadd.f32 %v7644_v33, %v1453_v49  ;;  %v1507_v60 = vadd.f32 %v7646_v34, %v1455_v50 }
 0x287   : > { %v1518_v61 = vmax.f32 %v1502_v53, 0.0  ;;  %v1520_v62 = vmax.f32 %v1504_v54, 0.0  ;;  %v1506_v63 = vadd.f32 %v7648_v37, %v1454_v55  ;;  %v1508_v0 = vadd.f32 %v7650_v38, %v1456_v56 }
 0x288   : > { %1533 = vst [vmem:[%s7443_s15] sm:$0xff] %v1517_v57  ;;  %1535 = vst [vmem:[%s7443_s15 + $0x10] sm:$0xff] %v1519_v58  ;;  %v1521_v1 = vmax.f32 %v1505_v59, 0.0  ;;  %v1523_v2 = vmax.f32 %v1507_v60, 0.0 }
 0x289   : > { %1534 = vst [vmem:[%s7443_s15 + $0x8] sm:$0xff] %v1518_v61  ;;  %1536 = vst [vmem:[%s7443_s15 + $0x18] sm:$0xff] %v1520_v62  ;;  %v1522_v3 = vmax.f32 %v1506_v63, 0.0  ;;  %v1524_v5 = vmax.f32 %v1508_v0, 0.0  ;;  %v1334_v6 = vpop.f32.mrb[8].mxu0  ;;  %v1387_v8 = vpop.f32.mrb[8].mxu1 }
 0x28a   : > { %1537 = vst [vmem:[%s7443_s15 + $0x20] sm:$0xff] %v1521_v1  ;;  %1539 = vst [vmem:[%s7443_s15 + $0x30] sm:$0xff] %v1523_v2  ;;  %v1457_v9 = vmul.f32 %v1436_v28, %v1334_v6  ;;  %v1459_v13 = vmul.f32 %v1444_v30, %v1387_v8  ;;  %v1336_v14 = vpop.f32.mrb[9].mxu0  ;;  %v1389_v15 = vpop.f32.mrb[9].mxu1 }
 0x28b   : > { %1538 = vst [vmem:[%s7443_s15 + $0x28] sm:$0xff] %v1522_v3  ;;  %1540 = vst [vmem:[%s7443_s15 + $0x38] sm:$0xff] %v1524_v5  ;;  %v1458_v16 = vmul.f32 %v7640_v31, %v1336_v14  ;;  %v1460_v17 = vmul.f32 %v7642_v32, %v1389_v15  ;;  %v1338_v18 = vpop.f32.mrb[10].mxu0  ;;  %v1391_v19 = vpop.f32.mrb[10].mxu1 }
 0x28c   : > { %v1509_v20 = vadd.f32 %v7644_v33, %v1457_v9  ;;  %v1511_v21 = vadd.f32 %v7646_v34, %v1459_v13  ;;  %v1461_v22 = vmul.f32 %v1436_v28, %v1338_v18  ;;  %v1463_v29 = vmul.f32 %v1444_v30, %v1391_v19  ;;  %v1340_v23 = vpop.f32.mrb[11].mxu0  ;;  %v1393_v24 = vpop.f32.mrb[11].mxu1 }
 0x28d   : > { %v1510_v25 = vadd.f32 %v7648_v37, %v1458_v16  ;;  %v1512_v26 = vadd.f32 %v7650_v38, %v1460_v17  ;;  %v1462_v27 = vmul.f32 %v7640_v31, %v1340_v23  ;;  %v1464_v35 = vmul.f32 %v7642_v32, %v1393_v24 }
 0x28e   : > { %v1525_v36 = vmax.f32 %v1509_v20, 0.0  ;;  %v1527_v39 = vmax.f32 %v1511_v21, 0.0  ;;  %v1513_v28 = vadd.f32 %v7644_v33, %v1461_v22  ;;  %v1515_v30 = vadd.f32 %v7646_v34, %v1463_v29 }
 0x28f   : > { %v1526_v40 = vmax.f32 %v1510_v25, 0.0  ;;  %v1528_v41 = vmax.f32 %v1512_v26, 0.0  ;;  %v1514_v42 = vadd.f32 %v7648_v37, %v1462_v27  ;;  %v1516_v43 = vadd.f32 %v7650_v38, %v1464_v35 }
 0x290   : > { %1541 = vst [vmem:[%s7443_s15 + $0x40] sm:$0xff] %v1525_v36  ;;  %1543 = vst [vmem:[%s7443_s15 + $0x50] sm:$0xff] %v1527_v39  ;;  %v1529_v31 = vmax.f32 %v1513_v28, 0.0  ;;  %v1531_v32 = vmax.f32 %v1515_v30, 0.0 }
 0x291   : > { %1542 = vst [vmem:[%s7443_s15 + $0x48] sm:$0xff] %v1526_v40  ;;  %1544 = vst [vmem:[%s7443_s15 + $0x58] sm:$0xff] %v1528_v41  ;;  %v1530_v44 = vmax.f32 %v1514_v42, 0.0  ;;  %v1532_v45 = vmax.f32 %v1516_v43, 0.0 }
 0x292   : > { %1545 = vst [vmem:[%s7443_s15 + $0x60] sm:$0xff] %v1529_v31  ;;  %1547 = vst [vmem:[%s7443_s15 + $0x70] sm:$0xff] %v1531_v32 }
 0x293   : > { %1546 = vst [vmem:[%s7443_s15 + $0x68] sm:$0xff] %v1530_v44  ;;  %1548 = vst [vmem:[%s7443_s15 + $0x78] sm:$0xff] %v1532_v45 }
 0x294 PF: > { %s8361_s12 = sld [smem:[#allocation12_spill]]  ;;  %s8362_s10 = sld [smem:[#allocation11_spill]] }
 0x29a   : > { %p1550_p1 = scmp.ne.s32.totalorder %s8361_s12, 2  ;;  %p1549_p12 = scmp.gt.s32.totalorder %s8362_s10, 0 }
 0x29b   : > { %p1551_p10 = scmp.ne.s32.totalorder %s8362_s10, 2 }
 0x29d   : > { %p1552_p11 = por %p1551_p10, %p1550_p1 }
 0x29f   : > { %p1553_p2 = pnand %p1552_p11, %p1549_p12 }
 0x2a0   : > { %v1558_v33 = vld [vmem:[%s7443_s15 + $0x8] sm:$0xff] (!%p1553_p2)  ;;  %v1557_v37 = vld [vmem:[%s7443_s15] sm:$0xff] (!%p1553_p2)  ;;  %v7097_v49 = vmov (!%p1553_p2), 0   ;;  %v1560_v54 = vld [vmem:[%s7443_s15 + $0x18] sm:$0xff] (!%p1553_p2)  ;;  %vm1581_vm1 = vcmask (!%p1553_p2), 261120  }
 0x2a1   : > { %1556 = sbr.rel (%p1553_p2) target bundleno = 1326 (0x52e), region = 60  ;;  %v1562_v34 = vld [vmem:[%s7443_s15 + $0x28] sm:$0xff] (!%p1553_p2)  ;;  %v1561_v46 = vld [vmem:[%s7443_s15 + $0x20] sm:$0xff] (!%p1553_p2)  ;;  %1620 = vmatprep.mubr.bf16.mxu0 (!%p1553_p2), %v7097_v49  ;;  %1673 = vmatprep.mubr.bf16.mxu1 (!%p1553_p2), %v7097_v49  ;;  %v1564_v55 = vld [vmem:[%s7443_s15 + $0x38] sm:$0xff] (!%p1553_p2) }
 0x2a2   : > { %v7698_v38 = vpack.c.bf16 (!%p1553_p2), %v1562_v34, %v1558_v33  ;;  %v1566_v47 = vld [vmem:[%s7443_s15 + $0x48] sm:$0xff] (!%p1553_p2)  ;;  %v7703_v50 = vpack.c.bf16 (!%p1553_p2), %v1561_v46, %v1557_v37  ;;  %v1565_v52 = vld [vmem:[%s7443_s15 + $0x40] sm:$0xff] (!%p1553_p2)  ;;  %v1559_v56 = vld [vmem:[%s7443_s15 + $0x10] sm:$0xff] (!%p1553_p2)  ;;  %v7717_v59 = vpack.c.bf16 (!%p1553_p2), %v1564_v55, %v1560_v54 }
 0x2a3   : > { %v1570_v48 = vld [vmem:[%s7443_s15 + $0x68] sm:$0xff] (!%p1553_p2)  ;;  %v1569_v53 = vld [vmem:[%s7443_s15 + $0x60] sm:$0xff] (!%p1553_p2)  ;;  %v1563_v57 = vld [vmem:[%s7443_s15 + $0x30] sm:$0xff] (!%p1553_p2) }
 0x2a4   : > { %v7705_v51 = vpack.c.bf16 (!%p1553_p2), %v1570_v48, %v1566_v47  ;;  %1588 = vmatprep.subr.bf16.mxu0 (!%p1553_p2), %v7698_v38  ;;  %v7715_v58 = vpack.c.bf16 (!%p1553_p2), %v1569_v53, %v1565_v52  ;;  %v7719_v60 = vpack.c.bf16 (!%p1553_p2), %v1563_v57, %v1559_v56  ;;  %v1568_v61 = vld [vmem:[%s7443_s15 + $0x58] sm:$0xff] (!%p1553_p2)  ;;  %v1567_v63 = vld [vmem:[%s7443_s15 + $0x50] sm:$0xff] (!%p1553_p2)  ;;  %1641 = vmatprep.subr.bf16.mxu1 (!%p1553_p2), %v7717_v59 }
 0x2a5   : > { %1589 = vmatpush1.bf16.msra.mxu0 (!%p1553_p2), %v7703_v50  ;;  %v1572_v62 = vld [vmem:[%s7443_s15 + $0x78] sm:$0xff] (!%p1553_p2)  ;;  %v1571_v1 = vld [vmem:[%s7443_s15 + $0x70] sm:$0xff] (!%p1553_p2) }
 0x2a6   : > { %1590 = vmatprep.subr.bf16.mxu0 (!%p1553_p2), %v7705_v51  ;;  %v7725_v0 = vpack.c.bf16 (!%p1553_p2), %v1572_v62, %v1568_v61  ;;  %1642 = vmatpush1.bf16.msra.mxu1 (!%p1553_p2), %v7719_v60  ;;  %v7730_v2 = vpack.c.bf16 (!%p1553_p2), %v1571_v1, %v1567_v63  ;;  %v6303_v3 = vld [vmem:[%s7427_s13 + $0x404] ss:$16 sps:$4 sm:$0xff] (!%p1553_p2)   ;;  %v6306_v5 = vld [vmem:[%s7427_s13 + $0x40c] ss:$16 sps:$4 sm:$0xff] (!%p1553_p2)   ;;  %v6304_v8 = vld [vmem:[%s7427_s13 + $0x408] ss:$16 sps:$4 sm:$0xff] (!%p1553_p2)  }
 0x2a7   : > { %v6309_v6 = vld [vmem:[%s7427_s13 + $0x424] ss:$16 sps:$4 sm:$0xff] (!%p1553_p2)   ;;  %v6307_v9 = vld [vmem:[%s7427_s13 + $0x420] ss:$16 sps:$4 sm:$0xff] (!%p1553_p2)   ;;  %v6312_v13 = vld [vmem:[%s7427_s13 + $0x42c] ss:$16 sps:$4 sm:$0xff] (!%p1553_p2)  }
 0x2a8   : > { %1643 = vmatprep.subr.bf16.mxu1 %v7725_v0  ;;  %v6315_v14 = vld [vmem:[%s7427_s13 + $0x444] ss:$16 sps:$4 sm:$0xff]   ;;  %v6313_v15 = vld [vmem:[%s7427_s13 + $0x440] ss:$16 sps:$4 sm:$0xff]   ;;  %v6318_v16 = vld [vmem:[%s7427_s13 + $0x44c] ss:$16 sps:$4 sm:$0xff]  }
 0x2a9   : > { %1591 = vmatpush1.bf16.msra.mxu0 %v7715_v58  ;;  %v6321_v17 = vld [vmem:[%s7427_s13 + $0x464] ss:$16 sps:$4 sm:$0xff]   ;;  %v6316_v18 = vld [vmem:[%s7427_s13 + $0x448] ss:$16 sps:$4 sm:$0xff]   ;;  %v6319_v19 = vld [vmem:[%s7427_s13 + $0x460] ss:$16 sps:$4 sm:$0xff]  }
 0x2aa   : > { %1708 = vmatprep.subr.bf16.mxu0 %v7698_v38  ;;  %1644 = vmatpush1.bf16.msra.mxu1 %v7730_v2  ;;  %v6327_v20 = vld [vmem:[%s7427_s13 + $0x484] ss:$16 sps:$4 sm:$0xff]   ;;  %v6322_v21 = vld [vmem:[%s7427_s13 + $0x468] ss:$16 sps:$4 sm:$0xff]   ;;  %v6325_v22 = vld [vmem:[%s7427_s13 + $0x480] ss:$16 sps:$4 sm:$0xff]  }
 0x2ab   : > { %1761 = vmatprep.subr.bf16.mxu1 %v7717_v59  ;;  %v6330_v29 = vld [vmem:[%s7427_s13 + $0x48c] ss:$16 sps:$4 sm:$0xff]   ;;  %v6333_v23 = vld [vmem:[%s7427_s13 + $0x4a4] ss:$16 sps:$4 sm:$0xff]   ;;  %v6328_v24 = vld [vmem:[%s7427_s13 + $0x488] ss:$16 sps:$4 sm:$0xff]  }
 0x2ac   : > { %5229 = vmatmul.mubr.msk.bf16.vlgmr.msra.gmra.mrb[0].mxu0 %vm1581_vm1, %v7457_v4  ;;  %v6331_v25 = vld [vmem:[%s7427_s13 + $0x4a0] ss:$16 sps:$4 sm:$0xff]   ;;  %v6339_v26 = vld [vmem:[%s7427_s13 + $0x4c4] ss:$16 sps:$4 sm:$0xff]   ;;  %v6334_v27 = vld [vmem:[%s7427_s13 + $0x4a8] ss:$16 sps:$4 sm:$0xff]  }
 0x2ad   : > { %1630 = vmatprep.mubr.bf16.mxu0 %v7097_v49  ;;  %1709 = vmatpush1.bf16.msra.mxu0 %v7703_v50  ;;  %v6337_v35 = vld [vmem:[%s7427_s13 + $0x4c0] ss:$16 sps:$4 sm:$0xff]   ;;  %v6342_v36 = vld [vmem:[%s7427_s13 + $0x4cc] ss:$16 sps:$4 sm:$0xff]   ;;  %v6345_v39 = vld [vmem:[%s7427_s13 + $0x4e4] ss:$16 sps:$4 sm:$0xff]  }
 0x2ae   : > { %5231 = vmatmul.mubr.msk.bf16.vlgmr.msra.gmra.mrb[0].mxu1 %vm1581_vm1, %v7457_v4  ;;  %1710 = vmatprep.subr.bf16.mxu0 %v7705_v51  ;;  %v6301_v4 = vld [vmem:[%s7427_s13 + $0x400] ss:$16 sps:$4 sm:$0xff]   ;;  %v6340_v28 = vld [vmem:[%s7427_s13 + $0x4c8] ss:$16 sps:$4 sm:$0xff]   ;;  %v6348_v40 = vld [vmem:[%s7427_s13 + $0x4ec] ss:$16 sps:$4 sm:$0xff]  }
 0x2af   : > { %1762 = vmatpush1.bf16.msra.mxu1 %v7719_v60  ;;  %1683 = vmatprep.mubr.bf16.mxu1 %v7097_v49  ;;  %v6343_v30 = vld [vmem:[%s7427_s13 + $0x4e0] ss:$16 sps:$4 sm:$0xff]   ;;  %v6351_v41 = vld [vmem:[%s7427_s13 + $0x504] ss:$16 sps:$4 sm:$0xff]   ;;  %v6346_v42 = vld [vmem:[%s7427_s13 + $0x4e8] ss:$16 sps:$4 sm:$0xff]  }
 0x2b0   : > { %1763 = vmatprep.subr.bf16.mxu1 %v7725_v0  ;;  %v6349_v43 = vld [vmem:[%s7427_s13 + $0x500] ss:$16 sps:$4 sm:$0xff]   ;;  %v6354_v31 = vld [vmem:[%s7427_s13 + $0x50c] ss:$16 sps:$4 sm:$0xff]   ;;  %v6357_v32 = vld [vmem:[%s7427_s13 + $0x524] ss:$16 sps:$4 sm:$0xff]  }
 0x2b1   : > { %1711 = vmatpush1.bf16.msra.mxu0 %v7715_v58  ;;  %v6352_v44 = vld [vmem:[%s7427_s13 + $0x508] ss:$16 sps:$4 sm:$0xff]   ;;  %v6355_v45 = vld [vmem:[%s7427_s13 + $0x520] ss:$16 sps:$4 sm:$0xff]   ;;  %v6360_v33 = vld [vmem:[%s7427_s13 + $0x52c] ss:$16 sps:$4 sm:$0xff]  }
 0x2b2   : > { %2719 = vmatprep.subr.bf16.mxu0 %v6303_v3  ;;  %v6363_v34 = vld [vmem:[%s7427_s13 + $0x544] ss:$16 sps:$4 sm:$0xff]   ;;  %v6358_v37 = vld [vmem:[%s7427_s13 + $0x528] ss:$16 sps:$4 sm:$0xff]   ;;  %v6366_v46 = vld [vmem:[%s7427_s13 + $0x54c] ss:$16 sps:$4 sm:$0xff]  }
 0x2b3   : > { %1764 = vmatpush1.bf16.msra.mxu1 %v7730_v2  ;;  %v6369_v47 = vld [vmem:[%s7427_s13 + $0x564] ss:$16 sps:$4 sm:$0xff]   ;;  %v6364_v48 = vld [vmem:[%s7427_s13 + $0x548] ss:$16 sps:$4 sm:$0xff]   ;;  %v6372_v52 = vld [vmem:[%s7427_s13 + $0x56c] ss:$16 sps:$4 sm:$0xff]  }
 0x2b4   : > { %5230 = vmatmul.mubr.msk.bf16.gmra.mrb[4].mxu0 %vm1581_vm1, %v7465_v7  ;;  %2825 = vmatprep.subr.bf16.mxu1 %v6306_v5  ;;  %v6375_v53 = vld [vmem:[%s7427_s13 + $0x584] ss:$16 sps:$4 sm:$0xff]   ;;  %v6370_v54 = vld [vmem:[%s7427_s13 + $0x568] ss:$16 sps:$4 sm:$0xff]   ;;  %v6373_v55 = vld [vmem:[%s7427_s13 + $0x580] ss:$16 sps:$4 sm:$0xff]  }
 0x2b5   : > { %1740 = vmatprep.mubr.bf16.mxu0 %v7097_v49  ;;  %v6378_v56 = vld [vmem:[%s7427_s13 + $0x58c] ss:$16 sps:$4 sm:$0xff]   ;;  %v6381_v57 = vld [vmem:[%s7427_s13 + $0x5a4] ss:$16 sps:$4 sm:$0xff]   ;;  %v6376_v61 = vld [vmem:[%s7427_s13 + $0x588] ss:$16 sps:$4 sm:$0xff]  }
 0x2b6   : > { %5232 = vmatmul.mubr.msk.bf16.gmra.mrb[4].mxu1 %vm1581_vm1, %v7465_v7  ;;  %v6310_v7 = vld [vmem:[%s7427_s13 + $0x428] ss:$16 sps:$4 sm:$0xff]   ;;  %v6379_v62 = vld [vmem:[%s7427_s13 + $0x5a0] ss:$16 sps:$4 sm:$0xff]   ;;  %v6384_v63 = vld [vmem:[%s7427_s13 + $0x5ac] ss:$16 sps:$4 sm:$0xff]  }
 0x2b7   : > { %1793 = vmatprep.mubr.bf16.mxu1 %v7097_v49  ;;  %v6387_v1 = vld [vmem:[%s7427_s13 + $0x5c4] ss:$16 sps:$4 sm:$0xff]   ;;  %v6382_v3 = vld [vmem:[%s7427_s13 + $0x5a8] ss:$16 sps:$4 sm:$0xff]   ;;  %v6385_v5 = vld [vmem:[%s7427_s13 + $0x5c0] ss:$16 sps:$4 sm:$0xff]  }
 0x2bc   : > { %5233 = vmatmul.mubr.msk.bf16.vlgmr.msra.gmra.mrb[8].mxu0 %vm1581_vm1, %v7473_v10 }
 0x2bd   : > { %2720 = vmatpush1.bf16.msra.mxu0 %v6301_v4  ;;  %1750 = vmatprep.mubr.bf16.mxu0 %v7097_v49  ;;  %v6390_v4 = vld [vmem:[%s7427_s13 + $0x5cc] ss:$16 sps:$4 sm:$0xff]  }
 0x2be   : > { %2721 = vmatprep.subr.bf16.mxu0 %v6309_v6  ;;  %5235 = vmatmul.mubr.msk.bf16.vlgmr.msra.gmra.mrb[8].mxu1 %vm1581_vm1, %v7473_v10  ;;  %v6324_v10 = vld [vmem:[%s7427_s13 + $0x46c] ss:$16 sps:$4 sm:$0xff]   ;;  %v6393_v6 = vld [vmem:[%s7427_s13 + $0x5e4] ss:$16 sps:$4 sm:$0xff]  }
 0x2bf   : > { %2826 = vmatpush1.bf16.msra.mxu1 %v6304_v8  ;;  %1803 = vmatprep.mubr.bf16.mxu1 %v7097_v49  ;;  %v6367_v49 = vld [vmem:[%s7427_s13 + $0x560] ss:$16 sps:$4 sm:$0xff]   ;;  %v6388_v8 = vld [vmem:[%s7427_s13 + $0x5c8] ss:$16 sps:$4 sm:$0xff]  }
 0x2c0   : > { %2827 = vmatprep.subr.bf16.mxu1 %v6312_v13  ;;  %v6396_v13 = vld [vmem:[%s7427_s13 + $0x5ec] ss:$16 sps:$4 sm:$0xff]  }
 0x2c1   : > { %2722 = vmatpush1.bf16.msra.mxu0 %v6307_v9  ;;  %v6391_v9 = vld [vmem:[%s7427_s13 + $0x5e0] ss:$16 sps:$4 sm:$0xff]  }
 0x2c2   : > { %2723 = vmatprep.subr.bf16.mxu0 %v6315_v14  ;;  %v6399_v14 = vld [vmem:[%s7427_s13 + $0x604] ss:$16 sps:$4 sm:$0xff]  }
 0x2c3   : > { %2828 = vmatpush1.bf16.msra.mxu1 %v6310_v7  ;;  %v6394_v7 = vld [vmem:[%s7427_s13 + $0x5e8] ss:$16 sps:$4 sm:$0xff]  }
 0x2c4   : > { %5234 = vmatmul.mubr.msk.bf16.gmra.mrb[12].mxu0 %vm1581_vm1, %v7477_v12  ;;  %2829 = vmatprep.subr.bf16.mxu1 %v6318_v16  ;;  %v6402_v16 = vld [vmem:[%s7427_s13 + $0x60c] ss:$16 sps:$4 sm:$0xff]  }
 0x2c5   : > { %2724 = vmatpush1.bf16.msra.mxu0 %v6313_v15  ;;  %2751 = vmatprep.mubr.bf16.mxu0 %v7698_v38  ;;  %v6397_v15 = vld [vmem:[%s7427_s13 + $0x600] ss:$16 sps:$4 sm:$0xff]  }
 0x2c6   : > { %2725 = vmatprep.subr.bf16.mxu0 %v6321_v17  ;;  %5236 = vmatmul.mubr.msk.bf16.gmra.mrb[12].mxu1 %vm1581_vm1, %v7477_v12  ;;  %v6336_v12 = vld [vmem:[%s7427_s13 + $0x4ac] ss:$16 sps:$4 sm:$0xff]   ;;  %v6405_v17 = vld [vmem:[%s7427_s13 + $0x624] ss:$16 sps:$4 sm:$0xff]  }
 0x2c7   : > { %2830 = vmatpush1.bf16.msra.mxu1 %v6316_v18  ;;  %2857 = vmatprep.mubr.bf16.mxu1 %v7698_v38  ;;  %v6361_v38 = vld [vmem:[%s7427_s13 + $0x540] ss:$16 sps:$4 sm:$0xff]   ;;  %v6400_v18 = vld [vmem:[%s7427_s13 + $0x608] ss:$16 sps:$4 sm:$0xff]  }
 0x2c8   : > { %2831 = vmatprep.subr.bf16.mxu1 %v6324_v10  ;;  %v6408_v10 = vld [vmem:[%s7427_s13 + $0x62c] ss:$16 sps:$4 sm:$0xff]  }
 0x2c9   : > { %2726 = vmatpush1.bf16.msra.mxu0 %v6319_v19  ;;  %v6403_v19 = vld [vmem:[%s7427_s13 + $0x620] ss:$16 sps:$4 sm:$0xff]  }
 0x2ca   : > { %2727 = vmatprep.subr.bf16.mxu0 %v6327_v20  ;;  %v6411_v20 = vld [vmem:[%s7427_s13 + $0x644] ss:$16 sps:$4 sm:$0xff]  }
 0x2cb   : > { %2832 = vmatpush1.bf16.msra.mxu1 %v6322_v21  ;;  %v6406_v21 = vld [vmem:[%s7427_s13 + $0x628] ss:$16 sps:$4 sm:$0xff]  }
 0x2cc   : > { %2833 = vmatprep.subr.bf16.mxu1 %v6330_v29  ;;  %v6414_v29 = vld [vmem:[%s7427_s13 + $0x64c] ss:$16 sps:$4 sm:$0xff]  }
 0x2cd   : > { %2728 = vmatpush1.bf16.msra.mxu0 %v6325_v22  ;;  %v6409_v22 = vld [vmem:[%s7427_s13 + $0x640] ss:$16 sps:$4 sm:$0xff]  }
 0x2ce   : > { %2729 = vmatprep.subr.bf16.mxu0 %v6333_v23  ;;  %v6417_v23 = vld [vmem:[%s7427_s13 + $0x664] ss:$16 sps:$4 sm:$0xff]  }
 0x2cf   : > { %2834 = vmatpush1.bf16.msra.mxu1 %v6328_v24  ;;  %v6412_v24 = vld [vmem:[%s7427_s13 + $0x648] ss:$16 sps:$4 sm:$0xff]  }
 0x2d0   : > { %2835 = vmatprep.subr.bf16.mxu1 %v6336_v12  ;;  %v6418_v12 = vld [vmem:[%s7427_s13 + $0x668] ss:$16 sps:$4 sm:$0xff]  }
 0x2d1   : > { %2730 = vmatpush1.bf16.msra.mxu0 %v6331_v25  ;;  %v6415_v25 = vld [vmem:[%s7427_s13 + $0x660] ss:$16 sps:$4 sm:$0xff]  }
 0x2d2   : > { %2731 = vmatprep.subr.bf16.mxu0 %v6339_v26  ;;  %v6421_v26 = vld [vmem:[%s7427_s13 + $0x680] ss:$16 sps:$4 sm:$0xff]  }
 0x2d3   : > { %2836 = vmatpush1.bf16.msra.mxu1 %v6334_v27  ;;  %v6426_v27 = vld [vmem:[%s7427_s13 + $0x68c] ss:$16 sps:$4 sm:$0xff]  }
 0x2d4   : > { %2837 = vmatprep.subr.bf16.mxu1 %v6342_v36  ;;  %v6424_v36 = vld [vmem:[%s7427_s13 + $0x688] ss:$16 sps:$4 sm:$0xff]  }
 0x2d5   : > { %2732 = vmatpush1.bf16.msra.mxu0 %v6337_v35  ;;  %v6429_v35 = vld [vmem:[%s7427_s13 + $0x6a4] ss:$16 sps:$4 sm:$0xff]  }
 0x2d6   : > { %2733 = vmatprep.subr.bf16.mxu0 %v6345_v39  ;;  %v6427_v39 = vld [vmem:[%s7427_s13 + $0x6a0] ss:$16 sps:$4 sm:$0xff]  }
 0x2d7   : > { %2838 = vmatpush1.bf16.msra.mxu1 %v6340_v28  ;;  %v6435_v28 = vld [vmem:[%s7427_s13 + $0x6c4] ss:$16 sps:$4 sm:$0xff]  }
 0x2d8   : > { %2839 = vmatprep.subr.bf16.mxu1 %v6348_v40  ;;  %v6438_v40 = vld [vmem:[%s7427_s13 + $0x6cc] ss:$16 sps:$4 sm:$0xff]  }
 0x2d9   : > { %2734 = vmatpush1.bf16.msra.mxu0 %v6343_v30  ;;  %v6433_v30 = vld [vmem:[%s7427_s13 + $0x6c0] ss:$16 sps:$4 sm:$0xff]  }
 0x2da   : > { %2735 = vmatprep.subr.bf16.mxu0 %v6351_v41  ;;  %v6441_v41 = vld [vmem:[%s7427_s13 + $0x6e4] ss:$16 sps:$4 sm:$0xff]  }
 0x2db   : > { %2840 = vmatpush1.bf16.msra.mxu1 %v6346_v42  ;;  %v6436_v42 = vld [vmem:[%s7427_s13 + $0x6c8] ss:$16 sps:$4 sm:$0xff]  }
 0x2dc   : > { %2841 = vmatprep.subr.bf16.mxu1 %v6354_v31  ;;  %v6444_v31 = vld [vmem:[%s7427_s13 + $0x6ec] ss:$16 sps:$4 sm:$0xff]  }
 0x2dd   : > { %2736 = vmatpush1.bf16.msra.mxu0 %v6349_v43  ;;  %v6439_v43 = vld [vmem:[%s7427_s13 + $0x6e0] ss:$16 sps:$4 sm:$0xff]  }
 0x2de   : > { %2737 = vmatprep.subr.bf16.mxu0 %v6357_v32  ;;  %v6447_v32 = vld [vmem:[%s7427_s13 + $0x704] ss:$16 sps:$4 sm:$0xff]  }
 0x2df   : > { %2842 = vmatpush1.bf16.msra.mxu1 %v6352_v44  ;;  %v6442_v44 = vld [vmem:[%s7427_s13 + $0x6e8] ss:$16 sps:$4 sm:$0xff]  }
 0x2e0   : > { %2843 = vmatprep.subr.bf16.mxu1 %v6360_v33  ;;  %v6450_v33 = vld [vmem:[%s7427_s13 + $0x70c] ss:$16 sps:$4 sm:$0xff]  }
 0x2e1   : > { %2738 = vmatpush1.bf16.msra.mxu0 %v6355_v45  ;;  %v6445_v45 = vld [vmem:[%s7427_s13 + $0x700] ss:$16 sps:$4 sm:$0xff]  }
 0x2e2   : > { %2739 = vmatprep.subr.bf16.mxu0 %v6363_v34  ;;  %v6453_v34 = vld [vmem:[%s7427_s13 + $0x724] ss:$16 sps:$4 sm:$0xff]  }
 0x2e3   : > { %2844 = vmatpush1.bf16.msra.mxu1 %v6358_v37  ;;  %v6448_v37 = vld [vmem:[%s7427_s13 + $0x708] ss:$16 sps:$4 sm:$0xff]  }
 0x2e4   : > { %2845 = vmatprep.subr.bf16.mxu1 %v6366_v46  ;;  %v6456_v46 = vld [vmem:[%s7427_s13 + $0x72c] ss:$16 sps:$4 sm:$0xff]  }
 0x2e5   : > { %2740 = vmatpush1.bf16.msra.mxu0 %v6361_v38  ;;  %v6451_v38 = vld [vmem:[%s7427_s13 + $0x720] ss:$16 sps:$4 sm:$0xff]  }
 0x2e6   : > { %2741 = vmatprep.subr.bf16.mxu0 %v6369_v47  ;;  %v6459_v47 = vld [vmem:[%s7427_s13 + $0x744] ss:$16 sps:$4 sm:$0xff]  }
 0x2e7   : > { %2846 = vmatpush1.bf16.msra.mxu1 %v6364_v48  ;;  %v6454_v48 = vld [vmem:[%s7427_s13 + $0x728] ss:$16 sps:$4 sm:$0xff]  }
 0x2e8   : > { %2847 = vmatprep.subr.bf16.mxu1 %v6372_v52  ;;  %v6462_v52 = vld [vmem:[%s7427_s13 + $0x74c] ss:$16 sps:$4 sm:$0xff]  }
 0x2e9   : > { %2742 = vmatpush1.bf16.msra.mxu0 %v6367_v49  ;;  %v6457_v49 = vld [vmem:[%s7427_s13 + $0x740] ss:$16 sps:$4 sm:$0xff]  }
 0x2ea   : > { %2743 = vmatprep.subr.bf16.mxu0 %v6375_v53  ;;  %v6465_v53 = vld [vmem:[%s7427_s13 + $0x764] ss:$16 sps:$4 sm:$0xff]  }
 0x2eb   : > { %2848 = vmatpush1.bf16.msra.mxu1 %v6370_v54  ;;  %v6460_v54 = vld [vmem:[%s7427_s13 + $0x748] ss:$16 sps:$4 sm:$0xff]  }
 0x2ec   : > { %2849 = vmatprep.subr.bf16.mxu1 %v6378_v56  ;;  %v6468_v56 = vld [vmem:[%s7427_s13 + $0x76c] ss:$16 sps:$4 sm:$0xff]  }
 0x2ed   : > { %2744 = vmatpush1.bf16.msra.mxu0 %v6373_v55  ;;  %v6463_v55 = vld [vmem:[%s7427_s13 + $0x760] ss:$16 sps:$4 sm:$0xff]  }
 0x2ee   : > { %2745 = vmatprep.subr.bf16.mxu0 %v6381_v57  ;;  %v6471_v57 = vld [vmem:[%s7427_s13 + $0x784] ss:$16 sps:$4 sm:$0xff]  }
 0x2ef   : > { %2850 = vmatpush1.bf16.msra.mxu1 %v6376_v61  ;;  %v6466_v61 = vld [vmem:[%s7427_s13 + $0x768] ss:$16 sps:$4 sm:$0xff]  }
 0x2f0   : > { %2851 = vmatprep.subr.bf16.mxu1 %v6384_v63  ;;  %v6474_v63 = vld [vmem:[%s7427_s13 + $0x78c] ss:$16 sps:$4 sm:$0xff]  }
 0x2f1   : > { %2746 = vmatpush1.bf16.msra.mxu0 %v6379_v62  ;;  %v6469_v62 = vld [vmem:[%s7427_s13 + $0x780] ss:$16 sps:$4 sm:$0xff]  }
 0x2f2   : > { %2747 = vmatprep.subr.bf16.mxu0 %v6387_v1  ;;  %v6477_v1 = vld [vmem:[%s7427_s13 + $0x7a4] ss:$16 sps:$4 sm:$0xff]  }
 0x2f3   : > { %2852 = vmatpush1.bf16.msra.mxu1 %v6382_v3  ;;  %v6472_v3 = vld [vmem:[%s7427_s13 + $0x788] ss:$16 sps:$4 sm:$0xff]  }
 0x2f4   : > { %2853 = vmatprep.subr.bf16.mxu1 %v6390_v4  ;;  %v6480_v4 = vld [vmem:[%s7427_s13 + $0x7ac] ss:$16 sps:$4 sm:$0xff]  }
 0x2f5   : > { %2748 = vmatpush1.bf16.msra.mxu0 %v6385_v5  ;;  %v6475_v5 = vld [vmem:[%s7427_s13 + $0x7a0] ss:$16 sps:$4 sm:$0xff]  }
 0x2f6   : > { %2749 = vmatprep.subr.bf16.mxu0 %v6393_v6  ;;  %v6483_v6 = vld [vmem:[%s7427_s13 + $0x7c4] ss:$16 sps:$4 sm:$0xff]  }
 0x2f7   : > { %2854 = vmatpush1.bf16.msra.mxu1 %v6388_v8  ;;  %v6478_v8 = vld [vmem:[%s7427_s13 + $0x7a8] ss:$16 sps:$4 sm:$0xff]  }
 0x2f8   : > { %2855 = vmatprep.subr.bf16.mxu1 %v6396_v13  ;;  %v6486_v13 = vld [vmem:[%s7427_s13 + $0x7cc] ss:$16 sps:$4 sm:$0xff]  }
 0x2f9   : > { %2750 = vmatpush1.bf16.msra.mxu0 %v6391_v9  ;;  %v6481_v9 = vld [vmem:[%s7427_s13 + $0x7c0] ss:$16 sps:$4 sm:$0xff]  }
 0x2fa   : > { %2772 = vmatprep.subr.bf16.mxu0 %v6399_v14  ;;  %v6489_v14 = vld [vmem:[%s7427_s13 + $0x7e4] ss:$16 sps:$4 sm:$0xff]  }
 0x2fb   : > { %2856 = vmatpush1.bf16.msra.mxu1 %v6394_v7  ;;  %v6484_v7 = vld [vmem:[%s7427_s13 + $0x7c8] ss:$16 sps:$4 sm:$0xff]  }
 0x2fc   : > { %2752 = vmatmul.mubr.bf16.vlgmr.msra.gmra.mrb[16].mxu0 %v7703_v50  ;;  %2878 = vmatprep.subr.bf16.mxu1 %v6402_v16  ;;  %v6492_v16 = vld [vmem:[%s7427_s13 + $0x7ec] ss:$16 sps:$4 sm:$0xff]  }
 0x2fd   : > { %2773 = vmatpush1.bf16.msra.mxu0 %v6397_v15  ;;  %2761 = vmatprep.mubr.bf16.mxu0 %v7705_v51  ;;  %v6487_v15 = vld [vmem:[%s7427_s13 + $0x7e0] ss:$16 sps:$4 sm:$0xff]  }
 0x2fe   : > { %2774 = vmatprep.subr.bf16.mxu0 %v6405_v17  ;;  %2858 = vmatmul.mubr.bf16.vlgmr.msra.gmra.mrb[16].mxu1 %v7703_v50  ;;  %v6420_v50 = vld [vmem:[%s7427_s13 + $0x66c] ss:$16 sps:$4 sm:$0xff]   ;;  %v6495_v17 = vld [vmem:[%s7427_s13 + $0x4] ss:$16 sps:$4 sm:$0xff]  }
 0x2ff   : > { %2879 = vmatpush1.bf16.msra.mxu1 %v6400_v18  ;;  %2867 = vmatprep.mubr.bf16.mxu1 %v7705_v51  ;;  %v6423_v51 = vld [vmem:[%s7427_s13 + $0x684] ss:$16 sps:$4 sm:$0xff]   ;;  %v6490_v18 = vld [vmem:[%s7427_s13 + $0x7e8] ss:$16 sps:$4 sm:$0xff]  }
 0x300   : > { %2880 = vmatprep.subr.bf16.mxu1 %v6408_v10  ;;  %v6498_v10 = vld [vmem:[%s7427_s13 + $0xc] ss:$16 sps:$4 sm:$0xff]  }
 0x301   : > { %2775 = vmatpush1.bf16.msra.mxu0 %v6403_v19  ;;  %v6493_v19 = vld [vmem:[%s7427_s13] ss:$16 sps:$4 sm:$0xff]  }
 0x302   : > { %2776 = vmatprep.subr.bf16.mxu0 %v6411_v20  ;;  %v6501_v20 = vld [vmem:[%s7427_s13 + $0x24] ss:$16 sps:$4 sm:$0xff]  }
 0x303   : > { %2881 = vmatpush1.bf16.msra.mxu1 %v6406_v21  ;;  %v6496_v21 = vld [vmem:[%s7427_s13 + $0x8] ss:$16 sps:$4 sm:$0xff]  }
 0x304   : > { %2762 = vmatmul.mubr.bf16.gmra.mrb[20].mxu0 %v7715_v58  ;;  %2882 = vmatprep.subr.bf16.mxu1 %v6414_v29  ;;  %v6504_v29 = vld [vmem:[%s7427_s13 + $0x2c] ss:$16 sps:$4 sm:$0xff]  }
 0x305   : > { %2777 = vmatpush1.bf16.msra.mxu0 %v6409_v22  ;;  %2804 = vmatprep.mubr.bf16.mxu0 %v7717_v59  ;;  %v6499_v22 = vld [vmem:[%s7427_s13 + $0x20] ss:$16 sps:$4 sm:$0xff]  }
 0x306   : > { %2778 = vmatprep.subr.bf16.mxu0 %v6417_v23  ;;  %2868 = vmatmul.mubr.bf16.gmra.mrb[20].mxu1 %v7715_v58  ;;  %v6432_v58 = vld [vmem:[%s7427_s13 + $0x6ac] ss:$16 sps:$4 sm:$0xff]   ;;  %v6507_v23 = vld [vmem:[%s7427_s13 + $0x44] ss:$16 sps:$4 sm:$0xff]  }
 0x307   : > { %2883 = vmatpush1.bf16.msra.mxu1 %v6412_v24  ;;  %2910 = vmatprep.mubr.bf16.mxu1 %v7717_v59  ;;  %v6430_v59 = vld [vmem:[%s7427_s13 + $0x6a8] ss:$16 sps:$4 sm:$0xff]  }
 0x308   : > { %2884 = vmatprep.subr.bf16.mxu1 %v6420_v50  ;;  %v6502_v24 = vld [vmem:[%s7427_s13 + $0x28] ss:$16 sps:$4 sm:$0xff]   ;;  %v6510_v50 = vld [vmem:[%s7427_s13 + $0x4c] ss:$16 sps:$4 sm:$0xff]  }
 0x309   : > { %2779 = vmatpush1.bf16.msra.mxu0 %v6415_v25  ;;  %v6505_v25 = vld [vmem:[%s7427_s13 + $0x40] ss:$16 sps:$4 sm:$0xff]  }
 0x30a   : > { %2780 = vmatprep.subr.bf16.mxu0 %v6423_v51  ;;  %v6513_v51 = vld [vmem:[%s7427_s13 + $0x64] ss:$16 sps:$4 sm:$0xff]  }
 0x30b   : > { %2885 = vmatpush1.bf16.msra.mxu1 %v6418_v12  ;;  %v6508_v12 = vld [vmem:[%s7427_s13 + $0x48] ss:$16 sps:$4 sm:$0xff]  }
 0x30c   : > { %2886 = vmatprep.subr.bf16.mxu1 %v6426_v27  ;;  %v6514_v27 = vld [vmem:[%s7427_s13 + $0x68] ss:$16 sps:$4 sm:$0xff]  }
 0x30d   : > { %2781 = vmatpush1.bf16.msra.mxu0 %v6421_v26  ;;  %v6511_v26 = vld [vmem:[%s7427_s13 + $0x60] ss:$16 sps:$4 sm:$0xff]  }
 0x30e   : > { %2782 = vmatprep.subr.bf16.mxu0 %v6429_v35  ;;  %v6517_v35 = vld [vmem:[%s7427_s13 + $0x80] ss:$16 sps:$4 sm:$0xff]  }
 0x30f   : > { %2887 = vmatpush1.bf16.msra.mxu1 %v6424_v36  ;;  %v6522_v36 = vld [vmem:[%s7427_s13 + $0x8c] ss:$16 sps:$4 sm:$0xff]  }
 0x310   : > { %2888 = vmatprep.subr.bf16.mxu1 %v6432_v58  ;;  %v6520_v58 = vld [vmem:[%s7427_s13 + $0x88] ss:$16 sps:$4 sm:$0xff]  }
 0x311   : > { %2783 = vmatpush1.bf16.msra.mxu0 %v6427_v39  ;;  %v6525_v39 = vld [vmem:[%s7427_s13 + $0xa4] ss:$16 sps:$4 sm:$0xff]  }
 0x312   : > { %2784 = vmatprep.subr.bf16.mxu0 %v6435_v28  ;;  %v6523_v28 = vld [vmem:[%s7427_s13 + $0xa0] ss:$16 sps:$4 sm:$0xff]  }
 0x313   : > { %2889 = vmatpush1.bf16.msra.mxu1 %v6430_v59  ;;  %v6531_v59 = vld [vmem:[%s7427_s13 + $0xc4] ss:$16 sps:$4 sm:$0xff]  }
 0x314   : > { %2890 = vmatprep.subr.bf16.mxu1 %v6438_v40  ;;  %v6529_v40 = vld [vmem:[%s7427_s13 + $0xc0] ss:$16 sps:$4 sm:$0xff]  }
 0x315   : > { %2785 = vmatpush1.bf16.msra.mxu0 %v6433_v30  ;;  %v6526_v30 = vld [vmem:[%s7427_s13 + $0xa8] ss:$16 sps:$4 sm:$0xff]  }
 0x316   : > { %2786 = vmatprep.subr.bf16.mxu0 %v6441_v41  ;;  %v6534_v41 = vld [vmem:[%s7427_s13 + $0xcc] ss:$16 sps:$4 sm:$0xff]  }
 0x317   : > { %2891 = vmatpush1.bf16.msra.mxu1 %v6436_v42  ;;  %v6537_v42 = vld [vmem:[%s7427_s13 + $0xe4] ss:$16 sps:$4 sm:$0xff]  }
 0x318   : > { %2892 = vmatprep.subr.bf16.mxu1 %v6444_v31  ;;  %v6535_v31 = vld [vmem:[%s7427_s13 + $0xe0] ss:$16 sps:$4 sm:$0xff]  }
 0x319   : > { %2787 = vmatpush1.bf16.msra.mxu0 %v6439_v43  ;;  %v6532_v43 = vld [vmem:[%s7427_s13 + $0xc8] ss:$16 sps:$4 sm:$0xff]  }
 0x31a   : > { %2788 = vmatprep.subr.bf16.mxu0 %v6447_v32  ;;  %v6540_v32 = vld [vmem:[%s7427_s13 + $0xec] ss:$16 sps:$4 sm:$0xff]  }
 0x31b   : > { %2893 = vmatpush1.bf16.msra.mxu1 %v6442_v44  ;;  %v6543_v44 = vld [vmem:[%s7427_s13 + $0x104] ss:$16 sps:$4 sm:$0xff]  }
 0x31c   : > { %2894 = vmatprep.subr.bf16.mxu1 %v6450_v33  ;;  %v6541_v33 = vld [vmem:[%s7427_s13 + $0x100] ss:$16 sps:$4 sm:$0xff]  }
 0x31d   : > { %2789 = vmatpush1.bf16.msra.mxu0 %v6445_v45  ;;  %v6538_v45 = vld [vmem:[%s7427_s13 + $0xe8] ss:$16 sps:$4 sm:$0xff]  }
 0x31e   : > { %2790 = vmatprep.subr.bf16.mxu0 %v6453_v34  ;;  %v6546_v34 = vld [vmem:[%s7427_s13 + $0x10c] ss:$16 sps:$4 sm:$0xff]  }
 0x31f   : > { %2895 = vmatpush1.bf16.msra.mxu1 %v6448_v37  ;;  %v6549_v37 = vld [vmem:[%s7427_s13 + $0x124] ss:$16 sps:$4 sm:$0xff]  }
 0x320   : > { %2896 = vmatprep.subr.bf16.mxu1 %v6456_v46  ;;  %v6547_v46 = vld [vmem:[%s7427_s13 + $0x120] ss:$16 sps:$4 sm:$0xff]  }
 0x321   : > { %2791 = vmatpush1.bf16.msra.mxu0 %v6451_v38  ;;  %v6544_v38 = vld [vmem:[%s7427_s13 + $0x108] ss:$16 sps:$4 sm:$0xff]  }
 0x322   : > { %2792 = vmatprep.subr.bf16.mxu0 %v6459_v47  ;;  %v6552_v47 = vld [vmem:[%s7427_s13 + $0x12c] ss:$16 sps:$4 sm:$0xff]  }
 0x323   : > { %2897 = vmatpush1.bf16.msra.mxu1 %v6454_v48  ;;  %v6555_v48 = vld [vmem:[%s7427_s13 + $0x144] ss:$16 sps:$4 sm:$0xff]  }
 0x324   : > { %2898 = vmatprep.subr.bf16.mxu1 %v6462_v52  ;;  %v6553_v52 = vld [vmem:[%s7427_s13 + $0x140] ss:$16 sps:$4 sm:$0xff]  }
 0x325   : > { %2793 = vmatpush1.bf16.msra.mxu0 %v6457_v49  ;;  %v6550_v49 = vld [vmem:[%s7427_s13 + $0x128] ss:$16 sps:$4 sm:$0xff]  }
 0x326   : > { %2794 = vmatprep.subr.bf16.mxu0 %v6465_v53  ;;  %v6558_v53 = vld [vmem:[%s7427_s13 + $0x14c] ss:$16 sps:$4 sm:$0xff]  }
 0x327   : > { %2899 = vmatpush1.bf16.msra.mxu1 %v6460_v54  ;;  %v6561_v54 = vld [vmem:[%s7427_s13 + $0x164] ss:$16 sps:$4 sm:$0xff]  }
 0x328   : > { %2900 = vmatprep.subr.bf16.mxu1 %v6468_v56  ;;  %v6559_v56 = vld [vmem:[%s7427_s13 + $0x160] ss:$16 sps:$4 sm:$0xff]  }
 0x329   : > { %2795 = vmatpush1.bf16.msra.mxu0 %v6463_v55  ;;  %v6556_v55 = vld [vmem:[%s7427_s13 + $0x148] ss:$16 sps:$4 sm:$0xff]  }
 0x32a   : > { %2796 = vmatprep.subr.bf16.mxu0 %v6471_v57  ;;  %v6564_v57 = vld [vmem:[%s7427_s13 + $0x16c] ss:$16 sps:$4 sm:$0xff]  }
 0x32b   : > { %2901 = vmatpush1.bf16.msra.mxu1 %v6466_v61  ;;  %v6567_v61 = vld [vmem:[%s7427_s13 + $0x184] ss:$16 sps:$4 sm:$0xff]  }
 0x32c   : > { %2902 = vmatprep.subr.bf16.mxu1 %v6474_v63  ;;  %v6565_v63 = vld [vmem:[%s7427_s13 + $0x180] ss:$16 sps:$4 sm:$0xff]  }
 0x32d   : > { %2797 = vmatpush1.bf16.msra.mxu0 %v6469_v62  ;;  %v6562_v62 = vld [vmem:[%s7427_s13 + $0x168] ss:$16 sps:$4 sm:$0xff]  }
 0x32e   : > { %2798 = vmatprep.subr.bf16.mxu0 %v6477_v1  ;;  %v6570_v1 = vld [vmem:[%s7427_s13 + $0x18c] ss:$16 sps:$4 sm:$0xff]  }
 0x32f   : > { %2903 = vmatpush1.bf16.msra.mxu1 %v6472_v3  ;;  %v6573_v3 = vld [vmem:[%s7427_s13 + $0x1a4] ss:$16 sps:$4 sm:$0xff]  }
 0x330   : > { %2904 = vmatprep.subr.bf16.mxu1 %v6480_v4  ;;  %v6571_v4 = vld [vmem:[%s7427_s13 + $0x1a0] ss:$16 sps:$4 sm:$0xff]  }
 0x331   : > { %2799 = vmatpush1.bf16.msra.mxu0 %v6475_v5  ;;  %v6568_v5 = vld [vmem:[%s7427_s13 + $0x188] ss:$16 sps:$4 sm:$0xff]  }
 0x332   : > { %2800 = vmatprep.subr.bf16.mxu0 %v6483_v6  ;;  %v6576_v6 = vld [vmem:[%s7427_s13 + $0x1ac] ss:$16 sps:$4 sm:$0xff]  }
 0x333   : > { %2905 = vmatpush1.bf16.msra.mxu1 %v6478_v8  ;;  %v6579_v8 = vld [vmem:[%s7427_s13 + $0x1c4] ss:$16 sps:$4 sm:$0xff]  }
 0x334   : > { %2906 = vmatprep.subr.bf16.mxu1 %v6486_v13  ;;  %v6577_v13 = vld [vmem:[%s7427_s13 + $0x1c0] ss:$16 sps:$4 sm:$0xff]  }
 0x335   : > { %2801 = vmatpush1.bf16.msra.mxu0 %v6481_v9  ;;  %v6574_v9 = vld [vmem:[%s7427_s13 + $0x1a8] ss:$16 sps:$4 sm:$0xff]  }
 0x336   : > { %2802 = vmatprep.subr.bf16.mxu0 %v6489_v14  ;;  %v6582_v14 = vld [vmem:[%s7427_s13 + $0x1cc] ss:$16 sps:$4 sm:$0xff]  }
 0x337   : > { %2907 = vmatpush1.bf16.msra.mxu1 %v6484_v7  ;;  %v6585_v7 = vld [vmem:[%s7427_s13 + $0x1e4] ss:$16 sps:$4 sm:$0xff]  }
 0x338   : > { %2908 = vmatprep.subr.bf16.mxu1 %v6492_v16  ;;  %v6583_v16 = vld [vmem:[%s7427_s13 + $0x1e0] ss:$16 sps:$4 sm:$0xff]  }
 0x339   : > { %2803 = vmatpush1.bf16.msra.mxu0 %v6487_v15  ;;  %v6580_v15 = vld [vmem:[%s7427_s13 + $0x1c8] ss:$16 sps:$4 sm:$0xff]  }
 0x33a   : > { %3571 = vmatprep.subr.bf16.mxu0 %v6495_v17  ;;  %v6588_v17 = vld [vmem:[%s7427_s13 + $0x1ec] ss:$16 sps:$4 sm:$0xff]  }
 0x33b   : > { %2909 = vmatpush1.bf16.msra.mxu1 %v6490_v18  ;;  %v6591_v18 = vld [vmem:[%s7427_s13 + $0x204] ss:$16 sps:$4 sm:$0xff]  }
 0x33c   : > { %2805 = vmatmul.mubr.bf16.vlgmr.msra.gmra.mrb[16].mxu0 %v7719_v60  ;;  %3677 = vmatprep.subr.bf16.mxu1 %v6498_v10  ;;  %v6594_v10 = vld [vmem:[%s7427_s13 + $0x20c] ss:$16 sps:$4 sm:$0xff]  }
 0x33d   : > { %3572 = vmatpush1.bf16.msra.mxu0 %v6493_v19  ;;  %2814 = vmatprep.mubr.bf16.mxu0 %v7725_v0  ;;  %v6586_v19 = vld [vmem:[%s7427_s13 + $0x1e8] ss:$16 sps:$4 sm:$0xff]  }
 0x33e   : > { %3573 = vmatprep.subr.bf16.mxu0 %v6501_v20  ;;  %2911 = vmatmul.mubr.bf16.vlgmr.msra.gmra.mrb[16].mxu1 %v7719_v60  ;;  %v6516_v60 = vld [vmem:[%s7427_s13 + $0x6c] ss:$16 sps:$4 sm:$0xff]  }
 0x33f   : > { %3678 = vmatpush1.bf16.msra.mxu1 %v6496_v21  ;;  %2920 = vmatprep.mubr.bf16.mxu1 %v7725_v0  ;;  %v6519_v0 = vld [vmem:[%s7427_s13 + $0x84] ss:$16 sps:$4 sm:$0xff]  }
 0x340   : > { %3679 = vmatprep.subr.bf16.mxu1 %v6504_v29  ;;  %v6589_v29 = vld [vmem:[%s7427_s13 + $0x200] ss:$16 sps:$4 sm:$0xff]  }
 0x341   : > { %3574 = vmatpush1.bf16.msra.mxu0 %v6499_v22 }
 0x342   : > { %3575 = vmatprep.subr.bf16.mxu0 %v6507_v23  ;;  %v6592_v23 = vld [vmem:[%s7427_s13 + $0x208] ss:$16 sps:$4 sm:$0xff]  }
 0x343   : > { %3680 = vmatpush1.bf16.msra.mxu1 %v6502_v24 }
 0x344   : > { %2815 = vmatmul.mubr.bf16.gmra.mrb[20].mxu0 %v7730_v2  ;;  %3681 = vmatprep.subr.bf16.mxu1 %v6510_v50 }
 0x345   : > { %3576 = vmatpush1.bf16.msra.mxu0 %v6505_v25 }
 0x346   : > { %3577 = vmatprep.subr.bf16.mxu0 %v6513_v51  ;;  %2921 = vmatmul.mubr.bf16.gmra.mrb[20].mxu1 %v7730_v2  ;;  %v6528_v2 = vld [vmem:[%s7427_s13 + $0xac] ss:$16 sps:$4 sm:$0xff]   ;;  %v6597_v51 = vld [vmem:[%s7427_s13 + $0x224] ss:$16 sps:$4 sm:$0xff]  }
 0x347   : > { %3682 = vmatpush1.bf16.msra.mxu1 %v6508_v12  ;;  %v6600_v12 = vld [vmem:[%s7427_s13 + $0x22c] ss:$16 sps:$4 sm:$0xff]  }
 0x348   : > { %3683 = vmatprep.subr.bf16.mxu1 %v6516_v60 }
 0x349   : > { %3578 = vmatpush1.bf16.msra.mxu0 %v6511_v26 }
 0x34a   : > { %3579 = vmatprep.subr.bf16.mxu0 %v6519_v0 }
 0x34b   : > { %3684 = vmatpush1.bf16.msra.mxu1 %v6514_v27 }
 0x34c   : > { %3685 = vmatprep.subr.bf16.mxu1 %v6522_v36  ;;  %v6595_v36 = vld [vmem:[%s7427_s13 + $0x220] ss:$16 sps:$4 sm:$0xff]  }
 0x34d   : > { %3580 = vmatpush1.bf16.msra.mxu0 %v6517_v35 }
 0x34e   : > { %3581 = vmatprep.subr.bf16.mxu0 %v6525_v39  ;;  %v6598_v39 = vld [vmem:[%s7427_s13 + $0x228] ss:$16 sps:$4 sm:$0xff]  }
 0x34f   : > { %3686 = vmatpush1.bf16.msra.mxu1 %v6520_v58 }
 0x350   : > { %3687 = vmatprep.subr.bf16.mxu1 %v6528_v2  ;;  %v6606_v2 = vld [vmem:[%s7427_s13 + $0x24c] ss:$16 sps:$4 sm:$0xff]  }
 0x351   : > { %3582 = vmatpush1.bf16.msra.mxu0 %v6523_v28  ;;  %v6603_v28 = vld [vmem:[%s7427_s13 + $0x244] ss:$16 sps:$4 sm:$0xff]  }
 0x352   : > { %3583 = vmatprep.subr.bf16.mxu0 %v6531_v59 }
 0x353   : > { %3688 = vmatpush1.bf16.msra.mxu1 %v6526_v30 }
 0x354   : > { %3689 = vmatprep.subr.bf16.mxu1 %v6534_v41 }
 0x355   : > { %3584 = vmatpush1.bf16.msra.mxu0 %v6529_v40 }
 0x356   : > { %3585 = vmatprep.subr.bf16.mxu0 %v6537_v42 }
 0x357   : > { %3690 = vmatpush1.bf16.msra.mxu1 %v6532_v43  ;;  %v6601_v43 = vld [vmem:[%s7427_s13 + $0x240] ss:$16 sps:$4 sm:$0xff]  }
 0x358   : > { %3691 = vmatprep.subr.bf16.mxu1 %v6540_v32 }
 0x359   : > { %3586 = vmatpush1.bf16.msra.mxu0 %v6535_v31  ;;  %v6604_v31 = vld [vmem:[%s7427_s13 + $0x248] ss:$16 sps:$4 sm:$0xff]  }
 0x35a   : > { %3587 = vmatprep.subr.bf16.mxu0 %v6543_v44 }
 0x35b   : > { %3692 = vmatpush1.bf16.msra.mxu1 %v6538_v45 }
 0x35c   : > { %3693 = vmatprep.subr.bf16.mxu1 %v6546_v34  ;;  %v6612_v34 = vld [vmem:[%s7427_s13 + $0x26c] ss:$16 sps:$4 sm:$0xff]  }
 0x35d   : > { %3588 = vmatpush1.bf16.msra.mxu0 %v6541_v33  ;;  %v6609_v33 = vld [vmem:[%s7427_s13 + $0x264] ss:$16 sps:$4 sm:$0xff]  }
 0x35e   : > { %3589 = vmatprep.subr.bf16.mxu0 %v6549_v37 }
 0x35f   : > { %3694 = vmatpush1.bf16.msra.mxu1 %v6544_v38 }
 0x360   : > { %3695 = vmatprep.subr.bf16.mxu1 %v6552_v47 }
 0x361   : > { %3590 = vmatpush1.bf16.msra.mxu0 %v6547_v46 }
 0x362   : > { %3591 = vmatprep.subr.bf16.mxu0 %v6555_v48  ;;  %v6607_v48 = vld [vmem:[%s7427_s13 + $0x260] ss:$16 sps:$4 sm:$0xff]  }
 0x363   : > { %3696 = vmatpush1.bf16.msra.mxu1 %v6550_v49  ;;  %v6610_v49 = vld [vmem:[%s7427_s13 + $0x268] ss:$16 sps:$4 sm:$0xff]  }
 0x364   : > { %3697 = vmatprep.subr.bf16.mxu1 %v6558_v53  ;;  %v6618_v53 = vld [vmem:[%s7427_s13 + $0x28c] ss:$16 sps:$4 sm:$0xff]  }
 0x365   : > { %3592 = vmatpush1.bf16.msra.mxu0 %v6553_v52  ;;  %v6615_v52 = vld [vmem:[%s7427_s13 + $0x284] ss:$16 sps:$4 sm:$0xff]  }
 0x366   : > { %3593 = vmatprep.subr.bf16.mxu0 %v6561_v54 }
 0x367   : > { %3698 = vmatpush1.bf16.msra.mxu1 %v6556_v55 }
 0x368   : > { %3699 = vmatprep.subr.bf16.mxu1 %v6564_v57  ;;  %v6616_v57 = vld [vmem:[%s7427_s13 + $0x288] ss:$16 sps:$4 sm:$0xff]  }
 0x369   : > { %3594 = vmatpush1.bf16.msra.mxu0 %v6559_v56  ;;  %v6613_v56 = vld [vmem:[%s7427_s13 + $0x280] ss:$16 sps:$4 sm:$0xff]  }
 0x36a   : > { %3595 = vmatprep.subr.bf16.mxu0 %v6567_v61 }
 0x36b   : > { %3700 = vmatpush1.bf16.msra.mxu1 %v6562_v62 }
 0x36c   : > { %3701 = vmatprep.subr.bf16.mxu1 %v6570_v1 }
 0x36d   : > { %3596 = vmatpush1.bf16.msra.mxu0 %v6565_v63 }
 0x36e   : > { %3597 = vmatprep.subr.bf16.mxu0 %v6573_v3  ;;  %v6621_v3 = vld [vmem:[%s7427_s13 + $0x2a4] ss:$16 sps:$4 sm:$0xff]  }
 0x36f   : > { %3702 = vmatpush1.bf16.msra.mxu1 %v6568_v5  ;;  %v6624_v5 = vld [vmem:[%s7427_s13 + $0x2ac] ss:$16 sps:$4 sm:$0xff]  }
 0x370   : > { %3703 = vmatprep.subr.bf16.mxu1 %v6576_v6 }
 0x371   : > { %3598 = vmatpush1.bf16.msra.mxu0 %v6571_v4 }
 0x372   : > { %3599 = vmatprep.subr.bf16.mxu0 %v6579_v8 }
 0x373   : > { %3704 = vmatpush1.bf16.msra.mxu1 %v6574_v9 }
 0x374   : > { %3705 = vmatprep.subr.bf16.mxu1 %v6582_v14 }
 0x375   : > { %3600 = vmatpush1.bf16.msra.mxu0 %v6577_v13 }
 0x376   : > { %3601 = vmatprep.subr.bf16.mxu0 %v6585_v7  ;;  %v6619_v7 = vld [vmem:[%s7427_s13 + $0x2a0] ss:$16 sps:$4 sm:$0xff]  }
 0x377   : > { %3706 = vmatpush1.bf16.msra.mxu1 %v6580_v15  ;;  %v6622_v15 = vld [vmem:[%s7427_s13 + $0x2a8] ss:$16 sps:$4 sm:$0xff]  }
 0x378   : > { %3707 = vmatprep.subr.bf16.mxu1 %v6588_v17  ;;  %v6627_v17 = vld [vmem:[%s7427_s13 + $0x2c4] ss:$16 sps:$4 sm:$0xff]  }
 0x379   : > { %3602 = vmatpush1.bf16.msra.mxu0 %v6583_v16 }
 0x37a   : > { %3624 = vmatprep.subr.bf16.mxu0 %v6591_v18  ;;  %v6630_v18 = vld [vmem:[%s7427_s13 + $0x2cc] ss:$16 sps:$4 sm:$0xff]  }
 0x37b   : > { %3708 = vmatpush1.bf16.msra.mxu1 %v6586_v19 }
 0x37c   : > { %3730 = vmatprep.subr.bf16.mxu1 %v6594_v10 }
 0x37f   : > { %v1622_v20 = vpop.f32.mrb[0].mxu0 }
 0x380   : > { %v1624_v21 = vpop.f32.mrb[1].mxu0 }
 0x381   : > { %v1626_v22 = vpop.f32.mrb[2].mxu0  ;;  %v1675_v50 = vpop.f32.mrb[0].mxu1 }
 0x382   : > { %v1694_v24 = vpack.c.bf16 %v1626_v22, %v1622_v20  ;;  %v1628_v25 = vpop.f32.mrb[3].mxu0  ;;  %v1677_v60 = vpop.f32.mrb[1].mxu1 }
 0x383   : > { %v1695_v26 = vpack.c.bf16 %v1628_v25, %v1624_v21  ;;  %v1679_v0 = vpop.f32.mrb[2].mxu1 }
 0x384   : > { %v7973_v27 = vpack.c.bf16 %v1679_v0, %v1675_v50  ;;  %v1681_v35 = vpop.f32.mrb[3].mxu1  ;;  %v6633_v50 = vld [vmem:[%s7427_s13 + $0x2e4] ss:$16 sps:$4 sm:$0xff]  }
 0x385   : > { %3603 = vmatprep.mubr.bf16.mxu0 %v1695_v26  ;;  %3709 = vmatprep.mubr.bf16.mxu1 %v1695_v26  ;;  %v1697_v58 = vpack.c.bf16 %v1681_v35, %v1677_v60  ;;  %v6631_v35 = vld [vmem:[%s7427_s13 + $0x2e0] ss:$16 sps:$4 sm:$0xff]  }
 0x386   : > { %3604 = vmatmul.mubr.bf16.vlgmr.msra.gmra.mrb[16].mxu0 %v1694_v24  ;;  %3710 = vmatmul.mubr.bf16.vlgmr.msra.gmra.mrb[16].mxu1 %v1694_v24 }
 0x387   : > { %3625 = vmatpush1.bf16.msra.mxu0 %v6589_v29  ;;  %3731 = vmatpush1.bf16.msra.mxu1 %v6592_v23  ;;  %v1632_v59 = vpop.f32.mrb[4].mxu0  ;;  %v6625_v29 = vld [vmem:[%s7427_s13 + $0x2c0] ss:$16 sps:$4 sm:$0xff]   ;;  %v6628_v23 = vld [vmem:[%s7427_s13 + $0x2c8] ss:$16 sps:$4 sm:$0xff]  }
 0x388   : > { %v1634_v30 = vpop.f32.mrb[5].mxu0  ;;  %3626 = vmatprep.subr.bf16.mxu0 %v6597_v51  ;;  %3732 = vmatprep.subr.bf16.mxu1 %v6600_v12  ;;  %v6636_v51 = vld [vmem:[%s7427_s13 + $0x2ec] ss:$16 sps:$4 sm:$0xff]  }
 0x389   : > { %v1636_v40 = vpop.f32.mrb[6].mxu0  ;;  %v1685_v32 = vpop.f32.mrb[4].mxu1 }
 0x38a   : > { %v1698_v41 = vpack.c.bf16 %v1636_v40, %v1632_v59  ;;  %v1638_v42 = vpop.f32.mrb[7].mxu0  ;;  %v1687_v45 = vpop.f32.mrb[5].mxu1  ;;  %v6645_v59 = vld [vmem:[%s7427_s13 + $0x324] ss:$16 sps:$4 sm:$0xff]   ;;  %v6643_v40 = vld [vmem:[%s7427_s13 + $0x320] ss:$16 sps:$4 sm:$0xff]  }
 0x38b   : > { %v1699_v44 = vpack.c.bf16 %v1638_v42, %v1634_v30  ;;  %3627 = vmatpush1.bf16.msra.mxu0 %v6595_v36  ;;  %3733 = vmatpush1.bf16.msra.mxu1 %v6598_v39  ;;  %v1689_v37 = vpop.f32.mrb[6].mxu1  ;;  %v6634_v36 = vld [vmem:[%s7427_s13 + $0x2e8] ss:$16 sps:$4 sm:$0xff]   ;;  %v6639_v39 = vld [vmem:[%s7427_s13 + $0x304] ss:$16 sps:$4 sm:$0xff]  }
 0x38c   : > { %3628 = vmatprep.subr.bf16.mxu0 %v6603_v28  ;;  %3734 = vmatprep.subr.bf16.mxu1 %v6606_v2  ;;  %v7983_v38 = vpack.c.bf16 %v1689_v37, %v1685_v32  ;;  %v1691_v46 = vpop.f32.mrb[7].mxu1  ;;  %v6637_v28 = vld [vmem:[%s7427_s13 + $0x300] ss:$16 sps:$4 sm:$0xff]   ;;  %v6640_v2 = vld [vmem:[%s7427_s13 + $0x308] ss:$16 sps:$4 sm:$0xff]  }
 0x38d   : > { %3613 = vmatprep.mubr.bf16.mxu0 %v1699_v44  ;;  %3719 = vmatprep.mubr.bf16.mxu1 %v1699_v44  ;;  %v7985_v47 = vpack.c.bf16 %v1691_v46, %v1687_v45  ;;  %v6648_v30 = vld [vmem:[%s7427_s13 + $0x32c] ss:$16 sps:$4 sm:$0xff]   ;;  %v6651_v42 = vld [vmem:[%s7427_s13 + $0x344] ss:$16 sps:$4 sm:$0xff]   ;;  %v6652_v32 = vld [vmem:[%s7427_s13 + $0x348] ss:$16 sps:$4 sm:$0xff]  }
 0x38e   : > { %3614 = vmatmul.mubr.bf16.gmra.mrb[20].mxu0 %v1698_v41  ;;  %3720 = vmatmul.mubr.bf16.gmra.mrb[20].mxu1 %v1698_v41  ;;  %v6646_v41 = vld [vmem:[%s7427_s13 + $0x328] ss:$16 sps:$4 sm:$0xff]   ;;  %v6657_v44 = vld [vmem:[%s7427_s13 + $0x364] ss:$16 sps:$4 sm:$0xff]   ;;  %v6660_v45 = vld [vmem:[%s7427_s13 + $0x36c] ss:$16 sps:$4 sm:$0xff]  }
 0x38f   : > { %3629 = vmatpush1.bf16.msra.mxu0 %v6601_v43  ;;  %3735 = vmatpush1.bf16.msra.mxu1 %v6604_v31  ;;  %v1742_v54 = vpop.f32.mrb[8].mxu0  ;;  %v6654_v43 = vld [vmem:[%s7427_s13 + $0x34c] ss:$16 sps:$4 sm:$0xff]   ;;  %v6649_v31 = vld [vmem:[%s7427_s13 + $0x340] ss:$16 sps:$4 sm:$0xff]  }
 0x390   : > { %3656 = vmatprep.mubr.bf16.mxu0 %v1697_v58  ;;  %3762 = vmatprep.mubr.bf16.mxu1 %v1697_v58  ;;  %v1744_v55 = vpop.f32.mrb[9].mxu0  ;;  %v6642_v58 = vld [vmem:[%s7427_s13 + $0x30c] ss:$16 sps:$4 sm:$0xff]   ;;  %v6663_v37 = vld [vmem:[%s7427_s13 + $0x384] ss:$16 sps:$4 sm:$0xff]  }
 0x391   : > { %3630 = vmatprep.subr.bf16.mxu0 %v6609_v33  ;;  %3736 = vmatprep.subr.bf16.mxu1 %v6612_v34  ;;  %v1746_v61 = vpop.f32.mrb[10].mxu0  ;;  %v1795_v62 = vpop.f32.mrb[8].mxu1  ;;  %v6655_v33 = vld [vmem:[%s7427_s13 + $0x360] ss:$16 sps:$4 sm:$0xff]   ;;  %v6658_v34 = vld [vmem:[%s7427_s13 + $0x368] ss:$16 sps:$4 sm:$0xff]  }
 0x392   : > { %v7993_v63 = vpack.c.bf16 %v1746_v61, %v1742_v54  ;;  %v1748_v1 = vpop.f32.mrb[11].mxu0  ;;  %v1797_v4 = vpop.f32.mrb[9].mxu1  ;;  %v6666_v46 = vld [vmem:[%s7427_s13 + $0x38c] ss:$16 sps:$4 sm:$0xff]   ;;  %v6667_v54 = vld [vmem:[%s7427_s13 + $0x3a0] ss:$16 sps:$4 sm:$0xff]  }
 0x393   : > { %3631 = vmatpush1.bf16.msra.mxu0 %v6607_v48  ;;  %3737 = vmatpush1.bf16.msra.mxu1 %v6610_v49  ;;  %v7997_v6 = vpack.c.bf16 %v1748_v1, %v1744_v55  ;;  %v1799_v8 = vpop.f32.mrb[10].mxu1  ;;  %v6661_v48 = vld [vmem:[%s7427_s13 + $0x380] ss:$16 sps:$4 sm:$0xff]   ;;  %v6664_v49 = vld [vmem:[%s7427_s13 + $0x388] ss:$16 sps:$4 sm:$0xff]  }
 0x394   : > { %3632 = vmatprep.subr.bf16.mxu0 %v6615_v52  ;;  %3738 = vmatprep.subr.bf16.mxu1 %v6618_v53  ;;  %v7999_v9 = vpack.c.bf16 %v1799_v8, %v1795_v62  ;;  %v1801_v13 = vpop.f32.mrb[11].mxu1  ;;  %v6669_v52 = vld [vmem:[%s7427_s13 + $0x3a4] ss:$16 sps:$4 sm:$0xff]   ;;  %v6672_v53 = vld [vmem:[%s7427_s13 + $0x3ac] ss:$16 sps:$4 sm:$0xff]  }
 0x395   : > { %v8001_v14 = vpack.c.bf16 %v1801_v13, %v1797_v4  ;;  %v6670_v55 = vld [vmem:[%s7427_s13 + $0x3a8] ss:$16 sps:$4 sm:$0xff]   ;;  %v6673_v61 = vld [vmem:[%s7427_s13 + $0x3c0] ss:$16 sps:$4 sm:$0xff]   ;;  %v6681_v1 = vld [vmem:[%s7427_s13 + $0x3e4] ss:$16 sps:$4 sm:$0xff]  }
 0x396   : > { %v6676_v62 = vld [vmem:[%s7427_s13 + $0x3c8] ss:$16 sps:$4 sm:$0xff]   ;;  %v6687_v8 = vld [vmem:[%s7427_s13 + $0x804] ss:$16 sps:$4 sm:$0xff]   ;;  %v6690_v13 = vld [vmem:[%s7427_s13 + $0x80c] ss:$16 sps:$4 sm:$0xff]  }
 0x397   : > { %3633 = vmatpush1.bf16.msra.mxu0 %v6613_v56  ;;  %3739 = vmatpush1.bf16.msra.mxu1 %v6616_v57  ;;  %v1752_v16 = vpop.f32.mrb[12].mxu0  ;;  %v6675_v56 = vld [vmem:[%s7427_s13 + $0x3c4] ss:$16 sps:$4 sm:$0xff]   ;;  %v6678_v57 = vld [vmem:[%s7427_s13 + $0x3cc] ss:$16 sps:$4 sm:$0xff]  }
 0x398   : > { %3634 = vmatprep.subr.bf16.mxu0 %v6621_v3  ;;  %3740 = vmatprep.subr.bf16.mxu1 %v6624_v5  ;;  %v1754_v19 = vpop.f32.mrb[13].mxu0  ;;  %v6684_v3 = vld [vmem:[%s7427_s13 + $0x3ec] ss:$16 sps:$4 sm:$0xff]   ;;  %v6679_v5 = vld [vmem:[%s7427_s13 + $0x3e0] ss:$16 sps:$4 sm:$0xff]  }
 0x399   : > { %v1756_v10 = vpop.f32.mrb[14].mxu0  ;;  %v1805_v20 = vpop.f32.mrb[12].mxu1  ;;  %v6682_v4 = vld [vmem:[%s7427_s13 + $0x3e8] ss:$16 sps:$4 sm:$0xff]  }
 0x39a   : > { %v8007_v21 = vpack.c.bf16 %v1756_v10, %v1752_v16  ;;  %v1758_v22 = vpop.f32.mrb[15].mxu0  ;;  %v1807_v24 = vpop.f32.mrb[13].mxu1  ;;  %v6693_v16 = vld [vmem:[%s7427_s13 + $0x824] ss:$16 sps:$4 sm:$0xff]  }
 0x39b   : > { %3635 = vmatpush1.bf16.msra.mxu0 %v6619_v7  ;;  %3741 = vmatpush1.bf16.msra.mxu1 %v6622_v15  ;;  %v8011_v25 = vpack.c.bf16 %v1758_v22, %v1754_v19  ;;  %v1809_v12 = vpop.f32.mrb[14].mxu1  ;;  %v6685_v7 = vld [vmem:[%s7427_s13 + $0x800] ss:$16 sps:$4 sm:$0xff]   ;;  %v6688_v15 = vld [vmem:[%s7427_s13 + $0x808] ss:$16 sps:$4 sm:$0xff]  }
 0x39c   : > { %3636 = vmatprep.subr.bf16.mxu0 %v6627_v17  ;;  %3742 = vmatprep.subr.bf16.mxu1 %v6630_v18  ;;  %v8015_v26 = vpack.c.bf16 %v1809_v12, %v1805_v20  ;;  %v1811_v60 = vpop.f32.mrb[15].mxu1  ;;  %v6696_v17 = vld [vmem:[%s7427_s13 + $0x82c] ss:$16 sps:$4 sm:$0xff]   ;;  %v6691_v18 = vld [vmem:[%s7427_s13 + $0x820] ss:$16 sps:$4 sm:$0xff]  }
 0x39d   : > { %v8017_v0 = vpack.c.bf16 %v1811_v60, %v1807_v24  ;;  %v6694_v19 = vld [vmem:[%s7427_s13 + $0x828] ss:$16 sps:$4 sm:$0xff]   ;;  %v6699_v10 = vld [vmem:[%s7427_s13 + $0x844] ss:$16 sps:$4 sm:$0xff]   ;;  %v6702_v20 = vld [vmem:[%s7427_s13 + $0x84c] ss:$16 sps:$4 sm:$0xff]  }
 0x39e   : > { %v6697_v22 = vld [vmem:[%s7427_s13 + $0x840] ss:$16 sps:$4 sm:$0xff]   ;;  %v6706_v24 = vld [vmem:[%s7427_s13 + $0x868] ss:$16 sps:$4 sm:$0xff]   ;;  %v6720_v60 = vld [vmem:[%s7427_s13 + $0x8ac] ss:$16 sps:$4 sm:$0xff]  }
 0x39f   : > { %3637 = vmatpush1.bf16.msra.mxu0 %v6625_v29  ;;  %3743 = vmatpush1.bf16.msra.mxu1 %v6628_v23  ;;  %v6708_v29 = vld [vmem:[%s7427_s13 + $0x86c] ss:$16 sps:$4 sm:$0xff]   ;;  %v6703_v23 = vld [vmem:[%s7427_s13 + $0x860] ss:$16 sps:$4 sm:$0xff]   ;;  %v6712_v12 = vld [vmem:[%s7427_s13 + $0x888] ss:$16 sps:$4 sm:$0xff]  }
 0x3a0   : > { %3638 = vmatprep.subr.bf16.mxu0 %v6633_v50  ;;  %3744 = vmatprep.subr.bf16.mxu1 %v6636_v51  ;;  %v6711_v50 = vld [vmem:[%s7427_s13 + $0x884] ss:$16 sps:$4 sm:$0xff]   ;;  %v6714_v51 = vld [vmem:[%s7427_s13 + $0x88c] ss:$16 sps:$4 sm:$0xff]  }
 0x3a3   : > { %3639 = vmatpush1.bf16.msra.mxu0 %v6631_v35  ;;  %3745 = vmatpush1.bf16.msra.mxu1 %v6634_v36  ;;  %v6715_v35 = vld [vmem:[%s7427_s13 + $0x8a0] ss:$16 sps:$4 sm:$0xff]   ;;  %v6718_v36 = vld [vmem:[%s7427_s13 + $0x8a8] ss:$16 sps:$4 sm:$0xff]  }
 0x3a4   : > { %3640 = vmatprep.subr.bf16.mxu0 %v6639_v39  ;;  %3746 = vmatprep.subr.bf16.mxu1 %v6642_v58  ;;  %v6723_v39 = vld [vmem:[%s7427_s13 + $0x8c4] ss:$16 sps:$4 sm:$0xff]   ;;  %v6726_v58 = vld [vmem:[%s7427_s13 + $0x8cc] ss:$16 sps:$4 sm:$0xff]  }
 0x3a7   : > { %3641 = vmatpush1.bf16.msra.mxu0 %v6637_v28  ;;  %3747 = vmatpush1.bf16.msra.mxu1 %v6640_v2  ;;  %v6721_v28 = vld [vmem:[%s7427_s13 + $0x8c0] ss:$16 sps:$4 sm:$0xff]   ;;  %v6724_v2 = vld [vmem:[%s7427_s13 + $0x8c8] ss:$16 sps:$4 sm:$0xff]  }
 0x3a8   : > { %3642 = vmatprep.subr.bf16.mxu0 %v6645_v59  ;;  %3748 = vmatprep.subr.bf16.mxu1 %v6648_v30  ;;  %v6729_v59 = vld [vmem:[%s7427_s13 + $0x8e4] ss:$16 sps:$4 sm:$0xff]   ;;  %v6732_v30 = vld [vmem:[%s7427_s13 + $0x8ec] ss:$16 sps:$4 sm:$0xff]  }
 0x3ab   : > { %3643 = vmatpush1.bf16.msra.mxu0 %v6643_v40  ;;  %3749 = vmatpush1.bf16.msra.mxu1 %v6646_v41  ;;  %v6727_v40 = vld [vmem:[%s7427_s13 + $0x8e0] ss:$16 sps:$4 sm:$0xff]   ;;  %v6730_v41 = vld [vmem:[%s7427_s13 + $0x8e8] ss:$16 sps:$4 sm:$0xff]  }
 0x3ac   : > { %3644 = vmatprep.subr.bf16.mxu0 %v6651_v42  ;;  %3750 = vmatprep.subr.bf16.mxu1 %v6654_v43  ;;  %v6735_v42 = vld [vmem:[%s7427_s13 + $0x904] ss:$16 sps:$4 sm:$0xff]   ;;  %v6738_v43 = vld [vmem:[%s7427_s13 + $0x90c] ss:$16 sps:$4 sm:$0xff]  }
 0x3af   : > { %3645 = vmatpush1.bf16.msra.mxu0 %v6649_v31  ;;  %3751 = vmatpush1.bf16.msra.mxu1 %v6652_v32  ;;  %v6733_v31 = vld [vmem:[%s7427_s13 + $0x900] ss:$16 sps:$4 sm:$0xff]   ;;  %v6736_v32 = vld [vmem:[%s7427_s13 + $0x908] ss:$16 sps:$4 sm:$0xff]  }
 0x3b0   : > { %3646 = vmatprep.subr.bf16.mxu0 %v6657_v44  ;;  %3752 = vmatprep.subr.bf16.mxu1 %v6660_v45  ;;  %v6741_v44 = vld [vmem:[%s7427_s13 + $0x924] ss:$16 sps:$4 sm:$0xff]   ;;  %v6744_v45 = vld [vmem:[%s7427_s13 + $0x92c] ss:$16 sps:$4 sm:$0xff]  }
 0x3b3   : > { %3647 = vmatpush1.bf16.msra.mxu0 %v6655_v33  ;;  %3753 = vmatpush1.bf16.msra.mxu1 %v6658_v34  ;;  %v6739_v33 = vld [vmem:[%s7427_s13 + $0x920] ss:$16 sps:$4 sm:$0xff]   ;;  %v6742_v34 = vld [vmem:[%s7427_s13 + $0x928] ss:$16 sps:$4 sm:$0xff]  }
 0x3b4   : > { %3648 = vmatprep.subr.bf16.mxu0 %v6663_v37  ;;  %3754 = vmatprep.subr.bf16.mxu1 %v6666_v46  ;;  %v6747_v37 = vld [vmem:[%s7427_s13 + $0x944] ss:$16 sps:$4 sm:$0xff]   ;;  %v6750_v46 = vld [vmem:[%s7427_s13 + $0x94c] ss:$16 sps:$4 sm:$0xff]  }
 0x3b7   : > { %3649 = vmatpush1.bf16.msra.mxu0 %v6661_v48  ;;  %3755 = vmatpush1.bf16.msra.mxu1 %v6664_v49  ;;  %v6745_v48 = vld [vmem:[%s7427_s13 + $0x940] ss:$16 sps:$4 sm:$0xff]   ;;  %v6748_v49 = vld [vmem:[%s7427_s13 + $0x948] ss:$16 sps:$4 sm:$0xff]  }
 0x3b8   : > { %3650 = vmatprep.subr.bf16.mxu0 %v6669_v52  ;;  %3756 = vmatprep.subr.bf16.mxu1 %v6672_v53  ;;  %v6753_v52 = vld [vmem:[%s7427_s13 + $0x964] ss:$16 sps:$4 sm:$0xff]   ;;  %v6756_v53 = vld [vmem:[%s7427_s13 + $0x96c] ss:$16 sps:$4 sm:$0xff]  }
 0x3bb   : > { %3651 = vmatpush1.bf16.msra.mxu0 %v6667_v54  ;;  %3757 = vmatpush1.bf16.msra.mxu1 %v6670_v55  ;;  %v6751_v54 = vld [vmem:[%s7427_s13 + $0x960] ss:$16 sps:$4 sm:$0xff]   ;;  %v6754_v55 = vld [vmem:[%s7427_s13 + $0x968] ss:$16 sps:$4 sm:$0xff]  }
 0x3bc   : > { %3652 = vmatprep.subr.bf16.mxu0 %v6675_v56  ;;  %3758 = vmatprep.subr.bf16.mxu1 %v6678_v57  ;;  %v6759_v56 = vld [vmem:[%s7427_s13 + $0x984] ss:$16 sps:$4 sm:$0xff]   ;;  %v6762_v57 = vld [vmem:[%s7427_s13 + $0x98c] ss:$16 sps:$4 sm:$0xff]  }
 0x3bf   : > { %3653 = vmatpush1.bf16.msra.mxu0 %v6673_v61  ;;  %3759 = vmatpush1.bf16.msra.mxu1 %v6676_v62  ;;  %v6757_v61 = vld [vmem:[%s7427_s13 + $0x980] ss:$16 sps:$4 sm:$0xff]   ;;  %v6760_v62 = vld [vmem:[%s7427_s13 + $0x988] ss:$16 sps:$4 sm:$0xff]  }
 0x3c0   : > { %3654 = vmatprep.subr.bf16.mxu0 %v6681_v1  ;;  %3760 = vmatprep.subr.bf16.mxu1 %v6684_v3  ;;  %v6765_v1 = vld [vmem:[%s7427_s13 + $0x9a4] ss:$16 sps:$4 sm:$0xff]   ;;  %v6768_v3 = vld [vmem:[%s7427_s13 + $0x9ac] ss:$16 sps:$4 sm:$0xff]  }
 0x3c3   : > { %3655 = vmatpush1.bf16.msra.mxu0 %v6679_v5  ;;  %3761 = vmatpush1.bf16.msra.mxu1 %v6682_v4  ;;  %v6763_v5 = vld [vmem:[%s7427_s13 + $0x9a0] ss:$16 sps:$4 sm:$0xff]   ;;  %v6766_v4 = vld [vmem:[%s7427_s13 + $0x9a8] ss:$16 sps:$4 sm:$0xff]  }
 0x3c4   : > { %4552 = vmatprep.subr.bf16.mxu0 %v6687_v8  ;;  %4658 = vmatprep.subr.bf16.mxu1 %v6690_v13  ;;  %v6771_v8 = vld [vmem:[%s7427_s13 + $0x9c4] ss:$16 sps:$4 sm:$0xff]   ;;  %v6774_v13 = vld [vmem:[%s7427_s13 + $0x9cc] ss:$16 sps:$4 sm:$0xff]  }
 0x3c6   : > { %3657 = vmatmul.mubr.bf16.vlgmr.msra.gmra.mrb[16].mxu0 %v7973_v27  ;;  %3763 = vmatmul.mubr.bf16.vlgmr.msra.gmra.mrb[16].mxu1 %v7973_v27  ;;  %v6700_v27 = vld [vmem:[%s7427_s13 + $0x848] ss:$16 sps:$4 sm:$0xff]  }
 0x3c7   : > { %3666 = vmatprep.mubr.bf16.mxu0 %v7985_v47  ;;  %3772 = vmatprep.mubr.bf16.mxu1 %v7985_v47  ;;  %v6705_v47 = vld [vmem:[%s7427_s13 + $0x864] ss:$16 sps:$4 sm:$0xff]  }
 0x3c8   : > { %4553 = vmatpush1.bf16.msra.mxu0 %v6685_v7  ;;  %4659 = vmatpush1.bf16.msra.mxu1 %v6688_v15  ;;  %v6769_v7 = vld [vmem:[%s7427_s13 + $0x9c0] ss:$16 sps:$4 sm:$0xff]   ;;  %v6772_v15 = vld [vmem:[%s7427_s13 + $0x9c8] ss:$16 sps:$4 sm:$0xff]  }
 0x3c9   : > { %4554 = vmatprep.subr.bf16.mxu0 %v6693_v16  ;;  %4660 = vmatprep.subr.bf16.mxu1 %v6696_v17  ;;  %v6777_v16 = vld [vmem:[%s7427_s13 + $0x9e4] ss:$16 sps:$4 sm:$0xff]   ;;  %v6780_v17 = vld [vmem:[%s7427_s13 + $0x9ec] ss:$16 sps:$4 sm:$0xff]  }
 0x3cc   : > { %4555 = vmatpush1.bf16.msra.mxu0 %v6691_v18  ;;  %4661 = vmatpush1.bf16.msra.mxu1 %v6694_v19  ;;  %v6775_v18 = vld [vmem:[%s7427_s13 + $0x9e0] ss:$16 sps:$4 sm:$0xff]   ;;  %v6778_v19 = vld [vmem:[%s7427_s13 + $0x9e8] ss:$16 sps:$4 sm:$0xff]  }
 0x3cd   : > { %4556 = vmatprep.subr.bf16.mxu0 %v6699_v10  ;;  %4662 = vmatprep.subr.bf16.mxu1 %v6702_v20  ;;  %v6783_v10 = vld [vmem:[%s7427_s13 + $0xa04] ss:$16 sps:$4 sm:$0xff]   ;;  %v6786_v20 = vld [vmem:[%s7427_s13 + $0xa0c] ss:$16 sps:$4 sm:$0xff]  }
 0x3ce   : > { %3667 = vmatmul.mubr.bf16.gmra.mrb[20].mxu0 %v7983_v38  ;;  %3773 = vmatmul.mubr.bf16.gmra.mrb[20].mxu1 %v7983_v38  ;;  %v6709_v38 = vld [vmem:[%s7427_s13 + $0x880] ss:$16 sps:$4 sm:$0xff]  }
 0x3cf   : > { %4584 = vmatprep.mubr.bf16.mxu0 %v7997_v6  ;;  %4690 = vmatprep.mubr.bf16.mxu1 %v7997_v6  ;;  %v6717_v6 = vld [vmem:[%s7427_s13 + $0x8a4] ss:$16 sps:$4 sm:$0xff]  }
 0x3d0   : > { %4557 = vmatpush1.bf16.msra.mxu0 %v6697_v22  ;;  %4663 = vmatpush1.bf16.msra.mxu1 %v6700_v27  ;;  %v6781_v22 = vld [vmem:[%s7427_s13 + $0xa00] ss:$16 sps:$4 sm:$0xff]   ;;  %v6784_v27 = vld [vmem:[%s7427_s13 + $0xa08] ss:$16 sps:$4 sm:$0xff]  }
 0x3d1   : > { %4558 = vmatprep.subr.bf16.mxu0 %v6705_v47  ;;  %4664 = vmatprep.subr.bf16.mxu1 %v6708_v29  ;;  %v6789_v47 = vld [vmem:[%s7427_s13 + $0xa24] ss:$16 sps:$4 sm:$0xff]   ;;  %v6792_v29 = vld [vmem:[%s7427_s13 + $0xa2c] ss:$16 sps:$4 sm:$0xff]  }
 0x3d4   : > { %4559 = vmatpush1.bf16.msra.mxu0 %v6703_v23  ;;  %4665 = vmatpush1.bf16.msra.mxu1 %v6706_v24  ;;  %v6787_v23 = vld [vmem:[%s7427_s13 + $0xa20] ss:$16 sps:$4 sm:$0xff]   ;;  %v6790_v24 = vld [vmem:[%s7427_s13 + $0xa28] ss:$16 sps:$4 sm:$0xff]  }
 0x3d5   : > { %4560 = vmatprep.subr.bf16.mxu0 %v6711_v50  ;;  %4666 = vmatprep.subr.bf16.mxu1 %v6714_v51  ;;  %v6795_v50 = vld [vmem:[%s7427_s13 + $0xa44] ss:$16 sps:$4 sm:$0xff]   ;;  %v6798_v51 = vld [vmem:[%s7427_s13 + $0xa4c] ss:$16 sps:$4 sm:$0xff]  }
 0x3d8   : > { %4561 = vmatpush1.bf16.msra.mxu0 %v6709_v38  ;;  %4667 = vmatpush1.bf16.msra.mxu1 %v6712_v12  ;;  %v6793_v38 = vld [vmem:[%s7427_s13 + $0xa40] ss:$16 sps:$4 sm:$0xff]   ;;  %v6801_v12 = vld [vmem:[%s7427_s13 + $0xa64] ss:$16 sps:$4 sm:$0xff]  }
 0x3d9   : > { %4562 = vmatprep.subr.bf16.mxu0 %v6717_v6  ;;  %4668 = vmatprep.subr.bf16.mxu1 %v6720_v60  ;;  %v6804_v6 = vld [vmem:[%s7427_s13 + $0xa6c] ss:$16 sps:$4 sm:$0xff]   ;;  %v6802_v60 = vld [vmem:[%s7427_s13 + $0xa68] ss:$16 sps:$4 sm:$0xff]  }
 0x3dc   : > { %4563 = vmatpush1.bf16.msra.mxu0 %v6715_v35  ;;  %4669 = vmatpush1.bf16.msra.mxu1 %v6718_v36  ;;  %v6807_v35 = vld [vmem:[%s7427_s13 + $0xa84] ss:$16 sps:$4 sm:$0xff]   ;;  %v6810_v36 = vld [vmem:[%s7427_s13 + $0xa8c] ss:$16 sps:$4 sm:$0xff]  }
 0x3dd   : > { %4564 = vmatprep.subr.bf16.mxu0 %v6723_v39  ;;  %4670 = vmatprep.subr.bf16.mxu1 %v6726_v58  ;;  %v6808_v39 = vld [vmem:[%s7427_s13 + $0xa88] ss:$16 sps:$4 sm:$0xff]   ;;  %v6813_v58 = vld [vmem:[%s7427_s13 + $0xaa4] ss:$16 sps:$4 sm:$0xff]  }
 0x3e0   : > { %4565 = vmatpush1.bf16.msra.mxu0 %v6721_v28  ;;  %4671 = vmatpush1.bf16.msra.mxu1 %v6724_v2  ;;  %v6816_v28 = vld [vmem:[%s7427_s13 + $0xaac] ss:$16 sps:$4 sm:$0xff]   ;;  %v6814_v2 = vld [vmem:[%s7427_s13 + $0xaa8] ss:$16 sps:$4 sm:$0xff]  }
 0x3e1   : > { %4566 = vmatprep.subr.bf16.mxu0 %v6729_v59  ;;  %4672 = vmatprep.subr.bf16.mxu1 %v6732_v30  ;;  %v6819_v59 = vld [vmem:[%s7427_s13 + $0xac4] ss:$16 sps:$4 sm:$0xff]   ;;  %v6822_v30 = vld [vmem:[%s7427_s13 + $0xacc] ss:$16 sps:$4 sm:$0xff]  }
 0x3e4   : > { %4567 = vmatpush1.bf16.msra.mxu0 %v6727_v40  ;;  %4673 = vmatpush1.bf16.msra.mxu1 %v6730_v41  ;;  %v6817_v40 = vld [vmem:[%s7427_s13 + $0xac0] ss:$16 sps:$4 sm:$0xff]   ;;  %v6820_v41 = vld [vmem:[%s7427_s13 + $0xac8] ss:$16 sps:$4 sm:$0xff]  }
 0x3e5   : > { %4568 = vmatprep.subr.bf16.mxu0 %v6735_v42  ;;  %4674 = vmatprep.subr.bf16.mxu1 %v6738_v43  ;;  %v6825_v42 = vld [vmem:[%s7427_s13 + $0xae4] ss:$16 sps:$4 sm:$0xff]   ;;  %v6828_v43 = vld [vmem:[%s7427_s13 + $0xaec] ss:$16 sps:$4 sm:$0xff]  }
 0x3e8   : > { %4569 = vmatpush1.bf16.msra.mxu0 %v6733_v31  ;;  %4675 = vmatpush1.bf16.msra.mxu1 %v6736_v32  ;;  %v6823_v31 = vld [vmem:[%s7427_s13 + $0xae0] ss:$16 sps:$4 sm:$0xff]   ;;  %v6826_v32 = vld [vmem:[%s7427_s13 + $0xae8] ss:$16 sps:$4 sm:$0xff]  }
 0x3e9   : > { %4570 = vmatprep.subr.bf16.mxu0 %v6741_v44  ;;  %4676 = vmatprep.subr.bf16.mxu1 %v6744_v45  ;;  %v6831_v44 = vld [vmem:[%s7427_s13 + $0xb04] ss:$16 sps:$4 sm:$0xff]   ;;  %v6834_v45 = vld [vmem:[%s7427_s13 + $0xb0c] ss:$16 sps:$4 sm:$0xff]  }
 0x3ec   : > { %4571 = vmatpush1.bf16.msra.mxu0 %v6739_v33  ;;  %4677 = vmatpush1.bf16.msra.mxu1 %v6742_v34  ;;  %v6829_v33 = vld [vmem:[%s7427_s13 + $0xb00] ss:$16 sps:$4 sm:$0xff]   ;;  %v6832_v34 = vld [vmem:[%s7427_s13 + $0xb08] ss:$16 sps:$4 sm:$0xff]  }
 0x3ed   : > { %4572 = vmatprep.subr.bf16.mxu0 %v6747_v37  ;;  %4678 = vmatprep.subr.bf16.mxu1 %v6750_v46  ;;  %v6837_v37 = vld [vmem:[%s7427_s13 + $0xb24] ss:$16 sps:$4 sm:$0xff]   ;;  %v6840_v46 = vld [vmem:[%s7427_s13 + $0xb2c] ss:$16 sps:$4 sm:$0xff]  }
 0x3f0   : > { %4573 = vmatpush1.bf16.msra.mxu0 %v6745_v48  ;;  %4679 = vmatpush1.bf16.msra.mxu1 %v6748_v49  ;;  %v6835_v48 = vld [vmem:[%s7427_s13 + $0xb20] ss:$16 sps:$4 sm:$0xff]   ;;  %v6838_v49 = vld [vmem:[%s7427_s13 + $0xb28] ss:$16 sps:$4 sm:$0xff]  }
 0x3f1   : > { %4574 = vmatprep.subr.bf16.mxu0 %v6753_v52  ;;  %4680 = vmatprep.subr.bf16.mxu1 %v6756_v53  ;;  %v6843_v52 = vld [vmem:[%s7427_s13 + $0xb44] ss:$16 sps:$4 sm:$0xff]   ;;  %v6846_v53 = vld [vmem:[%s7427_s13 + $0xb4c] ss:$16 sps:$4 sm:$0xff]  }
 0x3f4   : > { %4575 = vmatpush1.bf16.msra.mxu0 %v6751_v54  ;;  %4681 = vmatpush1.bf16.msra.mxu1 %v6754_v55  ;;  %v6841_v54 = vld [vmem:[%s7427_s13 + $0xb40] ss:$16 sps:$4 sm:$0xff]   ;;  %v6844_v55 = vld [vmem:[%s7427_s13 + $0xb48] ss:$16 sps:$4 sm:$0xff]  }
 0x3f5   : > { %4576 = vmatprep.subr.bf16.mxu0 %v6759_v56  ;;  %4682 = vmatprep.subr.bf16.mxu1 %v6762_v57  ;;  %v6849_v56 = vld [vmem:[%s7427_s13 + $0xb64] ss:$16 sps:$4 sm:$0xff]   ;;  %v6852_v57 = vld [vmem:[%s7427_s13 + $0xb6c] ss:$16 sps:$4 sm:$0xff]  }
 0x3f8   : > { %4577 = vmatpush1.bf16.msra.mxu0 %v6757_v61  ;;  %4683 = vmatpush1.bf16.msra.mxu1 %v6760_v62  ;;  %v6847_v61 = vld [vmem:[%s7427_s13 + $0xb60] ss:$16 sps:$4 sm:$0xff]   ;;  %v6850_v62 = vld [vmem:[%s7427_s13 + $0xb68] ss:$16 sps:$4 sm:$0xff]  }
 0x3f9   : > { %4578 = vmatprep.subr.bf16.mxu0 %v6765_v1  ;;  %4684 = vmatprep.subr.bf16.mxu1 %v6768_v3  ;;  %v6855_v1 = vld [vmem:[%s7427_s13 + $0xb84] ss:$16 sps:$4 sm:$0xff]   ;;  %v6858_v3 = vld [vmem:[%s7427_s13 + $0xb8c] ss:$16 sps:$4 sm:$0xff]  }
 0x3fc   : > { %4579 = vmatpush1.bf16.msra.mxu0 %v6763_v5  ;;  %4685 = vmatpush1.bf16.msra.mxu1 %v6766_v4  ;;  %v6853_v5 = vld [vmem:[%s7427_s13 + $0xb80] ss:$16 sps:$4 sm:$0xff]   ;;  %v6856_v4 = vld [vmem:[%s7427_s13 + $0xb88] ss:$16 sps:$4 sm:$0xff]  }
 0x3fd   : > { %4580 = vmatprep.subr.bf16.mxu0 %v6771_v8  ;;  %4686 = vmatprep.subr.bf16.mxu1 %v6774_v13  ;;  %v6861_v8 = vld [vmem:[%s7427_s13 + $0xba4] ss:$16 sps:$4 sm:$0xff]   ;;  %v6864_v13 = vld [vmem:[%s7427_s13 + $0xbac] ss:$16 sps:$4 sm:$0xff]  }
 0x400   : > { %4581 = vmatpush1.bf16.msra.mxu0 %v6769_v7  ;;  %4687 = vmatpush1.bf16.msra.mxu1 %v6772_v15  ;;  %v6859_v7 = vld [vmem:[%s7427_s13 + $0xba0] ss:$16 sps:$4 sm:$0xff]   ;;  %v6862_v15 = vld [vmem:[%s7427_s13 + $0xba8] ss:$16 sps:$4 sm:$0xff]  }
 0x401   : > { %4582 = vmatprep.subr.bf16.mxu0 %v6777_v16  ;;  %4688 = vmatprep.subr.bf16.mxu1 %v6780_v17  ;;  %v6867_v16 = vld [vmem:[%s7427_s13 + $0xbc4] ss:$16 sps:$4 sm:$0xff]   ;;  %v6870_v17 = vld [vmem:[%s7427_s13 + $0xbcc] ss:$16 sps:$4 sm:$0xff]  }
 0x404   : > { %4583 = vmatpush1.bf16.msra.mxu0 %v6775_v18  ;;  %4689 = vmatpush1.bf16.msra.mxu1 %v6778_v19  ;;  %v6865_v18 = vld [vmem:[%s7427_s13 + $0xbc0] ss:$16 sps:$4 sm:$0xff]   ;;  %v6868_v19 = vld [vmem:[%s7427_s13 + $0xbc8] ss:$16 sps:$4 sm:$0xff]  }
 0x405   : > { %4605 = vmatprep.subr.bf16.mxu0 %v6783_v10  ;;  %4711 = vmatprep.subr.bf16.mxu1 %v6786_v20  ;;  %v6873_v10 = vld [vmem:[%s7427_s13 + $0xbe4] ss:$16 sps:$4 sm:$0xff]   ;;  %v6876_v20 = vld [vmem:[%s7427_s13 + $0xbec] ss:$16 sps:$4 sm:$0xff]  }
 0x407   : > { %4585 = vmatmul.mubr.bf16.vlgmr.msra.gmra.mrb[16].mxu0 %v7993_v63  ;;  %4691 = vmatmul.mubr.bf16.vlgmr.msra.gmra.mrb[16].mxu1 %v7993_v63  ;;  %v6796_v63 = vld [vmem:[%s7427_s13 + $0xa48] ss:$16 sps:$4 sm:$0xff]  }
 0x408   : > { %4594 = vmatprep.mubr.bf16.mxu0 %v8011_v25  ;;  %4606 = vmatpush1.bf16.msra.mxu0 %v6781_v22  ;;  %v6871_v22 = vld [vmem:[%s7427_s13 + $0xbe0] ss:$16 sps:$4 sm:$0xff]  }
 0x409   : > { %4700 = vmatprep.mubr.bf16.mxu1 %v8011_v25  ;;  %4712 = vmatpush1.bf16.msra.mxu1 %v6784_v27  ;;  %v6799_v25 = vld [vmem:[%s7427_s13 + $0xa60] ss:$16 sps:$4 sm:$0xff]   ;;  %v6874_v27 = vld [vmem:[%s7427_s13 + $0xbe8] ss:$16 sps:$4 sm:$0xff]  }
 0x40a   : > { %4607 = vmatprep.subr.bf16.mxu0 %v6789_v47  ;;  %4713 = vmatprep.subr.bf16.mxu1 %v6792_v29  ;;  %v4781_v47 = vlaneseq }
 0x40c   : > { %4608 = vmatpush1.bf16.msra.mxu0 %v6787_v23  ;;  %v4782_v29 = vshrl.u32 %v4781_v47, 7 }
 0x40d   : > { %4714 = vmatpush1.bf16.msra.mxu1 %v6790_v24  ;;  %4609 = vmatprep.subr.bf16.mxu0 %v6795_v50 }
 0x40e   : > { %4715 = vmatprep.subr.bf16.mxu1 %v6798_v51  ;;  %v4783_v23 = vsub.s32 0, %v4782_v29  ;;  %v4791_v24 = vsub.s32 4, %v4782_v29  ;;  %v4787_v50 = vsub.s32 2, %v4782_v29  ;;  %v4835_v51 = vsub.s32 1, %v4782_v29 }
 0x40f   : > { %4595 = vmatmul.mubr.bf16.gmra.mrb[20].mxu0 %v8007_v21  ;;  %4701 = vmatmul.mubr.bf16.gmra.mrb[20].mxu1 %v8007_v21  ;;  %v6805_v21 = vld [vmem:[%s7427_s13 + $0xa80] ss:$16 sps:$4 sm:$0xff]  }
 0x410   : > { %4610 = vmatpush1.bf16.msra.mxu0 %v6793_v38  ;;  %4637 = vmatprep.mubr.bf16.mxu0 %v8001_v14  ;;  %v4795_v38 = vsub.s32 6, %v4782_v29 }
 0x411   : > { %4716 = vmatpush1.bf16.msra.mxu1 %v6796_v63  ;;  %4743 = vmatprep.mubr.bf16.mxu1 %v8001_v14  ;;  %v6811_v14 = vld [vmem:[%s7427_s13 + $0xaa0] ss:$16 sps:$4 sm:$0xff]   ;;  %v4843_v63 = vsub.s32 5, %v4782_v29 }
 0x412   : > { %4611 = vmatprep.subr.bf16.mxu0 %v6801_v12  ;;  %4717 = vmatprep.subr.bf16.mxu1 %v6804_v6  ;;  %v4839_v12 = vsub.s32 3, %v4782_v29  ;;  %v4784_v6 = vrot.slane %v7475_v11, %v4783_v23 }
 0x414   : > { %4612 = vmatpush1.bf16.msra.mxu0 %v6799_v25  ;;  %v4792_v25 = vrot.slane %v7475_v11, %v4791_v24 }
 0x415   : > { %4718 = vmatpush1.bf16.msra.mxu1 %v6802_v60  ;;  %4613 = vmatprep.subr.bf16.mxu0 %v6807_v35  ;;  %v4836_v60 = vrot.slane %v7475_v11, %v4835_v51  ;;  %v4844_v35 = vrot.slane %v7475_v11, %v4843_v63 }
 0x416   : > { %4719 = vmatprep.subr.bf16.mxu1 %v6810_v36  ;;  %v4840_v36 = vrot.slane %v7475_v11, %v4839_v12 }
 0x418   : > { %4614 = vmatpush1.bf16.msra.mxu0 %v6805_v21  ;;  %v4804_v21 = vrot.slane %v4784_v6, %v4783_v23 }
 0x419   : > { %4720 = vmatpush1.bf16.msra.mxu1 %v6808_v39  ;;  %4615 = vmatprep.subr.bf16.mxu0 %v6813_v58  ;;  %v4812_v58 = vrot.slane %v4792_v25, %v4783_v23 }
 0x41a   : > { %4721 = vmatprep.subr.bf16.mxu1 %v6816_v28 }
 0x41c   : > { %4616 = vmatpush1.bf16.msra.mxu0 %v6811_v14  ;;  %v8211_v14 = vrot.slane %v4836_v60, %v4835_v51 }
 0x41d   : > { %4722 = vmatpush1.bf16.msra.mxu1 %v6814_v2  ;;  %4617 = vmatprep.subr.bf16.mxu0 %v6819_v59 }
 0x41e   : > { %4723 = vmatprep.subr.bf16.mxu1 %v6822_v30  ;;  %v8215_v30 = vrot.slane %v4844_v35, %v4835_v51 }
 0x420   : > { %4618 = vmatpush1.bf16.msra.mxu0 %v6817_v40  ;;  %v8217_v40 = vrot.slane %v4840_v36, %v4835_v51 }
 0x421   : > { %4724 = vmatpush1.bf16.msra.mxu1 %v6820_v41  ;;  %4619 = vmatprep.subr.bf16.mxu0 %v6825_v42 }
 0x422   : > { %4725 = vmatprep.subr.bf16.mxu1 %v6828_v43 }
 0x424   : > { %4620 = vmatpush1.bf16.msra.mxu0 %v6823_v31 }
 0x425   : > { %4726 = vmatpush1.bf16.msra.mxu1 %v6826_v32  ;;  %4621 = vmatprep.subr.bf16.mxu0 %v6831_v44 }
 0x426   : > { %4727 = vmatprep.subr.bf16.mxu1 %v6834_v45 }
 0x428   : > { %4622 = vmatpush1.bf16.msra.mxu0 %v6829_v33 }
 0x429   : > { %4728 = vmatpush1.bf16.msra.mxu1 %v6832_v34  ;;  %4623 = vmatprep.subr.bf16.mxu0 %v6837_v37 }
 0x42a   : > { %4729 = vmatprep.subr.bf16.mxu1 %v6840_v46 }
 0x42c   : > { %4624 = vmatpush1.bf16.msra.mxu0 %v6835_v48 }
 0x42d   : > { %4730 = vmatpush1.bf16.msra.mxu1 %v6838_v49  ;;  %4625 = vmatprep.subr.bf16.mxu0 %v6843_v52 }
 0x42e   : > { %4731 = vmatprep.subr.bf16.mxu1 %v6846_v53 }
 0x430   : > { %4626 = vmatpush1.bf16.msra.mxu0 %v6841_v54 }
 0x431   : > { %4732 = vmatpush1.bf16.msra.mxu1 %v6844_v55  ;;  %4627 = vmatprep.subr.bf16.mxu0 %v6849_v56 }
 0x432   : > { %4733 = vmatprep.subr.bf16.mxu1 %v6852_v57 }
 0x434   : > { %4628 = vmatpush1.bf16.msra.mxu0 %v6847_v61 }
 0x435   : > { %4734 = vmatpush1.bf16.msra.mxu1 %v6850_v62  ;;  %4629 = vmatprep.subr.bf16.mxu0 %v6855_v1 }
 0x436   : > { %4735 = vmatprep.subr.bf16.mxu1 %v6858_v3 }
 0x438   : > { %4630 = vmatpush1.bf16.msra.mxu0 %v6853_v5 }
 0x439   : > { %4736 = vmatpush1.bf16.msra.mxu1 %v6856_v4  ;;  %4631 = vmatprep.subr.bf16.mxu0 %v6861_v8 }
 0x43a   : > { %4737 = vmatprep.subr.bf16.mxu1 %v6864_v13 }
 0x43c   : > { %4632 = vmatpush1.bf16.msra.mxu0 %v6859_v7 }
 0x43d   : > { %4738 = vmatpush1.bf16.msra.mxu1 %v6862_v15  ;;  %4633 = vmatprep.subr.bf16.mxu0 %v6867_v16 }
 0x43e   : > { %4739 = vmatprep.subr.bf16.mxu1 %v6870_v17 }
 0x440   : > { %4634 = vmatpush1.bf16.msra.mxu0 %v6865_v18 }
 0x441   : > { %4740 = vmatpush1.bf16.msra.mxu1 %v6868_v19  ;;  %4635 = vmatprep.subr.bf16.mxu0 %v6873_v10 }
 0x442   : > { %4741 = vmatprep.subr.bf16.mxu1 %v6876_v20 }
 0x444   : > { %4636 = vmatpush1.bf16.msra.mxu0 %v6871_v22 }
 0x445   : > { %4742 = vmatpush1.bf16.msra.mxu1 %v6874_v27 }
 0x447   : > { %4638 = vmatmul.mubr.bf16.vlgmr.msra.gmra.mrb[16].mxu0 %v7999_v9 }
 0x448   : > { %4744 = vmatmul.mubr.bf16.vlgmr.msra.gmra.mrb[16].mxu1 %v7999_v9  ;;  %4647 = vmatprep.mubr.bf16.mxu0 %v8017_v0  ;;  %v4847_v9 = vsub.s32 7, %v4782_v29 }
 0x449   : > { %4753 = vmatprep.mubr.bf16.mxu1 %v8017_v0  ;;  %v4788_v0 = vrot.slane %v7475_v11, %v4787_v50 }
 0x44a   : > { %v4848_v39 = vrot.slane %v7475_v11, %v4847_v9 }
 0x44b   : > { %v4808_v28 = vrot.slane %v4788_v0, %v4783_v23 }
 0x44c   : > { %v8219_v31 = vrot.slane %v4848_v39, %v4835_v51 }
 0x44f   : > { %4648 = vmatmul.mubr.bf16.gmra.mrb[20].mxu0 %v8015_v26 }
 0x450   : > { %4754 = vmatmul.mubr.bf16.gmra.mrb[20].mxu1 %v8015_v26  ;;  %v4796_v26 = vrot.slane %v7475_v11, %v4795_v38 }
 0x452   : > { %v8213_v2 = vrot.slane %v4796_v26, %v4783_v23 }
 0x51a   : > { %v4639_v59 = vpop.f32.mrb[16].mxu0 }
 0x51b   : > { %v4817_v41 = vmul.f32 %v4804_v21, %v4639_v59  ;;  %v4745_v42 = vpop.f32.mrb[16].mxu1  ;;  %v4641_v43 = vpop.f32.mrb[17].mxu0 }
 0x51c   : > { %v4819_v32 = vmul.f32 %v4812_v58, %v4745_v42  ;;  %v4818_v44 = vmul.f32 %v4808_v28, %v4641_v43  ;;  %v4747_v45 = vpop.f32.mrb[17].mxu1  ;;  %v4643_v11 = vpop.f32.mrb[18].mxu0 }
 0x51d   : > { %v4869_v33 = vadd.f32 %v8211_v14, %v4817_v41  ;;  %v4820_v34 = vmul.f32 %v8213_v2, %v4747_v45  ;;  %v4821_v37 = vmul.f32 %v4804_v21, %v4643_v11  ;;  %v4749_v46 = vpop.f32.mrb[18].mxu1  ;;  %v4645_v48 = vpop.f32.mrb[19].mxu0 }
 0x51e   : > { %v4871_v49 = vadd.f32 %v8215_v30, %v4819_v32  ;;  %v4870_v52 = vadd.f32 %v8217_v40, %v4818_v44  ;;  %v4823_v53 = vmul.f32 %v4812_v58, %v4749_v46  ;;  %v4822_v54 = vmul.f32 %v4808_v28, %v4645_v48  ;;  %v4751_v55 = vpop.f32.mrb[19].mxu1 }
 0x51f   : > { %v4885_v56 = vmax.f32 %v4869_v33, 0.0  ;;  %v4872_v57 = vadd.f32 %v8219_v31, %v4820_v34  ;;  %v4873_v61 = vadd.f32 %v8211_v14, %v4821_v37  ;;  %v4824_v62 = vmul.f32 %v8213_v2, %v4751_v55 }
 0x520   : > { %v4887_v1 = vmax.f32 %v4871_v49, 0.0  ;;  %v4886_v3 = vmax.f32 %v4870_v52, 0.0  ;;  %v4875_v5 = vadd.f32 %v8215_v30, %v4823_v53  ;;  %v4874_v4 = vadd.f32 %v8217_v40, %v4822_v54 }
 0x521   : > { %4901 = vst [vmem:[%s7443_s15] sm:$0xff] %v4885_v56  ;;  %v4888_v8 = vmax.f32 %v4872_v57, 0.0  ;;  %v4889_v13 = vmax.f32 %v4873_v61, 0.0  ;;  %v4876_v7 = vadd.f32 %v8219_v31, %v4824_v62 }
 0x522   : > { %4903 = vst [vmem:[%s7443_s15 + $0x10] sm:$0xff] %v4887_v1  ;;  %4902 = vst [vmem:[%s7443_s15 + $0x8] sm:$0xff] %v4886_v3  ;;  %v4891_v15 = vmax.f32 %v4875_v5, 0.0  ;;  %v4890_v16 = vmax.f32 %v4874_v4, 0.0  ;;  %v4649_v17 = vpop.f32.mrb[20].mxu0 }
 0x523   : > { %4904 = vst [vmem:[%s7443_s15 + $0x18] sm:$0xff] %v4888_v8  ;;  %4905 = vst [vmem:[%s7443_s15 + $0x20] sm:$0xff] %v4889_v13  ;;  %v4892_v18 = vmax.f32 %v4876_v7, 0.0  ;;  %v4825_v19 = vmul.f32 %v4804_v21, %v4649_v17  ;;  %v4755_v10 = vpop.f32.mrb[20].mxu1  ;;  %v4651_v20 = vpop.f32.mrb[21].mxu0 }
 0x524   : > { %4907 = vst [vmem:[%s7443_s15 + $0x30] sm:$0xff] %v4891_v15  ;;  %4906 = vst [vmem:[%s7443_s15 + $0x28] sm:$0xff] %v4890_v16  ;;  %v4827_v22 = vmul.f32 %v4812_v58, %v4755_v10  ;;  %v4826_v27 = vmul.f32 %v4808_v28, %v4651_v20  ;;  %v4757_v47 = vpop.f32.mrb[21].mxu1  ;;  %v4653_v29 = vpop.f32.mrb[22].mxu0 }
 0x525   : > { %4908 = vst [vmem:[%s7443_s15 + $0x38] sm:$0xff] %v4892_v18  ;;  %v4877_v23 = vadd.f32 %v8211_v14, %v4825_v19  ;;  %v4828_v24 = vmul.f32 %v8213_v2, %v4757_v47  ;;  %v4829_v50 = vmul.f32 %v4804_v21, %v4653_v29  ;;  %v4759_v51 = vpop.f32.mrb[22].mxu1  ;;  %v4655_v38 = vpop.f32.mrb[23].mxu0 }
 0x526   : > { %v4879_v63 = vadd.f32 %v8215_v30, %v4827_v22  ;;  %v4878_v12 = vadd.f32 %v8217_v40, %v4826_v27  ;;  %v4831_v6 = vmul.f32 %v4812_v58, %v4759_v51  ;;  %v4830_v9 = vmul.f32 %v4808_v28, %v4655_v38  ;;  %v4761_v25 = vpop.f32.mrb[23].mxu1 }
 0x527   : > { %v4893_v0 = vmax.f32 %v4877_v23, 0.0  ;;  %v4880_v60 = vadd.f32 %v8219_v31, %v4828_v24  ;;  %v4881_v26 = vadd.f32 %v8211_v14, %v4829_v50  ;;  %v4832_v35 = vmul.f32 %v8213_v2, %v4761_v25 }
 0x528   : > { %v4895_v36 = vmax.f32 %v4879_v63, 0.0  ;;  %v4894_v21 = vmax.f32 %v4878_v12, 0.0  ;;  %v4883_v39 = vadd.f32 %v8215_v30, %v4831_v6  ;;  %v4882_v58 = vadd.f32 %v8217_v40, %v4830_v9 }
 0x529   : > { %4909 = vst [vmem:[%s7443_s15 + $0x40] sm:$0xff] %v4893_v0  ;;  %v4896_v28 = vmax.f32 %v4880_v60, 0.0  ;;  %v4897_v59 = vmax.f32 %v4881_v26, 0.0  ;;  %v4884_v41 = vadd.f32 %v8219_v31, %v4832_v35 }
 0x52a   : > { %4911 = vst [vmem:[%s7443_s15 + $0x50] sm:$0xff] %v4895_v36  ;;  %4910 = vst [vmem:[%s7443_s15 + $0x48] sm:$0xff] %v4894_v21  ;;  %v4899_v42 = vmax.f32 %v4883_v39, 0.0  ;;  %v4898_v14 = vmax.f32 %v4882_v58, 0.0 }
 0x52b   : > { %4912 = vst [vmem:[%s7443_s15 + $0x58] sm:$0xff] %v4896_v28  ;;  %4913 = vst [vmem:[%s7443_s15 + $0x60] sm:$0xff] %v4897_v59  ;;  %v4900_v2 = vmax.f32 %v4884_v41, 0.0 }
 0x52c   : > { %4915 = vst [vmem:[%s7443_s15 + $0x70] sm:$0xff] %v4899_v42  ;;  %4914 = vst [vmem:[%s7443_s15 + $0x68] sm:$0xff] %v4898_v14 }
 0x52d   : > { %4916 = vst [vmem:[%s7443_s15 + $0x78] sm:$0xff] %v4900_v2 }
 0x52e PF: > { %s21_s6 = sadd.s32 1, %s7089_s6   ;;  %s8364_s1 = sld [smem:[#allocation10_spill]] }
 0x52f   : > { %p8258_p7 = scmp.ge.s32.totalorder %s21_s6, 11   ;;  %s8365_s23 = sld [smem:[#allocation14_spill]] }
 0x530   : > { %s8366_s28 = sld [smem:[#allocation15_spill]]  ;;  %s8367_s15 = sld [smem:[#allocation13_spill]] }
 0x531   : > { %s8368_s18 = smov %s7041_s19  ;;  %s8369_s19 = smov %s7045_s20 }
 0x532   : > { %s8370_s20 = smov %s7371_s9  ;;  %s8371_s21 = smov %s7053_s22 }
 0x533   : > { %s8373_s24 = smov %s7065_s25  ;;  %s8374_s25 = smov %s7069_s26 }
 0x534   : > { %s8372_s22 = smov %s8364_s1  ;;  %s8376_s27 = smov %s7081_s29 }
 0x535   : > { %s8378_s29 = smov %s8381_s8  ;;  %20 = sbr.rel (!%p8258_p7) target bundleno = 15 (0xf), region = 117 }
 0x536   : > { %s8375_s26 = smov %s8366_s28  ;;  %s8377_s28 = smov %s7085_s30 }
 0x537   : > { %s8379_s30 = smov %s8367_s15 }
 0x53c   :  { %4938 = vsyncpa [#allocation3], 1 }
 0x53d   :  { %4940 = vsyncpa [#allocation3 + $0x1], 1 }
 0x53e   :  { %4941 = vsyncpa [#allocation5], 1 }
 0x53f   :  { %4943 = vsyncpa [#allocation5 + $0x1], 1 }

</bundles_post_ra>
